<compile_context>
chip_gen: v5e
topology: v5e:2x2
jax: 0.10.0
libtpu: 0.0.40
codegen_flags: <defaults>
</compile_context>

<pallas_src>
import functools
import math

import jax
import jax.numpy as jnp
from jax.experimental import pallas as pl
from jax.experimental.pallas import tpu as pltpu


# --------------------------------------------------------------------------------------
# Stage 1: hoisted input convolution (one big lane-dense matmul over all steps/batches)
# --------------------------------------------------------------------------------------
def _preact_kernel(xp_ref, wx_ref, b_ref, out_ref, *, pad):
    """pre_x = conv1d(x, Wx) + b for a block of steps.

      xp_ref : (S_blk, B, Wp, Cin)   width-padded input (bf16)
      wx_ref : (K*Cin, 4*Ch)         fused, tap-merged input-conv weights (bf16)
      b_ref  : (1, 4*Ch)             fused bias (f32)
      out_ref: (S_blk, B, W, 4*Ch)   pre-activations (f32)
    """
    S_blk, B, Wp, Cin = xp_ref.shape
    KCin, Ch4 = wx_ref.shape
    K = KCin // Cin
    W = Wp - 2 * pad

    xp = xp_ref[...]
    # im2col along the lane axis: [..., w, k*Cin + c] = xp[..., w + k, c]
    x_cols = jnp.concatenate([xp[:, :, k:k + W, :] for k in range(K)], axis=-1)
    acc = jnp.dot(x_cols.reshape(S_blk * B * W, KCin), wx_ref[...],
                  preferred_element_type=jnp.float32)
    out_ref[...] = (acc + b_ref[...]).reshape(S_blk, B, W, Ch4)


def _preact(xp, wx_flat, b, *, width, pad):
    """Run the hoisted x-conv for all steps.  xp: (S, B, Wp, Cin) bf16 -> (S, B, W, 4*Ch) f32."""
    S, B, Wp, Cin = xp.shape
    KCin, Ch4 = wx_flat.shape

    # Pick the largest step-chunk whose (double-buffered) in+out blocks stay well under
    # the scoped-VMEM default (v7x: 32 MiB scoped / 64 MiB physical).
    budget = 8 << 20
    s_chunk = 1
    for d in range(1, S + 1):
        if S % d:
            continue
        blk_bytes = d * B * (Wp * Cin * 2 + width * Ch4 * 4)
        if 2 * blk_bytes <= budget:
            s_chunk = d

    return pl.pallas_call(
        functools.partial(_preact_kernel, pad=pad),
        grid=(S // s_chunk,),
        in_specs=[
            pl.BlockSpec((s_chunk, B, Wp, Cin), lambda s: (s, 0, 0, 0)),
            pl.BlockSpec((KCin, Ch4), lambda s: (0, 0)),        # resident weights
            pl.BlockSpec((1, Ch4), lambda s: (0, 0)),
        ],
        out_specs=pl.BlockSpec((s_chunk, B, width, Ch4), lambda s: (s, 0, 0, 0)),
        out_shape=jax.ShapeDtypeStruct((S, B, width, Ch4), jnp.float32),
        compiler_params=pltpu.CompilerParams(dimension_semantics=("parallel",)),
    )(xp, wx_flat, b)


# --------------------------------------------------------------------------------------
# Stage 2: the time recurrence (hidden conv + gates), h/c resident in VMEM
# --------------------------------------------------------------------------------------
def _convlstm_recurrent_kernel(px_ref, wh_ref, wc_if_ref, wc_o_ref,
                               h_seq_ref, c_last_ref,
                               hp_scr, c_scr, *, pad, x_per_step, t_chunk):
    """One ConvLSTM layer; time runs along grid axis 1 ("arbitrary"), T_CHUNK steps/iter.

      px_ref    : (T_CHUNK or 1, B_TILE, W, 4*Ch) f32  precomputed x-conv + bias
      wh_ref    : (K*Ch, 4*Ch)  bf16  fused hidden-conv weights, taps merged, gate order i,f,c,o
      wc_if_ref : (W, 2*Ch)     f32   packed peephole weights [Wci | Wcf]
      wc_o_ref  : (W, Ch)       f32   peephole weight Wco
      h_seq_ref : (T_CHUNK, B_TILE, W, Ch) bf16  per-step hidden outputs
      c_last_ref: (B_TILE, W, Ch) f32  resident output -> cell state after the last step
      hp_scr    : (B_TILE, Wp, Ch) bf16  width-padded hidden state carried across steps
      c_scr     : (B_TILE, W, Ch)  f32   cell state carried across steps
    """
    KCh, Ch4 = wh_ref.shape
    Ch = Ch4 // 4
    K = KCh // Ch
    BT, Wp, _ = hp_scr.shape
    W = Wp - 2 * pad

    # Zero h / c at the first time-chunk of every batch block (PyTorch init_hidden).
    @pl.when(pl.program_id(1) == 0)
    def _():
        hp_scr[...] = jnp.zeros_like(hp_scr)     # halo rows stay zero forever
        c_scr[...] = jnp.zeros_like(c_scr)

    wh = wh_ref[...]                             # resident weights, loaded once per chunk
    wc_if = wc_if_ref[...]
    wc_o = wc_o_ref[...]

    for t in range(t_chunk):                     # static unroll over the time chunk
        px = px_ref[t] if x_per_step else px_ref[0]           # (BT, W, 4*Ch) f32

        # ---- hidden conv: K taps merged into one (BT*W, K*Ch) x (K*Ch, 4*Ch) matmul ----
        hp = hp_scr[...]                                       # (BT, Wp, Ch) bf16
        h_cols = jnp.concatenate([hp[:, k:k + W, :] for k in range(K)], axis=-1)
        acc = px + jnp.dot(h_cols.reshape(BT * W, KCh), wh,
                           preferred_element_type=jnp.float32).reshape(BT, W, Ch4)

        # ---- gates / state update in f32 (v5e has no bf16 VPU/EUP) ----
        # i/f peephole + sigmoid done on the packed 2*Ch lane range in one launch.
        # TODO(synk): on v6e/v7x the sigmoid/tanh could run in bf16 if EUP becomes binding.
        c = c_scr[...]
        g_if = jax.nn.sigmoid(acc[..., :2 * Ch]
                              + jnp.concatenate([c, c], axis=-1) * wc_if)
        ci = g_if[..., :Ch]
        cf = g_if[..., Ch:]
        c_new = cf * c + ci * jnp.tanh(acc[..., 2 * Ch:3 * Ch])
        co = jax.nn.sigmoid(acc[..., 3 * Ch:] + c_new * wc_o)
        h_new = (co * jnp.tanh(c_new)).astype(jnp.bfloat16)

        hp_scr[:, pad:pad + W, :] = h_new        # interior rows only; halos remain zero
        c_scr[...] = c_new
        h_seq_ref[t] = h_new                     # chunked bf16 writeback

    # Cell state only needs to reach HBM after the final step.
    @pl.when(pl.program_id(1) == pl.num_programs(1) - 1)
    def _():
        c_last_ref[...] = c_scr[...]


def _pick_batch_tile(batch):
    """Largest divisor of `batch` that still leaves >=2 'parallel' blocks (v7x: 2 TCs)."""
    cap = batch if batch < 2 else (batch + 1) // 2
    for d in range(cap, 0, -1):
        if batch % d == 0:
            return d
    return 1


def _pick_time_chunk(num_steps, b_tile, width, ch, x_per_step, budget_bytes=8 << 20):
    """Largest divisor of num_steps (<=32) whose blocks fit a conservative VMEM budget."""
    best = 1
    for d in range(1, num_steps + 1):
        if num_steps % d or d > 32:
            continue
        px_bytes = (d if x_per_step else 1) * b_tile * width * (4 * ch) * 4
        h_bytes = d * b_tile * width * ch * 2
        if 2 * (px_bytes + h_bytes) <= budget_bytes:   # double-buffered blocks
            best = d
    return best


def convlstm_layer(x_in, p, *, num_steps, kernel_size):
    """Run one ConvLSTM layer for all time steps (2 pallas_calls: preact + recurrence).

    x_in : (S_in, B, W, Cin) channels-last, UNPADDED layer input.
           S_in == 1 means the same input is re-fed at every step (first layer).
    Returns:
      h_seq  : (num_steps, B, W, Ch) bf16 per-step hidden output
      c_last : (B, W, Ch) f32 cell state after the last step
    """
    # TODO(synk): even kernel_size changes PyTorch Conv1d output width; only odd K here.
    assert kernel_size % 2 == 1, "only odd kernel_size matches the reference module"
    pad = (kernel_size - 1) // 2

    S_in, B, W, Cin = x_in.shape
    Ch = p['wc_o'].shape[-1]
    Ch4 = 4 * Ch
    K = kernel_size
    assert S_in in (1, num_steps)
    assert p['wx'].shape == (K * Cin, Ch4) and p['wh'].shape == (K * Ch, Ch4)

    # ---- stage 1: hoisted input convolution + bias, one big matmul for all steps ----
    xp = jnp.pad(x_in.astype(jnp.bfloat16), ((0, 0), (0, 0), (pad, pad), (0, 0)))
    pre_x = _preact(xp, p['wx'], p['b'], width=W, pad=pad)     # (S_in, B, W, 4*Ch) f32

    # ---- stage 2: time recurrence ----
    x_per_step = S_in != 1
    b_tile = _pick_batch_tile(B)
    t_chunk = _pick_time_chunk(num_steps, b_tile, W, Ch, x_per_step)
    Wp = W + 2 * pad

    px_spec = (pl.BlockSpec((t_chunk, b_tile, W, Ch4), lambda bp, tc: (tc, bp, 0, 0))
               if x_per_step else
               pl.BlockSpec((1, b_tile, W, Ch4), lambda bp, tc: (0, bp, 0, 0)))

    h_seq, c_last = pl.pallas_call(
        functools.partial(_convlstm_recurrent_kernel, pad=pad,
                          x_per_step=x_per_step, t_chunk=t_chunk),
        grid=(B // b_tile, num_steps // t_chunk),   # (parallel batch, sequential time)
        in_specs=[
            px_spec,
            pl.BlockSpec((K * Ch, Ch4), lambda bp, tc: (0, 0)),     # resident weights
            pl.BlockSpec((W, 2 * Ch), lambda bp, tc: (0, 0)),
            pl.BlockSpec((W, Ch), lambda bp, tc: (0, 0)),
        ],
        out_specs=(
            pl.BlockSpec((t_chunk, b_tile, W, Ch), lambda bp, tc: (tc, bp, 0, 0)),
            pl.BlockSpec((b_tile, W, Ch), lambda bp, tc: (bp, 0, 0)),  # resident output
        ),
        out_shape=(
            jax.ShapeDtypeStruct((num_steps, B, W, Ch), jnp.bfloat16),
            jax.ShapeDtypeStruct((B, W, Ch), jnp.float32),
        ),
        scratch_shapes=[
            pltpu.VMEM((b_tile, Wp, Ch), jnp.bfloat16),   # width-padded hidden state
            pltpu.VMEM((b_tile, W, Ch), jnp.float32),     # cell state
        ],
        compiler_params=pltpu.CompilerParams(
            dimension_semantics=("parallel", "arbitrary")),
    )(pre_x, p['wh'], p['wc_if'], p['wc_o'])
    return h_seq, c_last


def convlstm_forward(x, params, kernel_size, step, effective_step):
    """Mirrors ConvLSTM.forward. x: (B, Cin, W) (PyTorch NCW layout)."""
    B, _, W = x.shape

    layer_in = jnp.transpose(x, (0, 2, 1))[None]     # (1, B, W, Cin) channels-last
    h_seq = c_last = None
    for p in params:
        h_seq, c_last = convlstm_layer(layer_in, p, num_steps=step,
                                       kernel_size=kernel_size)
        layer_in = h_seq                             # (step, B, W, Ch) bf16

    # Last layer outputs, back to PyTorch NCW (and f32).
    h_ncw = jnp.transpose(h_seq.astype(jnp.float32), (0, 1, 3, 2))   # (S, B, Ch, W)
    outputs = [h_ncw[s] for s in range(step) if s in effective_step]
    h_last = h_ncw[step - 1]
    c_last_ncw = jnp.transpose(c_last, (0, 2, 1))
    return outputs, (h_last, c_last_ncw)


# --------------------------------------------------------------------------------------
# Parameter init (mirrors the PyTorch module) and a pure-JAX reference
# --------------------------------------------------------------------------------------
def init_convlstm_params(key, input_channels, hidden_channels, kernel_size, width,
                         peephole_random=False):
    """Deterministic init mirroring the PyTorch module, packed into the fused layouts.

    Per layer (gate order i, f, c, o along the fused output-channel axis):
      Wx*: Conv1d(cin, ch, K, bias=True)  -> wx (K*cin, 4*ch) bf16, b (1, 4*ch) f32
      Wh*: Conv1d(ch,  ch, K, bias=False) -> wh (K*ch, 4*ch)  bf16
      Wci/Wcf/Wco: (1, ch, width)         -> wc_if (width, 2*ch), wc_o (width, ch) f32
    PyTorch's init_hidden zero-inits the peepholes; peephole_random=True draws small
    random values so the c*Wci/Wcf/Wco path is numerically exercised by the self-check.
    """
    in_chs = [input_channels] + list(hidden_channels)
    params = []
    for li, ch in enumerate(hidden_channels):
        assert ch % 2 == 0                            # mirrors ConvLSTMCell assert
        cin = in_chs[li]
        bx = 1.0 / math.sqrt(cin * kernel_size)
        bh = 1.0 / math.sqrt(ch * kernel_size)
        gx, gh, gb = [], [], []
        for _gate in range(4):                        # i, f, c, o
            key, kx, kh, kb = jax.random.split(key, 4)
            # PyTorch Conv1d weight (out_ch, in_ch, K) -> kernel layout (K, in_ch, out_ch)
            wxg = jax.random.uniform(kx, (ch, cin, kernel_size), jnp.float32, -bx, bx)
            whg = jax.random.uniform(kh, (ch, ch, kernel_size), jnp.float32, -bh, bh)
            bxg = jax.random.uniform(kb, (ch,), jnp.float32, -bx, bx)
            gx.append(jnp.transpose(wxg, (2, 1, 0)))
            gh.append(jnp.transpose(whg, (2, 1, 0)))
            gb.append(bxg)
        wx = jnp.concatenate(gx, axis=-1)             # (K, cin, 4*ch)
        wh = jnp.concatenate(gh, axis=-1)             # (K, ch, 4*ch)
        if peephole_random:
            key, kc = jax.random.split(key)
            wc = jax.random.uniform(kc, (3, width, ch), jnp.float32, -0.1, 0.1)
        else:
            wc = jnp.zeros((3, width, ch), jnp.float32)
        params.append(dict(
            wx=wx.reshape(kernel_size * cin, 4 * ch).astype(jnp.bfloat16),
            wh=wh.reshape(kernel_size * ch, 4 * ch).astype(jnp.bfloat16),
            b=jnp.concatenate(gb, axis=-1)[None, :],
            wc_if=jnp.concatenate([wc[0], wc[1]], axis=-1),   # (W, 2*ch)
            wc_o=wc[2],                                       # (W, ch)
        ))
    return params


def _ref_forward(x, params, kernel_size, step, effective_step):
    """Pure-JAX (plain XLA) reference: literal step-major PyTorch loop, f32 math."""
    pad = (kernel_size - 1) // 2
    B, _, W = x.shape
    xt = jnp.transpose(x, (0, 2, 1))

    def conv(z, w_flat):
        zp = jnp.pad(z, ((0, 0), (pad, pad), (0, 0)))
        zc = jnp.concatenate([zp[:, k:k + W, :] for k in range(kernel_size)], axis=-1)
        return jnp.einsum('bwc,cd->bwd', zc, w_flat.astype(jnp.float32))

    def cell(xin, h, c, p):
        ch_dim = p['wc_o'].shape[-1]
        acc = conv(xin, p['wx']) + p['b'] + conv(h, p['wh'])
        pi, pf, pc, po = jnp.split(acc, 4, axis=-1)
        wci = p['wc_if'][:, :ch_dim]
        wcf = p['wc_if'][:, ch_dim:]
        ci = jax.nn.sigmoid(pi + c * wci)
        cf = jax.nn.sigmoid(pf + c * wcf)
        cc = cf * c + ci * jnp.tanh(pc)
        co = jax.nn.sigmoid(po + cc * p['wc_o'])
        return co * jnp.tanh(cc), cc

    states = [None] * len(params)
    outs = []
    for s in range(step):
        xin = xt
        for i, p in enumerate(params):
            if s == 0:
                chd = p['wc_o'].shape[-1]
                states[i] = (jnp.zeros((B, W, chd), jnp.float32),
                             jnp.zeros((B, W, chd), jnp.float32))
            h, c = states[i]
            xin, c = cell(xin, h, c, p)
            states[i] = (xin, c)
        if s in effective_step:
            outs.append(xin)
    to_ncw = lambda t: jnp.transpose(t, (0, 2, 1))
    return ([to_ncw(o) for o in outs],
            (to_ncw(states[-1][0]), to_ncw(states[-1][1])))


if __name__ == "__main__":
    # Small shapes consistent with the module's forward (Conv1d input is (B, Cin, W)).
    B, Cin, W = 2, 4, 16
    hidden_channels = [32, 32]         # 4*Ch = 128 -> lane-dense fused gate matmuls
    kernel_size = 3
    step = 8                           # longer sequence than before to stress recurrence
    effective_step = [2, 7]

    key = jax.random.PRNGKey(0)
    key, xkey = jax.random.split(key)
    x = jax.random.normal(xkey, (B, Cin, W), jnp.float32)
    # peephole_random=True exercises the c*Wci/Wcf/Wco path (PyTorch inits them to 0).
    params = init_convlstm_params(key, Cin, hidden_channels, kernel_size, W,
                                  peephole_random=True)

    fwd = jax.jit(functools.partial(convlstm_forward, kernel_size=kernel_size,
                                    step=step, effective_step=tuple(effective_step)))
    outputs, (h_last, c_last) = fwd(x, params)
    jax.block_until_ready((outputs, h_last, c_last))

    assert h_last.shape == (B, hidden_channels[-1], W)
    assert c_last.shape == (B, hidden_channels[-1], W)
    assert len(outputs) == len(effective_step)

    # Numerical check against a pure-JAX f32 reference (kernel carries h in bf16 and uses
    # bf16 MXU operands -> moderate tolerance, tightened vs the previous version).
    ref_outputs, (ref_h, ref_c) = _ref_forward(x, params, kernel_size, step,
                                               effective_step)
    max_err = max(
        float(jnp.max(jnp.abs(h_last - ref_h))),
        float(jnp.max(jnp.abs(c_last - ref_c))),
        max(float(jnp.max(jnp.abs(o - r))) for o, r in zip(outputs, ref_outputs)),
    )
    assert max_err < 5e-2, f"mismatch vs reference: {max_err}"

    print("KERNEL_OK")
</pallas_src>

<mosaic_0001>
module attributes {stable_mosaic.version = 11 : i64} {
  func.func @_preact_kernel(%arg0: i32, %arg1: memref<1x2x18x4xbf16, #tpu.memory_space<vmem>>, %arg2: memref<12x128xbf16, #tpu.memory_space<vmem>>, %arg3: memref<1x128xf32, #tpu.memory_space<vmem>>, %arg4: memref<1x2x16x128xf32, #tpu.memory_space<vmem>>) attributes {dimension_semantics = [#tpu.dimension_semantics<parallel>], iteration_bounds = array<i64: 1>, scalar_prefetch = 0 : i64, scratch_operands = 0 : i64, tpu.core_type = #tpu.core_type<tc>, window_params = [{transform_indices = @transform_0, window_bounds = array<i64: 1, 2, 18, 4>}, {pipeline_mode = #tpu.pipeline_mode<synchronous>, transform_indices = @transform_1, window_bounds = array<i64: 12, 128>}, {pipeline_mode = #tpu.pipeline_mode<synchronous>, transform_indices = @transform_2, window_bounds = array<i64: 1, 128>}, {transform_indices = @transform_3, window_bounds = array<i64: 1, 2, 16, 128>}]} {
    %c0 = arith.constant 0 : index
    %c0_0 = arith.constant 0 : index
    %c0_1 = arith.constant 0 : index
    %c0_2 = arith.constant 0 : index
    %0 = vector.load %arg1[%c0, %c0_0, %c0_1, %c0_2] : memref<1x2x18x4xbf16, #tpu.memory_space<vmem>>, vector<1x2x18x4xbf16>
    %1 = vector.extract_strided_slice %0 {offsets = [0, 0, 0, 0], sizes = [1, 2, 16, 4], strides = [1, 1, 1, 1]} : vector<1x2x18x4xbf16> to vector<1x2x16x4xbf16>
    %2 = vector.extract_strided_slice %0 {offsets = [0, 0, 1, 0], sizes = [1, 2, 16, 4], strides = [1, 1, 1, 1]} : vector<1x2x18x4xbf16> to vector<1x2x16x4xbf16>
    %3 = vector.extract_strided_slice %0 {offsets = [0, 0, 2, 0], sizes = [1, 2, 16, 4], strides = [1, 1, 1, 1]} : vector<1x2x18x4xbf16> to vector<1x2x16x4xbf16>
    %4 = tpu.concatenate %1, %2, %3 in 3 : vector<1x2x16x4xbf16>, vector<1x2x16x4xbf16>, vector<1x2x16x4xbf16> -> vector<1x2x16x12xbf16>
    %5 = vector.shape_cast %4 : vector<1x2x16x12xbf16> to vector<32x12xbf16>
    %c0_3 = arith.constant 0 : index
    %c0_4 = arith.constant 0 : index
    %6 = vector.load %arg2[%c0_3, %c0_4] : memref<12x128xbf16, #tpu.memory_space<vmem>>, vector<12x128xbf16>
    %cst = arith.constant dense<0.000000e+00> : vector<32x128xf32>
    %7 = tpu.matmul %5, %6, %cst {dimension_numbers = #tpu.dot_dimension_numbers<[1], [0], [0], [1], [0, 0, 1, 1], [], []>} : vector<32x12xbf16>, vector<12x128xbf16>, vector<32x128xf32> -> vector<32x128xf32>
    %c0_5 = arith.constant 0 : index
    %c0_6 = arith.constant 0 : index
    %8 = vector.load %arg3[%c0_5, %c0_6] : memref<1x128xf32, #tpu.memory_space<vmem>>, vector<1x128xf32>
    %9 = vector.broadcast %8 : vector<1x128xf32> to vector<32x128xf32>
    %10 = arith.addf %7, %9 : vector<32x128xf32>
    %11 = vector.shape_cast %10 : vector<32x128xf32> to vector<1x2x16x128xf32>
    %c0_7 = arith.constant 0 : index
    %c0_8 = arith.constant 0 : index
    %c0_9 = arith.constant 0 : index
    %c0_10 = arith.constant 0 : index
    %12 = vector.load %arg4[%c0_7, %c0_8, %c0_9, %c0_10] : memref<1x2x16x128xf32, #tpu.memory_space<vmem>>, vector<1x2x16x128xf32>
    tpu.vector_store %arg4[%c0_7, %c0_8, %c0_9, %c0_10], %11 {strides = array<i32>} : memref<1x2x16x128xf32, #tpu.memory_space<vmem>>, vector<1x2x16x128xf32>,
    return
  }
  func.func @transform_0(%arg0: i32) -> (i32, i32, i32, i32) {
    %c0_i32 = arith.constant 0 : i32
    %c0_i32_0 = arith.constant 0 : i32
    %c0_i32_1 = arith.constant 0 : i32
    %c0_i32_2 = arith.constant 0 : i32
    return %arg0, %c0_i32, %c0_i32_0, %c0_i32_1 : i32, i32, i32, i32
  }
  func.func @transform_1(%arg0: i32) -> (i32, i32) {
    %c0_i32 = arith.constant 0 : i32
    %c0_i32_0 = arith.constant 0 : i32
    %c0_i32_1 = arith.constant 0 : i32
    return %c0_i32, %c0_i32_0 : i32, i32
  }
  func.func @transform_2(%arg0: i32) -> (i32, i32) {
    %c0_i32 = arith.constant 0 : i32
    %c0_i32_0 = arith.constant 0 : i32
    %c0_i32_1 = arith.constant 0 : i32
    return %c0_i32, %c0_i32_0 : i32, i32
  }
  func.func @transform_3(%arg0: i32) -> (i32, i32, i32, i32) {
    %c0_i32 = arith.constant 0 : i32
    %c0_i32_0 = arith.constant 0 : i32
    %c0_i32_1 = arith.constant 0 : i32
    %c0_i32_2 = arith.constant 0 : i32
    return %arg0, %c0_i32, %c0_i32_0, %c0_i32_1 : i32, i32, i32, i32
  }
}

module attributes {stable_mosaic.version = 11 : i64} {
  func.func @_preact_kernel(%arg0: i32, %arg1: memref<8x2x18x32xbf16, #tpu.memory_space<vmem>>, %arg2: memref<96x128xbf16, #tpu.memory_space<vmem>>, %arg3: memref<1x128xf32, #tpu.memory_space<vmem>>, %arg4: memref<8x2x16x128xf32, #tpu.memory_space<vmem>>) attributes {dimension_semantics = [#tpu.dimension_semantics<parallel>], iteration_bounds = array<i64: 1>, scalar_prefetch = 0 : i64, scratch_operands = 0 : i64, tpu.core_type = #tpu.core_type<tc>, window_params = [{transform_indices = @transform_0, window_bounds = array<i64: 8, 2, 18, 32>}, {pipeline_mode = #tpu.pipeline_mode<synchronous>, transform_indices = @transform_1, window_bounds = array<i64: 96, 128>}, {pipeline_mode = #tpu.pipeline_mode<synchronous>, transform_indices = @transform_2, window_bounds = array<i64: 1, 128>}, {transform_indices = @transform_3, window_bounds = array<i64: 8, 2, 16, 128>}]} {
    %c0 = arith.constant 0 : index
    %c0_0 = arith.constant 0 : index
    %c0_1 = arith.constant 0 : index
    %c0_2 = arith.constant 0 : index
    %0 = vector.load %arg1[%c0, %c0_0, %c0_1, %c0_2] : memref<8x2x18x32xbf16, #tpu.memory_space<vmem>>, vector<8x2x18x32xbf16>
    %1 = vector.extract_strided_slice %0 {offsets = [0, 0, 0, 0], sizes = [8, 2, 16, 32], strides = [1, 1, 1, 1]} : vector<8x2x18x32xbf16> to vector<8x2x16x32xbf16>
    %2 = vector.extract_strided_slice %0 {offsets = [0, 0, 1, 0], sizes = [8, 2, 16, 32], strides = [1, 1, 1, 1]} : vector<8x2x18x32xbf16> to vector<8x2x16x32xbf16>
    %3 = vector.extract_strided_slice %0 {offsets = [0, 0, 2, 0], sizes = [8, 2, 16, 32], strides = [1, 1, 1, 1]} : vector<8x2x18x32xbf16> to vector<8x2x16x32xbf16>
    %4 = tpu.concatenate %1, %2, %3 in 3 : vector<8x2x16x32xbf16>, vector<8x2x16x32xbf16>, vector<8x2x16x32xbf16> -> vector<8x2x16x96xbf16>
    %5 = vector.shape_cast %4 : vector<8x2x16x96xbf16> to vector<256x96xbf16>
    %c0_3 = arith.constant 0 : index
    %c0_4 = arith.constant 0 : index
    %6 = vector.load %arg2[%c0_3, %c0_4] : memref<96x128xbf16, #tpu.memory_space<vmem>>, vector<96x128xbf16>
    %cst = arith.constant dense<0.000000e+00> : vector<256x128xf32>
    %7 = tpu.matmul %5, %6, %cst {dimension_numbers = #tpu.dot_dimension_numbers<[1], [0], [0], [1], [0, 0, 1, 1], [], []>} : vector<256x96xbf16>, vector<96x128xbf16>, vector<256x128xf32> -> vector<256x128xf32>
    %c0_5 = arith.constant 0 : index
    %c0_6 = arith.constant 0 : index
    %8 = vector.load %arg3[%c0_5, %c0_6] : memref<1x128xf32, #tpu.memory_space<vmem>>, vector<1x128xf32>
    %9 = vector.broadcast %8 : vector<1x128xf32> to vector<256x128xf32>
    %10 = arith.addf %7, %9 : vector<256x128xf32>
    %11 = vector.shape_cast %10 : vector<256x128xf32> to vector<8x2x16x128xf32>
    %c0_7 = arith.constant 0 : index
    %c0_8 = arith.constant 0 : index
    %c0_9 = arith.constant 0 : index
    %c0_10 = arith.constant 0 : index
    %12 = vector.load %arg4[%c0_7, %c0_8, %c0_9, %c0_10] : memref<8x2x16x128xf32, #tpu.memory_space<vmem>>, vector<8x2x16x128xf32>
    tpu.vector_store %arg4[%c0_7, %c0_8, %c0_9, %c0_10], %11 {strides = array<i32>} : memref<8x2x16x128xf32, #tpu.memory_space<vmem>>, vector<8x2x16x128xf32>,
    return
  }
  func.func @transform_0(%arg0: i32) -> (i32, i32, i32, i32) {
    %c0_i32 = arith.constant 0 : i32
    %c0_i32_0 = arith.constant 0 : i32
    %c0_i32_1 = arith.constant 0 : i32
    %c0_i32_2 = arith.constant 0 : i32
    return %arg0, %c0_i32, %c0_i32_0, %c0_i32_1 : i32, i32, i32, i32
  }
  func.func @transform_1(%arg0: i32) -> (i32, i32) {
    %c0_i32 = arith.constant 0 : i32
    %c0_i32_0 = arith.constant 0 : i32
    %c0_i32_1 = arith.constant 0 : i32
    return %c0_i32, %c0_i32_0 : i32, i32
  }
  func.func @transform_2(%arg0: i32) -> (i32, i32) {
    %c0_i32 = arith.constant 0 : i32
    %c0_i32_0 = arith.constant 0 : i32
    %c0_i32_1 = arith.constant 0 : i32
    return %c0_i32, %c0_i32_0 : i32, i32
  }
  func.func @transform_3(%arg0: i32) -> (i32, i32, i32, i32) {
    %c0_i32 = arith.constant 0 : i32
    %c0_i32_0 = arith.constant 0 : i32
    %c0_i32_1 = arith.constant 0 : i32
    %c0_i32_2 = arith.constant 0 : i32
    return %arg0, %c0_i32, %c0_i32_0, %c0_i32_1 : i32, i32, i32, i32
  }
}

module attributes {stable_mosaic.version = 11 : i64} {
  func.func @_convlstm_recurrent_kernel(%arg0: i32, %arg1: i32, %arg2: memref<1x1x16x128xf32, #tpu.memory_space<vmem>>, %arg3: memref<96x128xbf16, #tpu.memory_space<vmem>>, %arg4: memref<16x64xf32, #tpu.memory_space<vmem>>, %arg5: memref<16x32xf32, #tpu.memory_space<vmem>>, %arg6: memref<8x1x16x32xbf16, #tpu.memory_space<vmem>>, %arg7: memref<1x16x32xf32, #tpu.memory_space<vmem>>, %arg8: memref<1x18x32xbf16, #tpu.memory_space<vmem>>, %arg9: memref<1x16x32xf32, #tpu.memory_space<vmem>>) attributes {dimension_semantics = [#tpu.dimension_semantics<parallel>, #tpu.dimension_semantics<arbitrary>], iteration_bounds = array<i64: 2, 1>, scalar_prefetch = 0 : i64, scratch_operands = 2 : i64, tpu.core_type = #tpu.core_type<tc>, window_params = [{transform_indices = @transform_0, window_bounds = array<i64: 1, 1, 16, 128>}, {pipeline_mode = #tpu.pipeline_mode<synchronous>, transform_indices = @transform_1, window_bounds = array<i64: 96, 128>}, {pipeline_mode = #tpu.pipeline_mode<synchronous>, transform_indices = @transform_2, window_bounds = array<i64: 16, 64>}, {pipeline_mode = #tpu.pipeline_mode<synchronous>, transform_indices = @transform_3, window_bounds = array<i64: 16, 32>}, {transform_indices = @transform_4, window_bounds = array<i64: 8, 1, 16, 32>}, {transform_indices = @transform_5, window_bounds = array<i64: 1, 16, 32>}]} {
    %c0_i32 = arith.constant 0 : i32
    %0 = arith.cmpi eq, %arg1, %c0_i32 : i32
    %1 = arith.extui %0 : i1 to i32
    %c0_i32_0 = arith.constant 0 : i32
    %2 = arith.cmpi ne, %1, %c0_i32_0 : i32
    scf.if %2 {
      %cst_184 = arith.constant 0.000000e+00 : bf16
      %377 = vector.broadcast %cst_184 : bf16 to vector<1x18x32xbf16>
      %c0_185 = arith.constant 0 : index
      %c0_186 = arith.constant 0 : index
      %c0_187 = arith.constant 0 : index
      %378 = vector.load %arg8[%c0_185, %c0_186, %c0_187] : memref<1x18x32xbf16, #tpu.memory_space<vmem>>, vector<1x18x32xbf16>
      tpu.vector_store %arg8[%c0_185, %c0_186, %c0_187], %377 {strides = array<i32>} : memref<1x18x32xbf16, #tpu.memory_space<vmem>>, vector<1x18x32xbf16>,
      %cst_188 = arith.constant 0.000000e+00 : f32
      %379 = vector.broadcast %cst_188 : f32 to vector<1x16x32xf32>
      %c0_189 = arith.constant 0 : index
      %c0_190 = arith.constant 0 : index
      %c0_191 = arith.constant 0 : index
      %380 = vector.load %arg9[%c0_189, %c0_190, %c0_191] : memref<1x16x32xf32, #tpu.memory_space<vmem>>, vector<1x16x32xf32>
      tpu.vector_store %arg9[%c0_189, %c0_190, %c0_191], %379 {strides = array<i32>} : memref<1x16x32xf32, #tpu.memory_space<vmem>>, vector<1x16x32xf32>,
    } else {
    }
    %c0 = arith.constant 0 : index
    %c0_1 = arith.constant 0 : index
    %3 = vector.load %arg3[%c0, %c0_1] : memref<96x128xbf16, #tpu.memory_space<vmem>>, vector<96x128xbf16>
    %c0_2 = arith.constant 0 : index
    %c0_3 = arith.constant 0 : index
    %4 = vector.load %arg4[%c0_2, %c0_3] : memref<16x64xf32, #tpu.memory_space<vmem>>, vector<16x64xf32>
    %c0_4 = arith.constant 0 : index
    %c0_5 = arith.constant 0 : index
    %5 = vector.load %arg5[%c0_4, %c0_5] : memref<16x32xf32, #tpu.memory_space<vmem>>, vector<16x32xf32>
    %c0_6 = arith.constant 0 : index
    %c0_7 = arith.constant 0 : index
    %c0_8 = arith.constant 0 : index
    %c0_9 = arith.constant 0 : index
    %6 = vector.load %arg2[%c0_6, %c0_7, %c0_8, %c0_9] : memref<1x1x16x128xf32, #tpu.memory_space<vmem>>, vector<1x1x16x128xf32>
    %7 = vector.shape_cast %6 : vector<1x1x16x128xf32> to vector<1x16x128xf32>
    %c0_10 = arith.constant 0 : index
    %c0_11 = arith.constant 0 : index
    %c0_12 = arith.constant 0 : index
    %8 = vector.load %arg8[%c0_10, %c0_11, %c0_12] : memref<1x18x32xbf16, #tpu.memory_space<vmem>>, vector<1x18x32xbf16>
    %9 = vector.extract_strided_slice %8 {offsets = [0, 0, 0], sizes = [1, 16, 32], strides = [1, 1, 1]} : vector<1x18x32xbf16> to vector<1x16x32xbf16>
    %10 = vector.extract_strided_slice %8 {offsets = [0, 1, 0], sizes = [1, 16, 32], strides = [1, 1, 1]} : vector<1x18x32xbf16> to vector<1x16x32xbf16>
    %11 = vector.extract_strided_slice %8 {offsets = [0, 2, 0], sizes = [1, 16, 32], strides = [1, 1, 1]} : vector<1x18x32xbf16> to vector<1x16x32xbf16>
    %12 = tpu.concatenate %9, %10, %11 in 2 : vector<1x16x32xbf16>, vector<1x16x32xbf16>, vector<1x16x32xbf16> -> vector<1x16x96xbf16>
    %13 = vector.shape_cast %12 : vector<1x16x96xbf16> to vector<16x96xbf16>
    %cst = arith.constant dense<0.000000e+00> : vector<16x128xf32>
    %14 = tpu.matmul %13, %3, %cst {dimension_numbers = #tpu.dot_dimension_numbers<[1], [0], [0], [1], [0, 0, 1, 1], [], []>} : vector<16x96xbf16>, vector<96x128xbf16>, vector<16x128xf32> -> vector<16x128xf32>
    %15 = vector.shape_cast %14 : vector<16x128xf32> to vector<1x16x128xf32>
    %16 = arith.addf %7, %15 : vector<1x16x128xf32>
    %c0_13 = arith.constant 0 : index
    %c0_14 = arith.constant 0 : index
    %c0_15 = arith.constant 0 : index
    %17 = vector.load %arg9[%c0_13, %c0_14, %c0_15] : memref<1x16x32xf32, #tpu.memory_space<vmem>>, vector<1x16x32xf32>
    %18 = vector.extract_strided_slice %16 {offsets = [0, 0, 0], sizes = [1, 16, 64], strides = [1, 1, 1]} : vector<1x16x128xf32> to vector<1x16x64xf32>
    %19 = tpu.concatenate %17, %17 in 2 : vector<1x16x32xf32>, vector<1x16x32xf32> -> vector<1x16x64xf32>
    %20 = vector.shape_cast %4 : vector<16x64xf32> to vector<1x16x64xf32>
    %21 = arith.mulf %19, %20 : vector<1x16x64xf32>
    %22 = arith.addf %18, %21 : vector<1x16x64xf32>
    %23 = arith.negf %22 : vector<1x16x64xf32>
    %24 = math.exp %23 : vector<1x16x64xf32>
    %cst_16 = arith.constant 1.000000e+00 : f32
    %25 = vector.broadcast %cst_16 : f32 to vector<1x16x64xf32>
    %26 = arith.addf %25, %24 : vector<1x16x64xf32>
    %27 = arith.divf %25, %26 : vector<1x16x64xf32>
    %28 = vector.extract_strided_slice %27 {offsets = [0, 0, 0], sizes = [1, 16, 32], strides = [1, 1, 1]} : vector<1x16x64xf32> to vector<1x16x32xf32>
    %29 = vector.extract_strided_slice %27 {offsets = [0, 0, 32], sizes = [1, 16, 32], strides = [1, 1, 1]} : vector<1x16x64xf32> to vector<1x16x32xf32>
    %30 = arith.mulf %29, %17 : vector<1x16x32xf32>
    %31 = vector.extract_strided_slice %16 {offsets = [0, 0, 64], sizes = [1, 16, 32], strides = [1, 1, 1]} : vector<1x16x128xf32> to vector<1x16x32xf32>
    %32 = math.tanh %31 : vector<1x16x32xf32>
    %33 = arith.mulf %28, %32 : vector<1x16x32xf32>
    %34 = arith.addf %30, %33 : vector<1x16x32xf32>
    %35 = vector.extract_strided_slice %16 {offsets = [0, 0, 96], sizes = [1, 16, 32], strides = [1, 1, 1]} : vector<1x16x128xf32> to vector<1x16x32xf32>
    %36 = vector.shape_cast %5 : vector<16x32xf32> to vector<1x16x32xf32>
    %37 = arith.mulf %34, %36 : vector<1x16x32xf32>
    %38 = arith.addf %35, %37 : vector<1x16x32xf32>
    %39 = arith.negf %38 : vector<1x16x32xf32>
    %40 = math.exp %39 : vector<1x16x32xf32>
    %cst_17 = arith.constant 1.000000e+00 : f32
    %41 = vector.broadcast %cst_17 : f32 to vector<1x16x32xf32>
    %42 = arith.addf %41, %40 : vector<1x16x32xf32>
    %43 = arith.divf %41, %42 : vector<1x16x32xf32>
    %44 = math.tanh %34 : vector<1x16x32xf32>
    %45 = arith.mulf %43, %44 : vector<1x16x32xf32>
    %46 = arith.truncf %45 : vector<1x16x32xf32> to vector<1x16x32xbf16>
    %c0_18 = arith.constant 0 : index
    %c1 = arith.constant 1 : index
    %c0_19 = arith.constant 0 : index
    %47 = vector.load %arg8[%c0_18, %c1, %c0_19] : memref<1x18x32xbf16, #tpu.memory_space<vmem>>, vector<1x16x32xbf16>
    tpu.vector_store %arg8[%c0_18, %c1, %c0_19], %46 {strides = array<i32>} : memref<1x18x32xbf16, #tpu.memory_space<vmem>>, vector<1x16x32xbf16>,
    %c0_20 = arith.constant 0 : index
    %c0_21 = arith.constant 0 : index
    %c0_22 = arith.constant 0 : index
    %48 = vector.load %arg9[%c0_20, %c0_21, %c0_22] : memref<1x16x32xf32, #tpu.memory_space<vmem>>, vector<1x16x32xf32>
    tpu.vector_store %arg9[%c0_20, %c0_21, %c0_22], %34 {strides = array<i32>} : memref<1x16x32xf32, #tpu.memory_space<vmem>>, vector<1x16x32xf32>,
    %c0_23 = arith.constant 0 : index
    %c0_24 = arith.constant 0 : index
    %c0_25 = arith.constant 0 : index
    %c0_26 = arith.constant 0 : index
    %49 = vector.load %arg6[%c0_23, %c0_24, %c0_25, %c0_26] : memref<8x1x16x32xbf16, #tpu.memory_space<vmem>>, vector<1x1x16x32xbf16>
    %50 = vector.shape_cast %49 : vector<1x1x16x32xbf16> to vector<1x16x32xbf16>
    %51 = vector.shape_cast %46 : vector<1x16x32xbf16> to vector<1x1x16x32xbf16>
    tpu.vector_store %arg6[%c0_23, %c0_24, %c0_25, %c0_26], %51 {strides = array<i32>} : memref<8x1x16x32xbf16, #tpu.memory_space<vmem>>, vector<1x1x16x32xbf16>,
    %c0_27 = arith.constant 0 : index
    %c0_28 = arith.constant 0 : index
    %c0_29 = arith.constant 0 : index
    %c0_30 = arith.constant 0 : index
    %52 = vector.load %arg2[%c0_27, %c0_28, %c0_29, %c0_30] : memref<1x1x16x128xf32, #tpu.memory_space<vmem>>, vector<1x1x16x128xf32>
    %53 = vector.shape_cast %52 : vector<1x1x16x128xf32> to vector<1x16x128xf32>
    %c0_31 = arith.constant 0 : index
    %c0_32 = arith.constant 0 : index
    %c0_33 = arith.constant 0 : index
    %54 = vector.load %arg8[%c0_31, %c0_32, %c0_33] : memref<1x18x32xbf16, #tpu.memory_space<vmem>>, vector<1x18x32xbf16>
    %55 = vector.extract_strided_slice %54 {offsets = [0, 0, 0], sizes = [1, 16, 32], strides = [1, 1, 1]} : vector<1x18x32xbf16> to vector<1x16x32xbf16>
    %56 = vector.extract_strided_slice %54 {offsets = [0, 1, 0], sizes = [1, 16, 32], strides = [1, 1, 1]} : vector<1x18x32xbf16> to vector<1x16x32xbf16>
    %57 = vector.extract_strided_slice %54 {offsets = [0, 2, 0], sizes = [1, 16, 32], strides = [1, 1, 1]} : vector<1x18x32xbf16> to vector<1x16x32xbf16>
    %58 = tpu.concatenate %55, %56, %57 in 2 : vector<1x16x32xbf16>, vector<1x16x32xbf16>, vector<1x16x32xbf16> -> vector<1x16x96xbf16>
    %59 = vector.shape_cast %58 : vector<1x16x96xbf16> to vector<16x96xbf16>
    %cst_34 = arith.constant dense<0.000000e+00> : vector<16x128xf32>
    %60 = tpu.matmul %59, %3, %cst_34 {dimension_numbers = #tpu.dot_dimension_numbers<[1], [0], [0], [1], [0, 0, 1, 1], [], []>} : vector<16x96xbf16>, vector<96x128xbf16>, vector<16x128xf32> -> vector<16x128xf32>
    %61 = vector.shape_cast %60 : vector<16x128xf32> to vector<1x16x128xf32>
    %62 = arith.addf %53, %61 : vector<1x16x128xf32>
    %c0_35 = arith.constant 0 : index
    %c0_36 = arith.constant 0 : index
    %c0_37 = arith.constant 0 : index
    %63 = vector.load %arg9[%c0_35, %c0_36, %c0_37] : memref<1x16x32xf32, #tpu.memory_space<vmem>>, vector<1x16x32xf32>
    %64 = vector.extract_strided_slice %62 {offsets = [0, 0, 0], sizes = [1, 16, 64], strides = [1, 1, 1]} : vector<1x16x128xf32> to vector<1x16x64xf32>
    %65 = tpu.concatenate %63, %63 in 2 : vector<1x16x32xf32>, vector<1x16x32xf32> -> vector<1x16x64xf32>
    %66 = vector.shape_cast %4 : vector<16x64xf32> to vector<1x16x64xf32>
    %67 = arith.mulf %65, %66 : vector<1x16x64xf32>
    %68 = arith.addf %64, %67 : vector<1x16x64xf32>
    %69 = arith.negf %68 : vector<1x16x64xf32>
    %70 = math.exp %69 : vector<1x16x64xf32>
    %cst_38 = arith.constant 1.000000e+00 : f32
    %71 = vector.broadcast %cst_38 : f32 to vector<1x16x64xf32>
    %72 = arith.addf %71, %70 : vector<1x16x64xf32>
    %73 = arith.divf %71, %72 : vector<1x16x64xf32>
    %74 = vector.extract_strided_slice %73 {offsets = [0, 0, 0], sizes = [1, 16, 32], strides = [1, 1, 1]} : vector<1x16x64xf32> to vector<1x16x32xf32>
    %75 = vector.extract_strided_slice %73 {offsets = [0, 0, 32], sizes = [1, 16, 32], strides = [1, 1, 1]} : vector<1x16x64xf32> to vector<1x16x32xf32>
    %76 = arith.mulf %75, %63 : vector<1x16x32xf32>
    %77 = vector.extract_strided_slice %62 {offsets = [0, 0, 64], sizes = [1, 16, 32], strides = [1, 1, 1]} : vector<1x16x128xf32> to vector<1x16x32xf32>
    %78 = math.tanh %77 : vector<1x16x32xf32>
    %79 = arith.mulf %74, %78 : vector<1x16x32xf32>
    %80 = arith.addf %76, %79 : vector<1x16x32xf32>
    %81 = vector.extract_strided_slice %62 {offsets = [0, 0, 96], sizes = [1, 16, 32], strides = [1, 1, 1]} : vector<1x16x128xf32> to vector<1x16x32xf32>
    %82 = vector.shape_cast %5 : vector<16x32xf32> to vector<1x16x32xf32>
    %83 = arith.mulf %80, %82 : vector<1x16x32xf32>
    %84 = arith.addf %81, %83 : vector<1x16x32xf32>
    %85 = arith.negf %84 : vector<1x16x32xf32>
    %86 = math.exp %85 : vector<1x16x32xf32>
    %cst_39 = arith.constant 1.000000e+00 : f32
    %87 = vector.broadcast %cst_39 : f32 to vector<1x16x32xf32>
    %88 = arith.addf %87, %86 : vector<1x16x32xf32>
    %89 = arith.divf %87, %88 : vector<1x16x32xf32>
    %90 = math.tanh %80 : vector<1x16x32xf32>
    %91 = arith.mulf %89, %90 : vector<1x16x32xf32>
    %92 = arith.truncf %91 : vector<1x16x32xf32> to vector<1x16x32xbf16>
    %c0_40 = arith.constant 0 : index
    %c1_41 = arith.constant 1 : index
    %c0_42 = arith.constant 0 : index
    %93 = vector.load %arg8[%c0_40, %c1_41, %c0_42] : memref<1x18x32xbf16, #tpu.memory_space<vmem>>, vector<1x16x32xbf16>
    tpu.vector_store %arg8[%c0_40, %c1_41, %c0_42], %92 {strides = array<i32>} : memref<1x18x32xbf16, #tpu.memory_space<vmem>>, vector<1x16x32xbf16>,
    %c0_43 = arith.constant 0 : index
    %c0_44 = arith.constant 0 : index
    %c0_45 = arith.constant 0 : index
    %94 = vector.load %arg9[%c0_43, %c0_44, %c0_45] : memref<1x16x32xf32, #tpu.memory_space<vmem>>, vector<1x16x32xf32>
    tpu.vector_store %arg9[%c0_43, %c0_44, %c0_45], %80 {strides = array<i32>} : memref<1x16x32xf32, #tpu.memory_space<vmem>>, vector<1x16x32xf32>,
    %c1_46 = arith.constant 1 : index
    %c0_47 = arith.constant 0 : index
    %c0_48 = arith.constant 0 : index
    %c0_49 = arith.constant 0 : index
    %95 = vector.load %arg6[%c1_46, %c0_47, %c0_48, %c0_49] : memref<8x1x16x32xbf16, #tpu.memory_space<vmem>>, vector<1x1x16x32xbf16>
    %96 = vector.shape_cast %95 : vector<1x1x16x32xbf16> to vector<1x16x32xbf16>
    %97 = vector.shape_cast %92 : vector<1x16x32xbf16> to vector<1x1x16x32xbf16>
    tpu.vector_store %arg6[%c1_46, %c0_47, %c0_48, %c0_49], %97 {strides = array<i32>} : memref<8x1x16x32xbf16, #tpu.memory_space<vmem>>, vector<1x1x16x32xbf16>,
    %c0_50 = arith.constant 0 : index
    %c0_51 = arith.constant 0 : index
    %c0_52 = arith.constant 0 : index
    %c0_53 = arith.constant 0 : index
    %98 = vector.load %arg2[%c0_50, %c0_51, %c0_52, %c0_53] : memref<1x1x16x128xf32, #tpu.memory_space<vmem>>, vector<1x1x16x128xf32>
    %99 = vector.shape_cast %98 : vector<1x1x16x128xf32> to vector<1x16x128xf32>
    %c0_54 = arith.constant 0 : index
    %c0_55 = arith.constant 0 : index
    %c0_56 = arith.constant 0 : index
    %100 = vector.load %arg8[%c0_54, %c0_55, %c0_56] : memref<1x18x32xbf16, #tpu.memory_space<vmem>>, vector<1x18x32xbf16>
    %101 = vector.extract_strided_slice %100 {offsets = [0, 0, 0], sizes = [1, 16, 32], strides = [1, 1, 1]} : vector<1x18x32xbf16> to vector<1x16x32xbf16>
    %102 = vector.extract_strided_slice %100 {offsets = [0, 1, 0], sizes = [1, 16, 32], strides = [1, 1, 1]} : vector<1x18x32xbf16> to vector<1x16x32xbf16>
    %103 = vector.extract_strided_slice %100 {offsets = [0, 2, 0], sizes = [1, 16, 32], strides = [1, 1, 1]} : vector<1x18x32xbf16> to vector<1x16x32xbf16>
    %104 = tpu.concatenate %101, %102, %103 in 2 : vector<1x16x32xbf16>, vector<1x16x32xbf16>, vector<1x16x32xbf16> -> vector<1x16x96xbf16>
    %105 = vector.shape_cast %104 : vector<1x16x96xbf16> to vector<16x96xbf16>
    %cst_57 = arith.constant dense<0.000000e+00> : vector<16x128xf32>
    %106 = tpu.matmul %105, %3, %cst_57 {dimension_numbers = #tpu.dot_dimension_numbers<[1], [0], [0], [1], [0, 0, 1, 1], [], []>} : vector<16x96xbf16>, vector<96x128xbf16>, vector<16x128xf32> -> vector<16x128xf32>
    %107 = vector.shape_cast %106 : vector<16x128xf32> to vector<1x16x128xf32>
    %108 = arith.addf %99, %107 : vector<1x16x128xf32>
    %c0_58 = arith.constant 0 : index
    %c0_59 = arith.constant 0 : index
    %c0_60 = arith.constant 0 : index
    %109 = vector.load %arg9[%c0_58, %c0_59, %c0_60] : memref<1x16x32xf32, #tpu.memory_space<vmem>>, vector<1x16x32xf32>
    %110 = vector.extract_strided_slice %108 {offsets = [0, 0, 0], sizes = [1, 16, 64], strides = [1, 1, 1]} : vector<1x16x128xf32> to vector<1x16x64xf32>
    %111 = tpu.concatenate %109, %109 in 2 : vector<1x16x32xf32>, vector<1x16x32xf32> -> vector<1x16x64xf32>
    %112 = vector.shape_cast %4 : vector<16x64xf32> to vector<1x16x64xf32>
    %113 = arith.mulf %111, %112 : vector<1x16x64xf32>
    %114 = arith.addf %110, %113 : vector<1x16x64xf32>
    %115 = arith.negf %114 : vector<1x16x64xf32>
    %116 = math.exp %115 : vector<1x16x64xf32>
    %cst_61 = arith.constant 1.000000e+00 : f32
    %117 = vector.broadcast %cst_61 : f32 to vector<1x16x64xf32>
    %118 = arith.addf %117, %116 : vector<1x16x64xf32>
    %119 = arith.divf %117, %118 : vector<1x16x64xf32>
    %120 = vector.extract_strided_slice %119 {offsets = [0, 0, 0], sizes = [1, 16, 32], strides = [1, 1, 1]} : vector<1x16x64xf32> to vector<1x16x32xf32>
    %121 = vector.extract_strided_slice %119 {offsets = [0, 0, 32], sizes = [1, 16, 32], strides = [1, 1, 1]} : vector<1x16x64xf32> to vector<1x16x32xf32>
    %122 = arith.mulf %121, %109 : vector<1x16x32xf32>
    %123 = vector.extract_strided_slice %108 {offsets = [0, 0, 64], sizes = [1, 16, 32], strides = [1, 1, 1]} : vector<1x16x128xf32> to vector<1x16x32xf32>
    %124 = math.tanh %123 : vector<1x16x32xf32>
    %125 = arith.mulf %120, %124 : vector<1x16x32xf32>
    %126 = arith.addf %122, %125 : vector<1x16x32xf32>
    %127 = vector.extract_strided_slice %108 {offsets = [0, 0, 96], sizes = [1, 16, 32], strides = [1, 1, 1]} : vector<1x16x128xf32> to vector<1x16x32xf32>
    %128 = vector.shape_cast %5 : vector<16x32xf32> to vector<1x16x32xf32>
    %129 = arith.mulf %126, %128 : vector<1x16x32xf32>
    %130 = arith.addf %127, %129 : vector<1x16x32xf32>
    %131 = arith.negf %130 : vector<1x16x32xf32>
    %132 = math.exp %131 : vector<1x16x32xf32>
    %cst_62 = arith.constant 1.000000e+00 : f32
    %133 = vector.broadcast %cst_62 : f32 to vector<1x16x32xf32>
    %134 = arith.addf %133, %132 : vector<1x16x32xf32>
    %135 = arith.divf %133, %134 : vector<1x16x32xf32>
    %136 = math.tanh %126 : vector<1x16x32xf32>
    %137 = arith.mulf %135, %136 : vector<1x16x32xf32>
    %138 = arith.truncf %137 : vector<1x16x32xf32> to vector<1x16x32xbf16>
    %c0_63 = arith.constant 0 : index
    %c1_64 = arith.constant 1 : index
    %c0_65 = arith.constant 0 : index
    %139 = vector.load %arg8[%c0_63, %c1_64, %c0_65] : memref<1x18x32xbf16, #tpu.memory_space<vmem>>, vector<1x16x32xbf16>
    tpu.vector_store %arg8[%c0_63, %c1_64, %c0_65], %138 {strides = array<i32>} : memref<1x18x32xbf16, #tpu.memory_space<vmem>>, vector<1x16x32xbf16>,
    %c0_66 = arith.constant 0 : index
    %c0_67 = arith.constant 0 : index
    %c0_68 = arith.constant 0 : index
    %140 = vector.load %arg9[%c0_66, %c0_67, %c0_68] : memref<1x16x32xf32, #tpu.memory_space<vmem>>, vector<1x16x32xf32>
    tpu.vector_store %arg9[%c0_66, %c0_67, %c0_68], %126 {strides = array<i32>} : memref<1x16x32xf32, #tpu.memory_space<vmem>>, vector<1x16x32xf32>,
    %c2 = arith.constant 2 : index
    %c0_69 = arith.constant 0 : index
    %c0_70 = arith.constant 0 : index
    %c0_71 = arith.constant 0 : index
    %141 = vector.load %arg6[%c2, %c0_69, %c0_70, %c0_71] : memref<8x1x16x32xbf16, #tpu.memory_space<vmem>>, vector<1x1x16x32xbf16>
    %142 = vector.shape_cast %141 : vector<1x1x16x32xbf16> to vector<1x16x32xbf16>
    %143 = vector.shape_cast %138 : vector<1x16x32xbf16> to vector<1x1x16x32xbf16>
    tpu.vector_store %arg6[%c2, %c0_69, %c0_70, %c0_71], %143 {strides = array<i32>} : memref<8x1x16x32xbf16, #tpu.memory_space<vmem>>, vector<1x1x16x32xbf16>,
    %c0_72 = arith.constant 0 : index
    %c0_73 = arith.constant 0 : index
    %c0_74 = arith.constant 0 : index
    %c0_75 = arith.constant 0 : index
    %144 = vector.load %arg2[%c0_72, %c0_73, %c0_74, %c0_75] : memref<1x1x16x128xf32, #tpu.memory_space<vmem>>, vector<1x1x16x128xf32>
    %145 = vector.shape_cast %144 : vector<1x1x16x128xf32> to vector<1x16x128xf32>
    %c0_76 = arith.constant 0 : index
    %c0_77 = arith.constant 0 : index
    %c0_78 = arith.constant 0 : index
    %146 = vector.load %arg8[%c0_76, %c0_77, %c0_78] : memref<1x18x32xbf16, #tpu.memory_space<vmem>>, vector<1x18x32xbf16>
    %147 = vector.extract_strided_slice %146 {offsets = [0, 0, 0], sizes = [1, 16, 32], strides = [1, 1, 1]} : vector<1x18x32xbf16> to vector<1x16x32xbf16>
    %148 = vector.extract_strided_slice %146 {offsets = [0, 1, 0], sizes = [1, 16, 32], strides = [1, 1, 1]} : vector<1x18x32xbf16> to vector<1x16x32xbf16>
    %149 = vector.extract_strided_slice %146 {offsets = [0, 2, 0], sizes = [1, 16, 32], strides = [1, 1, 1]} : vector<1x18x32xbf16> to vector<1x16x32xbf16>
    %150 = tpu.concatenate %147, %148, %149 in 2 : vector<1x16x32xbf16>, vector<1x16x32xbf16>, vector<1x16x32xbf16> -> vector<1x16x96xbf16>
    %151 = vector.shape_cast %150 : vector<1x16x96xbf16> to vector<16x96xbf16>
    %cst_79 = arith.constant dense<0.000000e+00> : vector<16x128xf32>
    %152 = tpu.matmul %151, %3, %cst_79 {dimension_numbers = #tpu.dot_dimension_numbers<[1], [0], [0], [1], [0, 0, 1, 1], [], []>} : vector<16x96xbf16>, vector<96x128xbf16>, vector<16x128xf32> -> vector<16x128xf32>
    %153 = vector.shape_cast %152 : vector<16x128xf32> to vector<1x16x128xf32>
    %154 = arith.addf %145, %153 : vector<1x16x128xf32>
    %c0_80 = arith.constant 0 : index
    %c0_81 = arith.constant 0 : index
    %c0_82 = arith.constant 0 : index
    %155 = vector.load %arg9[%c0_80, %c0_81, %c0_82] : memref<1x16x32xf32, #tpu.memory_space<vmem>>, vector<1x16x32xf32>
    %156 = vector.extract_strided_slice %154 {offsets = [0, 0, 0], sizes = [1, 16, 64], strides = [1, 1, 1]} : vector<1x16x128xf32> to vector<1x16x64xf32>
    %157 = tpu.concatenate %155, %155 in 2 : vector<1x16x32xf32>, vector<1x16x32xf32> -> vector<1x16x64xf32>
    %158 = vector.shape_cast %4 : vector<16x64xf32> to vector<1x16x64xf32>
    %159 = arith.mulf %157, %158 : vector<1x16x64xf32>
    %160 = arith.addf %156, %159 : vector<1x16x64xf32>
    %161 = arith.negf %160 : vector<1x16x64xf32>
    %162 = math.exp %161 : vector<1x16x64xf32>
    %cst_83 = arith.constant 1.000000e+00 : f32
    %163 = vector.broadcast %cst_83 : f32 to vector<1x16x64xf32>
    %164 = arith.addf %163, %162 : vector<1x16x64xf32>
    %165 = arith.divf %163, %164 : vector<1x16x64xf32>
    %166 = vector.extract_strided_slice %165 {offsets = [0, 0, 0], sizes = [1, 16, 32], strides = [1, 1, 1]} : vector<1x16x64xf32> to vector<1x16x32xf32>
    %167 = vector.extract_strided_slice %165 {offsets = [0, 0, 32], sizes = [1, 16, 32], strides = [1, 1, 1]} : vector<1x16x64xf32> to vector<1x16x32xf32>
    %168 = arith.mulf %167, %155 : vector<1x16x32xf32>
    %169 = vector.extract_strided_slice %154 {offsets = [0, 0, 64], sizes = [1, 16, 32], strides = [1, 1, 1]} : vector<1x16x128xf32> to vector<1x16x32xf32>
    %170 = math.tanh %169 : vector<1x16x32xf32>
    %171 = arith.mulf %166, %170 : vector<1x16x32xf32>
    %172 = arith.addf %168, %171 : vector<1x16x32xf32>
    %173 = vector.extract_strided_slice %154 {offsets = [0, 0, 96], sizes = [1, 16, 32], strides = [1, 1, 1]} : vector<1x16x128xf32> to vector<1x16x32xf32>
    %174 = vector.shape_cast %5 : vector<16x32xf32> to vector<1x16x32xf32>
    %175 = arith.mulf %172, %174 : vector<1x16x32xf32>
    %176 = arith.addf %173, %175 : vector<1x16x32xf32>
    %177 = arith.negf %176 : vector<1x16x32xf32>
    %178 = math.exp %177 : vector<1x16x32xf32>
    %cst_84 = arith.constant 1.000000e+00 : f32
    %179 = vector.broadcast %cst_84 : f32 to vector<1x16x32xf32>
    %180 = arith.addf %179, %178 : vector<1x16x32xf32>
    %181 = arith.divf %179, %180 : vector<1x16x32xf32>
    %182 = math.tanh %172 : vector<1x16x32xf32>
    %183 = arith.mulf %181, %182 : vector<1x16x32xf32>
    %184 = arith.truncf %183 : vector<1x16x32xf32> to vector<1x16x32xbf16>
    %c0_85 = arith.constant 0 : index
    %c1_86 = arith.constant 1 : index
    %c0_87 = arith.constant 0 : index
    %185 = vector.load %arg8[%c0_85, %c1_86, %c0_87] : memref<1x18x32xbf16, #tpu.memory_space<vmem>>, vector<1x16x32xbf16>
    tpu.vector_store %arg8[%c0_85, %c1_86, %c0_87], %184 {strides = array<i32>} : memref<1x18x32xbf16, #tpu.memory_space<vmem>>, vector<1x16x32xbf16>,
    %c0_88 = arith.constant 0 : index
    %c0_89 = arith.constant 0 : index
    %c0_90 = arith.constant 0 : index
    %186 = vector.load %arg9[%c0_88, %c0_89, %c0_90] : memref<1x16x32xf32, #tpu.memory_space<vmem>>, vector<1x16x32xf32>
    tpu.vector_store %arg9[%c0_88, %c0_89, %c0_90], %172 {strides = array<i32>} : memref<1x16x32xf32, #tpu.memory_space<vmem>>, vector<1x16x32xf32>,
    %c3 = arith.constant 3 : index
    %c0_91 = arith.constant 0 : index
    %c0_92 = arith.constant 0 : index
    %c0_93 = arith.constant 0 : index
    %187 = vector.load %arg6[%c3, %c0_91, %c0_92, %c0_93] : memref<8x1x16x32xbf16, #tpu.memory_space<vmem>>, vector<1x1x16x32xbf16>
    %188 = vector.shape_cast %187 : vector<1x1x16x32xbf16> to vector<1x16x32xbf16>
    %189 = vector.shape_cast %184 : vector<1x16x32xbf16> to vector<1x1x16x32xbf16>
    tpu.vector_store %arg6[%c3, %c0_91, %c0_92, %c0_93], %189 {strides = array<i32>} : memref<8x1x16x32xbf16, #tpu.memory_space<vmem>>, vector<1x1x16x32xbf16>,
    %c0_94 = arith.constant 0 : index
    %c0_95 = arith.constant 0 : index
    %c0_96 = arith.constant 0 : index
    %c0_97 = arith.constant 0 : index
    %190 = vector.load %arg2[%c0_94, %c0_95, %c0_96, %c0_97] : memref<1x1x16x128xf32, #tpu.memory_space<vmem>>, vector<1x1x16x128xf32>
    %191 = vector.shape_cast %190 : vector<1x1x16x128xf32> to vector<1x16x128xf32>
    %c0_98 = arith.constant 0 : index
    %c0_99 = arith.constant 0 : index
    %c0_100 = arith.constant 0 : index
    %192 = vector.load %arg8[%c0_98, %c0_99, %c0_100] : memref<1x18x32xbf16, #tpu.memory_space<vmem>>, vector<1x18x32xbf16>
    %193 = vector.extract_strided_slice %192 {offsets = [0, 0, 0], sizes = [1, 16, 32], strides = [1, 1, 1]} : vector<1x18x32xbf16> to vector<1x16x32xbf16>
    %194 = vector.extract_strided_slice %192 {offsets = [0, 1, 0], sizes = [1, 16, 32], strides = [1, 1, 1]} : vector<1x18x32xbf16> to vector<1x16x32xbf16>
    %195 = vector.extract_strided_slice %192 {offsets = [0, 2, 0], sizes = [1, 16, 32], strides = [1, 1, 1]} : vector<1x18x32xbf16> to vector<1x16x32xbf16>
    %196 = tpu.concatenate %193, %194, %195 in 2 : vector<1x16x32xbf16>, vector<1x16x32xbf16>, vector<1x16x32xbf16> -> vector<1x16x96xbf16>
    %197 = vector.shape_cast %196 : vector<1x16x96xbf16> to vector<16x96xbf16>
    %cst_101 = arith.constant dense<0.000000e+00> : vector<16x128xf32>
    %198 = tpu.matmul %197, %3, %cst_101 {dimension_numbers = #tpu.dot_dimension_numbers<[1], [0], [0], [1], [0, 0, 1, 1], [], []>} : vector<16x96xbf16>, vector<96x128xbf16>, vector<16x128xf32> -> vector<16x128xf32>
    %199 = vector.shape_cast %198 : vector<16x128xf32> to vector<1x16x128xf32>
    %200 = arith.addf %191, %199 : vector<1x16x128xf32>
    %c0_102 = arith.constant 0 : index
    %c0_103 = arith.constant 0 : index
    %c0_104 = arith.constant 0 : index
    %201 = vector.load %arg9[%c0_102, %c0_103, %c0_104] : memref<1x16x32xf32, #tpu.memory_space<vmem>>, vector<1x16x32xf32>
    %202 = vector.extract_strided_slice %200 {offsets = [0, 0, 0], sizes = [1, 16, 64], strides = [1, 1, 1]} : vector<1x16x128xf32> to vector<1x16x64xf32>
    %203 = tpu.concatenate %201, %201 in 2 : vector<1x16x32xf32>, vector<1x16x32xf32> -> vector<1x16x64xf32>
    %204 = vector.shape_cast %4 : vector<16x64xf32> to vector<1x16x64xf32>
    %205 = arith.mulf %203, %204 : vector<1x16x64xf32>
    %206 = arith.addf %202, %205 : vector<1x16x64xf32>
    %207 = arith.negf %206 : vector<1x16x64xf32>
    %208 = math.exp %207 : vector<1x16x64xf32>
    %cst_105 = arith.constant 1.000000e+00 : f32
    %209 = vector.broadcast %cst_105 : f32 to vector<1x16x64xf32>
    %210 = arith.addf %209, %208 : vector<1x16x64xf32>
    %211 = arith.divf %209, %210 : vector<1x16x64xf32>
    %212 = vector.extract_strided_slice %211 {offsets = [0, 0, 0], sizes = [1, 16, 32], strides = [1, 1, 1]} : vector<1x16x64xf32> to vector<1x16x32xf32>
    %213 = vector.extract_strided_slice %211 {offsets = [0, 0, 32], sizes = [1, 16, 32], strides = [1, 1, 1]} : vector<1x16x64xf32> to vector<1x16x32xf32>
    %214 = arith.mulf %213, %201 : vector<1x16x32xf32>
    %215 = vector.extract_strided_slice %200 {offsets = [0, 0, 64], sizes = [1, 16, 32], strides = [1, 1, 1]} : vector<1x16x128xf32> to vector<1x16x32xf32>
    %216 = math.tanh %215 : vector<1x16x32xf32>
    %217 = arith.mulf %212, %216 : vector<1x16x32xf32>
    %218 = arith.addf %214, %217 : vector<1x16x32xf32>
    %219 = vector.extract_strided_slice %200 {offsets = [0, 0, 96], sizes = [1, 16, 32], strides = [1, 1, 1]} : vector<1x16x128xf32> to vector<1x16x32xf32>
    %220 = vector.shape_cast %5 : vector<16x32xf32> to vector<1x16x32xf32>
    %221 = arith.mulf %218, %220 : vector<1x16x32xf32>
    %222 = arith.addf %219, %221 : vector<1x16x32xf32>
    %223 = arith.negf %222 : vector<1x16x32xf32>
    %224 = math.exp %223 : vector<1x16x32xf32>
    %cst_106 = arith.constant 1.000000e+00 : f32
    %225 = vector.broadcast %cst_106 : f32 to vector<1x16x32xf32>
    %226 = arith.addf %225, %224 : vector<1x16x32xf32>
    %227 = arith.divf %225, %226 : vector<1x16x32xf32>
    %228 = math.tanh %218 : vector<1x16x32xf32>
    %229 = arith.mulf %227, %228 : vector<1x16x32xf32>
    %230 = arith.truncf %229 : vector<1x16x32xf32> to vector<1x16x32xbf16>
    %c0_107 = arith.constant 0 : index
    %c1_108 = arith.constant 1 : index
    %c0_109 = arith.constant 0 : index
    %231 = vector.load %arg8[%c0_107, %c1_108, %c0_109] : memref<1x18x32xbf16, #tpu.memory_space<vmem>>, vector<1x16x32xbf16>
    tpu.vector_store %arg8[%c0_107, %c1_108, %c0_109], %230 {strides = array<i32>} : memref<1x18x32xbf16, #tpu.memory_space<vmem>>, vector<1x16x32xbf16>,
    %c0_110 = arith.constant 0 : index
    %c0_111 = arith.constant 0 : index
    %c0_112 = arith.constant 0 : index
    %232 = vector.load %arg9[%c0_110, %c0_111, %c0_112] : memref<1x16x32xf32, #tpu.memory_space<vmem>>, vector<1x16x32xf32>
    tpu.vector_store %arg9[%c0_110, %c0_111, %c0_112], %218 {strides = array<i32>} : memref<1x16x32xf32, #tpu.memory_space<vmem>>, vector<1x16x32xf32>,
    %c4 = arith.constant 4 : index
    %c0_113 = arith.constant 0 : index
    %c0_114 = arith.constant 0 : index
    %c0_115 = arith.constant 0 : index
    %233 = vector.load %arg6[%c4, %c0_113, %c0_114, %c0_115] : memref<8x1x16x32xbf16, #tpu.memory_space<vmem>>, vector<1x1x16x32xbf16>
    %234 = vector.shape_cast %233 : vector<1x1x16x32xbf16> to vector<1x16x32xbf16>
    %235 = vector.shape_cast %230 : vector<1x16x32xbf16> to vector<1x1x16x32xbf16>
    tpu.vector_store %arg6[%c4, %c0_113, %c0_114, %c0_115], %235 {strides = array<i32>} : memref<8x1x16x32xbf16, #tpu.memory_space<vmem>>, vector<1x1x16x32xbf16>,
    %c0_116 = arith.constant 0 : index
    %c0_117 = arith.constant 0 : index
    %c0_118 = arith.constant 0 : index
    %c0_119 = arith.constant 0 : index
    %236 = vector.load %arg2[%c0_116, %c0_117, %c0_118, %c0_119] : memref<1x1x16x128xf32, #tpu.memory_space<vmem>>, vector<1x1x16x128xf32>
    %237 = vector.shape_cast %236 : vector<1x1x16x128xf32> to vector<1x16x128xf32>
    %c0_120 = arith.constant 0 : index
    %c0_121 = arith.constant 0 : index
    %c0_122 = arith.constant 0 : index
    %238 = vector.load %arg8[%c0_120, %c0_121, %c0_122] : memref<1x18x32xbf16, #tpu.memory_space<vmem>>, vector<1x18x32xbf16>
    %239 = vector.extract_strided_slice %238 {offsets = [0, 0, 0], sizes = [1, 16, 32], strides = [1, 1, 1]} : vector<1x18x32xbf16> to vector<1x16x32xbf16>
    %240 = vector.extract_strided_slice %238 {offsets = [0, 1, 0], sizes = [1, 16, 32], strides = [1, 1, 1]} : vector<1x18x32xbf16> to vector<1x16x32xbf16>
    %241 = vector.extract_strided_slice %238 {offsets = [0, 2, 0], sizes = [1, 16, 32], strides = [1, 1, 1]} : vector<1x18x32xbf16> to vector<1x16x32xbf16>
    %242 = tpu.concatenate %239, %240, %241 in 2 : vector<1x16x32xbf16>, vector<1x16x32xbf16>, vector<1x16x32xbf16> -> vector<1x16x96xbf16>
    %243 = vector.shape_cast %242 : vector<1x16x96xbf16> to vector<16x96xbf16>
    %cst_123 = arith.constant dense<0.000000e+00> : vector<16x128xf32>
    %244 = tpu.matmul %243, %3, %cst_123 {dimension_numbers = #tpu.dot_dimension_numbers<[1], [0], [0], [1], [0, 0, 1, 1], [], []>} : vector<16x96xbf16>, vector<96x128xbf16>, vector<16x128xf32> -> vector<16x128xf32>
    %245 = vector.shape_cast %244 : vector<16x128xf32> to vector<1x16x128xf32>
    %246 = arith.addf %237, %245 : vector<1x16x128xf32>
    %c0_124 = arith.constant 0 : index
    %c0_125 = arith.constant 0 : index
    %c0_126 = arith.constant 0 : index
    %247 = vector.load %arg9[%c0_124, %c0_125, %c0_126] : memref<1x16x32xf32, #tpu.memory_space<vmem>>, vector<1x16x32xf32>
    %248 = vector.extract_strided_slice %246 {offsets = [0, 0, 0], sizes = [1, 16, 64], strides = [1, 1, 1]} : vector<1x16x128xf32> to vector<1x16x64xf32>
    %249 = tpu.concatenate %247, %247 in 2 : vector<1x16x32xf32>, vector<1x16x32xf32> -> vector<1x16x64xf32>
    %250 = vector.shape_cast %4 : vector<16x64xf32> to vector<1x16x64xf32>
    %251 = arith.mulf %249, %250 : vector<1x16x64xf32>
    %252 = arith.addf %248, %251 : vector<1x16x64xf32>
    %253 = arith.negf %252 : vector<1x16x64xf32>
    %254 = math.exp %253 : vector<1x16x64xf32>
    %cst_127 = arith.constant 1.000000e+00 : f32
    %255 = vector.broadcast %cst_127 : f32 to vector<1x16x64xf32>
    %256 = arith.addf %255, %254 : vector<1x16x64xf32>
    %257 = arith.divf %255, %256 : vector<1x16x64xf32>
    %258 = vector.extract_strided_slice %257 {offsets = [0, 0, 0], sizes = [1, 16, 32], strides = [1, 1, 1]} : vector<1x16x64xf32> to vector<1x16x32xf32>
    %259 = vector.extract_strided_slice %257 {offsets = [0, 0, 32], sizes = [1, 16, 32], strides = [1, 1, 1]} : vector<1x16x64xf32> to vector<1x16x32xf32>
    %260 = arith.mulf %259, %247 : vector<1x16x32xf32>
    %261 = vector.extract_strided_slice %246 {offsets = [0, 0, 64], sizes = [1, 16, 32], strides = [1, 1, 1]} : vector<1x16x128xf32> to vector<1x16x32xf32>
    %262 = math.tanh %261 : vector<1x16x32xf32>
    %263 = arith.mulf %258, %262 : vector<1x16x32xf32>
    %264 = arith.addf %260, %263 : vector<1x16x32xf32>
    %265 = vector.extract_strided_slice %246 {offsets = [0, 0, 96], sizes = [1, 16, 32], strides = [1, 1, 1]} : vector<1x16x128xf32> to vector<1x16x32xf32>
    %266 = vector.shape_cast %5 : vector<16x32xf32> to vector<1x16x32xf32>
    %267 = arith.mulf %264, %266 : vector<1x16x32xf32>
    %268 = arith.addf %265, %267 : vector<1x16x32xf32>
    %269 = arith.negf %268 : vector<1x16x32xf32>
    %270 = math.exp %269 : vector<1x16x32xf32>
    %cst_128 = arith.constant 1.000000e+00 : f32
    %271 = vector.broadcast %cst_128 : f32 to vector<1x16x32xf32>
    %272 = arith.addf %271, %270 : vector<1x16x32xf32>
    %273 = arith.divf %271, %272 : vector<1x16x32xf32>
    %274 = math.tanh %264 : vector<1x16x32xf32>
    %275 = arith.mulf %273, %274 : vector<1x16x32xf32>
    %276 = arith.truncf %275 : vector<1x16x32xf32> to vector<1x16x32xbf16>
    %c0_129 = arith.constant 0 : index
    %c1_130 = arith.constant 1 : index
    %c0_131 = arith.constant 0 : index
    %277 = vector.load %arg8[%c0_129, %c1_130, %c0_131] : memref<1x18x32xbf16, #tpu.memory_space<vmem>>, vector<1x16x32xbf16>
    tpu.vector_store %arg8[%c0_129, %c1_130, %c0_131], %276 {strides = array<i32>} : memref<1x18x32xbf16, #tpu.memory_space<vmem>>, vector<1x16x32xbf16>,
    %c0_132 = arith.constant 0 : index
    %c0_133 = arith.constant 0 : index
    %c0_134 = arith.constant 0 : index
    %278 = vector.load %arg9[%c0_132, %c0_133, %c0_134] : memref<1x16x32xf32, #tpu.memory_space<vmem>>, vector<1x16x32xf32>
    tpu.vector_store %arg9[%c0_132, %c0_133, %c0_134], %264 {strides = array<i32>} : memref<1x16x32xf32, #tpu.memory_space<vmem>>, vector<1x16x32xf32>,
    %c5 = arith.constant 5 : index
    %c0_135 = arith.constant 0 : index
    %c0_136 = arith.constant 0 : index
    %c0_137 = arith.constant 0 : index
    %279 = vector.load %arg6[%c5, %c0_135, %c0_136, %c0_137] : memref<8x1x16x32xbf16, #tpu.memory_space<vmem>>, vector<1x1x16x32xbf16>
    %280 = vector.shape_cast %279 : vector<1x1x16x32xbf16> to vector<1x16x32xbf16>
    %281 = vector.shape_cast %276 : vector<1x16x32xbf16> to vector<1x1x16x32xbf16>
    tpu.vector_store %arg6[%c5, %c0_135, %c0_136, %c0_137], %281 {strides = array<i32>} : memref<8x1x16x32xbf16, #tpu.memory_space<vmem>>, vector<1x1x16x32xbf16>,
    %c0_138 = arith.constant 0 : index
    %c0_139 = arith.constant 0 : index
    %c0_140 = arith.constant 0 : index
    %c0_141 = arith.constant 0 : index
    %282 = vector.load %arg2[%c0_138, %c0_139, %c0_140, %c0_141] : memref<1x1x16x128xf32, #tpu.memory_space<vmem>>, vector<1x1x16x128xf32>
    %283 = vector.shape_cast %282 : vector<1x1x16x128xf32> to vector<1x16x128xf32>
    %c0_142 = arith.constant 0 : index
    %c0_143 = arith.constant 0 : index
    %c0_144 = arith.constant 0 : index
    %284 = vector.load %arg8[%c0_142, %c0_143, %c0_144] : memref<1x18x32xbf16, #tpu.memory_space<vmem>>, vector<1x18x32xbf16>
    %285 = vector.extract_strided_slice %284 {offsets = [0, 0, 0], sizes = [1, 16, 32], strides = [1, 1, 1]} : vector<1x18x32xbf16> to vector<1x16x32xbf16>
    %286 = vector.extract_strided_slice %284 {offsets = [0, 1, 0], sizes = [1, 16, 32], strides = [1, 1, 1]} : vector<1x18x32xbf16> to vector<1x16x32xbf16>
    %287 = vector.extract_strided_slice %284 {offsets = [0, 2, 0], sizes = [1, 16, 32], strides = [1, 1, 1]} : vector<1x18x32xbf16> to vector<1x16x32xbf16>
    %288 = tpu.concatenate %285, %286, %287 in 2 : vector<1x16x32xbf16>, vector<1x16x32xbf16>, vector<1x16x32xbf16> -> vector<1x16x96xbf16>
    %289 = vector.shape_cast %288 : vector<1x16x96xbf16> to vector<16x96xbf16>
    %cst_145 = arith.constant dense<0.000000e+00> : vector<16x128xf32>
    %290 = tpu.matmul %289, %3, %cst_145 {dimension_numbers = #tpu.dot_dimension_numbers<[1], [0], [0], [1], [0, 0, 1, 1], [], []>} : vector<16x96xbf16>, vector<96x128xbf16>, vector<16x128xf32> -> vector<16x128xf32>
    %291 = vector.shape_cast %290 : vector<16x128xf32> to vector<1x16x128xf32>
    %292 = arith.addf %283, %291 : vector<1x16x128xf32>
    %c0_146 = arith.constant 0 : index
    %c0_147 = arith.constant 0 : index
    %c0_148 = arith.constant 0 : index
    %293 = vector.load %arg9[%c0_146, %c0_147, %c0_148] : memref<1x16x32xf32, #tpu.memory_space<vmem>>, vector<1x16x32xf32>
    %294 = vector.extract_strided_slice %292 {offsets = [0, 0, 0], sizes = [1, 16, 64], strides = [1, 1, 1]} : vector<1x16x128xf32> to vector<1x16x64xf32>
    %295 = tpu.concatenate %293, %293 in 2 : vector<1x16x32xf32>, vector<1x16x32xf32> -> vector<1x16x64xf32>
    %296 = vector.shape_cast %4 : vector<16x64xf32> to vector<1x16x64xf32>
    %297 = arith.mulf %295, %296 : vector<1x16x64xf32>
    %298 = arith.addf %294, %297 : vector<1x16x64xf32>
    %299 = arith.negf %298 : vector<1x16x64xf32>
    %300 = math.exp %299 : vector<1x16x64xf32>
    %cst_149 = arith.constant 1.000000e+00 : f32
    %301 = vector.broadcast %cst_149 : f32 to vector<1x16x64xf32>
    %302 = arith.addf %301, %300 : vector<1x16x64xf32>
    %303 = arith.divf %301, %302 : vector<1x16x64xf32>
    %304 = vector.extract_strided_slice %303 {offsets = [0, 0, 0], sizes = [1, 16, 32], strides = [1, 1, 1]} : vector<1x16x64xf32> to vector<1x16x32xf32>
    %305 = vector.extract_strided_slice %303 {offsets = [0, 0, 32], sizes = [1, 16, 32], strides = [1, 1, 1]} : vector<1x16x64xf32> to vector<1x16x32xf32>
    %306 = arith.mulf %305, %293 : vector<1x16x32xf32>
    %307 = vector.extract_strided_slice %292 {offsets = [0, 0, 64], sizes = [1, 16, 32], strides = [1, 1, 1]} : vector<1x16x128xf32> to vector<1x16x32xf32>
    %308 = math.tanh %307 : vector<1x16x32xf32>
    %309 = arith.mulf %304, %308 : vector<1x16x32xf32>
    %310 = arith.addf %306, %309 : vector<1x16x32xf32>
    %311 = vector.extract_strided_slice %292 {offsets = [0, 0, 96], sizes = [1, 16, 32], strides = [1, 1, 1]} : vector<1x16x128xf32> to vector<1x16x32xf32>
    %312 = vector.shape_cast %5 : vector<16x32xf32> to vector<1x16x32xf32>
    %313 = arith.mulf %310, %312 : vector<1x16x32xf32>
    %314 = arith.addf %311, %313 : vector<1x16x32xf32>
    %315 = arith.negf %314 : vector<1x16x32xf32>
    %316 = math.exp %315 : vector<1x16x32xf32>
    %cst_150 = arith.constant 1.000000e+00 : f32
    %317 = vector.broadcast %cst_150 : f32 to vector<1x16x32xf32>
    %318 = arith.addf %317, %316 : vector<1x16x32xf32>
    %319 = arith.divf %317, %318 : vector<1x16x32xf32>
    %320 = math.tanh %310 : vector<1x16x32xf32>
    %321 = arith.mulf %319, %320 : vector<1x16x32xf32>
    %322 = arith.truncf %321 : vector<1x16x32xf32> to vector<1x16x32xbf16>
    %c0_151 = arith.constant 0 : index
    %c1_152 = arith.constant 1 : index
    %c0_153 = arith.constant 0 : index
    %323 = vector.load %arg8[%c0_151, %c1_152, %c0_153] : memref<1x18x32xbf16, #tpu.memory_space<vmem>>, vector<1x16x32xbf16>
    tpu.vector_store %arg8[%c0_151, %c1_152, %c0_153], %322 {strides = array<i32>} : memref<1x18x32xbf16, #tpu.memory_space<vmem>>, vector<1x16x32xbf16>,
    %c0_154 = arith.constant 0 : index
    %c0_155 = arith.constant 0 : index
    %c0_156 = arith.constant 0 : index
    %324 = vector.load %arg9[%c0_154, %c0_155, %c0_156] : memref<1x16x32xf32, #tpu.memory_space<vmem>>, vector<1x16x32xf32>
    tpu.vector_store %arg9[%c0_154, %c0_155, %c0_156], %310 {strides = array<i32>} : memref<1x16x32xf32, #tpu.memory_space<vmem>>, vector<1x16x32xf32>,
    %c6 = arith.constant 6 : index
    %c0_157 = arith.constant 0 : index
    %c0_158 = arith.constant 0 : index
    %c0_159 = arith.constant 0 : index
    %325 = vector.load %arg6[%c6, %c0_157, %c0_158, %c0_159] : memref<8x1x16x32xbf16, #tpu.memory_space<vmem>>, vector<1x1x16x32xbf16>
    %326 = vector.shape_cast %325 : vector<1x1x16x32xbf16> to vector<1x16x32xbf16>
    %327 = vector.shape_cast %322 : vector<1x16x32xbf16> to vector<1x1x16x32xbf16>
    tpu.vector_store %arg6[%c6, %c0_157, %c0_158, %c0_159], %327 {strides = array<i32>} : memref<8x1x16x32xbf16, #tpu.memory_space<vmem>>, vector<1x1x16x32xbf16>,
    %c0_160 = arith.constant 0 : index
    %c0_161 = arith.constant 0 : index
    %c0_162 = arith.constant 0 : index
    %c0_163 = arith.constant 0 : index
    %328 = vector.load %arg2[%c0_160, %c0_161, %c0_162, %c0_163] : memref<1x1x16x128xf32, #tpu.memory_space<vmem>>, vector<1x1x16x128xf32>
    %329 = vector.shape_cast %328 : vector<1x1x16x128xf32> to vector<1x16x128xf32>
    %c0_164 = arith.constant 0 : index
    %c0_165 = arith.constant 0 : index
    %c0_166 = arith.constant 0 : index
    %330 = vector.load %arg8[%c0_164, %c0_165, %c0_166] : memref<1x18x32xbf16, #tpu.memory_space<vmem>>, vector<1x18x32xbf16>
    %331 = vector.extract_strided_slice %330 {offsets = [0, 0, 0], sizes = [1, 16, 32], strides = [1, 1, 1]} : vector<1x18x32xbf16> to vector<1x16x32xbf16>
    %332 = vector.extract_strided_slice %330 {offsets = [0, 1, 0], sizes = [1, 16, 32], strides = [1, 1, 1]} : vector<1x18x32xbf16> to vector<1x16x32xbf16>
    %333 = vector.extract_strided_slice %330 {offsets = [0, 2, 0], sizes = [1, 16, 32], strides = [1, 1, 1]} : vector<1x18x32xbf16> to vector<1x16x32xbf16>
    %334 = tpu.concatenate %331, %332, %333 in 2 : vector<1x16x32xbf16>, vector<1x16x32xbf16>, vector<1x16x32xbf16> -> vector<1x16x96xbf16>
    %335 = vector.shape_cast %334 : vector<1x16x96xbf16> to vector<16x96xbf16>
    %cst_167 = arith.constant dense<0.000000e+00> : vector<16x128xf32>
    %336 = tpu.matmul %335, %3, %cst_167 {dimension_numbers = #tpu.dot_dimension_numbers<[1], [0], [0], [1], [0, 0, 1, 1], [], []>} : vector<16x96xbf16>, vector<96x128xbf16>, vector<16x128xf32> -> vector<16x128xf32>
    %337 = vector.shape_cast %336 : vector<16x128xf32> to vector<1x16x128xf32>
    %338 = arith.addf %329, %337 : vector<1x16x128xf32>
    %c0_168 = arith.constant 0 : index
    %c0_169 = arith.constant 0 : index
    %c0_170 = arith.constant 0 : index
    %339 = vector.load %arg9[%c0_168, %c0_169, %c0_170] : memref<1x16x32xf32, #tpu.memory_space<vmem>>, vector<1x16x32xf32>
    %340 = vector.extract_strided_slice %338 {offsets = [0, 0, 0], sizes = [1, 16, 64], strides = [1, 1, 1]} : vector<1x16x128xf32> to vector<1x16x64xf32>
    %341 = tpu.concatenate %339, %339 in 2 : vector<1x16x32xf32>, vector<1x16x32xf32> -> vector<1x16x64xf32>
    %342 = vector.shape_cast %4 : vector<16x64xf32> to vector<1x16x64xf32>
    %343 = arith.mulf %341, %342 : vector<1x16x64xf32>
    %344 = arith.addf %340, %343 : vector<1x16x64xf32>
    %345 = arith.negf %344 : vector<1x16x64xf32>
    %346 = math.exp %345 : vector<1x16x64xf32>
    %cst_171 = arith.constant 1.000000e+00 : f32
    %347 = vector.broadcast %cst_171 : f32 to vector<1x16x64xf32>
    %348 = arith.addf %347, %346 : vector<1x16x64xf32>
    %349 = arith.divf %347, %348 : vector<1x16x64xf32>
    %350 = vector.extract_strided_slice %349 {offsets = [0, 0, 0], sizes = [1, 16, 32], strides = [1, 1, 1]} : vector<1x16x64xf32> to vector<1x16x32xf32>
    %351 = vector.extract_strided_slice %349 {offsets = [0, 0, 32], sizes = [1, 16, 32], strides = [1, 1, 1]} : vector<1x16x64xf32> to vector<1x16x32xf32>
    %352 = arith.mulf %351, %339 : vector<1x16x32xf32>
    %353 = vector.extract_strided_slice %338 {offsets = [0, 0, 64], sizes = [1, 16, 32], strides = [1, 1, 1]} : vector<1x16x128xf32> to vector<1x16x32xf32>
    %354 = math.tanh %353 : vector<1x16x32xf32>
    %355 = arith.mulf %350, %354 : vector<1x16x32xf32>
    %356 = arith.addf %352, %355 : vector<1x16x32xf32>
    %357 = vector.extract_strided_slice %338 {offsets = [0, 0, 96], sizes = [1, 16, 32], strides = [1, 1, 1]} : vector<1x16x128xf32> to vector<1x16x32xf32>
    %358 = vector.shape_cast %5 : vector<16x32xf32> to vector<1x16x32xf32>
    %359 = arith.mulf %356, %358 : vector<1x16x32xf32>
    %360 = arith.addf %357, %359 : vector<1x16x32xf32>
    %361 = arith.negf %360 : vector<1x16x32xf32>
    %362 = math.exp %361 : vector<1x16x32xf32>
    %cst_172 = arith.constant 1.000000e+00 : f32
    %363 = vector.broadcast %cst_172 : f32 to vector<1x16x32xf32>
    %364 = arith.addf %363, %362 : vector<1x16x32xf32>
    %365 = arith.divf %363, %364 : vector<1x16x32xf32>
    %366 = math.tanh %356 : vector<1x16x32xf32>
    %367 = arith.mulf %365, %366 : vector<1x16x32xf32>
    %368 = arith.truncf %367 : vector<1x16x32xf32> to vector<1x16x32xbf16>
    %c0_173 = arith.constant 0 : index
    %c1_174 = arith.constant 1 : index
    %c0_175 = arith.constant 0 : index
    %369 = vector.load %arg8[%c0_173, %c1_174, %c0_175] : memref<1x18x32xbf16, #tpu.memory_space<vmem>>, vector<1x16x32xbf16>
    tpu.vector_store %arg8[%c0_173, %c1_174, %c0_175], %368 {strides = array<i32>} : memref<1x18x32xbf16, #tpu.memory_space<vmem>>, vector<1x16x32xbf16>,
    %c0_176 = arith.constant 0 : index
    %c0_177 = arith.constant 0 : index
    %c0_178 = arith.constant 0 : index
    %370 = vector.load %arg9[%c0_176, %c0_177, %c0_178] : memref<1x16x32xf32, #tpu.memory_space<vmem>>, vector<1x16x32xf32>
    tpu.vector_store %arg9[%c0_176, %c0_177, %c0_178], %356 {strides = array<i32>} : memref<1x16x32xf32, #tpu.memory_space<vmem>>, vector<1x16x32xf32>,
    %c7 = arith.constant 7 : index
    %c0_179 = arith.constant 0 : index
    %c0_180 = arith.constant 0 : index
    %c0_181 = arith.constant 0 : index
    %371 = vector.load %arg6[%c7, %c0_179, %c0_180, %c0_181] : memref<8x1x16x32xbf16, #tpu.memory_space<vmem>>, vector<1x1x16x32xbf16>
    %372 = vector.shape_cast %371 : vector<1x1x16x32xbf16> to vector<1x16x32xbf16>
    %373 = vector.shape_cast %368 : vector<1x16x32xbf16> to vector<1x1x16x32xbf16>
    tpu.vector_store %arg6[%c7, %c0_179, %c0_180, %c0_181], %373 {strides = array<i32>} : memref<8x1x16x32xbf16, #tpu.memory_space<vmem>>, vector<1x1x16x32xbf16>,
    %c0_i32_182 = arith.constant 0 : i32
    %374 = arith.cmpi eq, %arg1, %c0_i32_182 : i32
    %375 = arith.extui %374 : i1 to i32
    %c0_i32_183 = arith.constant 0 : i32
    %376 = arith.cmpi ne, %375, %c0_i32_183 : i32
    scf.if %376 {
      %c0_184 = arith.constant 0 : index
      %c0_185 = arith.constant 0 : index
      %c0_186 = arith.constant 0 : index
      %377 = vector.load %arg9[%c0_184, %c0_185, %c0_186] : memref<1x16x32xf32, #tpu.memory_space<vmem>>, vector<1x16x32xf32>
      %c0_187 = arith.constant 0 : index
      %c0_188 = arith.constant 0 : index
      %c0_189 = arith.constant 0 : index
      %378 = vector.load %arg7[%c0_187, %c0_188, %c0_189] : memref<1x16x32xf32, #tpu.memory_space<vmem>>, vector<1x16x32xf32>
      tpu.vector_store %arg7[%c0_187, %c0_188, %c0_189], %377 {strides = array<i32>} : memref<1x16x32xf32, #tpu.memory_space<vmem>>, vector<1x16x32xf32>,
    } else {
    }
    return
  }
  func.func @transform_0(%arg0: i32, %arg1: i32) -> (i32, i32, i32, i32) {
    %c0_i32 = arith.constant 0 : i32
    %c0_i32_0 = arith.constant 0 : i32
    %c0_i32_1 = arith.constant 0 : i32
    %c0_i32_2 = arith.constant 0 : i32
    return %c0_i32, %arg0, %c0_i32_0, %c0_i32_1 : i32, i32, i32, i32
  }
  func.func @transform_1(%arg0: i32, %arg1: i32) -> (i32, i32) {
    %c0_i32 = arith.constant 0 : i32
    %c0_i32_0 = arith.constant 0 : i32
    %c0_i32_1 = arith.constant 0 : i32
    return %c0_i32, %c0_i32_0 : i32, i32
  }
  func.func @transform_2(%arg0: i32, %arg1: i32) -> (i32, i32) {
    %c0_i32 = arith.constant 0 : i32
    %c0_i32_0 = arith.constant 0 : i32
    %c0_i32_1 = arith.constant 0 : i32
    return %c0_i32, %c0_i32_0 : i32, i32
  }
  func.func @transform_3(%arg0: i32, %arg1: i32) -> (i32, i32) {
    %c0_i32 = arith.constant 0 : i32
    %c0_i32_0 = arith.constant 0 : i32
    %c0_i32_1 = arith.constant 0 : i32
    return %c0_i32, %c0_i32_0 : i32, i32
  }
  func.func @transform_4(%arg0: i32, %arg1: i32) -> (i32, i32, i32, i32) {
    %c0_i32 = arith.constant 0 : i32
    %c0_i32_0 = arith.constant 0 : i32
    %c0_i32_1 = arith.constant 0 : i32
    return %arg1, %arg0, %c0_i32, %c0_i32_0 : i32, i32, i32, i32
  }
  func.func @transform_5(%arg0: i32, %arg1: i32) -> (i32, i32, i32) {
    %c0_i32 = arith.constant 0 : i32
    %c0_i32_0 = arith.constant 0 : i32
    %c0_i32_1 = arith.constant 0 : i32
    return %arg0, %c0_i32, %c0_i32_0 : i32, i32, i32
  }
}

module attributes {stable_mosaic.version = 11 : i64} {
  func.func @_convlstm_recurrent_kernel(%arg0: i32, %arg1: i32, %arg2: memref<8x1x16x128xf32, #tpu.memory_space<vmem>>, %arg3: memref<96x128xbf16, #tpu.memory_space<vmem>>, %arg4: memref<16x64xf32, #tpu.memory_space<vmem>>, %arg5: memref<16x32xf32, #tpu.memory_space<vmem>>, %arg6: memref<8x1x16x32xbf16, #tpu.memory_space<vmem>>, %arg7: memref<1x16x32xf32, #tpu.memory_space<vmem>>, %arg8: memref<1x18x32xbf16, #tpu.memory_space<vmem>>, %arg9: memref<1x16x32xf32, #tpu.memory_space<vmem>>) attributes {dimension_semantics = [#tpu.dimension_semantics<parallel>, #tpu.dimension_semantics<arbitrary>], iteration_bounds = array<i64: 2, 1>, scalar_prefetch = 0 : i64, scratch_operands = 2 : i64, tpu.core_type = #tpu.core_type<tc>, window_params = [{transform_indices = @transform_0, window_bounds = array<i64: 8, 1, 16, 128>}, {pipeline_mode = #tpu.pipeline_mode<synchronous>, transform_indices = @transform_1, window_bounds = array<i64: 96, 128>}, {pipeline_mode = #tpu.pipeline_mode<synchronous>, transform_indices = @transform_2, window_bounds = array<i64: 16, 64>}, {pipeline_mode = #tpu.pipeline_mode<synchronous>, transform_indices = @transform_3, window_bounds = array<i64: 16, 32>}, {transform_indices = @transform_4, window_bounds = array<i64: 8, 1, 16, 32>}, {transform_indices = @transform_5, window_bounds = array<i64: 1, 16, 32>}]} {
    %c0_i32 = arith.constant 0 : i32
    %0 = arith.cmpi eq, %arg1, %c0_i32 : i32
    %1 = arith.extui %0 : i1 to i32
    %c0_i32_0 = arith.constant 0 : i32
    %2 = arith.cmpi ne, %1, %c0_i32_0 : i32
    scf.if %2 {
      %cst_184 = arith.constant 0.000000e+00 : bf16
      %377 = vector.broadcast %cst_184 : bf16 to vector<1x18x32xbf16>
      %c0_185 = arith.constant 0 : index
      %c0_186 = arith.constant 0 : index
      %c0_187 = arith.constant 0 : index
      %378 = vector.load %arg8[%c0_185, %c0_186, %c0_187] : memref<1x18x32xbf16, #tpu.memory_space<vmem>>, vector<1x18x32xbf16>
      tpu.vector_store %arg8[%c0_185, %c0_186, %c0_187], %377 {strides = array<i32>} : memref<1x18x32xbf16, #tpu.memory_space<vmem>>, vector<1x18x32xbf16>,
      %cst_188 = arith.constant 0.000000e+00 : f32
      %379 = vector.broadcast %cst_188 : f32 to vector<1x16x32xf32>
      %c0_189 = arith.constant 0 : index
      %c0_190 = arith.constant 0 : index
      %c0_191 = arith.constant 0 : index
      %380 = vector.load %arg9[%c0_189, %c0_190, %c0_191] : memref<1x16x32xf32, #tpu.memory_space<vmem>>, vector<1x16x32xf32>
      tpu.vector_store %arg9[%c0_189, %c0_190, %c0_191], %379 {strides = array<i32>} : memref<1x16x32xf32, #tpu.memory_space<vmem>>, vector<1x16x32xf32>,
    } else {
    }
    %c0 = arith.constant 0 : index
    %c0_1 = arith.constant 0 : index
    %3 = vector.load %arg3[%c0, %c0_1] : memref<96x128xbf16, #tpu.memory_space<vmem>>, vector<96x128xbf16>
    %c0_2 = arith.constant 0 : index
    %c0_3 = arith.constant 0 : index
    %4 = vector.load %arg4[%c0_2, %c0_3] : memref<16x64xf32, #tpu.memory_space<vmem>>, vector<16x64xf32>
    %c0_4 = arith.constant 0 : index
    %c0_5 = arith.constant 0 : index
    %5 = vector.load %arg5[%c0_4, %c0_5] : memref<16x32xf32, #tpu.memory_space<vmem>>, vector<16x32xf32>
    %c0_6 = arith.constant 0 : index
    %c0_7 = arith.constant 0 : index
    %c0_8 = arith.constant 0 : index
    %c0_9 = arith.constant 0 : index
    %6 = vector.load %arg2[%c0_6, %c0_7, %c0_8, %c0_9] : memref<8x1x16x128xf32, #tpu.memory_space<vmem>>, vector<1x1x16x128xf32>
    %7 = vector.shape_cast %6 : vector<1x1x16x128xf32> to vector<1x16x128xf32>
    %c0_10 = arith.constant 0 : index
    %c0_11 = arith.constant 0 : index
    %c0_12 = arith.constant 0 : index
    %8 = vector.load %arg8[%c0_10, %c0_11, %c0_12] : memref<1x18x32xbf16, #tpu.memory_space<vmem>>, vector<1x18x32xbf16>
    %9 = vector.extract_strided_slice %8 {offsets = [0, 0, 0], sizes = [1, 16, 32], strides = [1, 1, 1]} : vector<1x18x32xbf16> to vector<1x16x32xbf16>
    %10 = vector.extract_strided_slice %8 {offsets = [0, 1, 0], sizes = [1, 16, 32], strides = [1, 1, 1]} : vector<1x18x32xbf16> to vector<1x16x32xbf16>
    %11 = vector.extract_strided_slice %8 {offsets = [0, 2, 0], sizes = [1, 16, 32], strides = [1, 1, 1]} : vector<1x18x32xbf16> to vector<1x16x32xbf16>
    %12 = tpu.concatenate %9, %10, %11 in 2 : vector<1x16x32xbf16>, vector<1x16x32xbf16>, vector<1x16x32xbf16> -> vector<1x16x96xbf16>
    %13 = vector.shape_cast %12 : vector<1x16x96xbf16> to vector<16x96xbf16>
    %cst = arith.constant dense<0.000000e+00> : vector<16x128xf32>
    %14 = tpu.matmul %13, %3, %cst {dimension_numbers = #tpu.dot_dimension_numbers<[1], [0], [0], [1], [0, 0, 1, 1], [], []>} : vector<16x96xbf16>, vector<96x128xbf16>, vector<16x128xf32> -> vector<16x128xf32>
    %15 = vector.shape_cast %14 : vector<16x128xf32> to vector<1x16x128xf32>
    %16 = arith.addf %7, %15 : vector<1x16x128xf32>
    %c0_13 = arith.constant 0 : index
    %c0_14 = arith.constant 0 : index
    %c0_15 = arith.constant 0 : index
    %17 = vector.load %arg9[%c0_13, %c0_14, %c0_15] : memref<1x16x32xf32, #tpu.memory_space<vmem>>, vector<1x16x32xf32>
    %18 = vector.extract_strided_slice %16 {offsets = [0, 0, 0], sizes = [1, 16, 64], strides = [1, 1, 1]} : vector<1x16x128xf32> to vector<1x16x64xf32>
    %19 = tpu.concatenate %17, %17 in 2 : vector<1x16x32xf32>, vector<1x16x32xf32> -> vector<1x16x64xf32>
    %20 = vector.shape_cast %4 : vector<16x64xf32> to vector<1x16x64xf32>
    %21 = arith.mulf %19, %20 : vector<1x16x64xf32>
    %22 = arith.addf %18, %21 : vector<1x16x64xf32>
    %23 = arith.negf %22 : vector<1x16x64xf32>
    %24 = math.exp %23 : vector<1x16x64xf32>
    %cst_16 = arith.constant 1.000000e+00 : f32
    %25 = vector.broadcast %cst_16 : f32 to vector<1x16x64xf32>
    %26 = arith.addf %25, %24 : vector<1x16x64xf32>
    %27 = arith.divf %25, %26 : vector<1x16x64xf32>
    %28 = vector.extract_strided_slice %27 {offsets = [0, 0, 0], sizes = [1, 16, 32], strides = [1, 1, 1]} : vector<1x16x64xf32> to vector<1x16x32xf32>
    %29 = vector.extract_strided_slice %27 {offsets = [0, 0, 32], sizes = [1, 16, 32], strides = [1, 1, 1]} : vector<1x16x64xf32> to vector<1x16x32xf32>
    %30 = arith.mulf %29, %17 : vector<1x16x32xf32>
    %31 = vector.extract_strided_slice %16 {offsets = [0, 0, 64], sizes = [1, 16, 32], strides = [1, 1, 1]} : vector<1x16x128xf32> to vector<1x16x32xf32>
    %32 = math.tanh %31 : vector<1x16x32xf32>
    %33 = arith.mulf %28, %32 : vector<1x16x32xf32>
    %34 = arith.addf %30, %33 : vector<1x16x32xf32>
    %35 = vector.extract_strided_slice %16 {offsets = [0, 0, 96], sizes = [1, 16, 32], strides = [1, 1, 1]} : vector<1x16x128xf32> to vector<1x16x32xf32>
    %36 = vector.shape_cast %5 : vector<16x32xf32> to vector<1x16x32xf32>
    %37 = arith.mulf %34, %36 : vector<1x16x32xf32>
    %38 = arith.addf %35, %37 : vector<1x16x32xf32>
    %39 = arith.negf %38 : vector<1x16x32xf32>
    %40 = math.exp %39 : vector<1x16x32xf32>
    %cst_17 = arith.constant 1.000000e+00 : f32
    %41 = vector.broadcast %cst_17 : f32 to vector<1x16x32xf32>
    %42 = arith.addf %41, %40 : vector<1x16x32xf32>
    %43 = arith.divf %41, %42 : vector<1x16x32xf32>
    %44 = math.tanh %34 : vector<1x16x32xf32>
    %45 = arith.mulf %43, %44 : vector<1x16x32xf32>
    %46 = arith.truncf %45 : vector<1x16x32xf32> to vector<1x16x32xbf16>
    %c0_18 = arith.constant 0 : index
    %c1 = arith.constant 1 : index
    %c0_19 = arith.constant 0 : index
    %47 = vector.load %arg8[%c0_18, %c1, %c0_19] : memref<1x18x32xbf16, #tpu.memory_space<vmem>>, vector<1x16x32xbf16>
    tpu.vector_store %arg8[%c0_18, %c1, %c0_19], %46 {strides = array<i32>} : memref<1x18x32xbf16, #tpu.memory_space<vmem>>, vector<1x16x32xbf16>,
    %c0_20 = arith.constant 0 : index
    %c0_21 = arith.constant 0 : index
    %c0_22 = arith.constant 0 : index
    %48 = vector.load %arg9[%c0_20, %c0_21, %c0_22] : memref<1x16x32xf32, #tpu.memory_space<vmem>>, vector<1x16x32xf32>
    tpu.vector_store %arg9[%c0_20, %c0_21, %c0_22], %34 {strides = array<i32>} : memref<1x16x32xf32, #tpu.memory_space<vmem>>, vector<1x16x32xf32>,
    %c0_23 = arith.constant 0 : index
    %c0_24 = arith.constant 0 : index
    %c0_25 = arith.constant 0 : index
    %c0_26 = arith.constant 0 : index
    %49 = vector.load %arg6[%c0_23, %c0_24, %c0_25, %c0_26] : memref<8x1x16x32xbf16, #tpu.memory_space<vmem>>, vector<1x1x16x32xbf16>
    %50 = vector.shape_cast %49 : vector<1x1x16x32xbf16> to vector<1x16x32xbf16>
    %51 = vector.shape_cast %46 : vector<1x16x32xbf16> to vector<1x1x16x32xbf16>
    tpu.vector_store %arg6[%c0_23, %c0_24, %c0_25, %c0_26], %51 {strides = array<i32>} : memref<8x1x16x32xbf16, #tpu.memory_space<vmem>>, vector<1x1x16x32xbf16>,
    %c1_27 = arith.constant 1 : index
    %c0_28 = arith.constant 0 : index
    %c0_29 = arith.constant 0 : index
    %c0_30 = arith.constant 0 : index
    %52 = vector.load %arg2[%c1_27, %c0_28, %c0_29, %c0_30] : memref<8x1x16x128xf32, #tpu.memory_space<vmem>>, vector<1x1x16x128xf32>
    %53 = vector.shape_cast %52 : vector<1x1x16x128xf32> to vector<1x16x128xf32>
    %c0_31 = arith.constant 0 : index
    %c0_32 = arith.constant 0 : index
    %c0_33 = arith.constant 0 : index
    %54 = vector.load %arg8[%c0_31, %c0_32, %c0_33] : memref<1x18x32xbf16, #tpu.memory_space<vmem>>, vector<1x18x32xbf16>
    %55 = vector.extract_strided_slice %54 {offsets = [0, 0, 0], sizes = [1, 16, 32], strides = [1, 1, 1]} : vector<1x18x32xbf16> to vector<1x16x32xbf16>
    %56 = vector.extract_strided_slice %54 {offsets = [0, 1, 0], sizes = [1, 16, 32], strides = [1, 1, 1]} : vector<1x18x32xbf16> to vector<1x16x32xbf16>
    %57 = vector.extract_strided_slice %54 {offsets = [0, 2, 0], sizes = [1, 16, 32], strides = [1, 1, 1]} : vector<1x18x32xbf16> to vector<1x16x32xbf16>
    %58 = tpu.concatenate %55, %56, %57 in 2 : vector<1x16x32xbf16>, vector<1x16x32xbf16>, vector<1x16x32xbf16> -> vector<1x16x96xbf16>
    %59 = vector.shape_cast %58 : vector<1x16x96xbf16> to vector<16x96xbf16>
    %cst_34 = arith.constant dense<0.000000e+00> : vector<16x128xf32>
    %60 = tpu.matmul %59, %3, %cst_34 {dimension_numbers = #tpu.dot_dimension_numbers<[1], [0], [0], [1], [0, 0, 1, 1], [], []>} : vector<16x96xbf16>, vector<96x128xbf16>, vector<16x128xf32> -> vector<16x128xf32>
    %61 = vector.shape_cast %60 : vector<16x128xf32> to vector<1x16x128xf32>
    %62 = arith.addf %53, %61 : vector<1x16x128xf32>
    %c0_35 = arith.constant 0 : index
    %c0_36 = arith.constant 0 : index
    %c0_37 = arith.constant 0 : index
    %63 = vector.load %arg9[%c0_35, %c0_36, %c0_37] : memref<1x16x32xf32, #tpu.memory_space<vmem>>, vector<1x16x32xf32>
    %64 = vector.extract_strided_slice %62 {offsets = [0, 0, 0], sizes = [1, 16, 64], strides = [1, 1, 1]} : vector<1x16x128xf32> to vector<1x16x64xf32>
    %65 = tpu.concatenate %63, %63 in 2 : vector<1x16x32xf32>, vector<1x16x32xf32> -> vector<1x16x64xf32>
    %66 = vector.shape_cast %4 : vector<16x64xf32> to vector<1x16x64xf32>
    %67 = arith.mulf %65, %66 : vector<1x16x64xf32>
    %68 = arith.addf %64, %67 : vector<1x16x64xf32>
    %69 = arith.negf %68 : vector<1x16x64xf32>
    %70 = math.exp %69 : vector<1x16x64xf32>
    %cst_38 = arith.constant 1.000000e+00 : f32
    %71 = vector.broadcast %cst_38 : f32 to vector<1x16x64xf32>
    %72 = arith.addf %71, %70 : vector<1x16x64xf32>
    %73 = arith.divf %71, %72 : vector<1x16x64xf32>
    %74 = vector.extract_strided_slice %73 {offsets = [0, 0, 0], sizes = [1, 16, 32], strides = [1, 1, 1]} : vector<1x16x64xf32> to vector<1x16x32xf32>
    %75 = vector.extract_strided_slice %73 {offsets = [0, 0, 32], sizes = [1, 16, 32], strides = [1, 1, 1]} : vector<1x16x64xf32> to vector<1x16x32xf32>
    %76 = arith.mulf %75, %63 : vector<1x16x32xf32>
    %77 = vector.extract_strided_slice %62 {offsets = [0, 0, 64], sizes = [1, 16, 32], strides = [1, 1, 1]} : vector<1x16x128xf32> to vector<1x16x32xf32>
    %78 = math.tanh %77 : vector<1x16x32xf32>
    %79 = arith.mulf %74, %78 : vector<1x16x32xf32>
    %80 = arith.addf %76, %79 : vector<1x16x32xf32>
    %81 = vector.extract_strided_slice %62 {offsets = [0, 0, 96], sizes = [1, 16, 32], strides = [1, 1, 1]} : vector<1x16x128xf32> to vector<1x16x32xf32>
    %82 = vector.shape_cast %5 : vector<16x32xf32> to vector<1x16x32xf32>
    %83 = arith.mulf %80, %82 : vector<1x16x32xf32>
    %84 = arith.addf %81, %83 : vector<1x16x32xf32>
    %85 = arith.negf %84 : vector<1x16x32xf32>
    %86 = math.exp %85 : vector<1x16x32xf32>
    %cst_39 = arith.constant 1.000000e+00 : f32
    %87 = vector.broadcast %cst_39 : f32 to vector<1x16x32xf32>
    %88 = arith.addf %87, %86 : vector<1x16x32xf32>
    %89 = arith.divf %87, %88 : vector<1x16x32xf32>
    %90 = math.tanh %80 : vector<1x16x32xf32>
    %91 = arith.mulf %89, %90 : vector<1x16x32xf32>
    %92 = arith.truncf %91 : vector<1x16x32xf32> to vector<1x16x32xbf16>
    %c0_40 = arith.constant 0 : index
    %c1_41 = arith.constant 1 : index
    %c0_42 = arith.constant 0 : index
    %93 = vector.load %arg8[%c0_40, %c1_41, %c0_42] : memref<1x18x32xbf16, #tpu.memory_space<vmem>>, vector<1x16x32xbf16>
    tpu.vector_store %arg8[%c0_40, %c1_41, %c0_42], %92 {strides = array<i32>} : memref<1x18x32xbf16, #tpu.memory_space<vmem>>, vector<1x16x32xbf16>,
    %c0_43 = arith.constant 0 : index
    %c0_44 = arith.constant 0 : index
    %c0_45 = arith.constant 0 : index
    %94 = vector.load %arg9[%c0_43, %c0_44, %c0_45] : memref<1x16x32xf32, #tpu.memory_space<vmem>>, vector<1x16x32xf32>
    tpu.vector_store %arg9[%c0_43, %c0_44, %c0_45], %80 {strides = array<i32>} : memref<1x16x32xf32, #tpu.memory_space<vmem>>, vector<1x16x32xf32>,
    %c1_46 = arith.constant 1 : index
    %c0_47 = arith.constant 0 : index
    %c0_48 = arith.constant 0 : index
    %c0_49 = arith.constant 0 : index
    %95 = vector.load %arg6[%c1_46, %c0_47, %c0_48, %c0_49] : memref<8x1x16x32xbf16, #tpu.memory_space<vmem>>, vector<1x1x16x32xbf16>
    %96 = vector.shape_cast %95 : vector<1x1x16x32xbf16> to vector<1x16x32xbf16>
    %97 = vector.shape_cast %92 : vector<1x16x32xbf16> to vector<1x1x16x32xbf16>
    tpu.vector_store %arg6[%c1_46, %c0_47, %c0_48, %c0_49], %97 {strides = array<i32>} : memref<8x1x16x32xbf16, #tpu.memory_space<vmem>>, vector<1x1x16x32xbf16>,
    %c2 = arith.constant 2 : index
    %c0_50 = arith.constant 0 : index
    %c0_51 = arith.constant 0 : index
    %c0_52 = arith.constant 0 : index
    %98 = vector.load %arg2[%c2, %c0_50, %c0_51, %c0_52] : memref<8x1x16x128xf32, #tpu.memory_space<vmem>>, vector<1x1x16x128xf32>
    %99 = vector.shape_cast %98 : vector<1x1x16x128xf32> to vector<1x16x128xf32>
    %c0_53 = arith.constant 0 : index
    %c0_54 = arith.constant 0 : index
    %c0_55 = arith.constant 0 : index
    %100 = vector.load %arg8[%c0_53, %c0_54, %c0_55] : memref<1x18x32xbf16, #tpu.memory_space<vmem>>, vector<1x18x32xbf16>
    %101 = vector.extract_strided_slice %100 {offsets = [0, 0, 0], sizes = [1, 16, 32], strides = [1, 1, 1]} : vector<1x18x32xbf16> to vector<1x16x32xbf16>
    %102 = vector.extract_strided_slice %100 {offsets = [0, 1, 0], sizes = [1, 16, 32], strides = [1, 1, 1]} : vector<1x18x32xbf16> to vector<1x16x32xbf16>
    %103 = vector.extract_strided_slice %100 {offsets = [0, 2, 0], sizes = [1, 16, 32], strides = [1, 1, 1]} : vector<1x18x32xbf16> to vector<1x16x32xbf16>
    %104 = tpu.concatenate %101, %102, %103 in 2 : vector<1x16x32xbf16>, vector<1x16x32xbf16>, vector<1x16x32xbf16> -> vector<1x16x96xbf16>
    %105 = vector.shape_cast %104 : vector<1x16x96xbf16> to vector<16x96xbf16>
    %cst_56 = arith.constant dense<0.000000e+00> : vector<16x128xf32>
    %106 = tpu.matmul %105, %3, %cst_56 {dimension_numbers = #tpu.dot_dimension_numbers<[1], [0], [0], [1], [0, 0, 1, 1], [], []>} : vector<16x96xbf16>, vector<96x128xbf16>, vector<16x128xf32> -> vector<16x128xf32>
    %107 = vector.shape_cast %106 : vector<16x128xf32> to vector<1x16x128xf32>
    %108 = arith.addf %99, %107 : vector<1x16x128xf32>
    %c0_57 = arith.constant 0 : index
    %c0_58 = arith.constant 0 : index
    %c0_59 = arith.constant 0 : index
    %109 = vector.load %arg9[%c0_57, %c0_58, %c0_59] : memref<1x16x32xf32, #tpu.memory_space<vmem>>, vector<1x16x32xf32>
    %110 = vector.extract_strided_slice %108 {offsets = [0, 0, 0], sizes = [1, 16, 64], strides = [1, 1, 1]} : vector<1x16x128xf32> to vector<1x16x64xf32>
    %111 = tpu.concatenate %109, %109 in 2 : vector<1x16x32xf32>, vector<1x16x32xf32> -> vector<1x16x64xf32>
    %112 = vector.shape_cast %4 : vector<16x64xf32> to vector<1x16x64xf32>
    %113 = arith.mulf %111, %112 : vector<1x16x64xf32>
    %114 = arith.addf %110, %113 : vector<1x16x64xf32>
    %115 = arith.negf %114 : vector<1x16x64xf32>
    %116 = math.exp %115 : vector<1x16x64xf32>
    %cst_60 = arith.constant 1.000000e+00 : f32
    %117 = vector.broadcast %cst_60 : f32 to vector<1x16x64xf32>
    %118 = arith.addf %117, %116 : vector<1x16x64xf32>
    %119 = arith.divf %117, %118 : vector<1x16x64xf32>
    %120 = vector.extract_strided_slice %119 {offsets = [0, 0, 0], sizes = [1, 16, 32], strides = [1, 1, 1]} : vector<1x16x64xf32> to vector<1x16x32xf32>
    %121 = vector.extract_strided_slice %119 {offsets = [0, 0, 32], sizes = [1, 16, 32], strides = [1, 1, 1]} : vector<1x16x64xf32> to vector<1x16x32xf32>
    %122 = arith.mulf %121, %109 : vector<1x16x32xf32>
    %123 = vector.extract_strided_slice %108 {offsets = [0, 0, 64], sizes = [1, 16, 32], strides = [1, 1, 1]} : vector<1x16x128xf32> to vector<1x16x32xf32>
    %124 = math.tanh %123 : vector<1x16x32xf32>
    %125 = arith.mulf %120, %124 : vector<1x16x32xf32>
    %126 = arith.addf %122, %125 : vector<1x16x32xf32>
    %127 = vector.extract_strided_slice %108 {offsets = [0, 0, 96], sizes = [1, 16, 32], strides = [1, 1, 1]} : vector<1x16x128xf32> to vector<1x16x32xf32>
    %128 = vector.shape_cast %5 : vector<16x32xf32> to vector<1x16x32xf32>
    %129 = arith.mulf %126, %128 : vector<1x16x32xf32>
    %130 = arith.addf %127, %129 : vector<1x16x32xf32>
    %131 = arith.negf %130 : vector<1x16x32xf32>
    %132 = math.exp %131 : vector<1x16x32xf32>
    %cst_61 = arith.constant 1.000000e+00 : f32
    %133 = vector.broadcast %cst_61 : f32 to vector<1x16x32xf32>
    %134 = arith.addf %133, %132 : vector<1x16x32xf32>
    %135 = arith.divf %133, %134 : vector<1x16x32xf32>
    %136 = math.tanh %126 : vector<1x16x32xf32>
    %137 = arith.mulf %135, %136 : vector<1x16x32xf32>
    %138 = arith.truncf %137 : vector<1x16x32xf32> to vector<1x16x32xbf16>
    %c0_62 = arith.constant 0 : index
    %c1_63 = arith.constant 1 : index
    %c0_64 = arith.constant 0 : index
    %139 = vector.load %arg8[%c0_62, %c1_63, %c0_64] : memref<1x18x32xbf16, #tpu.memory_space<vmem>>, vector<1x16x32xbf16>
    tpu.vector_store %arg8[%c0_62, %c1_63, %c0_64], %138 {strides = array<i32>} : memref<1x18x32xbf16, #tpu.memory_space<vmem>>, vector<1x16x32xbf16>,
    %c0_65 = arith.constant 0 : index
    %c0_66 = arith.constant 0 : index
    %c0_67 = arith.constant 0 : index
    %140 = vector.load %arg9[%c0_65, %c0_66, %c0_67] : memref<1x16x32xf32, #tpu.memory_space<vmem>>, vector<1x16x32xf32>
    tpu.vector_store %arg9[%c0_65, %c0_66, %c0_67], %126 {strides = array<i32>} : memref<1x16x32xf32, #tpu.memory_space<vmem>>, vector<1x16x32xf32>,
    %c2_68 = arith.constant 2 : index
    %c0_69 = arith.constant 0 : index
    %c0_70 = arith.constant 0 : index
    %c0_71 = arith.constant 0 : index
    %141 = vector.load %arg6[%c2_68, %c0_69, %c0_70, %c0_71] : memref<8x1x16x32xbf16, #tpu.memory_space<vmem>>, vector<1x1x16x32xbf16>
    %142 = vector.shape_cast %141 : vector<1x1x16x32xbf16> to vector<1x16x32xbf16>
    %143 = vector.shape_cast %138 : vector<1x16x32xbf16> to vector<1x1x16x32xbf16>
    tpu.vector_store %arg6[%c2_68, %c0_69, %c0_70, %c0_71], %143 {strides = array<i32>} : memref<8x1x16x32xbf16, #tpu.memory_space<vmem>>, vector<1x1x16x32xbf16>,
    %c3 = arith.constant 3 : index
    %c0_72 = arith.constant 0 : index
    %c0_73 = arith.constant 0 : index
    %c0_74 = arith.constant 0 : index
    %144 = vector.load %arg2[%c3, %c0_72, %c0_73, %c0_74] : memref<8x1x16x128xf32, #tpu.memory_space<vmem>>, vector<1x1x16x128xf32>
    %145 = vector.shape_cast %144 : vector<1x1x16x128xf32> to vector<1x16x128xf32>
    %c0_75 = arith.constant 0 : index
    %c0_76 = arith.constant 0 : index
    %c0_77 = arith.constant 0 : index
    %146 = vector.load %arg8[%c0_75, %c0_76, %c0_77] : memref<1x18x32xbf16, #tpu.memory_space<vmem>>, vector<1x18x32xbf16>
    %147 = vector.extract_strided_slice %146 {offsets = [0, 0, 0], sizes = [1, 16, 32], strides = [1, 1, 1]} : vector<1x18x32xbf16> to vector<1x16x32xbf16>
    %148 = vector.extract_strided_slice %146 {offsets = [0, 1, 0], sizes = [1, 16, 32], strides = [1, 1, 1]} : vector<1x18x32xbf16> to vector<1x16x32xbf16>
    %149 = vector.extract_strided_slice %146 {offsets = [0, 2, 0], sizes = [1, 16, 32], strides = [1, 1, 1]} : vector<1x18x32xbf16> to vector<1x16x32xbf16>
    %150 = tpu.concatenate %147, %148, %149 in 2 : vector<1x16x32xbf16>, vector<1x16x32xbf16>, vector<1x16x32xbf16> -> vector<1x16x96xbf16>
    %151 = vector.shape_cast %150 : vector<1x16x96xbf16> to vector<16x96xbf16>
    %cst_78 = arith.constant dense<0.000000e+00> : vector<16x128xf32>
    %152 = tpu.matmul %151, %3, %cst_78 {dimension_numbers = #tpu.dot_dimension_numbers<[1], [0], [0], [1], [0, 0, 1, 1], [], []>} : vector<16x96xbf16>, vector<96x128xbf16>, vector<16x128xf32> -> vector<16x128xf32>
    %153 = vector.shape_cast %152 : vector<16x128xf32> to vector<1x16x128xf32>
    %154 = arith.addf %145, %153 : vector<1x16x128xf32>
    %c0_79 = arith.constant 0 : index
    %c0_80 = arith.constant 0 : index
    %c0_81 = arith.constant 0 : index
    %155 = vector.load %arg9[%c0_79, %c0_80, %c0_81] : memref<1x16x32xf32, #tpu.memory_space<vmem>>, vector<1x16x32xf32>
    %156 = vector.extract_strided_slice %154 {offsets = [0, 0, 0], sizes = [1, 16, 64], strides = [1, 1, 1]} : vector<1x16x128xf32> to vector<1x16x64xf32>
    %157 = tpu.concatenate %155, %155 in 2 : vector<1x16x32xf32>, vector<1x16x32xf32> -> vector<1x16x64xf32>
    %158 = vector.shape_cast %4 : vector<16x64xf32> to vector<1x16x64xf32>
    %159 = arith.mulf %157, %158 : vector<1x16x64xf32>
    %160 = arith.addf %156, %159 : vector<1x16x64xf32>
    %161 = arith.negf %160 : vector<1x16x64xf32>
    %162 = math.exp %161 : vector<1x16x64xf32>
    %cst_82 = arith.constant 1.000000e+00 : f32
    %163 = vector.broadcast %cst_82 : f32 to vector<1x16x64xf32>
    %164 = arith.addf %163, %162 : vector<1x16x64xf32>
    %165 = arith.divf %163, %164 : vector<1x16x64xf32>
    %166 = vector.extract_strided_slice %165 {offsets = [0, 0, 0], sizes = [1, 16, 32], strides = [1, 1, 1]} : vector<1x16x64xf32> to vector<1x16x32xf32>
    %167 = vector.extract_strided_slice %165 {offsets = [0, 0, 32], sizes = [1, 16, 32], strides = [1, 1, 1]} : vector<1x16x64xf32> to vector<1x16x32xf32>
    %168 = arith.mulf %167, %155 : vector<1x16x32xf32>
    %169 = vector.extract_strided_slice %154 {offsets = [0, 0, 64], sizes = [1, 16, 32], strides = [1, 1, 1]} : vector<1x16x128xf32> to vector<1x16x32xf32>
    %170 = math.tanh %169 : vector<1x16x32xf32>
    %171 = arith.mulf %166, %170 : vector<1x16x32xf32>
    %172 = arith.addf %168, %171 : vector<1x16x32xf32>
    %173 = vector.extract_strided_slice %154 {offsets = [0, 0, 96], sizes = [1, 16, 32], strides = [1, 1, 1]} : vector<1x16x128xf32> to vector<1x16x32xf32>
    %174 = vector.shape_cast %5 : vector<16x32xf32> to vector<1x16x32xf32>
    %175 = arith.mulf %172, %174 : vector<1x16x32xf32>
    %176 = arith.addf %173, %175 : vector<1x16x32xf32>
    %177 = arith.negf %176 : vector<1x16x32xf32>
    %178 = math.exp %177 : vector<1x16x32xf32>
    %cst_83 = arith.constant 1.000000e+00 : f32
    %179 = vector.broadcast %cst_83 : f32 to vector<1x16x32xf32>
    %180 = arith.addf %179, %178 : vector<1x16x32xf32>
    %181 = arith.divf %179, %180 : vector<1x16x32xf32>
    %182 = math.tanh %172 : vector<1x16x32xf32>
    %183 = arith.mulf %181, %182 : vector<1x16x32xf32>
    %184 = arith.truncf %183 : vector<1x16x32xf32> to vector<1x16x32xbf16>
    %c0_84 = arith.constant 0 : index
    %c1_85 = arith.constant 1 : index
    %c0_86 = arith.constant 0 : index
    %185 = vector.load %arg8[%c0_84, %c1_85, %c0_86] : memref<1x18x32xbf16, #tpu.memory_space<vmem>>, vector<1x16x32xbf16>
    tpu.vector_store %arg8[%c0_84, %c1_85, %c0_86], %184 {strides = array<i32>} : memref<1x18x32xbf16, #tpu.memory_space<vmem>>, vector<1x16x32xbf16>,
    %c0_87 = arith.constant 0 : index
    %c0_88 = arith.constant 0 : index
    %c0_89 = arith.constant 0 : index
    %186 = vector.load %arg9[%c0_87, %c0_88, %c0_89] : memref<1x16x32xf32, #tpu.memory_space<vmem>>, vector<1x16x32xf32>
    tpu.vector_store %arg9[%c0_87, %c0_88, %c0_89], %172 {strides = array<i32>} : memref<1x16x32xf32, #tpu.memory_space<vmem>>, vector<1x16x32xf32>,
    %c3_90 = arith.constant 3 : index
    %c0_91 = arith.constant 0 : index
    %c0_92 = arith.constant 0 : index
    %c0_93 = arith.constant 0 : index
    %187 = vector.load %arg6[%c3_90, %c0_91, %c0_92, %c0_93] : memref<8x1x16x32xbf16, #tpu.memory_space<vmem>>, vector<1x1x16x32xbf16>
    %188 = vector.shape_cast %187 : vector<1x1x16x32xbf16> to vector<1x16x32xbf16>
    %189 = vector.shape_cast %184 : vector<1x16x32xbf16> to vector<1x1x16x32xbf16>
    tpu.vector_store %arg6[%c3_90, %c0_91, %c0_92, %c0_93], %189 {strides = array<i32>} : memref<8x1x16x32xbf16, #tpu.memory_space<vmem>>, vector<1x1x16x32xbf16>,
    %c4 = arith.constant 4 : index
    %c0_94 = arith.constant 0 : index
    %c0_95 = arith.constant 0 : index
    %c0_96 = arith.constant 0 : index
    %190 = vector.load %arg2[%c4, %c0_94, %c0_95, %c0_96] : memref<8x1x16x128xf32, #tpu.memory_space<vmem>>, vector<1x1x16x128xf32>
    %191 = vector.shape_cast %190 : vector<1x1x16x128xf32> to vector<1x16x128xf32>
    %c0_97 = arith.constant 0 : index
    %c0_98 = arith.constant 0 : index
    %c0_99 = arith.constant 0 : index
    %192 = vector.load %arg8[%c0_97, %c0_98, %c0_99] : memref<1x18x32xbf16, #tpu.memory_space<vmem>>, vector<1x18x32xbf16>
    %193 = vector.extract_strided_slice %192 {offsets = [0, 0, 0], sizes = [1, 16, 32], strides = [1, 1, 1]} : vector<1x18x32xbf16> to vector<1x16x32xbf16>
    %194 = vector.extract_strided_slice %192 {offsets = [0, 1, 0], sizes = [1, 16, 32], strides = [1, 1, 1]} : vector<1x18x32xbf16> to vector<1x16x32xbf16>
    %195 = vector.extract_strided_slice %192 {offsets = [0, 2, 0], sizes = [1, 16, 32], strides = [1, 1, 1]} : vector<1x18x32xbf16> to vector<1x16x32xbf16>
    %196 = tpu.concatenate %193, %194, %195 in 2 : vector<1x16x32xbf16>, vector<1x16x32xbf16>, vector<1x16x32xbf16> -> vector<1x16x96xbf16>
    %197 = vector.shape_cast %196 : vector<1x16x96xbf16> to vector<16x96xbf16>
    %cst_100 = arith.constant dense<0.000000e+00> : vector<16x128xf32>
    %198 = tpu.matmul %197, %3, %cst_100 {dimension_numbers = #tpu.dot_dimension_numbers<[1], [0], [0], [1], [0, 0, 1, 1], [], []>} : vector<16x96xbf16>, vector<96x128xbf16>, vector<16x128xf32> -> vector<16x128xf32>
    %199 = vector.shape_cast %198 : vector<16x128xf32> to vector<1x16x128xf32>
    %200 = arith.addf %191, %199 : vector<1x16x128xf32>
    %c0_101 = arith.constant 0 : index
    %c0_102 = arith.constant 0 : index
    %c0_103 = arith.constant 0 : index
    %201 = vector.load %arg9[%c0_101, %c0_102, %c0_103] : memref<1x16x32xf32, #tpu.memory_space<vmem>>, vector<1x16x32xf32>
    %202 = vector.extract_strided_slice %200 {offsets = [0, 0, 0], sizes = [1, 16, 64], strides = [1, 1, 1]} : vector<1x16x128xf32> to vector<1x16x64xf32>
    %203 = tpu.concatenate %201, %201 in 2 : vector<1x16x32xf32>, vector<1x16x32xf32> -> vector<1x16x64xf32>
    %204 = vector.shape_cast %4 : vector<16x64xf32> to vector<1x16x64xf32>
    %205 = arith.mulf %203, %204 : vector<1x16x64xf32>
    %206 = arith.addf %202, %205 : vector<1x16x64xf32>
    %207 = arith.negf %206 : vector<1x16x64xf32>
    %208 = math.exp %207 : vector<1x16x64xf32>
    %cst_104 = arith.constant 1.000000e+00 : f32
    %209 = vector.broadcast %cst_104 : f32 to vector<1x16x64xf32>
    %210 = arith.addf %209, %208 : vector<1x16x64xf32>
    %211 = arith.divf %209, %210 : vector<1x16x64xf32>
    %212 = vector.extract_strided_slice %211 {offsets = [0, 0, 0], sizes = [1, 16, 32], strides = [1, 1, 1]} : vector<1x16x64xf32> to vector<1x16x32xf32>
    %213 = vector.extract_strided_slice %211 {offsets = [0, 0, 32], sizes = [1, 16, 32], strides = [1, 1, 1]} : vector<1x16x64xf32> to vector<1x16x32xf32>
    %214 = arith.mulf %213, %201 : vector<1x16x32xf32>
    %215 = vector.extract_strided_slice %200 {offsets = [0, 0, 64], sizes = [1, 16, 32], strides = [1, 1, 1]} : vector<1x16x128xf32> to vector<1x16x32xf32>
    %216 = math.tanh %215 : vector<1x16x32xf32>
    %217 = arith.mulf %212, %216 : vector<1x16x32xf32>
    %218 = arith.addf %214, %217 : vector<1x16x32xf32>
    %219 = vector.extract_strided_slice %200 {offsets = [0, 0, 96], sizes = [1, 16, 32], strides = [1, 1, 1]} : vector<1x16x128xf32> to vector<1x16x32xf32>
    %220 = vector.shape_cast %5 : vector<16x32xf32> to vector<1x16x32xf32>
    %221 = arith.mulf %218, %220 : vector<1x16x32xf32>
    %222 = arith.addf %219, %221 : vector<1x16x32xf32>
    %223 = arith.negf %222 : vector<1x16x32xf32>
    %224 = math.exp %223 : vector<1x16x32xf32>
    %cst_105 = arith.constant 1.000000e+00 : f32
    %225 = vector.broadcast %cst_105 : f32 to vector<1x16x32xf32>
    %226 = arith.addf %225, %224 : vector<1x16x32xf32>
    %227 = arith.divf %225, %226 : vector<1x16x32xf32>
    %228 = math.tanh %218 : vector<1x16x32xf32>
    %229 = arith.mulf %227, %228 : vector<1x16x32xf32>
    %230 = arith.truncf %229 : vector<1x16x32xf32> to vector<1x16x32xbf16>
    %c0_106 = arith.constant 0 : index
    %c1_107 = arith.constant 1 : index
    %c0_108 = arith.constant 0 : index
    %231 = vector.load %arg8[%c0_106, %c1_107, %c0_108] : memref<1x18x32xbf16, #tpu.memory_space<vmem>>, vector<1x16x32xbf16>
    tpu.vector_store %arg8[%c0_106, %c1_107, %c0_108], %230 {strides = array<i32>} : memref<1x18x32xbf16, #tpu.memory_space<vmem>>, vector<1x16x32xbf16>,
    %c0_109 = arith.constant 0 : index
    %c0_110 = arith.constant 0 : index
    %c0_111 = arith.constant 0 : index
    %232 = vector.load %arg9[%c0_109, %c0_110, %c0_111] : memref<1x16x32xf32, #tpu.memory_space<vmem>>, vector<1x16x32xf32>
    tpu.vector_store %arg9[%c0_109, %c0_110, %c0_111], %218 {strides = array<i32>} : memref<1x16x32xf32, #tpu.memory_space<vmem>>, vector<1x16x32xf32>,
    %c4_112 = arith.constant 4 : index
    %c0_113 = arith.constant 0 : index
    %c0_114 = arith.constant 0 : index
    %c0_115 = arith.constant 0 : index
    %233 = vector.load %arg6[%c4_112, %c0_113, %c0_114, %c0_115] : memref<8x1x16x32xbf16, #tpu.memory_space<vmem>>, vector<1x1x16x32xbf16>
    %234 = vector.shape_cast %233 : vector<1x1x16x32xbf16> to vector<1x16x32xbf16>
    %235 = vector.shape_cast %230 : vector<1x16x32xbf16> to vector<1x1x16x32xbf16>
    tpu.vector_store %arg6[%c4_112, %c0_113, %c0_114, %c0_115], %235 {strides = array<i32>} : memref<8x1x16x32xbf16, #tpu.memory_space<vmem>>, vector<1x1x16x32xbf16>,
    %c5 = arith.constant 5 : index
    %c0_116 = arith.constant 0 : index
    %c0_117 = arith.constant 0 : index
    %c0_118 = arith.constant 0 : index
    %236 = vector.load %arg2[%c5, %c0_116, %c0_117, %c0_118] : memref<8x1x16x128xf32, #tpu.memory_space<vmem>>, vector<1x1x16x128xf32>
    %237 = vector.shape_cast %236 : vector<1x1x16x128xf32> to vector<1x16x128xf32>
    %c0_119 = arith.constant 0 : index
    %c0_120 = arith.constant 0 : index
    %c0_121 = arith.constant 0 : index
    %238 = vector.load %arg8[%c0_119, %c0_120, %c0_121] : memref<1x18x32xbf16, #tpu.memory_space<vmem>>, vector<1x18x32xbf16>
    %239 = vector.extract_strided_slice %238 {offsets = [0, 0, 0], sizes = [1, 16, 32], strides = [1, 1, 1]} : vector<1x18x32xbf16> to vector<1x16x32xbf16>
    %240 = vector.extract_strided_slice %238 {offsets = [0, 1, 0], sizes = [1, 16, 32], strides = [1, 1, 1]} : vector<1x18x32xbf16> to vector<1x16x32xbf16>
    %241 = vector.extract_strided_slice %238 {offsets = [0, 2, 0], sizes = [1, 16, 32], strides = [1, 1, 1]} : vector<1x18x32xbf16> to vector<1x16x32xbf16>
    %242 = tpu.concatenate %239, %240, %241 in 2 : vector<1x16x32xbf16>, vector<1x16x32xbf16>, vector<1x16x32xbf16> -> vector<1x16x96xbf16>
    %243 = vector.shape_cast %242 : vector<1x16x96xbf16> to vector<16x96xbf16>
    %cst_122 = arith.constant dense<0.000000e+00> : vector<16x128xf32>
    %244 = tpu.matmul %243, %3, %cst_122 {dimension_numbers = #tpu.dot_dimension_numbers<[1], [0], [0], [1], [0, 0, 1, 1], [], []>} : vector<16x96xbf16>, vector<96x128xbf16>, vector<16x128xf32> -> vector<16x128xf32>
    %245 = vector.shape_cast %244 : vector<16x128xf32> to vector<1x16x128xf32>
    %246 = arith.addf %237, %245 : vector<1x16x128xf32>
    %c0_123 = arith.constant 0 : index
    %c0_124 = arith.constant 0 : index
    %c0_125 = arith.constant 0 : index
    %247 = vector.load %arg9[%c0_123, %c0_124, %c0_125] : memref<1x16x32xf32, #tpu.memory_space<vmem>>, vector<1x16x32xf32>
    %248 = vector.extract_strided_slice %246 {offsets = [0, 0, 0], sizes = [1, 16, 64], strides = [1, 1, 1]} : vector<1x16x128xf32> to vector<1x16x64xf32>
    %249 = tpu.concatenate %247, %247 in 2 : vector<1x16x32xf32>, vector<1x16x32xf32> -> vector<1x16x64xf32>
    %250 = vector.shape_cast %4 : vector<16x64xf32> to vector<1x16x64xf32>
    %251 = arith.mulf %249, %250 : vector<1x16x64xf32>
    %252 = arith.addf %248, %251 : vector<1x16x64xf32>
    %253 = arith.negf %252 : vector<1x16x64xf32>
    %254 = math.exp %253 : vector<1x16x64xf32>
    %cst_126 = arith.constant 1.000000e+00 : f32
    %255 = vector.broadcast %cst_126 : f32 to vector<1x16x64xf32>
    %256 = arith.addf %255, %254 : vector<1x16x64xf32>
    %257 = arith.divf %255, %256 : vector<1x16x64xf32>
    %258 = vector.extract_strided_slice %257 {offsets = [0, 0, 0], sizes = [1, 16, 32], strides = [1, 1, 1]} : vector<1x16x64xf32> to vector<1x16x32xf32>
    %259 = vector.extract_strided_slice %257 {offsets = [0, 0, 32], sizes = [1, 16, 32], strides = [1, 1, 1]} : vector<1x16x64xf32> to vector<1x16x32xf32>
    %260 = arith.mulf %259, %247 : vector<1x16x32xf32>
    %261 = vector.extract_strided_slice %246 {offsets = [0, 0, 64], sizes = [1, 16, 32], strides = [1, 1, 1]} : vector<1x16x128xf32> to vector<1x16x32xf32>
    %262 = math.tanh %261 : vector<1x16x32xf32>
    %263 = arith.mulf %258, %262 : vector<1x16x32xf32>
    %264 = arith.addf %260, %263 : vector<1x16x32xf32>
    %265 = vector.extract_strided_slice %246 {offsets = [0, 0, 96], sizes = [1, 16, 32], strides = [1, 1, 1]} : vector<1x16x128xf32> to vector<1x16x32xf32>
    %266 = vector.shape_cast %5 : vector<16x32xf32> to vector<1x16x32xf32>
    %267 = arith.mulf %264, %266 : vector<1x16x32xf32>
    %268 = arith.addf %265, %267 : vector<1x16x32xf32>
    %269 = arith.negf %268 : vector<1x16x32xf32>
    %270 = math.exp %269 : vector<1x16x32xf32>
    %cst_127 = arith.constant 1.000000e+00 : f32
    %271 = vector.broadcast %cst_127 : f32 to vector<1x16x32xf32>
    %272 = arith.addf %271, %270 : vector<1x16x32xf32>
    %273 = arith.divf %271, %272 : vector<1x16x32xf32>
    %274 = math.tanh %264 : vector<1x16x32xf32>
    %275 = arith.mulf %273, %274 : vector<1x16x32xf32>
    %276 = arith.truncf %275 : vector<1x16x32xf32> to vector<1x16x32xbf16>
    %c0_128 = arith.constant 0 : index
    %c1_129 = arith.constant 1 : index
    %c0_130 = arith.constant 0 : index
    %277 = vector.load %arg8[%c0_128, %c1_129, %c0_130] : memref<1x18x32xbf16, #tpu.memory_space<vmem>>, vector<1x16x32xbf16>
    tpu.vector_store %arg8[%c0_128, %c1_129, %c0_130], %276 {strides = array<i32>} : memref<1x18x32xbf16, #tpu.memory_space<vmem>>, vector<1x16x32xbf16>,
    %c0_131 = arith.constant 0 : index
    %c0_132 = arith.constant 0 : index
    %c0_133 = arith.constant 0 : index
    %278 = vector.load %arg9[%c0_131, %c0_132, %c0_133] : memref<1x16x32xf32, #tpu.memory_space<vmem>>, vector<1x16x32xf32>
    tpu.vector_store %arg9[%c0_131, %c0_132, %c0_133], %264 {strides = array<i32>} : memref<1x16x32xf32, #tpu.memory_space<vmem>>, vector<1x16x32xf32>,
    %c5_134 = arith.constant 5 : index
    %c0_135 = arith.constant 0 : index
    %c0_136 = arith.constant 0 : index
    %c0_137 = arith.constant 0 : index
    %279 = vector.load %arg6[%c5_134, %c0_135, %c0_136, %c0_137] : memref<8x1x16x32xbf16, #tpu.memory_space<vmem>>, vector<1x1x16x32xbf16>
    %280 = vector.shape_cast %279 : vector<1x1x16x32xbf16> to vector<1x16x32xbf16>
    %281 = vector.shape_cast %276 : vector<1x16x32xbf16> to vector<1x1x16x32xbf16>
    tpu.vector_store %arg6[%c5_134, %c0_135, %c0_136, %c0_137], %281 {strides = array<i32>} : memref<8x1x16x32xbf16, #tpu.memory_space<vmem>>, vector<1x1x16x32xbf16>,
    %c6 = arith.constant 6 : index
    %c0_138 = arith.constant 0 : index
    %c0_139 = arith.constant 0 : index
    %c0_140 = arith.constant 0 : index
    %282 = vector.load %arg2[%c6, %c0_138, %c0_139, %c0_140] : memref<8x1x16x128xf32, #tpu.memory_space<vmem>>, vector<1x1x16x128xf32>
    %283 = vector.shape_cast %282 : vector<1x1x16x128xf32> to vector<1x16x128xf32>
    %c0_141 = arith.constant 0 : index
    %c0_142 = arith.constant 0 : index
    %c0_143 = arith.constant 0 : index
    %284 = vector.load %arg8[%c0_141, %c0_142, %c0_143] : memref<1x18x32xbf16, #tpu.memory_space<vmem>>, vector<1x18x32xbf16>
    %285 = vector.extract_strided_slice %284 {offsets = [0, 0, 0], sizes = [1, 16, 32], strides = [1, 1, 1]} : vector<1x18x32xbf16> to vector<1x16x32xbf16>
    %286 = vector.extract_strided_slice %284 {offsets = [0, 1, 0], sizes = [1, 16, 32], strides = [1, 1, 1]} : vector<1x18x32xbf16> to vector<1x16x32xbf16>
    %287 = vector.extract_strided_slice %284 {offsets = [0, 2, 0], sizes = [1, 16, 32], strides = [1, 1, 1]} : vector<1x18x32xbf16> to vector<1x16x32xbf16>
    %288 = tpu.concatenate %285, %286, %287 in 2 : vector<1x16x32xbf16>, vector<1x16x32xbf16>, vector<1x16x32xbf16> -> vector<1x16x96xbf16>
    %289 = vector.shape_cast %288 : vector<1x16x96xbf16> to vector<16x96xbf16>
    %cst_144 = arith.constant dense<0.000000e+00> : vector<16x128xf32>
    %290 = tpu.matmul %289, %3, %cst_144 {dimension_numbers = #tpu.dot_dimension_numbers<[1], [0], [0], [1], [0, 0, 1, 1], [], []>} : vector<16x96xbf16>, vector<96x128xbf16>, vector<16x128xf32> -> vector<16x128xf32>
    %291 = vector.shape_cast %290 : vector<16x128xf32> to vector<1x16x128xf32>
    %292 = arith.addf %283, %291 : vector<1x16x128xf32>
    %c0_145 = arith.constant 0 : index
    %c0_146 = arith.constant 0 : index
    %c0_147 = arith.constant 0 : index
    %293 = vector.load %arg9[%c0_145, %c0_146, %c0_147] : memref<1x16x32xf32, #tpu.memory_space<vmem>>, vector<1x16x32xf32>
    %294 = vector.extract_strided_slice %292 {offsets = [0, 0, 0], sizes = [1, 16, 64], strides = [1, 1, 1]} : vector<1x16x128xf32> to vector<1x16x64xf32>
    %295 = tpu.concatenate %293, %293 in 2 : vector<1x16x32xf32>, vector<1x16x32xf32> -> vector<1x16x64xf32>
    %296 = vector.shape_cast %4 : vector<16x64xf32> to vector<1x16x64xf32>
    %297 = arith.mulf %295, %296 : vector<1x16x64xf32>
    %298 = arith.addf %294, %297 : vector<1x16x64xf32>
    %299 = arith.negf %298 : vector<1x16x64xf32>
    %300 = math.exp %299 : vector<1x16x64xf32>
    %cst_148 = arith.constant 1.000000e+00 : f32
    %301 = vector.broadcast %cst_148 : f32 to vector<1x16x64xf32>
    %302 = arith.addf %301, %300 : vector<1x16x64xf32>
    %303 = arith.divf %301, %302 : vector<1x16x64xf32>
    %304 = vector.extract_strided_slice %303 {offsets = [0, 0, 0], sizes = [1, 16, 32], strides = [1, 1, 1]} : vector<1x16x64xf32> to vector<1x16x32xf32>
    %305 = vector.extract_strided_slice %303 {offsets = [0, 0, 32], sizes = [1, 16, 32], strides = [1, 1, 1]} : vector<1x16x64xf32> to vector<1x16x32xf32>
    %306 = arith.mulf %305, %293 : vector<1x16x32xf32>
    %307 = vector.extract_strided_slice %292 {offsets = [0, 0, 64], sizes = [1, 16, 32], strides = [1, 1, 1]} : vector<1x16x128xf32> to vector<1x16x32xf32>
    %308 = math.tanh %307 : vector<1x16x32xf32>
    %309 = arith.mulf %304, %308 : vector<1x16x32xf32>
    %310 = arith.addf %306, %309 : vector<1x16x32xf32>
    %311 = vector.extract_strided_slice %292 {offsets = [0, 0, 96], sizes = [1, 16, 32], strides = [1, 1, 1]} : vector<1x16x128xf32> to vector<1x16x32xf32>
    %312 = vector.shape_cast %5 : vector<16x32xf32> to vector<1x16x32xf32>
    %313 = arith.mulf %310, %312 : vector<1x16x32xf32>
    %314 = arith.addf %311, %313 : vector<1x16x32xf32>
    %315 = arith.negf %314 : vector<1x16x32xf32>
    %316 = math.exp %315 : vector<1x16x32xf32>
    %cst_149 = arith.constant 1.000000e+00 : f32
    %317 = vector.broadcast %cst_149 : f32 to vector<1x16x32xf32>
    %318 = arith.addf %317, %316 : vector<1x16x32xf32>
    %319 = arith.divf %317, %318 : vector<1x16x32xf32>
    %320 = math.tanh %310 : vector<1x16x32xf32>
    %321 = arith.mulf %319, %320 : vector<1x16x32xf32>
    %322 = arith.truncf %321 : vector<1x16x32xf32> to vector<1x16x32xbf16>
    %c0_150 = arith.constant 0 : index
    %c1_151 = arith.constant 1 : index
    %c0_152 = arith.constant 0 : index
    %323 = vector.load %arg8[%c0_150, %c1_151, %c0_152] : memref<1x18x32xbf16, #tpu.memory_space<vmem>>, vector<1x16x32xbf16>
    tpu.vector_store %arg8[%c0_150, %c1_151, %c0_152], %322 {strides = array<i32>} : memref<1x18x32xbf16, #tpu.memory_space<vmem>>, vector<1x16x32xbf16>,
    %c0_153 = arith.constant 0 : index
    %c0_154 = arith.constant 0 : index
    %c0_155 = arith.constant 0 : index
    %324 = vector.load %arg9[%c0_153, %c0_154, %c0_155] : memref<1x16x32xf32, #tpu.memory_space<vmem>>, vector<1x16x32xf32>
    tpu.vector_store %arg9[%c0_153, %c0_154, %c0_155], %310 {strides = array<i32>} : memref<1x16x32xf32, #tpu.memory_space<vmem>>, vector<1x16x32xf32>,
    %c6_156 = arith.constant 6 : index
    %c0_157 = arith.constant 0 : index
    %c0_158 = arith.constant 0 : index
    %c0_159 = arith.constant 0 : index
    %325 = vector.load %arg6[%c6_156, %c0_157, %c0_158, %c0_159] : memref<8x1x16x32xbf16, #tpu.memory_space<vmem>>, vector<1x1x16x32xbf16>
    %326 = vector.shape_cast %325 : vector<1x1x16x32xbf16> to vector<1x16x32xbf16>
    %327 = vector.shape_cast %322 : vector<1x16x32xbf16> to vector<1x1x16x32xbf16>
    tpu.vector_store %arg6[%c6_156, %c0_157, %c0_158, %c0_159], %327 {strides = array<i32>} : memref<8x1x16x32xbf16, #tpu.memory_space<vmem>>, vector<1x1x16x32xbf16>,
    %c7 = arith.constant 7 : index
    %c0_160 = arith.constant 0 : index
    %c0_161 = arith.constant 0 : index
    %c0_162 = arith.constant 0 : index
    %328 = vector.load %arg2[%c7, %c0_160, %c0_161, %c0_162] : memref<8x1x16x128xf32, #tpu.memory_space<vmem>>, vector<1x1x16x128xf32>
    %329 = vector.shape_cast %328 : vector<1x1x16x128xf32> to vector<1x16x128xf32>
    %c0_163 = arith.constant 0 : index
    %c0_164 = arith.constant 0 : index
    %c0_165 = arith.constant 0 : index
    %330 = vector.load %arg8[%c0_163, %c0_164, %c0_165] : memref<1x18x32xbf16, #tpu.memory_space<vmem>>, vector<1x18x32xbf16>
    %331 = vector.extract_strided_slice %330 {offsets = [0, 0, 0], sizes = [1, 16, 32], strides = [1, 1, 1]} : vector<1x18x32xbf16> to vector<1x16x32xbf16>
    %332 = vector.extract_strided_slice %330 {offsets = [0, 1, 0], sizes = [1, 16, 32], strides = [1, 1, 1]} : vector<1x18x32xbf16> to vector<1x16x32xbf16>
    %333 = vector.extract_strided_slice %330 {offsets = [0, 2, 0], sizes = [1, 16, 32], strides = [1, 1, 1]} : vector<1x18x32xbf16> to vector<1x16x32xbf16>
    %334 = tpu.concatenate %331, %332, %333 in 2 : vector<1x16x32xbf16>, vector<1x16x32xbf16>, vector<1x16x32xbf16> -> vector<1x16x96xbf16>
    %335 = vector.shape_cast %334 : vector<1x16x96xbf16> to vector<16x96xbf16>
    %cst_166 = arith.constant dense<0.000000e+00> : vector<16x128xf32>
    %336 = tpu.matmul %335, %3, %cst_166 {dimension_numbers = #tpu.dot_dimension_numbers<[1], [0], [0], [1], [0, 0, 1, 1], [], []>} : vector<16x96xbf16>, vector<96x128xbf16>, vector<16x128xf32> -> vector<16x128xf32>
    %337 = vector.shape_cast %336 : vector<16x128xf32> to vector<1x16x128xf32>
    %338 = arith.addf %329, %337 : vector<1x16x128xf32>
    %c0_167 = arith.constant 0 : index
    %c0_168 = arith.constant 0 : index
    %c0_169 = arith.constant 0 : index
    %339 = vector.load %arg9[%c0_167, %c0_168, %c0_169] : memref<1x16x32xf32, #tpu.memory_space<vmem>>, vector<1x16x32xf32>
    %340 = vector.extract_strided_slice %338 {offsets = [0, 0, 0], sizes = [1, 16, 64], strides = [1, 1, 1]} : vector<1x16x128xf32> to vector<1x16x64xf32>
    %341 = tpu.concatenate %339, %339 in 2 : vector<1x16x32xf32>, vector<1x16x32xf32> -> vector<1x16x64xf32>
    %342 = vector.shape_cast %4 : vector<16x64xf32> to vector<1x16x64xf32>
    %343 = arith.mulf %341, %342 : vector<1x16x64xf32>
    %344 = arith.addf %340, %343 : vector<1x16x64xf32>
    %345 = arith.negf %344 : vector<1x16x64xf32>
    %346 = math.exp %345 : vector<1x16x64xf32>
    %cst_170 = arith.constant 1.000000e+00 : f32
    %347 = vector.broadcast %cst_170 : f32 to vector<1x16x64xf32>
    %348 = arith.addf %347, %346 : vector<1x16x64xf32>
    %349 = arith.divf %347, %348 : vector<1x16x64xf32>
    %350 = vector.extract_strided_slice %349 {offsets = [0, 0, 0], sizes = [1, 16, 32], strides = [1, 1, 1]} : vector<1x16x64xf32> to vector<1x16x32xf32>
    %351 = vector.extract_strided_slice %349 {offsets = [0, 0, 32], sizes = [1, 16, 32], strides = [1, 1, 1]} : vector<1x16x64xf32> to vector<1x16x32xf32>
    %352 = arith.mulf %351, %339 : vector<1x16x32xf32>
    %353 = vector.extract_strided_slice %338 {offsets = [0, 0, 64], sizes = [1, 16, 32], strides = [1, 1, 1]} : vector<1x16x128xf32> to vector<1x16x32xf32>
    %354 = math.tanh %353 : vector<1x16x32xf32>
    %355 = arith.mulf %350, %354 : vector<1x16x32xf32>
    %356 = arith.addf %352, %355 : vector<1x16x32xf32>
    %357 = vector.extract_strided_slice %338 {offsets = [0, 0, 96], sizes = [1, 16, 32], strides = [1, 1, 1]} : vector<1x16x128xf32> to vector<1x16x32xf32>
    %358 = vector.shape_cast %5 : vector<16x32xf32> to vector<1x16x32xf32>
    %359 = arith.mulf %356, %358 : vector<1x16x32xf32>
    %360 = arith.addf %357, %359 : vector<1x16x32xf32>
    %361 = arith.negf %360 : vector<1x16x32xf32>
    %362 = math.exp %361 : vector<1x16x32xf32>
    %cst_171 = arith.constant 1.000000e+00 : f32
    %363 = vector.broadcast %cst_171 : f32 to vector<1x16x32xf32>
    %364 = arith.addf %363, %362 : vector<1x16x32xf32>
    %365 = arith.divf %363, %364 : vector<1x16x32xf32>
    %366 = math.tanh %356 : vector<1x16x32xf32>
    %367 = arith.mulf %365, %366 : vector<1x16x32xf32>
    %368 = arith.truncf %367 : vector<1x16x32xf32> to vector<1x16x32xbf16>
    %c0_172 = arith.constant 0 : index
    %c1_173 = arith.constant 1 : index
    %c0_174 = arith.constant 0 : index
    %369 = vector.load %arg8[%c0_172, %c1_173, %c0_174] : memref<1x18x32xbf16, #tpu.memory_space<vmem>>, vector<1x16x32xbf16>
    tpu.vector_store %arg8[%c0_172, %c1_173, %c0_174], %368 {strides = array<i32>} : memref<1x18x32xbf16, #tpu.memory_space<vmem>>, vector<1x16x32xbf16>,
    %c0_175 = arith.constant 0 : index
    %c0_176 = arith.constant 0 : index
    %c0_177 = arith.constant 0 : index
    %370 = vector.load %arg9[%c0_175, %c0_176, %c0_177] : memref<1x16x32xf32, #tpu.memory_space<vmem>>, vector<1x16x32xf32>
    tpu.vector_store %arg9[%c0_175, %c0_176, %c0_177], %356 {strides = array<i32>} : memref<1x16x32xf32, #tpu.memory_space<vmem>>, vector<1x16x32xf32>,
    %c7_178 = arith.constant 7 : index
    %c0_179 = arith.constant 0 : index
    %c0_180 = arith.constant 0 : index
    %c0_181 = arith.constant 0 : index
    %371 = vector.load %arg6[%c7_178, %c0_179, %c0_180, %c0_181] : memref<8x1x16x32xbf16, #tpu.memory_space<vmem>>, vector<1x1x16x32xbf16>
    %372 = vector.shape_cast %371 : vector<1x1x16x32xbf16> to vector<1x16x32xbf16>
    %373 = vector.shape_cast %368 : vector<1x16x32xbf16> to vector<1x1x16x32xbf16>
    tpu.vector_store %arg6[%c7_178, %c0_179, %c0_180, %c0_181], %373 {strides = array<i32>} : memref<8x1x16x32xbf16, #tpu.memory_space<vmem>>, vector<1x1x16x32xbf16>,
    %c0_i32_182 = arith.constant 0 : i32
    %374 = arith.cmpi eq, %arg1, %c0_i32_182 : i32
    %375 = arith.extui %374 : i1 to i32
    %c0_i32_183 = arith.constant 0 : i32
    %376 = arith.cmpi ne, %375, %c0_i32_183 : i32
    scf.if %376 {
      %c0_184 = arith.constant 0 : index
      %c0_185 = arith.constant 0 : index
      %c0_186 = arith.constant 0 : index
      %377 = vector.load %arg9[%c0_184, %c0_185, %c0_186] : memref<1x16x32xf32, #tpu.memory_space<vmem>>, vector<1x16x32xf32>
      %c0_187 = arith.constant 0 : index
      %c0_188 = arith.constant 0 : index
      %c0_189 = arith.constant 0 : index
      %378 = vector.load %arg7[%c0_187, %c0_188, %c0_189] : memref<1x16x32xf32, #tpu.memory_space<vmem>>, vector<1x16x32xf32>
      tpu.vector_store %arg7[%c0_187, %c0_188, %c0_189], %377 {strides = array<i32>} : memref<1x16x32xf32, #tpu.memory_space<vmem>>, vector<1x16x32xf32>,
    } else {
    }
    return
  }
  func.func @transform_0(%arg0: i32, %arg1: i32) -> (i32, i32, i32, i32) {
    %c0_i32 = arith.constant 0 : i32
    %c0_i32_0 = arith.constant 0 : i32
    %c0_i32_1 = arith.constant 0 : i32
    return %arg1, %arg0, %c0_i32, %c0_i32_0 : i32, i32, i32, i32
  }
  func.func @transform_1(%arg0: i32, %arg1: i32) -> (i32, i32) {
    %c0_i32 = arith.constant 0 : i32
    %c0_i32_0 = arith.constant 0 : i32
    %c0_i32_1 = arith.constant 0 : i32
    return %c0_i32, %c0_i32_0 : i32, i32
  }
  func.func @transform_2(%arg0: i32, %arg1: i32) -> (i32, i32) {
    %c0_i32 = arith.constant 0 : i32
    %c0_i32_0 = arith.constant 0 : i32
    %c0_i32_1 = arith.constant 0 : i32
    return %c0_i32, %c0_i32_0 : i32, i32
  }
  func.func @transform_3(%arg0: i32, %arg1: i32) -> (i32, i32) {
    %c0_i32 = arith.constant 0 : i32
    %c0_i32_0 = arith.constant 0 : i32
    %c0_i32_1 = arith.constant 0 : i32
    return %c0_i32, %c0_i32_0 : i32, i32
  }
  func.func @transform_4(%arg0: i32, %arg1: i32) -> (i32, i32, i32, i32) {
    %c0_i32 = arith.constant 0 : i32
    %c0_i32_0 = arith.constant 0 : i32
    %c0_i32_1 = arith.constant 0 : i32
    return %arg1, %arg0, %c0_i32, %c0_i32_0 : i32, i32, i32, i32
  }
  func.func @transform_5(%arg0: i32, %arg1: i32) -> (i32, i32, i32) {
    %c0_i32 = arith.constant 0 : i32
    %c0_i32_0 = arith.constant 0 : i32
    %c0_i32_1 = arith.constant 0 : i32
    return %arg0, %c0_i32, %c0_i32_0 : i32, i32, i32
  }
}

</mosaic_0001>

<bundles_post_ra>
// kernel: convlstm_forward.4
= control target key start
LH: loop header
LB: loop body
LE: loop exit
PB: predicated region body
PF: predicated region fallthrough
CT: control target
= control target key end

     0   :  { %vm103_vm0 = vcmask 1045504   ;;  %vm66_vm1 = vcmask 1046528   ;;  %vm37_vm2 = vsmask.f32 7424  ;;  %vm77_vm3 = vcmask 31744   ;;  %s214_s0 = inlined_call_operand.vmem [shape: bf16[1,2,18,4], index: 0, kind: input, shape index: {}]   ;;  %s215_s1 = inlined_call_operand.vmem [shape: bf16[12,128], index: 1, kind: input, shape index: {}]   ;;  %s216_s2 = inlined_call_operand.vmem [shape: f32[1,128], index: 2, kind: input, shape index: {}]   ;;  %s217_s3 = inlined_call_operand.vmem [shape: f32[1,2,16,128], index: 3, kind: output, shape index: {}]  }
   0x1   :  { %v148_v0 = vld [vmem:[%s214_s0] sm:$0xff]  ;;  %v17_v1 = vld [vmem:[%s214_s0 + $0x8] sm:$0x1]  ;;  %v149_v2 = vld [vmem:[%s214_s0 + $0xc] sm:$0xff]  ;;  %vm82_vm4 = vcmask 64512   ;;  %vm98_vm5 = vcmask 97280  }
   0x2   :  { %v33_v3 = vunpack.c.l.b16 %v17_v1  ;;  %v20_v4 = vld [vmem:[%s214_s0 + $0x14] sm:$0x1]  ;;  %v144_v5 = vld [vmem:[%s215_s1] sm:$0xf]  ;;  %v150_v6 = vld [vmem:[%s215_s1] sm:$0x30] }
   0x3   :  { %v39_v7 = vshrl.u32 %v148_v0, 16  ;;  %v41_v8 = vshll.u32 %v148_v0, 16  ;;  %v34_v9 = vunpack.c.l.b16 %v20_v4  ;;  %v67_v11 = vrot.slane %v148_v0, 1  ;;  %s155_s0 = smov 8   ;;  %s156_s1 = smov 4  }
   0x4   :  { %v35_v10 = vpack.c.b16 %v33_v3, %v33_v3  ;;  %v53_v12 = vshll.u32 %v149_v2, 16  ;;  %v145_v15 = vor.u32 %v150_v6, %v144_v5  ;;  %v51_v19 = vshrl.u32 %v149_v2, 16  ;;  %v154_v40 = vld [vmem:[%s216_s2] ss:$0 sm:$0xff] }
   0x5   :  { %v43_v13 = vrot.slane %v41_v8, 1  ;;  %v36_v14 = vpack.c.b16 %v34_v9, %v34_v9  ;;  %v70_v26 = vrot.slane %v149_v2, 1 }
   0x6   :  { %v46_v16 = vshll.u32 %v35_v10, 16  ;;  %v68_v17 = vrot.slane %v35_v10, 1  ;;  %v105_v20 = vsel %vm103_vm0, %v145_v15, 0  ;;  %v55_v23 = vrot.slane %v53_v12, 1 }
   0x7   :  { %v44_v18 = vor.u32 %v43_v13, %v39_v7  ;;  %v58_v24 = vshll.u32 %v36_v14, 16  ;;  %114 = vmatpush.bf16.msra.mxu0 %v105_v20  ;;  %151 = vmatpush.bf16.msra.mxu1 %v105_v20  ;;  %v71_v27 = vrot.slane %v36_v14, 1 }
   0x8   :  { %v48_v21 = vrot.slane %v46_v16, 1  ;;  %v69_v22 = vsel %vm66_vm1, %v67_v11, %v68_v17  ;;  %v56_v28 = vor.u32 %v55_v23, %v51_v19 }
   0x9   :  { %73 = vrot.lane.b32.xlu1 %v69_v22, %s155_s0  ;;  %v60_v29 = vrot.slane %v58_v24, 1  ;;  %v72_v30 = vsel %vm66_vm1, %v70_v26, %v71_v27 }
   0xa   :  { %v49_v25 = vsel %vm37_vm2, %v44_v18, %v48_v21 }
   0xb   :  { %62 = vrot.lane.b32.xlu0 %v49_v25, %s156_s1  ;;  %v61_v31 = vsel %vm37_vm2, %v56_v28, %v60_v29 }
  0x11   :  { %75 = vrot.lane.b32.xlu1 %v72_v30, %s155_s0 }
  0x13   :  { %64 = vrot.lane.b32.xlu0 %v61_v31, %s156_s1 }
  0x7b   :  { %v74_v32 = vpop.permute.xlu1 %73 }
  0x7d   :  { %v63_v33 = vpop.permute.xlu0 %62 }
  0x7e   :  { %v79_v34 = vsel %vm77_vm3, %v148_v0, %v63_v33 }
  0x7f   :  { %v84_v35 = vsel %vm82_vm4, %v79_v34, %v74_v32 }
  0x80   :  { %146 = vmatmul.msk.bf16.vlgmr.msra.gmra.mxu0 %vm98_vm5, %v84_v35 }
  0x83   :  { %v76_v36 = vpop.permute.xlu1 %75 }
  0x85   :  { %v65_v37 = vpop.permute.xlu0 %64 }
  0x86   :  { %v81_v38 = vsel %vm77_vm3, %v149_v2, %v65_v37 }
  0x87   :  { %v86_v39 = vsel %vm82_vm4, %v81_v38, %v76_v36 }
  0x88   :  { %147 = vmatmul.msk.bf16.vlgmr.msra.gmra.mxu1 %vm98_vm5, %v86_v39 }
  0xfd   :  { %v116_v41 = vpop.f32.mrf.mxu0 }
  0xfe   :  { %v117_v42 = vadd.f32 %v154_v40, %v116_v41 }
 0x100   :  { %126 = vst [vmem:[%s217_s3] sm:$0xff] %v117_v42 }
 0x105   :  { %v118_v43 = vpop.f32.mrf.mxu0  ;;  %v121_v44 = vpop.f32.mrf.mxu1 }
 0x106   :  { %v119_v45 = vadd.f32 %v154_v40, %v118_v43  ;;  %v122_v46 = vadd.f32 %v154_v40, %v121_v44 }
 0x108   :  { %127 = vst [vmem:[%s217_s3 + $0x8] sm:$0xff] %v119_v45 }
 0x109   :  { %128 = vst [vmem:[%s217_s3 + $0x10] sm:$0xff] %v122_v46 }
 0x10d   :  { %v123_v47 = vpop.f32.mrf.mxu1 }
 0x10e   :  { %v124_v48 = vadd.f32 %v154_v40, %v123_v47 }
 0x110   :  { %129 = vst [vmem:[%s217_s3 + $0x18] sm:$0xff] %v124_v48 }

// kernel: convlstm_forward.6
= control target key start
LH: loop header
LB: loop body
LE: loop exit
PB: predicated region body
PF: predicated region fallthrough
CT: control target
= control target key end

     0   :  { %vm416_vm0 = vcmask 1046528   ;;  %vm191_vm1 = vsmask.f32 7424  ;;  %s920_s24 = smov 64   ;;  %s921_s25 = smov 32   ;;  %vm497_vm2 = vcmask 261120   ;;  %s1441_s0 = inlined_call_operand.vmem [shape: bf16[8,2,18,32], index: 0, kind: input, shape index: {}]   ;;  %s1442_s1 = inlined_call_operand.vmem [shape: bf16[96,128], index: 1, kind: input, shape index: {}]   ;;  %s1443_s2 = inlined_call_operand.vmem [shape: f32[1,128], index: 2, kind: input, shape index: {}]   ;;  %s1444_s3 = inlined_call_operand.vmem [shape: f32[8,2,16,128], index: 3, kind: output, shape index: {}]  }
   0x1   :  { %v945_v0 = vld [vmem:[%s1441_s0 + $0x60] sm:$0xff]  ;;  %v41_v1 = vld [vmem:[%s1441_s0 + $0x68] sm:$0x1]  ;;  %v953_v2 = vld [vmem:[%s1441_s0 + $0x90] sm:$0xff]  ;;  %vm530_vm3 = vcmask 523264   ;;  %vm615_vm4 = vcmask 785408  }
   0x2   :  { %v167_v3 = vunpack.c.l.b16 %v41_v1  ;;  %v53_v4 = vld [vmem:[%s1441_s0 + $0x98] sm:$0x1]  ;;  %v289_v5 = vshrl.u32 %v945_v0, 16  ;;  %v291_v6 = vshll.u32 %v945_v0, 16  ;;  %v441_v9 = vrot.slane %v945_v0, 1  ;;  %v977_v28 = vld [vmem:[%s1441_s0] sm:$0xff] }
   0x3   :  { %v171_v7 = vunpack.c.l.b16 %v53_v4  ;;  %v339_v10 = vshll.u32 %v953_v2, 16  ;;  %v17_v11 = vld [vmem:[%s1441_s0 + $0x8] sm:$0x1]  ;;  %v337_v17 = vshrl.u32 %v953_v2, 16  ;;  %v29_v18 = vld [vmem:[%s1441_s0 + $0x38] sm:$0x1] }
   0x4   :  { %v183_v8 = vpack.c.b16 %v167_v3, %v167_v3  ;;  %v293_v12 = vrot.slane %v291_v6, 1  ;;  %v159_v19 = vunpack.c.l.b16 %v17_v11  ;;  %v453_v25 = vrot.slane %v953_v2, 1  ;;  %v56_v32 = vld [vmem:[%s1441_s0 + $0xa4] sm:$0x1]  ;;  %v988_v37 = vld [vmem:[%s1441_s0 + $0x30] sm:$0xff]  ;;  %v997_v43 = vld [vmem:[%s1441_s0 + $0x9c] sm:$0xff] }
   0x5   :  { %v187_v13 = vpack.c.b16 %v171_v7, %v171_v7  ;;  %v341_v22 = vrot.slane %v339_v10, 1  ;;  %v163_v27 = vunpack.c.l.b16 %v29_v18  ;;  %v193_v33 = vshrl.u32 %v977_v28, 16  ;;  %v44_v39 = vld [vmem:[%s1441_s0 + $0x74] sm:$0x1]  ;;  %v32_v52 = vld [vmem:[%s1441_s0 + $0x44] sm:$0x1] }
   0x6   :  { %v442_v14 = vrot.slane %v183_v8, 1  ;;  %v296_v15 = vshll.u32 %v183_v8, 16  ;;  %v294_v16 = vor.u32 %v293_v12, %v289_v5  ;;  %v175_v29 = vpack.c.b16 %v159_v19, %v159_v19  ;;  %v1016_v58 = vld [vmem:[%s1441_s0 + $0x6c] sm:$0xff]  ;;  %v20_v59 = vld [vmem:[%s1441_s0 + $0x14] sm:$0x1]  ;;  %v1025_v63 = vld [vmem:[%s1441_s0 + $0x3c] sm:$0xff] }
   0x7   :  { %v344_v23 = vshll.u32 %v187_v13, 16  ;;  %v454_v26 = vrot.slane %v187_v13, 1  ;;  %v342_v30 = vor.u32 %v341_v22, %v337_v17  ;;  %v195_v34 = vshll.u32 %v977_v28, 16 }
   0x8   :  { %v443_v20 = vsel %vm416_vm0, %v441_v9, %v442_v14  ;;  %v298_v21 = vrot.slane %v296_v15, 1  ;;  %v200_v35 = vshll.u32 %v175_v29, 16  ;;  %v179_v38 = vpack.c.b16 %v163_v27, %v163_v27  ;;  %v1033_v9 = vld [vmem:[%s1441_s0 + $0xc] sm:$0xff] }
   0x9   :  { %481 = vrot.lane.b32.xlu1 %v443_v20, %s920_s24  ;;  %v346_v31 = vrot.slane %v344_v23, 1  ;;  %v455_v36 = vsel %vm416_vm0, %v453_v25, %v454_v26  ;;  %v197_v40 = vrot.slane %v195_v34, 1  ;;  %v172_v44 = vunpack.c.l.b16 %v56_v32  ;;  %v47_v20 = vld [vmem:[%s1441_s0 + $0x80] sm:$0x1]  ;;  %v1055_v26 = vld [vmem:[%s1441_s0 + $0x78] sm:$0xff] }
   0xa   :  { %v299_v24 = vsel %vm191_vm1, %v294_v16, %v298_v21  ;;  %v202_v41 = vrot.slane %v200_v35, 1  ;;  %v429_v46 = vrot.slane %v988_v37, 1  ;;  %v430_v47 = vrot.slane %v179_v38, 1 }
   0xb   :  { %400 = vrot.lane.b32.xlu0 %v299_v24, %s921_s25  ;;  %v347_v42 = vsel %vm191_vm1, %v342_v30, %v346_v31  ;;  %v198_v45 = vor.u32 %v197_v40, %v193_v33  ;;  %v417_v48 = vrot.slane %v977_v28, 1  ;;  %v168_v49 = vunpack.c.l.b16 %v44_v39 }
   0xc   :  { %v418_v50 = vrot.slane %v175_v29, 1  ;;  %v241_v53 = vshrl.u32 %v988_v37, 16  ;;  %v243_v54 = vshll.u32 %v988_v37, 16  ;;  %v1009_v55 = vpack.c.b16 %v172_v44, %v172_v44 }
   0xd   :  { %v203_v51 = vsel %vm191_vm1, %v198_v45, %v202_v41  ;;  %v351_v56 = vshll.u32 %v997_v43, 16  ;;  %v248_v57 = vshll.u32 %v179_v38, 16  ;;  %v431_v61 = vsel %vm416_vm0, %v429_v46, %v430_v47  ;;  %v50_v41 = vld [vmem:[%s1441_s0 + $0x8c] sm:$0x1]  ;;  %v1073_v46 = vld [vmem:[%s1441_s0 + $0x84] sm:$0xff] }
   0xe   :  { %384 = vrot.lane.b32.xlu2 %v203_v51, %s921_s25  ;;  %v245_v60 = vrot.slane %v243_v54, 1  ;;  %v184_v62 = vpack.c.b16 %v168_v49, %v168_v49  ;;  %v164_v1 = vunpack.c.l.b16 %v32_v52  ;;  %v419_v4 = vsel %vm416_vm0, %v417_v48, %v418_v50 }
   0xf   :  { %v250_v3 = vrot.slane %v248_v57, 1  ;;  %v349_v5 = vshrl.u32 %v997_v43, 16  ;;  %v353_v7 = vrot.slane %v351_v56, 1  ;;  %v356_v8 = vshll.u32 %v1009_v55, 16 }
  0x10   :  { %v246_v6 = vor.u32 %v245_v60, %v241_v53  ;;  %v160_v10 = vunpack.c.l.b16 %v20_v59  ;;  %v303_v11 = vshll.u32 %v1016_v58, 16  ;;  %v444_v12 = vrot.slane %v1016_v58, 1 }
  0x11   :  { %489 = vrot.lane.b32.xlu1 %v455_v36, %s920_s24  ;;  %v301_v14 = vshrl.u32 %v1016_v58, 16  ;;  %v308_v15 = vshll.u32 %v184_v62, 16  ;;  %v445_v16 = vrot.slane %v184_v62, 1  ;;  %v1040_v17 = vpack.c.b16 %v164_v1, %v164_v1  ;;  %v59_v62 = vld [vmem:[%s1441_s0 + $0xb0] sm:$0x1] }
  0x12   :  { %v251_v13 = vsel %vm191_vm1, %v246_v6, %v250_v3  ;;  %v255_v18 = vshll.u32 %v1025_v63, 16  ;;  %v305_v19 = vrot.slane %v303_v11, 1  ;;  %v354_v21 = vor.u32 %v353_v7, %v349_v5  ;;  %v26_v3 = vld [vmem:[%s1441_s0 + $0x2c] sm:$0x1]  ;;  %v1097_v5 = vld [vmem:[%s1441_s0 + $0x24] sm:$0xff] }
  0x13   :  { %408 = vrot.lane.b32.xlu0 %v347_v42, %s921_s25  ;;  %v358_v22 = vrot.slane %v356_v8, 1  ;;  %v1047_v23 = vpack.c.b16 %v160_v10, %v160_v10  ;;  %v207_v24 = vshll.u32 %v1033_v9, 16  ;;  %v253_v25 = vshrl.u32 %v1025_v63, 16 }
  0x14   :  { %v306_v27 = vor.u32 %v305_v19, %v301_v14  ;;  %v310_v29 = vrot.slane %v308_v15, 1  ;;  %v446_v30 = vsel %vm416_vm0, %v444_v12, %v445_v16  ;;  %v257_v31 = vrot.slane %v255_v18, 1  ;;  %v1108_v15 = vld [vmem:[%s1441_s0 + $0xa8] sm:$0xff] }
  0x15   :  { %v260_v32 = vshll.u32 %v1040_v17, 16  ;;  %v169_v33 = vunpack.c.l.b16 %v47_v20  ;;  %v359_v34 = vsel %vm191_vm1, %v354_v21, %v358_v22  ;;  %v205_v35 = vshrl.u32 %v1033_v9, 16  ;;  %v23_v21 = vld [vmem:[%s1441_s0 + $0x20] sm:$0x1] }
  0x16   :  { %392 = vrot.lane.b32.xlu2 %v251_v13, %s921_s25  ;;  %v209_v36 = vrot.slane %v207_v24, 1  ;;  %v212_v38 = vshll.u32 %v1047_v23, 16  ;;  %v315_v39 = vshll.u32 %v1055_v26, 16  ;;  %v311_v40 = vsel %vm191_vm1, %v306_v27, %v310_v29 }
  0x17   :  { %v258_v42 = vor.u32 %v257_v31, %v253_v25  ;;  %v262_v44 = vrot.slane %v260_v32, 1  ;;  %v1068_v45 = vpack.c.b16 %v169_v33, %v169_v33  ;;  %v170_v47 = vunpack.c.l.b16 %v50_v41  ;;  %v35_v25 = vld [vmem:[%s1441_s0 + $0x50] sm:$0x1] }
  0x18   :  { %v210_v48 = vor.u32 %v209_v36, %v205_v35  ;;  %v214_v49 = vrot.slane %v212_v38, 1  ;;  %v313_v50 = vshrl.u32 %v1055_v26, 16  ;;  %v317_v52 = vrot.slane %v315_v39, 1  ;;  %v1131_v35 = vld [vmem:[%s1441_s0 + $0x48] sm:$0xff] }
  0x19   :  { %473 = vrot.lane.b32.xlu1 %v431_v61, %s920_s24  ;;  %v1078_v51 = vpack.c.b16 %v170_v47, %v170_v47  ;;  %v456_v53 = vrot.slane %v997_v43, 1  ;;  %v457_v54 = vrot.slane %v1009_v55, 1  ;;  %v327_v56 = vshll.u32 %v1073_v46, 16  ;;  %v38_v47 = vld [vmem:[%s1441_s0 + $0x5c] sm:$0x1] }
  0x1a   :  { %v263_v57 = vsel %vm191_vm1, %v258_v42, %v262_v44  ;;  %v320_v59 = vshll.u32 %v1068_v45, 16  ;;  %v325_v60 = vshrl.u32 %v1073_v46, 16  ;;  %v215_v55 = vsel %vm191_vm1, %v210_v48, %v214_v49 }
  0x1b   :  { %465 = vrot.lane.b32.xlu0 %v419_v4, %s920_s24  ;;  %v332_v61 = vshll.u32 %v1078_v51, 16  ;;  %v329_v1 = vrot.slane %v327_v56, 1  ;;  %v162_v6 = vunpack.c.l.b16 %v26_v3  ;;  %v318_v7 = vor.u32 %v317_v52, %v313_v50 }
  0x1c   :  { %v458_v8 = vsel %vm416_vm0, %v456_v53, %v457_v54  ;;  %v322_v11 = vrot.slane %v320_v59, 1  ;;  %v173_v12 = vunpack.c.l.b16 %v59_v62  ;;  %v231_v14 = vshll.u32 %v1097_v5, 16  ;;  %v1150_v53 = vld [vmem:[%s1441_s0 + $0x18] sm:$0xff] }
  0x1d   :  { %v334_v4 = vrot.slane %v332_v61, 1  ;;  %v330_v10 = vor.u32 %v329_v1, %v325_v60  ;;  %v1101_v13 = vpack.c.b16 %v162_v6, %v162_v6  ;;  %v229_v18 = vshrl.u32 %v1097_v5, 16  ;;  %v1159_v59 = vld [vmem:[%s1441_s0 + $0x54] sm:$0xff] }
  0x1e   :  { %402 = vrot.lane.b32.xlu2 %v311_v40, %s921_s25  ;;  %v432_v19 = vrot.slane %v1025_v63, 1  ;;  %v433_v20 = vrot.slane %v1040_v17, 1  ;;  %v233_v22 = vrot.slane %v231_v14, 1  ;;  %v420_v27 = vrot.slane %v1033_v9, 1  ;;  %v1171_v6 = vld [vmem:[%s1441_s0 + $0xb4] sm:$0xff] }
  0x1f   :  { %v1111_v16 = vsel %vm191_vm1, %v330_v10, %v334_v4  ;;  %v236_v24 = vshll.u32 %v1101_v13, 16  ;;  %v421_v29 = vrot.slane %v1047_v23, 1  ;;  %v323_v17 = vsel %vm191_vm1, %v318_v7, %v322_v11 }
  0x20   :  { %v189_v31 = vpack.c.b16 %v173_v12, %v173_v12  ;;  %v234_v32 = vor.u32 %v233_v22, %v229_v18  ;;  %v434_v36 = vsel %vm416_vm0, %v432_v19, %v433_v20  ;;  %v459_v38 = vrot.slane %v1108_v15, 1 }
  0x21   :  { %483 = vrot.lane.b32.xlu1 %v446_v30, %s920_s24  ;;  %v363_v30 = vshll.u32 %v1108_v15, 16  ;;  %v238_v33 = vrot.slane %v236_v24, 1  ;;  %v165_v39 = vunpack.c.l.b16 %v35_v25  ;;  %v422_v40 = vsel %vm416_vm0, %v420_v27, %v421_v29 }
  0x22   :  { %v361_v41 = vshrl.u32 %v1108_v15, 16  ;;  %v368_v44 = vshll.u32 %v189_v31, 16  ;;  %v460_v48 = vrot.slane %v189_v31, 1  ;;  %v447_v49 = vrot.slane %v1055_v26, 1 }
  0x23   :  { %410 = vrot.lane.b32.xlu0 %v359_v34, %s921_s25  ;;  %v161_v34 = vunpack.c.l.b16 %v23_v21  ;;  %v1136_v23 = vsel %vm191_vm1, %v234_v32, %v238_v33  ;;  %v365_v42 = vrot.slane %v363_v30, 1  ;;  %v448_v50 = vrot.slane %v1068_v45, 1 }
  0x24   :  { %v166_v52 = vunpack.c.l.b16 %v38_v47  ;;  %v267_v56 = vshll.u32 %v1131_v35, 16  ;;  %v1161_v45 = vpack.c.b16 %v165_v39, %v165_v39  ;;  %v370_v62 = vrot.slane %v368_v44, 1 }
  0x25   :  { %v177_v54 = vpack.c.b16 %v161_v34, %v161_v34  ;;  %v366_v61 = vor.u32 %v365_v42, %v361_v41  ;;  %v219_v1 = vshll.u32 %v1150_v53, 16  ;;  %v438_v3 = vrot.slane %v1159_v59, 1  ;;  %v898_v34 = vld [vmem:[%s1442_s1 + $0x28] sm:$0xff] }
  0x26   :  { %491 = vrot.lane.b32.xlu2 %v458_v8, %s920_s24  ;;  %v182_v60 = vpack.c.b16 %v166_v52, %v166_v52  ;;  %v449_v4 = vsel %vm416_vm0, %v447_v49, %v448_v50  ;;  %v423_v10 = vrot.slane %v1150_v53, 1  ;;  %v265_v12 = vshrl.u32 %v1131_v35, 16  ;;  %900 = vmatpush.bf16.msra.mxu2 %v898_v34 }
  0x27   :  { %v424_v11 = vrot.slane %v177_v54, 1  ;;  %v269_v14 = vrot.slane %v267_v56, 1  ;;  %v272_v18 = vshll.u32 %v1161_v45, 16  ;;  %v426_v20 = vrot.slane %v1097_v5, 1  ;;  %901 = vmatpush.bf16.msra.mxu3 %v898_v34  ;;  %899 = vmatpush.bf16.msra.mxu1 %v898_v34 }
  0x28   :  { %v439_v8 = vrot.slane %v182_v60, 1  ;;  %v427_v21 = vrot.slane %v1101_v13, 1  ;;  %v371_v22 = vsel %vm191_vm1, %v366_v61, %v370_v62  ;;  %v217_v24 = vshrl.u32 %v1150_v53, 16  ;;  %650 = vmatpush.bf16.msra.mxu0 %v898_v34 }
  0x29   :  { %394 = vrot.lane.b32.xlu1 %v263_v57, %s921_s25  ;;  %v62_v57 = vld [vmem:[%s1441_s0 + $0xbc] sm:$0x1]  ;;  %v221_v25 = vrot.slane %v219_v1, 1  ;;  %v224_v27 = vshll.u32 %v177_v54, 16  ;;  %v375_v30 = vshll.u32 %v1171_v6, 16  ;;  %v425_v31 = vsel %vm416_vm0, %v423_v10, %v424_v11  ;;  %v894_v10 = vld [vmem:[%s1442_s1 + $0x8] sm:$0xff] }
  0x2a   :  { %v174_v7 = vunpack.c.l.b16 %v62_v57  ;;  %v1177_v19 = vsel %vm416_vm0, %v438_v3, %v439_v8  ;;  %v270_v13 = vor.u32 %v269_v14, %v265_v12  ;;  %v450_v32 = vrot.slane %v1073_v46, 1 }
  0x2b   :  { %386 = vrot.lane.b32.xlu0 %v215_v55, %s921_s25  ;;  %v461_v55 = vsel %vm416_vm0, %v459_v38, %v460_v48  ;;  %v451_v33 = vrot.slane %v1078_v51, 1  ;;  %v277_v38 = vshrl.u32 %v1159_v59, 16  ;;  %v279_v39 = vshll.u32 %v1159_v59, 16  ;;  %v897_v51 = vld [vmem:[%s1442_s1 + $0x20] sm:$0xff] }
  0x2c   :  { %v1184_v29 = vpack.c.b16 %v174_v7, %v174_v7  ;;  %v373_v41 = vshrl.u32 %v1171_v6, 16  ;;  %v222_v42 = vor.u32 %v221_v25, %v217_v24  ;;  %v226_v44 = vrot.slane %v224_v27, 1  ;;  %903 = vmatpush.bf16.msra.mxu2 %v897_v51  ;;  %904 = vmatpush.bf16.msra.mxu3 %v897_v51 }
  0x2d   :  { %v452_v47 = vsel %vm416_vm0, %v450_v32, %v451_v33  ;;  %v377_v48 = vrot.slane %v375_v30, 1  ;;  %v281_v50 = vrot.slane %v279_v39, 1  ;;  %902 = vmatpush.bf16.msra.mxu1 %v897_v51  ;;  %651 = vmatpush.bf16.msra.mxu0 %v897_v51  ;;  %v435_v3 = vrot.slane %v1131_v35, 1 }
  0x2e   :  { %467 = vrot.lane.b32.xlu2 %v422_v40, %s920_s24  ;;  %v284_v40 = vshll.u32 %v182_v60, 16  ;;  %v380_v49 = vshll.u32 %v1184_v29, 16  ;;  %v227_v57 = vsel %vm191_vm1, %v222_v42, %v226_v44  ;;  %v896_v60 = vld [vmem:[%s1442_s1 + $0x18] sm:$0xff]  ;;  %v463_v11 = vrot.slane %v1184_v29, 1 }
  0x2f   :  { %v282_v56 = vor.u32 %v281_v50, %v277_v38  ;;  %v378_v61 = vor.u32 %v377_v48, %v373_v41 }
  0x30   :  { %v286_v52 = vrot.slane %v284_v40, 1  ;;  %v382_v62 = vrot.slane %v380_v49, 1  ;;  %906 = vmatpush.bf16.msra.mxu2 %v896_v60  ;;  %907 = vmatpush.bf16.msra.mxu3 %v896_v60 }
  0x31   :  { %404 = vrot.lane.b32.xlu1 %v323_v17, %s921_s25  ;;  %v1188_v17 = vsel %vm416_vm0, %v426_v20, %v427_v21  ;;  %905 = vmatpush.bf16.msra.mxu1 %v896_v60 }
  0x32   :  { %v287_v1 = vsel %vm191_vm1, %v282_v56, %v286_v52  ;;  %v383_v7 = vsel %vm191_vm1, %v378_v61, %v382_v62  ;;  %652 = vmatpush.bf16.msra.mxu0 %v896_v60 }
  0x33   :  { %475 = vrot.lane.b32.xlu0 %v434_v36, %s920_s24  ;;  %v274_v36 = vrot.slane %v272_v18, 1 }
  0x35   :  { %v275_v54 = vsel %vm191_vm1, %v270_v13, %v274_v36 }
  0x36   :  { %412 = vrot.lane.b32.xlu2 %v371_v22, %s921_s25 }
  0x39   :  { %493 = vrot.lane.b32.xlu1 %v461_v55, %s920_s24  ;;  %v436_v55 = vrot.slane %v1161_v45, 1  ;;  %v462_v45 = vrot.slane %v1171_v6, 1 }
  0x3b   :  { %485 = vrot.lane.b32.xlu0 %v449_v4, %s920_s24  ;;  %v895_v4 = vld [vmem:[%s1442_s1 + $0x10] sm:$0xff]  ;;  %v437_v8 = vsel %vm416_vm0, %v435_v3, %v436_v55  ;;  %v464_v12 = vsel %vm416_vm0, %v462_v45, %v463_v11 }
  0x3c   :  { %909 = vmatpush.bf16.msra.mxu2 %v895_v4  ;;  %910 = vmatpush.bf16.msra.mxu3 %v895_v4 }
  0x3d   :  { %908 = vmatpush.bf16.msra.mxu1 %v895_v4  ;;  %653 = vmatpush.bf16.msra.mxu0 %v895_v4 }
  0x3e   :  { %388 = vrot.lane.b32.xlu2 %v227_v57, %s921_s25 }
  0x40   :  { %912 = vmatpush.bf16.msra.mxu2 %v894_v10  ;;  %913 = vmatpush.bf16.msra.mxu3 %v894_v10 }
  0x41   :  { %469 = vrot.lane.b32.xlu1 %v425_v31, %s920_s24  ;;  %911 = vmatpush.bf16.msra.mxu1 %v894_v10 }
  0x42   :  { %654 = vmatpush.bf16.msra.mxu0 %v894_v10 }
  0x43   :  { %396 = vrot.lane.b32.xlu0 %v275_v54, %s921_s25 }
  0x46   :  { %477 = vrot.lane.b32.xlu2 %v437_v8, %s920_s24 }
  0x49   :  { %414 = vrot.lane.b32.xlu1 %v383_v7, %s921_s25 }
  0x4b   :  { %406 = vrot.lane.b32.xlu0 %v1111_v16, %s921_s25  ;;  %v893_v16 = vld [vmem:[%s1442_s1] sm:$0xff] }
  0x4c   :  { %915 = vmatpush.bf16.msra.mxu2 %v893_v16  ;;  %916 = vmatpush.bf16.msra.mxu3 %v893_v16 }
  0x4d   :  { %914 = vmatpush.bf16.msra.mxu1 %v893_v16  ;;  %655 = vmatpush.bf16.msra.mxu0 %v893_v16 }
  0x4e   :  { %487 = vrot.lane.b32.xlu2 %v452_v47, %s920_s24 }
  0x51   :  { %390 = vrot.lane.b32.xlu1 %v1136_v23, %s921_s25 }
  0x53   :  { %495 = vrot.lane.b32.xlu0 %v464_v12, %s920_s24 }
  0x56   :  { %398 = vrot.lane.b32.xlu2 %v287_v1, %s921_s25 }
  0x59   :  { %479 = vrot.lane.b32.xlu1 %v1177_v19, %s920_s24 }
  0x5b   :  { %471 = vrot.lane.b32.xlu0 %v1188_v17, %s920_s24 }
  0x68   :  { %v385_v23 = vpop.permute.xlu2 %384 }
  0x69   :  { %v499_v13 = vsel %vm497_vm2, %v977_v28, %v385_v23 }
  0x70   :  { %v393_v14 = vpop.permute.xlu2 %392 }
  0x71   :  { %v507_v30 = vsel %vm497_vm2, %v988_v37, %v393_v14 }
  0x78   :  { %v403_v22 = vpop.permute.xlu2 %402 }
  0x7b   :  { %v482_v18 = vpop.permute.xlu1 %481 }
  0x7d   :  { %v401_v20 = vpop.permute.xlu0 %400 }
  0x7e   :  { %v515_v19 = vsel %vm497_vm2, %v945_v0, %v401_v20 }
  0x7f   :  { %v548_v21 = vsel %vm530_vm3, %v515_v19, %v482_v18  ;;  %v1311_v18 = vld [vmem:[%s1443_s2] ss:$0 sm:$0xff] }
  0x80   :  { %869 = vmatmul.msk.bf16.vlgmr.msra.gmra.mxu2 %vm615_vm4, %v548_v21  ;;  %v492_v17 = vpop.permute.xlu2 %491 }
  0x83   :  { %v490_v24 = vpop.permute.xlu1 %489 }
  0x85   :  { %v409_v25 = vpop.permute.xlu0 %408 }
  0x86   :  { %v523_v27 = vsel %vm497_vm2, %v953_v2, %v409_v25  ;;  %v517_v2 = vsel %vm497_vm2, %v1016_v58, %v403_v22 }
  0x87   :  { %v556_v29 = vsel %vm530_vm3, %v523_v27, %v490_v24 }
  0x88   :  { %873 = vmatmul.msk.bf16.vlgmr.msra.gmra.mxu3 %vm615_vm4, %v556_v29  ;;  %v468_v36 = vpop.permute.xlu2 %467 }
  0x8b   :  { %v474_v31 = vpop.permute.xlu1 %473 }
  0x8c   :  { %v540_v0 = vsel %vm530_vm3, %v507_v30, %v474_v31 }
  0x8d   :  { %v466_v32 = vpop.permute.xlu0 %465  ;;  %865 = vmatmul.msk.bf16.vlgmr.msra.gmra.mxu1 %vm615_vm4, %v540_v0 }
  0x8e   :  { %v532_v33 = vsel %vm530_vm3, %v499_v13, %v466_v32 }
  0x8f   :  { %861 = vmatmul.msk.bf16.vlgmr.msra.gmra.mxu0 %vm615_vm4, %v532_v33 }
  0x90   :  { %v413_v58 = vpop.permute.xlu2 %412 }
  0x91   :  { %v527_v50 = vsel %vm497_vm2, %v1108_v15, %v413_v58 }
  0x93   :  { %v484_v34 = vpop.permute.xlu1 %483 }
  0x94   :  { %v550_v37 = vsel %vm530_vm3, %v517_v2, %v484_v34 }
  0x95   :  { %v411_v38 = vpop.permute.xlu0 %410  ;;  %870 = vmatmul.msk.bf16.gmra.mxu2 %vm615_vm4, %v550_v37 }
  0x96   :  { %v525_v28 = vsel %vm497_vm2, %v997_v43, %v411_v38 }
  0x97   :  { %v558_v39 = vsel %vm530_vm3, %v525_v28, %v492_v17 }
  0x98   :  { %874 = vmatmul.msk.bf16.gmra.mxu3 %vm615_vm4, %v558_v39  ;;  %v389_v49 = vpop.permute.xlu2 %388 }
  0x99   :  { %v503_v57 = vsel %vm497_vm2, %v1150_v53, %v389_v49 }
  0x9b   :  { %v395_v40 = vpop.permute.xlu1 %394 }
  0x9c   :  { %v509_v51 = vsel %vm497_vm2, %v1025_v63, %v395_v40 }
  0x9d   :  { %v387_v41 = vpop.permute.xlu0 %386 }
  0x9e   :  { %v501_v42 = vsel %vm497_vm2, %v1033_v9, %v387_v41 }
  0x9f   :  { %v534_v44 = vsel %vm530_vm3, %v501_v42, %v468_v36 }
  0xa0   :  { %862 = vmatmul.msk.bf16.gmra.mxu0 %vm615_vm4, %v534_v44  ;;  %v478_v60 = vpop.permute.xlu2 %477 }
  0xa3   :  { %v405_v47 = vpop.permute.xlu1 %404 }
  0xa4   :  { %v519_v54 = vsel %vm497_vm2, %v1055_v26, %v405_v47 }
  0xa5   :  { %v476_v48 = vpop.permute.xlu0 %475 }
  0xa6   :  { %v542_v43 = vsel %vm530_vm3, %v509_v51, %v476_v48 }
  0xa7   :  { %866 = vmatmul.msk.bf16.gmra.mxu1 %vm615_vm4, %v542_v43 }
  0xa8   :  { %v488_v55 = vpop.permute.xlu2 %487 }
  0xab   :  { %v494_v52 = vpop.permute.xlu1 %493 }
  0xac   :  { %v560_v9 = vsel %vm530_vm3, %v527_v50, %v494_v52 }
  0xad   :  { %v486_v56 = vpop.permute.xlu0 %485  ;;  %875 = vmatmul.msk.bf16.gmra.mxu3 %vm615_vm4, %v560_v9 }
  0xae   :  { %v552_v63 = vsel %vm530_vm3, %v519_v54, %v486_v56 }
  0xaf   :  { %871 = vmatmul.msk.bf16.gmra.mxu2 %vm615_vm4, %v552_v63 }
  0xb0   :  { %v399_v11 = vpop.permute.xlu2 %398 }
  0xb1   :  { %v513_v12 = vsel %vm497_vm2, %v1159_v59, %v399_v11 }
  0xb3   :  { %v470_v61 = vpop.permute.xlu1 %469 }
  0xb4   :  { %v536_v15 = vsel %vm530_vm3, %v503_v57, %v470_v61 }
  0xb5   :  { %v397_v62 = vpop.permute.xlu0 %396  ;;  %863 = vmatmul.msk.bf16.gmra.mxu0 %vm615_vm4, %v536_v15 }
  0xb6   :  { %v511_v26 = vsel %vm497_vm2, %v1131_v35, %v397_v62 }
  0xb7   :  { %v544_v1 = vsel %vm530_vm3, %v511_v26, %v478_v60 }
  0xb8   :  { %867 = vmatmul.msk.bf16.gmra.mxu1 %vm615_vm4, %v544_v1 }
  0xbb   :  { %v415_v3 = vpop.permute.xlu1 %414 }
  0xbc   :  { %v529_v10 = vsel %vm497_vm2, %v1171_v6, %v415_v3 }
  0xbd   :  { %v407_v4 = vpop.permute.xlu0 %406 }
  0xbe   :  { %v521_v53 = vsel %vm497_vm2, %v1073_v46, %v407_v4 }
  0xbf   :  { %v554_v7 = vsel %vm530_vm3, %v521_v53, %v488_v55 }
  0xc0   :  { %872 = vmatmul.msk.bf16.gmra.mxu2 %vm615_vm4, %v554_v7 }
  0xc3   :  { %v391_v8 = vpop.permute.xlu1 %390 }
  0xc4   :  { %v505_v23 = vsel %vm497_vm2, %v1097_v5, %v391_v8 }
  0xc5   :  { %v496_v45 = vpop.permute.xlu0 %495 }
  0xc6   :  { %v562_v35 = vsel %vm530_vm3, %v529_v10, %v496_v45 }
  0xc7   :  { %876 = vmatmul.msk.bf16.gmra.mxu3 %vm615_vm4, %v562_v35 }
  0xcb   :  { %v480_v16 = vpop.permute.xlu1 %479 }
  0xcc   :  { %v546_v46 = vsel %vm530_vm3, %v513_v12, %v480_v16 }
  0xcd   :  { %v472_v14 = vpop.permute.xlu0 %471  ;;  %868 = vmatmul.msk.bf16.gmra.mxu1 %vm615_vm4, %v546_v46 }
  0xce   :  { %v538_v6 = vsel %vm530_vm3, %v505_v23, %v472_v14 }
  0xcf   :  { %864 = vmatmul.msk.bf16.gmra.mxu0 %vm615_vm4, %v538_v6 }
 0x103   :  { %v697_v20 = vpop.f32.mrf.mxu2 }
 0x104   :  { %v698_v59 = vadd.f32 %v1311_v18, %v697_v20 }
 0x106   :  { %753 = vst [vmem:[%s1444_s3 + $0x80] sm:$0xff] %v698_v59 }
 0x10a   :  { %v677_v5 = vpop.f32.mrf.mxu1 }
 0x10b   :  { %v678_v19 = vadd.f32 %v1311_v18, %v677_v5  ;;  %v699_v21 = vpop.f32.mrf.mxu2  ;;  %v717_v22 = vpop.f32.mrf.mxu3 }
 0x10c   :  { %v700_v24 = vadd.f32 %v1311_v18, %v699_v21  ;;  %v718_v25 = vadd.f32 %v1311_v18, %v717_v22  ;;  %v657_v27 = vpop.f32.mrf.mxu0 }
 0x10d   :  { %745 = vst [vmem:[%s1444_s3 + $0x40] sm:$0xff] %v678_v19  ;;  %v658_v29 = vadd.f32 %v1311_v18, %v657_v27 }
 0x10e   :  { %754 = vst [vmem:[%s1444_s3 + $0x88] sm:$0xff] %v700_v24 }
 0x10f   :  { %761 = vst [vmem:[%s1444_s3 + $0xc0] sm:$0xff] %v718_v25 }
 0x110   :  { %737 = vst [vmem:[%s1444_s3] sm:$0xff] %v658_v29 }
 0x112   :  { %v679_v30 = vpop.f32.mrf.mxu1 }
 0x113   :  { %v680_v17 = vadd.f32 %v1311_v18, %v679_v30  ;;  %v719_v31 = vpop.f32.mrf.mxu3 }
 0x114   :  { %v720_v0 = vadd.f32 %v1311_v18, %v719_v31  ;;  %v659_v13 = vpop.f32.mrf.mxu0 }
 0x115   :  { %746 = vst [vmem:[%s1444_s3 + $0x48] sm:$0xff] %v680_v17  ;;  %v660_v32 = vadd.f32 %v1311_v18, %v659_v13 }
 0x116   :  { %762 = vst [vmem:[%s1444_s3 + $0xc8] sm:$0xff] %v720_v0 }
 0x117   :  { %738 = vst [vmem:[%s1444_s3 + $0x8] sm:$0xff] %v660_v32 }
 0x118   :  { %v702_v33 = vpop.f32.mrf.mxu2 }
 0x119   :  { %v703_v2 = vadd.f32 %v1311_v18, %v702_v33 }
 0x11b   :  { %755 = vst [vmem:[%s1444_s3 + $0x90] sm:$0xff] %v703_v2  ;;  %v722_v34 = vpop.f32.mrf.mxu3 }
 0x11c   :  { %v723_v37 = vadd.f32 %v1311_v18, %v722_v34 }
 0x11d   :  { %v662_v36 = vpop.f32.mrf.mxu0 }
 0x11e   :  { %763 = vst [vmem:[%s1444_s3 + $0xd0] sm:$0xff] %v723_v37  ;;  %v663_v38 = vadd.f32 %v1311_v18, %v662_v36 }
 0x120   :  { %739 = vst [vmem:[%s1444_s3 + $0x10] sm:$0xff] %v663_v38  ;;  %v704_v28 = vpop.f32.mrf.mxu2 }
 0x121   :  { %v705_v39 = vadd.f32 %v1311_v18, %v704_v28 }
 0x123   :  { %756 = vst [vmem:[%s1444_s3 + $0x98] sm:$0xff] %v705_v39  ;;  %v724_v40 = vpop.f32.mrf.mxu3 }
 0x124   :  { %v725_v41 = vadd.f32 %v1311_v18, %v724_v40  ;;  %v682_v42 = vpop.f32.mrf.mxu1 }
 0x125   :  { %v683_v58 = vadd.f32 %v1311_v18, %v682_v42  ;;  %v664_v44 = vpop.f32.mrf.mxu0 }
 0x126   :  { %764 = vst [vmem:[%s1444_s3 + $0xd8] sm:$0xff] %v725_v41  ;;  %v665_v47 = vadd.f32 %v1311_v18, %v664_v44 }
 0x127   :  { %747 = vst [vmem:[%s1444_s3 + $0x50] sm:$0xff] %v683_v58 }
 0x128   :  { %740 = vst [vmem:[%s1444_s3 + $0x18] sm:$0xff] %v665_v47 }
 0x12c   :  { %v684_v51 = vpop.f32.mrf.mxu1 }
 0x12d   :  { %v685_v48 = vadd.f32 %v1311_v18, %v684_v51 }
 0x12f   :  { %748 = vst [vmem:[%s1444_s3 + $0x58] sm:$0xff] %v685_v48 }
 0x130   :  { %v727_v43 = vpop.f32.mrf.mxu3 }
 0x131   :  { %v728_v49 = vadd.f32 %v1311_v18, %v727_v43 }
 0x132   :  { %v667_v50 = vpop.f32.mrf.mxu0  ;;  %v707_v52 = vpop.f32.mrf.mxu2 }
 0x133   :  { %765 = vst [vmem:[%s1444_s3 + $0xe0] sm:$0xff] %v728_v49  ;;  %v668_v9 = vadd.f32 %v1311_v18, %v667_v50  ;;  %v708_v54 = vadd.f32 %v1311_v18, %v707_v52 }
 0x135   :  { %741 = vst [vmem:[%s1444_s3 + $0x20] sm:$0xff] %v668_v9  ;;  %v687_v56 = vpop.f32.mrf.mxu1 }
 0x136   :  { %757 = vst [vmem:[%s1444_s3 + $0xa0] sm:$0xff] %v708_v54  ;;  %v688_v63 = vadd.f32 %v1311_v18, %v687_v56 }
 0x138   :  { %749 = vst [vmem:[%s1444_s3 + $0x60] sm:$0xff] %v688_v63  ;;  %v729_v57 = vpop.f32.mrf.mxu3 }
 0x139   :  { %v730_v60 = vadd.f32 %v1311_v18, %v729_v57 }
 0x13a   :  { %v669_v61 = vpop.f32.mrf.mxu0  ;;  %v709_v15 = vpop.f32.mrf.mxu2 }
 0x13b   :  { %766 = vst [vmem:[%s1444_s3 + $0xe8] sm:$0xff] %v730_v60  ;;  %v670_v62 = vadd.f32 %v1311_v18, %v669_v61  ;;  %v710_v26 = vadd.f32 %v1311_v18, %v709_v15 }
 0x13d   :  { %742 = vst [vmem:[%s1444_s3 + $0x28] sm:$0xff] %v670_v62  ;;  %v689_v1 = vpop.f32.mrf.mxu1 }
 0x13e   :  { %758 = vst [vmem:[%s1444_s3 + $0xa8] sm:$0xff] %v710_v26  ;;  %v690_v3 = vadd.f32 %v1311_v18, %v689_v1 }
 0x140   :  { %750 = vst [vmem:[%s1444_s3 + $0x68] sm:$0xff] %v690_v3 }
 0x143   :  { %v712_v55 = vpop.f32.mrf.mxu2 }
 0x144   :  { %v713_v4 = vadd.f32 %v1311_v18, %v712_v55 }
 0x146   :  { %759 = vst [vmem:[%s1444_s3 + $0xb0] sm:$0xff] %v713_v4 }
 0x14a   :  { %v692_v53 = vpop.f32.mrf.mxu1  ;;  %v732_v7 = vpop.f32.mrf.mxu3 }
 0x14b   :  { %v693_v8 = vadd.f32 %v1311_v18, %v692_v53  ;;  %v733_v10 = vadd.f32 %v1311_v18, %v732_v7  ;;  %v714_v45 = vpop.f32.mrf.mxu2 }
 0x14c   :  { %v715_v35 = vadd.f32 %v1311_v18, %v714_v45  ;;  %v672_v11 = vpop.f32.mrf.mxu0 }
 0x14d   :  { %751 = vst [vmem:[%s1444_s3 + $0x70] sm:$0xff] %v693_v8  ;;  %v673_v12 = vadd.f32 %v1311_v18, %v672_v11 }
 0x14e   :  { %767 = vst [vmem:[%s1444_s3 + $0xf0] sm:$0xff] %v733_v10 }
 0x14f   :  { %760 = vst [vmem:[%s1444_s3 + $0xb8] sm:$0xff] %v715_v35 }
 0x150   :  { %743 = vst [vmem:[%s1444_s3 + $0x30] sm:$0xff] %v673_v12 }
 0x152   :  { %v694_v16 = vpop.f32.mrf.mxu1  ;;  %v734_v46 = vpop.f32.mrf.mxu3 }
 0x153   :  { %v695_v23 = vadd.f32 %v1311_v18, %v694_v16  ;;  %v735_v14 = vadd.f32 %v1311_v18, %v734_v46 }
 0x154   :  { %v674_v6 = vpop.f32.mrf.mxu0 }
 0x155   :  { %752 = vst [vmem:[%s1444_s3 + $0x78] sm:$0xff] %v695_v23  ;;  %v675_v20 = vadd.f32 %v1311_v18, %v674_v6 }
 0x156   :  { %768 = vst [vmem:[%s1444_s3 + $0xf8] sm:$0xff] %v735_v14 }
 0x157   :  { %744 = vst [vmem:[%s1444_s3 + $0x38] sm:$0xff] %v675_v20 }

// kernel: convlstm_forward.5
= control target key start
LH: loop header
LB: loop body
LE: loop exit
PB: predicated region body
PF: predicated region fallthrough
CT: control target
= control target key end

     0   :  { %11 = vsyncpa [#allocation5], 0  ;;  %s3972_s0 = inlined_call_operand.vmem [shape: f32[1,2,16,128], index: 0, kind: input, shape index: {}]   ;;  %s3973_s1 = inlined_call_operand.vmem [shape: bf16[96,128], index: 1, kind: input, shape index: {}]   ;;  %s3974_s2 = inlined_call_operand.vmem [shape: f32[16,64], index: 2, kind: input, shape index: {}]   ;;  %s3975_s3 = inlined_call_operand.hbm [shape: f32[16,32], index: 3, kind: input, shape index: {}]   ;;  %s3976_s4 = inlined_call_operand.vmem [shape: bf16[8,2,16,32], index: 4, kind: output, shape index: {0}]   ;;  %s3977_s5 = inlined_call_operand.hbm [shape: f32[2,16,32], index: 5, kind: output, shape index: {1}]  }
   0x1   :  { %12 = vsyncpa [#allocation6], 0 }
   0x2   :  { %14 = vsyncpa [#allocation6 + $0x1], 0  ;;  %s3161_s18 = smov 0   ;;  %s3163_s19 = smov 0  }
   0x3   :  { %s3165_s20 = smov 0   ;;  %s3167_s21 = smov 0  }
   0x4   :  { %s3169_s22 = smov 0   ;;  %s3171_s23 = smov 0  }
   0x5 LB: > { %s2590_s24 = sadd.s32 4294967295, %s3119_s23   ;;  %s2591_s25 = sadd.s32 4294967294, %s3119_s23   ;;  %s3119_s23 = sphi %s3171_s23, %s20_s23   ;;  %s3115_s22 = sphi %s3169_s22, %s3995_s22   ;;  %s3111_s21 = sphi %s3167_s21, %s3994_s21   ;;  %s3107_s20 = sphi %s3165_s20, %s3993_s20   ;;  %s3103_s19 = sphi %s3163_s19, %s3992_s19   ;;  %s3099_s18 = sphi %s3161_s18, %s3991_s18  }
   0x6   : > { %s32_s26 = sadd.s32 1, %s3115_s22  ;;  %s130_s27 = sadd.s32 1, %s3107_s20 }
   0x7   : > { %p34_p0 = scmp.ge.s32.totalorder %s32_s26, 2  ;;  %p140_p1 = scmp.ne.s32.totalorder %s3107_s20, %s3103_s19 }
   0x8   : > { %p141_p2 = scmp.eq.s32.totalorder %s2590_s24, 1  ;;  %p172_p3 = scmp.ne.s32.totalorder %s3103_s19, %s3099_s18 }
   0x9   : > { %s3997_s26 = smov (%p34_p0, %s32_s26), 0  ;;  %p173_p5 = scmp.eq.s32.totalorder %s2591_s25, 1 }
   0xa   : > { %p3201_p4 = por %p141_p2, %p140_p1  ;;  %s126_s29 = ssub.s32 %s3115_s22, %s3997_s26 }
   0xb   : > { %p2592_p6 = scmp.ge.s32.totalorder %s3119_s23, 1  ;;  %p128_p7 = scmp.eq.s32.totalorder %s126_s29, 0 }
   0xc   : > { %p3208_p8 = por %p173_p5, %p172_p3  ;;  %p180_p9 = scmp.lt.s32.totalorder %s3119_s23, 3 }
   0xd   : > { %s3214_s6 = scalar_select %p128_p7, %s3107_s20, %s130_s27  }
   0xe   : > { %p181_p10 = pnand %p2592_p6, %p180_p9  ;;  %p2750_p11 = scmp.eq.s32.totalorder %s2590_s24, 0 }
   0xf   : > { %s197_s9 = sshll.u32 %s3975_s3, 4  ;;  %s3121_s10 = smov [#allocation4]   ;;  %s198_s9 = int_to_ptr.hbm [resolvable:$true] %s197_s9 }
  0x10   : > { %p2742_p12 = pneg %p181_p10  ;;  %s199_s11 = sshll.u32 %s3121_s10, 4  ;;  %s200_s11 = int_to_ptr.vmem [resolvable:$true] %s199_s11 }
  0x11   : > { %s3122_s12 = smov 128   ;;  %s3123_s13 = smov 8  }
  0x12   : > { %p2743_p13 = pnand %p2750_p11, %p2742_p12  ;;  %223 = sbr.rel (%p181_p10) target bundleno = 6138 (0x17fa), region = 36 }
  0x14   : > { %2745 = dma.hbm_to_vmem [thread:$0]  (!%p2743_p13), %s198_s9, 256, %s200_s11, [#allocation5], %s3122_s12, %s3122_s12, %s3123_s13  }
  0x17   : > { %3090 = dma.done.wait (%p2750_p11), [#allocation5], 256  }
  0x18   : > { %3092 = vsyncadd (%p2750_p11), [#allocation5], 4294967040  ;;  %vm267_vm0 = vcmask 257024   ;;  %vm270_vm1 = vcmask 253952   ;;  %v3124_v0 = vmov 0   ;;  %v2725_v1 = vld [vmem:[%s3973_s1 + $0x28] sm:$0xff] }
  0x19   : > { %268 = vst.msk [vmem:[#allocation2] sm:$0xf] %vm267_vm0, %v3124_v0  ;;  %372 = vmatpush.bf16.msra.mxu0 %v2725_v1  ;;  %v2724_v3 = vld [vmem:[%s3973_s1 + $0x20] sm:$0xff]  ;;  %637 = vmatpush.bf16.msra.mxu1 %v2725_v1  ;;  %v2723_v10 = vld [vmem:[%s3973_s1 + $0x18] sm:$0xff]  ;;  %vm304_vm2 = vsmask.f32 7424 }
  0x1a   : > { %269 = vst.msk [vmem:[#allocation2 + $0x4] sm:$0xf] %vm267_vm0, %v3124_v0  ;;  %886 = vmatpush.bf16.msra.mxu2 %v2725_v1  ;;  %1135 = vmatpush.bf16.msra.mxu3 %v2725_v1  ;;  %v2722_v14 = vld [vmem:[%s3973_s1 + $0x10] sm:$0xff]  ;;  %s3125_s7 = smov 32   ;;  %vm319_vm3 = vcmask 1046528   ;;  %s3126_s8 = smov 64  }
  0x1b   : > { %271 = vst.msk [vmem:[#allocation2 + $0x8] sm:$0x1] %vm270_vm1, %v3124_v0  ;;  %v2721_v19 = vld [vmem:[%s3973_s1 + $0x8] sm:$0xff]  ;;  %v2720_v20 = vld [vmem:[%s3973_s1] sm:$0xff]  ;;  %vm272_vm4 = vcmask 261120   ;;  %v3127_v21 = vmov 0.0  }
  0x1c   : > { %273 = vst.msk [vmem:[#allocation3] sm:$0xff] %vm272_vm4, %v3127_v21  ;;  %vm328_vm5 = vcmask 523264   ;;  %vm3978_vm6 = vcmask 785408   ;;  %p256_p0 = scmp.lt.s32.totalorder %s3111_s21, 1  ;;  %v3283_v37 = vld [vmem:[%s3974_s2] sm:$0xff]  ;;  %v3291_v42 = vld [vmem:[%s3974_s2 + $0x8] sm:$0xff] }
  0x1d   : > { %373 = vmatpush.bf16.msra.mxu0 %v2724_v3  ;;  %638 = vmatpush.bf16.msra.mxu1 %v2724_v3  ;;  %274 = vst.msk [vmem:[#allocation3 + $0x8] sm:$0xff] %vm272_vm4, %v3127_v21  ;;  %v289_v53 = vld [vmem:[#allocation4] sm:$0xff]  ;;  %s3128_s9 = smov 96   ;;  %s3822_s24 = sand.u32 1, %s3103_s19  }
  0x1e   : > { %887 = vmatpush.bf16.msra.mxu2 %v2724_v3  ;;  %1136 = vmatpush.bf16.msra.mxu3 %v2724_v3  ;;  %s257_s13 = scalar_select %p256_p0, %s3111_s21, 1 }
  0x1f   : > { %s2598_s27 = sshll.u32 %s3822_s24, 4 }
  0x20   : > { %s2719_s14 = sshll.u32 %s257_s13, 4  ;;  %s3871_s29 = scalar_lea.vmem [#allocation8], %s2598_s27 }
  0x21   : > { %v3225_v2 = vld [vmem:[#allocation2] sm:$0xff]  ;;  %374 = vmatpush.bf16.msra.mxu0 %v2723_v10  ;;  %639 = vmatpush.bf16.msra.mxu1 %v2723_v10  ;;  %s3262_s17 = scalar_lea.vmem %s3972_s0, %s2719_s14 }
  0x22   : > { %v295_v4 = vld [vmem:[#allocation2 + $0x8] sm:$0x1]  ;;  %v306_v6 = vshrl.u32 %v3225_v2, 16  ;;  %v308_v7 = vshll.u32 %v3225_v2, 16  ;;  %888 = vmatpush.bf16.msra.mxu2 %v2723_v10  ;;  %1137 = vmatpush.bf16.msra.mxu3 %v2723_v10  ;;  %v320_v16 = vrot.slane %v3225_v2, 1  ;;  %v3265_v28 = vld [vmem:[%s3262_s17] sm:$0xff] }
  0x23   : > { %v302_v5 = vunpack.c.l.b16 %v295_v4  ;;  %v386_v22 = vld [vmem:[#allocation3] sm:$0xff] }
  0x24   : > { %v310_v9 = vrot.slane %v308_v7, 1  ;;  %390 = vrot.lane.b32.xlu1 %v386_v22, %s3125_s7  ;;  %v387_v23 = vld [vmem:[#allocation3 + $0x8] sm:$0xff]  ;;  %v3272_v31 = vld [vmem:[%s3262_s17 + $0x8] sm:$0xff] }
  0x25   : > { %v303_v8 = vpack.c.b16 %v302_v5, %v302_v5  ;;  %375 = vmatpush.bf16.msra.mxu0 %v2722_v14  ;;  %640 = vmatpush.bf16.msra.mxu1 %v2722_v14 }
  0x26   : > { %v311_v11 = vor.u32 %v310_v9, %v306_v6  ;;  %889 = vmatpush.bf16.msra.mxu2 %v2722_v14  ;;  %1138 = vmatpush.bf16.msra.mxu3 %v2722_v14 }
  0x27   : > { %v313_v12 = vshll.u32 %v303_v8, 16  ;;  %v321_v17 = vrot.slane %v303_v8, 1 }
  0x29   : > { %v315_v13 = vrot.slane %v313_v12, 1  ;;  %v322_v18 = vsel %vm319_vm3, %v320_v16, %v321_v17  ;;  %376 = vmatpush.bf16.msra.mxu0 %v2721_v19  ;;  %641 = vmatpush.bf16.msra.mxu1 %v2721_v19  ;;  %v290_v12 = vld [vmem:[#allocation4 + $0x8] sm:$0xff] }
  0x2a   : > { %890 = vmatpush.bf16.msra.mxu2 %v2721_v19  ;;  %1139 = vmatpush.bf16.msra.mxu3 %v2721_v19 }
  0x2b   : > { %v316_v15 = vsel %vm304_vm2, %v311_v11, %v315_v13 }
  0x2c   : > { %317 = vrot.lane.b32.xlu0 %v316_v15, %s3125_s7  ;;  %392 = vrot.lane.b32.xlu1 %v387_v23, %s3125_s7 }
  0x2d   : > { %377 = vmatpush.bf16.msra.mxu0 %v2720_v20  ;;  %642 = vmatpush.bf16.msra.mxu1 %v2720_v20 }
  0x2e   : > { %891 = vmatpush.bf16.msra.mxu2 %v2720_v20  ;;  %1140 = vmatpush.bf16.msra.mxu3 %v2720_v20 }
  0x31   : > { %1384 = vmatpush.bf16.msrb.mxu0 %v2725_v1  ;;  %1633 = vmatpush.bf16.msrb.mxu1 %v2725_v1 }
  0x32   : > { %1882 = vmatpush.bf16.msrb.mxu2 %v2725_v1  ;;  %2131 = vmatpush.bf16.msrb.mxu3 %v2725_v1 }
  0x34   : > { %323 = vrot.lane.b32.xlu0 %v322_v18, %s3126_s8 }
  0x35   : > { %1385 = vmatpush.bf16.msrb.mxu0 %v2724_v3  ;;  %1634 = vmatpush.bf16.msrb.mxu1 %v2724_v3 }
  0x36   : > { %1883 = vmatpush.bf16.msrb.mxu2 %v2724_v3  ;;  %2132 = vmatpush.bf16.msrb.mxu3 %v2724_v3 }
  0x39   : > { %1386 = vmatpush.bf16.msrb.mxu0 %v2723_v10  ;;  %1635 = vmatpush.bf16.msrb.mxu1 %v2723_v10 }
  0x3a   : > { %1884 = vmatpush.bf16.msrb.mxu2 %v2723_v10  ;;  %2133 = vmatpush.bf16.msrb.mxu3 %v2723_v10 }
  0x3d   : > { %1387 = vmatpush.bf16.msrb.mxu0 %v2722_v14  ;;  %1636 = vmatpush.bf16.msrb.mxu1 %v2722_v14 }
  0x3e   : > { %1885 = vmatpush.bf16.msrb.mxu2 %v2722_v14  ;;  %2134 = vmatpush.bf16.msrb.mxu3 %v2722_v14 }
  0x41   : > { %1388 = vmatpush.bf16.msrb.mxu0 %v2721_v19  ;;  %1637 = vmatpush.bf16.msrb.mxu1 %v2721_v19 }
  0x42   : > { %1886 = vmatpush.bf16.msrb.mxu2 %v2721_v19  ;;  %2135 = vmatpush.bf16.msrb.mxu3 %v2721_v19 }
  0x45   : > { %1389 = vmatpush.bf16.msrb.mxu0 %v2720_v20  ;;  %1638 = vmatpush.bf16.msrb.mxu1 %v2720_v20 }
  0x46   : > { %1887 = vmatpush.bf16.msrb.mxu2 %v2720_v20  ;;  %2136 = vmatpush.bf16.msrb.mxu3 %v2720_v20 }
  0x96   : > { %v391_v36 = vpop.permute.xlu1 %390 }
  0x97   : > { %v396_v38 = vsel %vm272_vm4, %v386_v22, %v391_v36 }
  0x98   : > { %v398_v39 = vmul.f32 %v396_v38, %v3283_v37 }
  0x9e   : > { %v318_v24 = vpop.permute.xlu0 %317  ;;  %v393_v40 = vpop.permute.xlu1 %392 }
  0x9f   : > { %v327_v25 = vsel %vm272_vm4, %v3225_v2, %v318_v24  ;;  %v397_v43 = vsel %vm272_vm4, %v387_v23, %v393_v40 }
  0xa0   : > { %v399_v45 = vmul.f32 %v397_v43, %v3291_v42 }
  0xa6   : > { %v324_v26 = vpop.permute.xlu0 %323 }
  0xa7   : > { %v330_v27 = vsel %vm328_vm5, %v327_v25, %v324_v26 }
  0xa8   : > { %2629 = vmatmul.msk.bf16.vlgmr.msra.gmra.mxu0 %vm3978_vm6, %v330_v27 }
 0x125   : > { %v379_v29 = vpop.f32.mrf.mxu0 }
 0x126   : > { %v3268_v30 = vadd.f32 %v379_v29, %v3265_v28 }
 0x128   : > { %2811 = vtanh.f32 %v3268_v30  ;;  %v400_v41 = vadd.f32 %v398_v39, %v3268_v30 }
 0x12a   : > { %v2630_v44 = vmul.f32 -1.442695, %v400_v41 }
 0x12d   : > { %v381_v32 = vpop.f32.mrf.mxu0 }
 0x12e   : > { %v2812_v33 = vpop.eup %2811  ;;  %v3275_v34 = vadd.f32 %v381_v32, %v3272_v31 }
 0x12f   : > { %446 = vrot.lane.b32.xlu2 %v2812_v33, %s3126_s8 }
 0x130   : > { %2813 = vtanh.f32 %v3275_v34  ;;  %v401_v46 = vadd.f32 %v399_v45, %v3275_v34 }
 0x131   : > { %2815 = vpow2.f32 %v2630_v44 }
 0x132   : > { %v2631_v47 = vmul.f32 -1.442695, %v401_v46 }
 0x134   : > { %2817 = vpow2.f32 %v2631_v47 }
 0x136   : > { %v2814_v35 = vpop.eup %2813 }
 0x137   : > { %448 = vrot.lane.b32.xlu2 %v2814_v35, %s3126_s8  ;;  %v2816_v48 = vpop.eup %2815 }
 0x138   : > { %v408_v49 = vadd.f32 1.0, %v2816_v48 }
 0x13a   : > { %2819 = vrcp.f32 %v408_v49  ;;  %v2818_v50 = vpop.eup %2817  ;;  %v421_v61 = vand.u32 2147483648, %v408_v49  ;;  %vm415_vm8 = vweird.f32 %v408_v49  ;;  %v419_v62 = vand.u32 2147483647, %v408_v49 }
 0x13b   : > { %v409_v51 = vadd.f32 1.0, %v2818_v50 }
 0x13c   : > { %v422_v1 = vor.u32 1.1754944e-38, %v421_v61  ;;  %vm420_vm10 = vcmp.eq.f32.partialorder %v419_v62, 8.507059e+37 }
 0x13d   : > { %2821 = vrcp.f32 %v409_v51  ;;  %v436_v6 = vand.u32 2147483648, %v409_v51  ;;  %vm430_vm12 = vweird.f32 %v409_v51  ;;  %v434_v7 = vand.u32 2147483647, %v409_v51 }
 0x13f   : > { %466 = vrot.lane.b32.xlu2 %v289_v53, %s3125_s7  ;;  %v437_v9 = vor.u32 1.1754944e-38, %v436_v6  ;;  %vm435_vm14 = vcmp.eq.f32.partialorder %v434_v7, 8.507059e+37 }
 0x140   : > { %v2820_v52 = vpop.eup %2819 }
 0x141   : > { %v411_v54 = vmul.f32 %v2820_v52, %v408_v49  ;;  %vm416_vm7 = vweird.f32 %v2820_v52 }
 0x142   : > { %vm417_vm9 = vmor %vm415_vm8, %vm416_vm7 }
 0x143   : > { %v412_v55 = vsub.f32 1.0, %v411_v54  ;;  %v2822_v56 = vpop.eup %2821 }
 0x144   : > { %v426_v58 = vmul.f32 %v2822_v56, %v409_v51  ;;  %vm431_vm11 = vweird.f32 %v2822_v56 }
 0x145   : > { %v413_v57 = vmul.f32 %v2820_v52, %v412_v55  ;;  %vm432_vm13 = vmor %vm430_vm12, %vm431_vm11 }
 0x146   : > { %v427_v60 = vsub.f32 1.0, %v426_v58 }
 0x147   : > { %v414_v59 = vadd.f32 %v2820_v52, %v413_v57 }
 0x148   : > { %v428_v0 = vmul.f32 %v2822_v56, %v427_v60 }
 0x149   : > { %v418_v63 = vsel %vm417_vm9, %v2820_v52, %v414_v59 }
 0x14a   : > { %v423_v3 = vsel %vm420_vm10, %v422_v1, %v418_v63  ;;  %v429_v5 = vadd.f32 %v2822_v56, %v428_v0 }
 0x14b   : > { %v440_v14 = vmul.f32 %v423_v3, %v391_v36 }
 0x14c   : > { %v433_v8 = vsel %vm432_vm13, %v2822_v56, %v429_v5 }
 0x14d   : > { %v438_v11 = vsel %vm435_vm14, %v437_v9, %v433_v8  ;;  %vm536_vm14 = vsmask.f32 256 }
 0x14e   : > { %v441_v19 = vmul.f32 %v438_v11, %v393_v40 }
 0x189   : > { %v447_v2 = vpop.permute.xlu2 %446 }
 0x18a   : > { %v452_v4 = vmul.f32 %v447_v2, %v423_v3 }
 0x18c   : > { %456 = vrot.lane.b32.xlu0 %v452_v4, %s3125_s7 }
 0x191   : > { %v449_v10 = vpop.permute.xlu2 %448 }
 0x192   : > { %v453_v13 = vmul.f32 %v449_v10, %v438_v11 }
 0x194   : > { %458 = vrot.lane.b32.xlu1 %v453_v13, %s3125_s7  ;;  %468 = vrot.lane.b32.xlu0 %v290_v12, %s3125_s7 }
 0x199   : > { %v3300_v16 = vpop.permute.xlu2 %466 }
 0x1fe   : > { %v457_v15 = vpop.permute.xlu0 %456 }
 0x1ff   : > { %v3302_v17 = vadd.f32 %v457_v15, %v440_v14  ;;  %v293_v15 = vld [vmem:[#allocation2] sm:$0xf] }
 0x201   : > { %2823 = vtanh.f32 %v3302_v17  ;;  %v472_v18 = vmul.f32 %v3300_v16, %v3302_v17 }
 0x203   : > { %476 = vrot.lane.b32.xlu1 %v472_v18, %s3126_s8 }
 0x206   : > { %v459_v20 = vpop.permute.xlu1 %458  ;;  %v3308_v21 = vpop.permute.xlu0 %468 }
 0x207   : > { %v2824_v22 = vpop.eup %2823  ;;  %v3310_v23 = vadd.f32 %v459_v20, %v441_v19 }
 0x208   : > { %526 = vrot.lane.b32.xlu0 %v2824_v22, %s3126_s8  ;;  %v574_v22 = vld [vmem:[#allocation2 + $0x8] sm:$0x1] }
 0x209   : > { %2825 = vtanh.f32 %v3310_v23  ;;  %v473_v24 = vmul.f32 %v3308_v21, %v3310_v23 }
 0x20b   : > { %478 = vrot.lane.b32.xlu2 %v473_v24, %s3126_s8 }
 0x20f   : > { %v2826_v25 = vpop.eup %2825 }
 0x210   : > { %528 = vrot.lane.b32.xlu1 %v2826_v25, %s3126_s8 }
 0x265   : > { %v479_v26 = vpop.permute.xlu2 %478 }
 0x266   : > { %v483_v27 = vadd.f32 %v479_v26, %v3275_v34 }
 0x268   : > { %v2633_v29 = vmul.f32 -1.442695, %v483_v27 }
 0x26a   : > { %2827 = vpow2.f32 %v2633_v29 }
 0x270   : > { %v2828_v32 = vpop.eup %2827 }
 0x271   : > { %v491_v33 = vadd.f32 1.0, %v2828_v32 }
 0x273   : > { %2829 = vrcp.f32 %v491_v33  ;;  %v518_v44 = vand.u32 2147483648, %v491_v33  ;;  %v516_v45 = vand.u32 2147483647, %v491_v33  ;;  %vm512_vm7 = vweird.f32 %v491_v33 }
 0x275   : > { %v477_v35 = vpop.permute.xlu1 %476  ;;  %v519_v50 = vor.u32 1.1754944e-38, %v518_v44  ;;  %vm517_vm9 = vcmp.eq.f32.partialorder %v516_v45, 8.507059e+37 }
 0x276   : > { %v482_v36 = vadd.f32 %v477_v35, %v3268_v30 }
 0x278   : > { %v2632_v38 = vmul.f32 -1.442695, %v482_v36 }
 0x279   : > { %v2830_v39 = vpop.eup %2829 }
 0x27a   : > { %2831 = vpow2.f32 %v2632_v38  ;;  %v508_v40 = vmul.f32 %v2830_v39, %v491_v33  ;;  %vm513_vm15 = vweird.f32 %v2830_v39  ;;  %v527_v1 = vpop.permute.xlu0 %526 }
 0x27b   : > { %vm514_vm8 = vmor %vm512_vm7, %vm513_vm15  ;;  %vm537_vm15 = vsmask.f32 4368 }
 0x27c   : > { %v509_v41 = vsub.f32 1.0, %v508_v40  ;;  %vm3330_vm7 = vmor %vm536_vm14, %vm537_vm15 }
 0x27e   : > { %v510_v43 = vmul.f32 %v2830_v39, %v509_v41 }
 0x280   : > { %v2832_v46 = vpop.eup %2831  ;;  %v511_v47 = vadd.f32 %v2830_v39, %v510_v43 }
 0x281   : > { %v490_v34 = vadd.f32 1.0, %v2832_v46 }
 0x282   : > { %v529_v48 = vpop.permute.xlu1 %528  ;;  %v515_v49 = vsel %vm514_vm8, %v2830_v39, %v511_v47  ;;  %vm566_vm8 = vsmask.f32 7938 }
 0x283   : > { %2833 = vrcp.f32 %v490_v34  ;;  %v520_v30 = vsel %vm517_vm9, %v519_v50, %v515_v49  ;;  %v503_v58 = vand.u32 2147483648, %v490_v34  ;;  %v501_v61 = vand.u32 2147483647, %v490_v34  ;;  %vm3341_vm9 = vmand %vm267_vm0, %vm566_vm8 }
 0x284   : > { %v533_v51 = vmul.f32 %v529_v48, %v520_v30  ;;  %vm497_vm11 = vweird.f32 %v490_v34 }
 0x285   : > { %v504_v63 = vor.u32 1.1754944e-38, %v503_v58  ;;  %vm502_vm13 = vcmp.eq.f32.partialorder %v501_v61, 8.507059e+37 }
 0x286   : > { %v3320_v52 = vpack.c.bf16 %v533_v51, %v533_v51 }
 0x288   : > { %v548_v54 = vshrl.u32 %v3320_v52, 16  ;;  %v551_v7 = vshll.u32 %v3320_v52, 16 }
 0x289   : > { %v2834_v53 = vpop.eup %2833 }
 0x28a   : > { %v493_v55 = vmul.f32 %v2834_v53, %v490_v34  ;;  %v550_v56 = vrot.slane %v548_v54, 7  ;;  %vm498_vm10 = vweird.f32 %v2834_v53 }
 0x28b   : > { %vm499_vm12 = vmor %vm497_vm11, %vm498_vm10 }
 0x28c   : > { %v494_v57 = vsub.f32 1.0, %v493_v55  ;;  %v555_v59 = vrot.slane %v550_v56, 4  ;;  %v553_v12 = vor.u32 %v551_v7, %v550_v56  ;;  %vm3349_vm10 = vmand %vm270_vm1, %vm536_vm14 }
 0x28e   : > { %v495_v60 = vmul.f32 %v2834_v53, %v494_v57  ;;  %560 = vrot.lane.b32.xlu0 %v555_v59, %s3125_s7 }
 0x290   : > { %v496_v62 = vadd.f32 %v2834_v53, %v495_v60 }
 0x292   : > { %v500_v0 = vsel %vm499_vm12, %v2834_v53, %v496_v62 }
 0x293   : > { %v505_v2 = vsel %vm502_vm13, %v504_v63, %v500_v0 }
 0x294   : > { %v532_v3 = vmul.f32 %v527_v1, %v505_v2 }
 0x296   : > { %v3324_v4 = vpack.c.bf16 %v532_v3, %v532_v3 }
 0x298   : > { %v540_v5 = vshrl.u32 %v3324_v4, 16  ;;  %v543_v6 = vshll.u32 %v3324_v4, 16 }
 0x29a   : > { %v542_v8 = vrot.slane %v540_v5, 7 }
 0x29c   : > { %v545_v10 = vor.u32 %v543_v6, %v542_v8  ;;  %v546_v11 = vrot.slane %v542_v8, 4 }
 0x29e   : > { %556 = vrot.lane.b32.xlu2 %v545_v10, %s3125_s7  ;;  %v554_v13 = vsel %vm3330_vm7, %v546_v11, %v553_v12 }
 0x29f   : > { %558 = vrot.lane.b32.xlu1 %v554_v13, %s3125_s7 }
 0x2a7   : > { %579 = vrot.lane.b32.xlu1 %v3302_v17, %s3128_s9 }
 0x2f8   : > { %v557_v18 = vpop.permute.xlu2 %556 }
 0x2f9   : > { %v568_v19 = vsel %vm3341_vm9, %v557_v18, %v293_v15 }
 0x2fa   : > { %569 = vst [vmem:[#allocation2] sm:$0xf] %v568_v19 }
 0x300   : > { %v561_v17 = vpop.permute.xlu0 %560 }
 0x301   : > { %v575_v24 = vsel %vm3349_vm10, %v561_v17, %v574_v22 }
 0x302   : > { %576 = vst [vmem:[#allocation2 + $0x8] sm:$0x1] %v575_v24 }
 0x309   : > { %v601_v25 = vld [vmem:[#allocation2 + $0x8] sm:$0x1] }
 0x30a   : > { %v608_v27 = vunpack.c.l.b16 %v601_v25 }
 0x30c   : > { %v609_v29 = vpack.c.b16 %v608_v27, %v608_v27 }
 0x30e   : > { %v625_v36 = vrot.slane %v609_v29, 1  ;;  %v618_v39 = vshll.u32 %v609_v29, 16 }
 0x310   : > { %v620_v45 = vrot.slane %v618_v39, 1 }
 0x311   : > { %v559_v26 = vpop.permute.xlu1 %558 }
 0x312   : > { %571 = vst.msk [vmem:[#allocation2 + $0x4] sm:$0xf] %vm267_vm0, %v559_v26 }
 0x319   : > { %v580_v32 = vpop.permute.xlu1 %579  ;;  %v2727_v33 = vld [vmem:[#allocation2] sm:$0xff] }
 0x31a   : > { %585 = vst.msk [vmem:[#allocation3] sm:$0xff] %vm272_vm4, %v580_v32  ;;  %v624_v35 = vrot.slane %v2727_v33, 1  ;;  %v613_v38 = vshll.u32 %v2727_v33, 16  ;;  %v611_v41 = vshrl.u32 %v2727_v33, 16 }
 0x31c   : > { %v626_v40 = vsel %vm319_vm3, %v624_v35, %v625_v36  ;;  %v615_v43 = vrot.slane %v613_v38, 1 }
 0x31d   : > { %627 = vrot.lane.b32.xlu0 %v626_v40, %s3126_s8 }
 0x31e   : > { %v616_v44 = vor.u32 %v615_v43, %v611_v41 }
 0x320   : > { %v621_v46 = vsel %vm304_vm2, %v616_v44, %v620_v45 }
 0x321   : > { %622 = vrot.lane.b32.xlu2 %v621_v46, %s3125_s7  ;;  %v651_v47 = vld [vmem:[#allocation3] sm:$0xff] }
 0x325   : > { %655 = vrot.lane.b32.xlu0 %v651_v47, %s3125_s7 }
 0x329   : > { %581 = vrot.lane.b32.xlu2 %v3310_v23, %s3128_s9 }
 0x37b   : > { %v623_v34 = vpop.permute.xlu2 %622 }
 0x37c   : > { %v630_v50 = vsel %vm272_vm4, %v2727_v33, %v623_v34 }
 0x383   : > { %v582_v48 = vpop.permute.xlu2 %581 }
 0x384   : > { %586 = vst.msk [vmem:[#allocation3 + $0x8] sm:$0xff] %vm272_vm4, %v582_v48 }
 0x38b   : > { %v652_v49 = vld [vmem:[#allocation3 + $0x8] sm:$0xff] }
 0x38c   : > { %657 = vrot.lane.b32.xlu1 %v652_v49, %s3125_s7 }
 0x38f   : > { %v628_v30 = vpop.permute.xlu0 %627 }
 0x390   : > { %v632_v51 = vsel %vm328_vm5, %v630_v50, %v628_v30 }
 0x391   : > { %2638 = vmatmul.msk.bf16.vlgmr.msra.gmra.mxu1 %vm3978_vm6, %v632_v51 }
 0x397   : > { %v656_v58 = vpop.permute.xlu0 %655 }
 0x398   : > { %v661_v59 = vsel %vm272_vm4, %v651_v47, %v656_v58 }
 0x399   : > { %v663_v60 = vmul.f32 %v661_v59, %v3283_v37 }
 0x3fe   : > { %v658_v1 = vpop.permute.xlu1 %657 }
 0x3ff   : > { %v662_v3 = vsel %vm272_vm4, %v652_v49, %v658_v1 }
 0x400   : > { %v664_v5 = vmul.f32 %v662_v3, %v3291_v42 }
 0x40e   : > { %v644_v53 = vpop.f32.mrf.mxu1 }
 0x40f   : > { %v3370_v54 = vadd.f32 %v644_v53, %v3265_v28 }
 0x411   : > { %2835 = vtanh.f32 %v3370_v54  ;;  %v665_v61 = vadd.f32 %v663_v60, %v3370_v54 }
 0x413   : > { %v2639_v62 = vmul.f32 -1.442695, %v665_v61 }
 0x416   : > { %v646_v23 = vpop.f32.mrf.mxu1 }
 0x417   : > { %v2836_v55 = vpop.eup %2835  ;;  %v3374_v56 = vadd.f32 %v646_v23, %v3272_v31 }
 0x418   : > { %711 = vrot.lane.b32.xlu2 %v2836_v55, %s3126_s8 }
 0x419   : > { %2837 = vtanh.f32 %v3374_v56  ;;  %v666_v7 = vadd.f32 %v664_v5, %v3374_v56 }
 0x41a   : > { %2839 = vpow2.f32 %v2639_v62 }
 0x41b   : > { %v2640_v10 = vmul.f32 -1.442695, %v666_v7 }
 0x41f   : > { %v2838_v57 = vpop.eup %2837 }
 0x420   : > { %713 = vrot.lane.b32.xlu0 %v2838_v57, %s3126_s8  ;;  %v2840_v63 = vpop.eup %2839 }
 0x421   : > { %v673_v0 = vadd.f32 1.0, %v2840_v63 }
 0x423   : > { %2841 = vrcp.f32 %v673_v0  ;;  %v686_v13 = vand.u32 2147483648, %v673_v0  ;;  %vm680_vm11 = vweird.f32 %v673_v0  ;;  %v684_v15 = vand.u32 2147483647, %v673_v0 }
 0x424   : > { %2843 = vpow2.f32 %v2640_v10 }
 0x425   : > { %v687_v22 = vor.u32 1.1754944e-38, %v686_v13  ;;  %vm685_vm13 = vcmp.eq.f32.partialorder %v684_v15, 8.507059e+37 }
 0x429   : > { %v2842_v2 = vpop.eup %2841 }
 0x42a   : > { %v676_v6 = vmul.f32 %v2842_v2, %v673_v0  ;;  %vm681_vm1 = vweird.f32 %v2842_v2  ;;  %v2844_v18 = vpop.eup %2843 }
 0x42b   : > { %vm682_vm12 = vmor %vm680_vm11, %vm681_vm1  ;;  %v674_v17 = vadd.f32 1.0, %v2844_v18 }
 0x42c   : > { %v677_v8 = vsub.f32 1.0, %v676_v6 }
 0x42d   : > { %2845 = vrcp.f32 %v674_v17  ;;  %v701_v36 = vand.u32 2147483648, %v674_v17  ;;  %vm695_vm15 = vweird.f32 %v674_v17  ;;  %v699_v38 = vand.u32 2147483647, %v674_v17 }
 0x42e   : > { %v678_v11 = vmul.f32 %v2842_v2, %v677_v8 }
 0x42f   : > { %v702_v40 = vor.u32 1.1754944e-38, %v701_v36  ;;  %vm700_vm1 = vcmp.eq.f32.partialorder %v699_v38, 8.507059e+37 }
 0x430   : > { %v679_v12 = vadd.f32 %v2842_v2, %v678_v11 }
 0x432   : > { %v683_v19 = vsel %vm682_vm12, %v2842_v2, %v679_v12 }
 0x433   : > { %v688_v24 = vsel %vm685_vm13, %v687_v22, %v683_v19  ;;  %v2846_v27 = vpop.eup %2845 }
 0x434   : > { %v691_v29 = vmul.f32 %v2846_v27, %v674_v17  ;;  %vm696_vm14 = vweird.f32 %v2846_v27  ;;  %v705_v45 = vmul.f32 %v688_v24, %v656_v58 }
 0x435   : > { %vm697_vm8 = vmor %vm695_vm15, %vm696_vm14 }
 0x436   : > { %v692_v32 = vsub.f32 1.0, %v691_v29 }
 0x438   : > { %v693_v33 = vmul.f32 %v2846_v27, %v692_v32 }
 0x43a   : > { %v694_v35 = vadd.f32 %v2846_v27, %v693_v33 }
 0x43c   : > { %v698_v39 = vsel %vm697_vm8, %v2846_v27, %v694_v35 }
 0x43d   : > { %v703_v43 = vsel %vm700_vm1, %v702_v40, %v698_v39 }
 0x43e   : > { %v706_v48 = vmul.f32 %v703_v43, %v658_v1 }
 0x472   : > { %v712_v25 = vpop.permute.xlu2 %711 }
 0x473   : > { %v717_v26 = vmul.f32 %v712_v25, %v688_v24 }
 0x475   : > { %721 = vrot.lane.b32.xlu1 %v717_v26, %s3125_s7 }
 0x492   : > { %v714_v41 = vpop.permute.xlu0 %713 }
 0x493   : > { %v718_v44 = vmul.f32 %v714_v41, %v703_v43 }
 0x495   : > { %723 = vrot.lane.b32.xlu2 %v718_v44, %s3125_s7 }
 0x4e7   : > { %v722_v46 = vpop.permute.xlu1 %721 }
 0x4e8   : > { %v3387_v47 = vadd.f32 %v722_v46, %v705_v45 }
 0x4ea   : > { %2847 = vtanh.f32 %v3387_v47  ;;  %v729_v34 = vmul.f32 %v3387_v47, %v3300_v16 }
 0x4ec   : > { %733 = vrot.lane.b32.xlu0 %v729_v34, %s3126_s8 }
 0x4ef   : > { %v724_v49 = vpop.permute.xlu2 %723 }
 0x4f0   : > { %v2848_v50 = vpop.eup %2847  ;;  %v3393_v30 = vadd.f32 %v724_v49, %v706_v48  ;;  %v822_v49 = vld [vmem:[#allocation2 + $0x8] sm:$0x1] }
 0x4f1   : > { %783 = vrot.lane.b32.xlu2 %v2848_v50, %s3126_s8 }
 0x4f2   : > { %2849 = vtanh.f32 %v3393_v30  ;;  %v730_v51 = vmul.f32 %v3393_v30, %v3308_v21 }
 0x4f4   : > { %735 = vrot.lane.b32.xlu1 %v730_v51, %s3126_s8 }
 0x4f8   : > { %v2850_v53 = vpop.eup %2849 }
 0x4f9   : > { %785 = vrot.lane.b32.xlu0 %v2850_v53, %s3126_s8 }
 0x54b   : > { %v784_v12 = vpop.permute.xlu2 %783 }
 0x55e   : > { %v734_v23 = vpop.permute.xlu0 %733 }
 0x55f   : > { %v739_v55 = vadd.f32 %v734_v23, %v3370_v54  ;;  %v599_v23 = vld [vmem:[#allocation2] sm:$0xf] }
 0x561   : > { %v2641_v57 = vmul.f32 -1.442695, %v739_v55 }
 0x563   : > { %2851 = vpow2.f32 %v2641_v57 }
 0x566   : > { %v736_v58 = vpop.permute.xlu1 %735 }
 0x567   : > { %v740_v59 = vadd.f32 %v736_v58, %v3374_v56 }
 0x569   : > { %v2852_v60 = vpop.eup %2851  ;;  %v2642_v61 = vmul.f32 -1.442695, %v740_v59 }
 0x56a   : > { %v747_v62 = vadd.f32 1.0, %v2852_v60 }
 0x56b   : > { %2853 = vpow2.f32 %v2642_v61  ;;  %v786_v35 = vpop.permute.xlu0 %785 }
 0x56c   : > { %2855 = vrcp.f32 %v747_v62  ;;  %v760_v5 = vand.u32 2147483648, %v747_v62  ;;  %v758_v54 = vand.u32 2147483647, %v747_v62  ;;  %vm754_vm12 = vweird.f32 %v747_v62 }
 0x56e   : > { %v761_v10 = vor.u32 1.1754944e-38, %v760_v5  ;;  %vm759_vm14 = vcmp.eq.f32.partialorder %v758_v54, 8.507059e+37 }
 0x571   : > { %v2854_v63 = vpop.eup %2853 }
 0x572   : > { %v2856_v0 = vpop.eup %2855  ;;  %v748_v1 = vadd.f32 1.0, %v2854_v63 }
 0x573   : > { %v750_v2 = vmul.f32 %v2856_v0, %v747_v62  ;;  %vm755_vm11 = vweird.f32 %v2856_v0 }
 0x574   : > { %2857 = vrcp.f32 %v748_v1  ;;  %vm756_vm13 = vmor %vm754_vm12, %vm755_vm11  ;;  %v775_v19 = vand.u32 2147483648, %v748_v1  ;;  %v773_v17 = vand.u32 2147483647, %v748_v1  ;;  %vm769_vm8 = vweird.f32 %v748_v1 }
 0x575   : > { %v751_v3 = vsub.f32 1.0, %v750_v2 }
 0x576   : > { %v776_v27 = vor.u32 1.1754944e-38, %v775_v19  ;;  %vm774_vm11 = vcmp.eq.f32.partialorder %v773_v17, 8.507059e+37 }
 0x577   : > { %v752_v6 = vmul.f32 %v2856_v0, %v751_v3 }
 0x579   : > { %v753_v7 = vadd.f32 %v2856_v0, %v752_v6 }
 0x57a   : > { %v2858_v8 = vpop.eup %2857 }
 0x57b   : > { %v765_v56 = vmul.f32 %v2858_v8, %v748_v1  ;;  %v757_v11 = vsel %vm756_vm13, %v2856_v0, %v753_v7  ;;  %vm770_vm15 = vweird.f32 %v2858_v8 }
 0x57c   : > { %v762_v13 = vsel %vm759_vm14, %v761_v10, %v757_v11  ;;  %vm771_vm1 = vmor %vm769_vm8, %vm770_vm15 }
 0x57d   : > { %v766_v15 = vsub.f32 1.0, %v765_v56  ;;  %v789_v18 = vmul.f32 %v784_v12, %v762_v13 }
 0x57f   : > { %v767_v22 = vmul.f32 %v2858_v8, %v766_v15  ;;  %v3403_v24 = vpack.c.bf16 %v789_v18, %v789_v18 }
 0x581   : > { %v768_v25 = vadd.f32 %v2858_v8, %v767_v22  ;;  %v794_v26 = vshrl.u32 %v3403_v24, 16  ;;  %v797_v33 = vshll.u32 %v3403_v24, 16 }
 0x583   : > { %v772_v29 = vsel %vm771_vm1, %v2858_v8, %v768_v25  ;;  %v796_v32 = vrot.slane %v794_v26, 7 }
 0x584   : > { %v777_v36 = vsel %vm774_vm11, %v776_v27, %v772_v29 }
 0x585   : > { %v790_v38 = vmul.f32 %v786_v35, %v777_v36  ;;  %v799_v39 = vor.u32 %v797_v33, %v796_v32  ;;  %v800_v46 = vrot.slane %v796_v32, 4 }
 0x587   : > { %v3407_v40 = vpack.c.bf16 %v790_v38, %v790_v38  ;;  %810 = vrot.lane.b32.xlu1 %v799_v39, %s3125_s7 }
 0x589   : > { %v802_v41 = vshrl.u32 %v3407_v40, 16  ;;  %v805_v43 = vshll.u32 %v3407_v40, 16 }
 0x58b   : > { %v804_v44 = vrot.slane %v802_v41, 7 }
 0x58d   : > { %v809_v45 = vrot.slane %v804_v44, 4  ;;  %v807_v34 = vor.u32 %v805_v43, %v804_v44 }
 0x58f   : > { %814 = vrot.lane.b32.xlu2 %v809_v45, %s3125_s7  ;;  %v808_v48 = vsel %vm3330_vm7, %v800_v46, %v807_v34 }
 0x590   : > { %812 = vrot.lane.b32.xlu0 %v808_v48, %s3125_s7 }
 0x598   : > { %827 = vrot.lane.b32.xlu0 %v3387_v47, %s3128_s9 }
 0x5e9   : > { %v815_v50 = vpop.permute.xlu2 %814 }
 0x5ea   : > { %v823_v51 = vsel %vm3349_vm10, %v815_v50, %v822_v49 }
 0x5eb   : > { %824 = vst [vmem:[#allocation2 + $0x8] sm:$0x1] %v823_v51 }
 0x5f2   : > { %v850_v57 = vld [vmem:[#allocation2 + $0x8] sm:$0x1] }
 0x5f3   : > { %v857_v59 = vunpack.c.l.b16 %v850_v57 }
 0x5f5   : > { %v858_v60 = vpack.c.b16 %v857_v59, %v857_v59 }
 0x5f7   : > { %v874_v63 = vrot.slane %v858_v60, 1  ;;  %v867_v1 = vshll.u32 %v858_v60, 16 }
 0x5f9   : > { %v811_v53 = vpop.permute.xlu1 %810  ;;  %v869_v54 = vrot.slane %v867_v1, 1 }
 0x5fa   : > { %v819_v55 = vsel %vm3341_vm9, %v811_v53, %v599_v23 }
 0x5fb   : > { %820 = vst [vmem:[#allocation2] sm:$0xf] %v819_v55 }
 0x602   : > { %v813_v58 = vpop.permute.xlu0 %812 }
 0x603   : > { %821 = vst.msk [vmem:[#allocation2 + $0x4] sm:$0xf] %vm267_vm0, %v813_v58 }
 0x60a   : > { %v828_v61 = vpop.permute.xlu0 %827  ;;  %v2728_v47 = vld [vmem:[#allocation2] sm:$0xff] }
 0x60b   : > { %833 = vst.msk [vmem:[#allocation3] sm:$0xff] %vm272_vm4, %v828_v61  ;;  %v873_v62 = vrot.slane %v2728_v47, 1  ;;  %v862_v0 = vshll.u32 %v2728_v47, 16  ;;  %v860_v3 = vshrl.u32 %v2728_v47, 16 }
 0x60d   : > { %v875_v2 = vsel %vm319_vm3, %v873_v62, %v874_v63  ;;  %v864_v5 = vrot.slane %v862_v0, 1 }
 0x60e   : > { %876 = vrot.lane.b32.xlu2 %v875_v2, %s3126_s8 }
 0x60f   : > { %v865_v6 = vor.u32 %v864_v5, %v860_v3 }
 0x611   : > { %v870_v7 = vsel %vm304_vm2, %v865_v6, %v869_v54 }
 0x612   : > { %871 = vrot.lane.b32.xlu1 %v870_v7, %s3125_s7  ;;  %v900_v8 = vld [vmem:[#allocation3] sm:$0xff] }
 0x616   : > { %904 = vrot.lane.b32.xlu2 %v900_v8, %s3125_s7 }
 0x61a   : > { %829 = vrot.lane.b32.xlu1 %v3393_v30, %s3128_s9 }
 0x668   : > { %v877_v56 = vpop.permute.xlu2 %876 }
 0x670   : > { %v905_v33 = vpop.permute.xlu2 %904 }
 0x684   : > { %v872_v10 = vpop.permute.xlu1 %871 }
 0x685   : > { %v879_v11 = vsel %vm272_vm4, %v2728_v47, %v872_v10 }
 0x686   : > { %v881_v12 = vsel %vm328_vm5, %v879_v11, %v877_v56 }
 0x687   : > { %2649 = vmatmul.msk.bf16.vlgmr.msra.gmra.mxu2 %vm3978_vm6, %v881_v12 }
 0x68c   : > { %v830_v13 = vpop.permute.xlu1 %829 }
 0x68d   : > { %834 = vst.msk [vmem:[#allocation3 + $0x8] sm:$0xff] %vm272_vm4, %v830_v13 }
 0x694   : > { %v901_v15 = vld [vmem:[#allocation3 + $0x8] sm:$0xff] }
 0x695   : > { %906 = vrot.lane.b32.xlu0 %v901_v15, %s3125_s7 }
 0x707   : > { %v907_v26 = vpop.permute.xlu0 %906 }
 0x708   : > { %v911_v27 = vsel %vm272_vm4, %v901_v15, %v907_v26 }
 0x70a   : > { %v893_v18 = vpop.f32.mrf.mxu2 }
 0x70b   : > { %v3437_v19 = vadd.f32 %v893_v18, %v3265_v28  ;;  %v913_v28 = vmul.f32 %v911_v27, %v3291_v42 }
 0x70d   : > { %2859 = vtanh.f32 %v3437_v19 }
 0x712   : > { %v895_v30 = vpop.f32.mrf.mxu2 }
 0x713   : > { %v2860_v22 = vpop.eup %2859  ;;  %v3441_v17 = vadd.f32 %v895_v30, %v3272_v31  ;;  %v910_v31 = vsel %vm272_vm4, %v900_v8, %v905_v33 }
 0x714   : > { %960 = vrot.lane.b32.xlu1 %v2860_v22, %s3126_s8  ;;  %v912_v36 = vmul.f32 %v910_v31, %v3283_v37 }
 0x715   : > { %2861 = vtanh.f32 %v3441_v17  ;;  %v915_v29 = vadd.f32 %v913_v28, %v3441_v17 }
 0x716   : > { %v914_v38 = vadd.f32 %v912_v36, %v3437_v19 }
 0x717   : > { %v2651_v32 = vmul.f32 -1.442695, %v915_v29 }
 0x718   : > { %v2650_v41 = vmul.f32 -1.442695, %v914_v38 }
 0x719   : > { %2863 = vpow2.f32 %v2651_v32 }
 0x71b   : > { %v2862_v25 = vpop.eup %2861 }
 0x71c   : > { %962 = vrot.lane.b32.xlu2 %v2862_v25, %s3126_s8 }
 0x71f   : > { %v2864_v35 = vpop.eup %2863 }
 0x720   : > { %v923_v39 = vadd.f32 1.0, %v2864_v35 }
 0x722   : > { %2865 = vrcp.f32 %v923_v39  ;;  %v950_v50 = vand.u32 2147483648, %v923_v39  ;;  %vm944_vm13 = vweird.f32 %v923_v39  ;;  %v948_v51 = vand.u32 2147483647, %v923_v39 }
 0x723   : > { %2867 = vpow2.f32 %v2650_v41 }
 0x724   : > { %v951_v23 = vor.u32 1.1754944e-38, %v950_v50  ;;  %vm949_vm15 = vcmp.eq.f32.partialorder %v948_v51, 8.507059e+37 }
 0x728   : > { %v2866_v43 = vpop.eup %2865 }
 0x729   : > { %v2868_v44 = vpop.eup %2867  ;;  %v940_v45 = vmul.f32 %v2866_v43, %v923_v39  ;;  %vm945_vm12 = vweird.f32 %v2866_v43 }
 0x72a   : > { %v922_v42 = vadd.f32 1.0, %v2868_v44  ;;  %vm946_vm14 = vmor %vm944_vm13, %vm945_vm12 }
 0x72b   : > { %v941_v46 = vsub.f32 1.0, %v940_v45 }
 0x72c   : > { %2869 = vrcp.f32 %v922_v42  ;;  %v935_v47 = vand.u32 2147483648, %v922_v42  ;;  %vm929_vm1 = vweird.f32 %v922_v42  ;;  %v933_v62 = vand.u32 2147483647, %v922_v42 }
 0x72d   : > { %v942_v34 = vmul.f32 %v2866_v43, %v941_v46 }
 0x72e   : > { %v936_v0 = vor.u32 1.1754944e-38, %v935_v47  ;;  %vm934_vm12 = vcmp.eq.f32.partialorder %v933_v62, 8.507059e+37 }
 0x72f   : > { %v943_v48 = vadd.f32 %v2866_v43, %v942_v34 }
 0x731   : > { %v947_v37 = vsel %vm946_vm14, %v2866_v43, %v943_v48 }
 0x732   : > { %v2870_v49 = vpop.eup %2869  ;;  %v952_v57 = vsel %vm949_vm15, %v951_v23, %v947_v37 }
 0x733   : > { %v925_v53 = vmul.f32 %v2870_v49, %v922_v42  ;;  %vm930_vm8 = vweird.f32 %v2870_v49  ;;  %v955_v5 = vmul.f32 %v952_v57, %v907_v26 }
 0x734   : > { %vm931_vm11 = vmor %vm929_vm1, %vm930_vm8 }
 0x735   : > { %v926_v59 = vsub.f32 1.0, %v925_v53 }
 0x737   : > { %v927_v60 = vmul.f32 %v2870_v49, %v926_v59 }
 0x739   : > { %v928_v61 = vadd.f32 %v2870_v49, %v927_v60 }
 0x73b   : > { %v932_v63 = vsel %vm931_vm11, %v2870_v49, %v928_v61 }
 0x73c   : > { %v937_v1 = vsel %vm934_vm12, %v936_v0, %v932_v63 }
 0x73d   : > { %v954_v8 = vmul.f32 %v937_v1, %v905_v33 }
 0x776   : > { %v963_v55 = vpop.permute.xlu2 %962 }
 0x777   : > { %v967_v58 = vmul.f32 %v963_v55, %v952_v57 }
 0x779   : > { %972 = vrot.lane.b32.xlu1 %v967_v58, %s3125_s7 }
 0x786   : > { %v961_v2 = vpop.permute.xlu1 %960 }
 0x787   : > { %v966_v3 = vmul.f32 %v961_v2, %v937_v1 }
 0x789   : > { %970 = vrot.lane.b32.xlu0 %v966_v3, %s3125_s7 }
 0x7eb   : > { %v973_v6 = vpop.permute.xlu1 %972 }
 0x7ec   : > { %v3454_v54 = vadd.f32 %v973_v6, %v955_v5 }
 0x7ee   : > { %v979_v7 = vmul.f32 %v3454_v54, %v3308_v21 }
 0x7f0   : > { %984 = vrot.lane.b32.xlu0 %v979_v7, %s3126_s8 }
 0x7fb   : > { %v971_v10 = vpop.permute.xlu0 %970 }
 0x7fc   : > { %v3459_v56 = vadd.f32 %v971_v10, %v954_v8 }
 0x7fe   : > { %2871 = vtanh.f32 %v3459_v56  ;;  %v978_v11 = vmul.f32 %v3459_v56, %v3300_v16 }
 0x7ff   : > { %2873 = vtanh.f32 %v3454_v54 }
 0x800   : > { %982 = vrot.lane.b32.xlu2 %v978_v11, %s3126_s8  ;;  %v848_v11 = vld [vmem:[#allocation2] sm:$0xf] }
 0x804   : > { %v2872_v12 = vpop.eup %2871 }
 0x805   : > { %1032 = vrot.lane.b32.xlu1 %v2872_v12, %s3126_s8  ;;  %v2874_v13 = vpop.eup %2873 }
 0x808   : > { %1034 = vrot.lane.b32.xlu2 %v2874_v13, %s3126_s8  ;;  %v1071_v13 = vld [vmem:[#allocation2 + $0x8] sm:$0x1] }
 0x85a   : > { %v983_v15 = vpop.permute.xlu2 %982 }
 0x85b   : > { %v988_v18 = vadd.f32 %v983_v15, %v3437_v19 }
 0x85d   : > { %v2652_v30 = vmul.f32 -1.442695, %v988_v18 }
 0x85f   : > { %2875 = vpow2.f32 %v2652_v30 }
 0x862   : > { %v985_v22 = vpop.permute.xlu0 %984  ;;  %v1035_v59 = vpop.permute.xlu2 %1034 }
 0x863   : > { %v989_v25 = vadd.f32 %v985_v22, %v3441_v17 }
 0x865   : > { %v2876_v26 = vpop.eup %2875  ;;  %v2653_v27 = vmul.f32 -1.442695, %v989_v25 }
 0x866   : > { %v996_v28 = vadd.f32 1.0, %v2876_v26 }
 0x867   : > { %2877 = vpow2.f32 %v2653_v27 }
 0x868   : > { %2879 = vrcp.f32 %v996_v28  ;;  %v1009_v36 = vand.u32 2147483648, %v996_v28  ;;  %v1007_v19 = vand.u32 2147483647, %v996_v28  ;;  %vm1003_vm14 = vweird.f32 %v996_v28 }
 0x86a   : > { %v1010_v17 = vor.u32 1.1754944e-38, %v1009_v36  ;;  %vm1008_vm8 = vcmp.eq.f32.partialorder %v1007_v19, 8.507059e+37 }
 0x86d   : > { %v2878_v29 = vpop.eup %2877 }
 0x86e   : > { %v2880_v32 = vpop.eup %2879  ;;  %v997_v33 = vadd.f32 1.0, %v2878_v29 }
 0x86f   : > { %v999_v31 = vmul.f32 %v2880_v32, %v996_v28  ;;  %vm1004_vm13 = vweird.f32 %v2880_v32 }
 0x870   : > { %2881 = vrcp.f32 %v997_v33  ;;  %vm1005_vm15 = vmor %vm1003_vm14, %vm1004_vm13  ;;  %v1024_v48 = vand.u32 2147483648, %v997_v33  ;;  %v1022_v51 = vand.u32 2147483647, %v997_v33  ;;  %vm1018_vm11 = vweird.f32 %v997_v33 }
 0x871   : > { %v1000_v35 = vsub.f32 1.0, %v999_v31 }
 0x872   : > { %v1025_v23 = vor.u32 1.1754944e-38, %v1024_v48  ;;  %vm1023_vm13 = vcmp.eq.f32.partialorder %v1022_v51, 8.507059e+37 }
 0x873   : > { %v1001_v38 = vmul.f32 %v2880_v32, %v1000_v35 }
 0x875   : > { %v1002_v39 = vadd.f32 %v2880_v32, %v1001_v38 }
 0x876   : > { %v2882_v41 = vpop.eup %2881 }
 0x877   : > { %v1014_v43 = vmul.f32 %v2882_v41, %v997_v33  ;;  %v1006_v44 = vsel %vm1005_vm15, %v2880_v32, %v1002_v39  ;;  %v1033_v45 = vpop.permute.xlu1 %1032  ;;  %vm1019_vm1 = vweird.f32 %v2882_v41 }
 0x878   : > { %v1011_v42 = vsel %vm1008_vm8, %v1010_v17, %v1006_v44  ;;  %vm1020_vm12 = vmor %vm1018_vm11, %vm1019_vm1 }
 0x879   : > { %v1015_v46 = vsub.f32 1.0, %v1014_v43  ;;  %v1038_v34 = vmul.f32 %v1033_v45, %v1011_v42  ;;  %v3504_v42 = vld [vmem:[%s3262_s17] sm:$0xff] }
 0x87b   : > { %v1016_v49 = vmul.f32 %v2882_v41, %v1015_v46  ;;  %v3470_v50 = vpack.c.bf16 %v1038_v34, %v1038_v34 }
 0x87d   : > { %v1043_v37 = vshrl.u32 %v3470_v50, 16  ;;  %v1017_v53 = vadd.f32 %v2882_v41, %v1016_v49  ;;  %v1046_v55 = vshll.u32 %v3470_v50, 16 }
 0x87f   : > { %v1045_v57 = vrot.slane %v1043_v37, 7  ;;  %v1021_v58 = vsel %vm1020_vm12, %v2882_v41, %v1017_v53 }
 0x880   : > { %v1026_v60 = vsel %vm1023_vm13, %v1025_v23, %v1021_v58 }
 0x881   : > { %v1048_v61 = vor.u32 %v1046_v55, %v1045_v57  ;;  %v1039_v47 = vmul.f32 %v1035_v59, %v1026_v60  ;;  %v1049_v3 = vrot.slane %v1045_v57, 4  ;;  %v3523_v55 = vld [vmem:[%s3974_s2] sm:$0xff] }
 0x883   : > { %1059 = vrot.lane.b32.xlu0 %v1048_v61, %s3125_s7  ;;  %v3475_v62 = vpack.c.bf16 %v1039_v47, %v1039_v47  ;;  %v3531_v47 = vld [vmem:[%s3974_s2 + $0x8] sm:$0xff] }
 0x885   : > { %v1051_v63 = vshrl.u32 %v3475_v62, 16  ;;  %v1054_v1 = vshll.u32 %v3475_v62, 16 }
 0x887   : > { %v1053_v0 = vrot.slane %v1051_v63, 7 }
 0x889   : > { %v1058_v2 = vrot.slane %v1053_v0, 4  ;;  %v1056_v5 = vor.u32 %v1054_v1, %v1053_v0 }
 0x88b   : > { %1063 = vrot.lane.b32.xlu1 %v1058_v2, %s3125_s7  ;;  %v1057_v6 = vsel %vm3330_vm7, %v1049_v3, %v1056_v5 }
 0x88c   : > { %1061 = vrot.lane.b32.xlu2 %v1057_v6, %s3125_s7 }
 0x894   : > { %1076 = vrot.lane.b32.xlu2 %v3459_v56, %s3128_s9 }
 0x8e6   : > { %v1062_v7 = vpop.permute.xlu2 %1061 }
 0x8e7   : > { %1070 = vst.msk [vmem:[#allocation2 + $0x4] sm:$0xf] %vm267_vm0, %v1062_v7 }
 0x8ee   : > { %v1077_v8 = vpop.permute.xlu2 %1076 }
 0x8ef   : > { %1082 = vst.msk [vmem:[#allocation3] sm:$0xff] %vm272_vm4, %v1077_v8 }
 0x8f5   : > { %v1060_v10 = vpop.permute.xlu0 %1059 }
 0x8f6   : > { %v1068_v12 = vsel %vm3341_vm9, %v1060_v10, %v848_v11  ;;  %v1149_v19 = vld [vmem:[#allocation3] sm:$0xff] }
 0x8f7   : > { %1069 = vst [vmem:[#allocation2] sm:$0xf] %v1068_v12 }
 0x8fd   : > { %v1064_v15 = vpop.permute.xlu1 %1063 }
 0x8fe   : > { %v1072_v18 = vsel %vm3349_vm10, %v1064_v15, %v1071_v13  ;;  %v2729_v30 = vld [vmem:[#allocation2] sm:$0xff] }
 0x8ff   : > { %1073 = vst [vmem:[#allocation2 + $0x8] sm:$0x1] %v1072_v18  ;;  %v1111_v56 = vshll.u32 %v2729_v30, 16  ;;  %v1122_v28 = vrot.slane %v2729_v30, 1  ;;  %v1109_v32 = vshrl.u32 %v2729_v30, 16 }
 0x901   : > { %v1113_v27 = vrot.slane %v1111_v56, 1 }
 0x903   : > { %v1114_v35 = vor.u32 %v1113_v27, %v1109_v32 }
 0x906   : > { %v1099_v22 = vld [vmem:[#allocation2 + $0x8] sm:$0x1] }
 0x907   : > { %v1106_v25 = vunpack.c.l.b16 %v1099_v22 }
 0x909   : > { %v1107_v26 = vpack.c.b16 %v1106_v25, %v1106_v25 }
 0x90b   : > { %v1123_v29 = vrot.slane %v1107_v26, 1  ;;  %v1116_v33 = vshll.u32 %v1107_v26, 16 }
 0x90d   : > { %v1124_v31 = vsel %vm319_vm3, %v1122_v28, %v1123_v29  ;;  %v1118_v36 = vrot.slane %v1116_v33, 1 }
 0x90e   : > { %1125 = vrot.lane.b32.xlu1 %v1124_v31, %s3126_s8 }
 0x90f   : > { %v1119_v38 = vsel %vm304_vm2, %v1114_v35, %v1118_v36 }
 0x910   : > { %1120 = vrot.lane.b32.xlu0 %v1119_v38, %s3125_s7 }
 0x916   : > { %1153 = vrot.lane.b32.xlu1 %v1149_v19, %s3125_s7 }
 0x918   : > { %1078 = vrot.lane.b32.xlu0 %v3454_v54, %s3128_s9  ;;  %v3511_v54 = vld [vmem:[%s3262_s17 + $0x8] sm:$0xff] }
 0x980   : > { %v1126_v41 = vpop.permute.xlu1 %1125 }
 0x982   : > { %v1121_v39 = vpop.permute.xlu0 %1120 }
 0x983   : > { %v1128_v17 = vsel %vm272_vm4, %v2729_v30, %v1121_v39 }
 0x984   : > { %v1130_v43 = vsel %vm328_vm5, %v1128_v17, %v1126_v41 }
 0x985   : > { %2660 = vmatmul.msk.bf16.vlgmr.msra.gmra.mxu3 %vm3978_vm6, %v1130_v43 }
 0x988   : > { %v1154_v53 = vpop.permute.xlu1 %1153 }
 0x989   : > { %v1159_v23 = vsel %vm272_vm4, %v1149_v19, %v1154_v53 }
 0x98a   : > { %v1079_v44 = vpop.permute.xlu0 %1078  ;;  %v1161_v57 = vmul.f32 %v3523_v55, %v1159_v23 }
 0x98b   : > { %1083 = vst.msk [vmem:[#allocation3 + $0x8] sm:$0xff] %vm272_vm4, %v1079_v44 }
 0x992   : > { %v1150_v45 = vld [vmem:[#allocation3 + $0x8] sm:$0xff] }
 0x993   : > { %1155 = vrot.lane.b32.xlu2 %v1150_v45, %s3125_s7 }
 0x9ed   : > { %v1156_v58 = vpop.permute.xlu2 %1155 }
 0x9ee   : > { %v1160_v60 = vsel %vm272_vm4, %v1150_v45, %v1156_v58 }
 0x9ef   : > { %v1162_v63 = vmul.f32 %v3531_v47, %v1160_v60 }
 0xa08   : > { %v1142_v46 = vpop.f32.mrf.mxu3 }
 0xa09   : > { %v3507_v34 = vadd.f32 %v1142_v46, %v3504_v42 }
 0xa0b   : > { %2883 = vtanh.f32 %v3507_v34  ;;  %v1163_v59 = vadd.f32 %v1161_v57, %v3507_v34 }
 0xa0d   : > { %v2661_v61 = vmul.f32 -1.442695, %v1163_v59 }
 0xa10   : > { %v1144_v48 = vpop.f32.mrf.mxu3 }
 0xa11   : > { %v2884_v49 = vpop.eup %2883  ;;  %v3514_v51 = vadd.f32 %v1144_v48, %v3511_v54 }
 0xa12   : > { %1209 = vrot.lane.b32.xlu0 %v2884_v49, %s3126_s8 }
 0xa13   : > { %2885 = vtanh.f32 %v3514_v51  ;;  %v1164_v0 = vadd.f32 %v1162_v63, %v3514_v51 }
 0xa14   : > { %2887 = vpow2.f32 %v2661_v61 }
 0xa15   : > { %v2662_v1 = vmul.f32 -1.442695, %v1164_v0 }
 0xa17   : > { %2889 = vpow2.f32 %v2662_v1 }
 0xa19   : > { %v2886_v37 = vpop.eup %2885 }
 0xa1a   : > { %1211 = vrot.lane.b32.xlu1 %v2886_v37, %s3126_s8  ;;  %v2888_v2 = vpop.eup %2887 }
 0xa1b   : > { %v1171_v3 = vadd.f32 1.0, %v2888_v2 }
 0xa1d   : > { %2891 = vrcp.f32 %v1171_v3  ;;  %v2890_v5 = vpop.eup %2889  ;;  %v1184_v30 = vand.u32 2147483648, %v1171_v3  ;;  %vm1178_vm15 = vweird.f32 %v1171_v3  ;;  %v1182_v56 = vand.u32 2147483647, %v1171_v3 }
 0xa1e   : > { %v1172_v6 = vadd.f32 1.0, %v2890_v5 }
 0xa1f   : > { %v1185_v26 = vor.u32 1.1754944e-38, %v1184_v30  ;;  %vm1183_vm1 = vcmp.eq.f32.partialorder %v1182_v56, 8.507059e+37 }
 0xa20   : > { %2893 = vrcp.f32 %v1172_v6  ;;  %v1199_v33 = vand.u32 2147483648, %v1172_v6  ;;  %vm1193_vm12 = vweird.f32 %v1172_v6  ;;  %v1197_v31 = vand.u32 2147483647, %v1172_v6 }
 0xa22   : > { %v1200_v36 = vor.u32 1.1754944e-38, %v1199_v33  ;;  %vm1198_vm6 = vcmp.eq.f32.partialorder %v1197_v31, 8.507059e+37 }
 0xa23   : > { %v2892_v7 = vpop.eup %2891 }
 0xa24   : > { %v1174_v8 = vmul.f32 %v2892_v7, %v1171_v3  ;;  %vm1179_vm14 = vweird.f32 %v2892_v7 }
 0xa25   : > { %vm1180_vm8 = vmor %vm1178_vm15, %vm1179_vm14 }
 0xa26   : > { %v1175_v10 = vsub.f32 1.0, %v1174_v8  ;;  %v2894_v11 = vpop.eup %2893 }
 0xa27   : > { %v1189_v13 = vmul.f32 %v2894_v11, %v1172_v6  ;;  %vm1194_vm11 = vweird.f32 %v2894_v11 }
 0xa28   : > { %v1176_v12 = vmul.f32 %v2892_v7, %v1175_v10  ;;  %vm1195_vm13 = vmor %vm1193_vm12, %vm1194_vm11 }
 0xa29   : > { %v1190_v18 = vsub.f32 1.0, %v1189_v13 }
 0xa2a   : > { %v1177_v15 = vadd.f32 %v2892_v7, %v1176_v12 }
 0xa2b   : > { %v1191_v25 = vmul.f32 %v2894_v11, %v1190_v18 }
 0xa2c   : > { %v1181_v22 = vsel %vm1180_vm8, %v2892_v7, %v1177_v15 }
 0xa2d   : > { %v1186_v27 = vsel %vm1183_vm1, %v1185_v26, %v1181_v22  ;;  %v1192_v32 = vadd.f32 %v2894_v11, %v1191_v25 }
 0xa2e   : > { %v1203_v41 = vmul.f32 %v1186_v27, %v1154_v53 }
 0xa2f   : > { %v1196_v35 = vsel %vm1195_vm13, %v2894_v11, %v1192_v32 }
 0xa30   : > { %v1201_v19 = vsel %vm1198_vm6, %v1200_v36, %v1196_v35 }
 0xa31   : > { %v1204_v46 = vmul.f32 %v1201_v19, %v1156_v58 }
 0xa84   : > { %v1210_v28 = vpop.permute.xlu0 %1209 }
 0xa85   : > { %v1215_v29 = vmul.f32 %v1210_v28, %v1186_v27 }
 0xa87   : > { %1219 = vrot.lane.b32.xlu2 %v1215_v29, %s3125_s7 }
 0xa8c   : > { %v1212_v38 = vpop.permute.xlu1 %1211 }
 0xa8d   : > { %v1216_v39 = vmul.f32 %v1212_v38, %v1201_v19 }
 0xa8f   : > { %1221 = vrot.lane.b32.xlu0 %v1216_v39, %s3125_s7 }
 0xae1   : > { %v1220_v17 = vpop.permute.xlu2 %1219 }
 0xae2   : > { %v3537_v43 = vadd.f32 %v1220_v17, %v1203_v41 }
 0xae4   : > { %2895 = vtanh.f32 %v3537_v43  ;;  %v1227_v44 = vmul.f32 %v3537_v43, %v3300_v16 }
 0xae6   : > { %1231 = vrot.lane.b32.xlu1 %v1227_v44, %s3126_s8 }
 0xaea   : > { %v2896_v45 = vpop.eup %2895 }
 0xaeb   : > { %1281 = vrot.lane.b32.xlu0 %v2896_v45, %s3126_s8 }
 0xb01   : > { %v1222_v48 = vpop.permute.xlu0 %1221 }
 0xb02   : > { %v3544_v49 = vadd.f32 %v1222_v48, %v1204_v46 }
 0xb04   : > { %2897 = vtanh.f32 %v3544_v49  ;;  %v1228_v37 = vmul.f32 %v3544_v49, %v3308_v21 }
 0xb06   : > { %1233 = vrot.lane.b32.xlu2 %v1228_v37, %s3126_s8 }
 0xb0a   : > { %v2898_v53 = vpop.eup %2897 }
 0xb0b   : > { %1283 = vrot.lane.b32.xlu1 %v2898_v53, %s3126_s8 }
 0xb58   : > { %v1232_v23 = vpop.permute.xlu1 %1231 }
 0xb59   : > { %v1237_v57 = vadd.f32 %v1232_v23, %v3507_v34 }
 0xb5b   : > { %v2663_v59 = vmul.f32 -1.442695, %v1237_v57  ;;  %v1097_v57 = vld [vmem:[#allocation2] sm:$0xf] }
 0xb5d   : > { %2899 = vpow2.f32 %v2663_v59  ;;  %v1282_v18 = vpop.permute.xlu0 %1281 }
 0xb60   : > { %v1234_v60 = vpop.permute.xlu2 %1233 }
 0xb61   : > { %v1238_v58 = vadd.f32 %v1234_v60, %v3514_v51  ;;  %v1320_v60 = vld [vmem:[#allocation2 + $0x8] sm:$0x1] }
 0xb63   : > { %v2900_v61 = vpop.eup %2899  ;;  %v2664_v63 = vmul.f32 -1.442695, %v1238_v58 }
 0xb64   : > { %v1245_v0 = vadd.f32 1.0, %v2900_v61 }
 0xb65   : > { %2901 = vpow2.f32 %v2664_v63 }
 0xb66   : > { %2903 = vrcp.f32 %v1245_v0  ;;  %v1258_v7 = vand.u32 2147483648, %v1245_v0  ;;  %v1256_v34 = vand.u32 2147483647, %v1245_v0  ;;  %vm1252_vm14 = vweird.f32 %v1245_v0 }
 0xb68   : > { %v1259_v51 = vor.u32 1.1754944e-38, %v1258_v7  ;;  %vm1257_vm8 = vcmp.eq.f32.partialorder %v1256_v34, 8.507059e+37 }
 0xb6b   : > { %v2902_v1 = vpop.eup %2901 }
 0xb6c   : > { %v2904_v2 = vpop.eup %2903  ;;  %v1246_v3 = vadd.f32 1.0, %v2902_v1 }
 0xb6d   : > { %v1248_v5 = vmul.f32 %v2904_v2, %v1245_v0  ;;  %vm1253_vm6 = vweird.f32 %v2904_v2 }
 0xb6e   : > { %2905 = vrcp.f32 %v1246_v3  ;;  %vm1254_vm15 = vmor %vm1252_vm14, %vm1253_vm6  ;;  %v1273_v22 = vand.u32 2147483648, %v1246_v3  ;;  %v1271_v27 = vand.u32 2147483647, %v1246_v3  ;;  %vm1267_vm11 = vweird.f32 %v1246_v3 }
 0xb6f   : > { %v1249_v6 = vsub.f32 1.0, %v1248_v5  ;;  %vm3987_vm6 = vcmask 785408  }
 0xb70   : > { %v1274_v32 = vor.u32 1.1754944e-38, %v1273_v22  ;;  %vm1272_vm13 = vcmp.eq.f32.partialorder %v1271_v27, 8.507059e+37 }
 0xb71   : > { %v1250_v8 = vmul.f32 %v2904_v2, %v1249_v6 }
 0xb73   : > { %v1251_v10 = vadd.f32 %v2904_v2, %v1250_v8 }
 0xb74   : > { %v2906_v11 = vpop.eup %2905 }
 0xb75   : > { %v1255_v12 = vsel %vm1254_vm15, %v2904_v2, %v1251_v10  ;;  %v1263_v13 = vmul.f32 %v2906_v11, %v1246_v3  ;;  %vm1268_vm1 = vweird.f32 %v2906_v11 }
 0xb76   : > { %v1260_v15 = vsel %vm1257_vm8, %v1259_v51, %v1255_v12  ;;  %vm1269_vm12 = vmor %vm1267_vm11, %vm1268_vm1 }
 0xb77   : > { %v1287_v30 = vmul.f32 %v1282_v18, %v1260_v15  ;;  %v1264_v56 = vsub.f32 1.0, %v1263_v13 }
 0xb79   : > { %v3553_v25 = vpack.c.bf16 %v1287_v30, %v1287_v30  ;;  %v1265_v26 = vmul.f32 %v2906_v11, %v1264_v56 }
 0xb7b   : > { %v1292_v28 = vshrl.u32 %v3553_v25, 16  ;;  %v1266_v29 = vadd.f32 %v2906_v11, %v1265_v26  ;;  %v1295_v33 = vshll.u32 %v3553_v25, 16 }
 0xb7d   : > { %v1284_v31 = vpop.permute.xlu1 %1283  ;;  %v1270_v35 = vsel %vm1269_vm12, %v2906_v11, %v1266_v29  ;;  %v1294_v36 = vrot.slane %v1292_v28, 7 }
 0xb7e   : > { %v1275_v38 = vsel %vm1272_vm13, %v1274_v32, %v1270_v35 }
 0xb7f   : > { %v1288_v19 = vmul.f32 %v1284_v31, %v1275_v38  ;;  %v1297_v39 = vor.u32 %v1295_v33, %v1294_v36  ;;  %v1298_v48 = vrot.slane %v1294_v36, 4 }
 0xb81   : > { %v3557_v41 = vpack.c.bf16 %v1288_v19, %v1288_v19  ;;  %1308 = vrot.lane.b32.xlu2 %v1297_v39, %s3125_s7 }
 0xb83   : > { %v1300_v17 = vshrl.u32 %v3557_v41, 16  ;;  %v1303_v44 = vshll.u32 %v3557_v41, 16 }
 0xb85   : > { %v1302_v45 = vrot.slane %v1300_v17, 7 }
 0xb87   : > { %v1307_v46 = vrot.slane %v1302_v45, 4  ;;  %v1305_v37 = vor.u32 %v1303_v44, %v1302_v45 }
 0xb89   : > { %1312 = vrot.lane.b32.xlu0 %v1307_v46, %s3125_s7  ;;  %v1306_v53 = vsel %vm3330_vm7, %v1298_v48, %v1305_v37 }
 0xb8a   : > { %1310 = vrot.lane.b32.xlu1 %v1306_v53, %s3125_s7 }
 0xb92   : > { %1325 = vrot.lane.b32.xlu1 %v3537_v43, %s3128_s9 }
 0xbdb   : > { %v1309_v23 = vpop.permute.xlu2 %1308 }
 0xbdc   : > { %v1317_v59 = vsel %vm3341_vm9, %v1309_v23, %v1097_v57 }
 0xbdd   : > { %1318 = vst [vmem:[#allocation2] sm:$0xf] %v1317_v59 }
 0xbfb   : > { %v1313_v58 = vpop.permute.xlu0 %1312 }
 0xbfc   : > { %v1321_v61 = vsel %vm3349_vm10, %v1313_v58, %v1320_v60  ;;  %v1311_v63 = vpop.permute.xlu1 %1310 }
 0xbfd   : > { %1322 = vst [vmem:[#allocation2 + $0x8] sm:$0x1] %v1321_v61 }
 0xbfe   : > { %1319 = vst.msk [vmem:[#allocation2 + $0x4] sm:$0xf] %vm267_vm0, %v1311_v63 }
 0xc04   : > { %v1326_v0 = vpop.permute.xlu1 %1325  ;;  %v1348_v1 = vld [vmem:[#allocation2 + $0x8] sm:$0x1] }
 0xc05   : > { %1331 = vst.msk [vmem:[#allocation3] sm:$0xff] %vm272_vm4, %v1326_v0  ;;  %v2730_v43 = vld [vmem:[#allocation2] sm:$0xff]  ;;  %v1355_v2 = vunpack.c.l.b16 %v1348_v1 }
 0xc06   : > { %v1360_v5 = vshll.u32 %v2730_v43, 16  ;;  %v1371_v6 = vrot.slane %v2730_v43, 1  ;;  %v1358_v8 = vshrl.u32 %v2730_v43, 16 }
 0xc07   : > { %v1356_v3 = vpack.c.b16 %v1355_v2, %v1355_v2 }
 0xc08   : > { %v1362_v34 = vrot.slane %v1360_v5, 1 }
 0xc09   : > { %v1372_v7 = vrot.slane %v1356_v3, 1  ;;  %v1365_v10 = vshll.u32 %v1356_v3, 16 }
 0xc0a   : > { %v1363_v51 = vor.u32 %v1362_v34, %v1358_v8 }
 0xc0b   : > { %v1373_v11 = vsel %vm319_vm3, %v1371_v6, %v1372_v7  ;;  %v1367_v12 = vrot.slane %v1365_v10, 1 }
 0xc0c   : > { %1374 = vrot.lane.b32.xlu0 %v1373_v11, %s3126_s8  ;;  %v1398_v15 = vld [vmem:[#allocation3] sm:$0xff] }
 0xc0d   : > { %v1368_v13 = vsel %vm304_vm2, %v1363_v51, %v1367_v12 }
 0xc0e   : > { %1369 = vrot.lane.b32.xlu2 %v1368_v13, %s3125_s7 }
 0xc14   : > { %1402 = vrot.lane.b32.xlu0 %v1398_v15, %s3125_s7 }
 0xc16   : > { %1327 = vrot.lane.b32.xlu2 %v3544_v49, %s3128_s9 }
 0xc68   : > { %v1370_v18 = vpop.permute.xlu2 %1369 }
 0xc69   : > { %v1377_v22 = vsel %vm272_vm4, %v2730_v43, %v1370_v18 }
 0xc70   : > { %v1328_v30 = vpop.permute.xlu2 %1327 }
 0xc71   : > { %1332 = vst.msk [vmem:[#allocation3 + $0x8] sm:$0xff] %vm272_vm4, %v1328_v30 }
 0xc78   : > { %v1399_v56 = vld [vmem:[#allocation3 + $0x8] sm:$0xff] }
 0xc79   : > { %1404 = vrot.lane.b32.xlu1 %v1399_v56, %s3125_s7 }
 0xc7e   : > { %v1375_v26 = vpop.permute.xlu0 %1374 }
 0xc7f   : > { %v1379_v27 = vsel %vm328_vm5, %v1377_v22, %v1375_v26 }
 0xc80   : > { %2671 = vmatmul.msk.bf16.vlgmr.msrb.gmra.mxu0 %vm3987_vm6, %v1379_v27 }
 0xc86   : > { %v1403_v35 = vpop.permute.xlu0 %1402 }
 0xc87   : > { %v1408_v36 = vsel %vm272_vm4, %v1398_v15, %v1403_v35 }
 0xc88   : > { %v1410_v38 = vmul.f32 %v3523_v55, %v1408_v36 }
 0xceb   : > { %v1405_v45 = vpop.permute.xlu1 %1404 }
 0xcec   : > { %v1409_v48 = vsel %vm272_vm4, %v1399_v56, %v1405_v45 }
 0xced   : > { %v1411_v37 = vmul.f32 %v3531_v47, %v1409_v48 }
 0xcfd   : > { %v1391_v28 = vpop.f32.mrf.mxu0 }
 0xcfe   : > { %v3587_v29 = vadd.f32 %v1391_v28, %v3504_v42 }
 0xd00   : > { %2907 = vtanh.f32 %v3587_v29  ;;  %v1412_v19 = vadd.f32 %v1410_v38, %v3587_v29 }
 0xd02   : > { %v2672_v39 = vmul.f32 -1.442695, %v1412_v19 }
 0xd05   : > { %v1393_v49 = vpop.f32.mrf.mxu0 }
 0xd06   : > { %v2908_v32 = vpop.eup %2907  ;;  %v3591_v33 = vadd.f32 %v1393_v49, %v3511_v54 }
 0xd07   : > { %1458 = vrot.lane.b32.xlu2 %v2908_v32, %s3126_s8 }
 0xd08   : > { %2909 = vtanh.f32 %v3591_v33  ;;  %v1413_v23 = vadd.f32 %v1411_v37, %v3591_v33 }
 0xd09   : > { %2911 = vpow2.f32 %v2672_v39 }
 0xd0a   : > { %v2673_v59 = vmul.f32 -1.442695, %v1413_v23 }
 0xd0e   : > { %v2910_v31 = vpop.eup %2909 }
 0xd0f   : > { %1460 = vrot.lane.b32.xlu0 %v2910_v31, %s3126_s8  ;;  %v2912_v17 = vpop.eup %2911 }
 0xd10   : > { %v1420_v44 = vadd.f32 1.0, %v2912_v17 }
 0xd12   : > { %2913 = vrcp.f32 %v1420_v44  ;;  %v1433_v61 = vand.u32 2147483648, %v1420_v44  ;;  %vm1427_vm15 = vweird.f32 %v1420_v44  ;;  %v1431_v63 = vand.u32 2147483647, %v1420_v44 }
 0xd13   : > { %2915 = vpow2.f32 %v2673_v59 }
 0xd14   : > { %v1434_v43 = vor.u32 1.1754944e-38, %v1433_v61  ;;  %vm1432_vm1 = vcmp.eq.f32.partialorder %v1431_v63, 8.507059e+37 }
 0xd18   : > { %v2914_v46 = vpop.eup %2913 }
 0xd19   : > { %v1423_v53 = vmul.f32 %v2914_v46, %v1420_v44  ;;  %vm1428_vm14 = vweird.f32 %v2914_v46  ;;  %v2916_v0 = vpop.eup %2915 }
 0xd1a   : > { %vm1429_vm8 = vmor %vm1427_vm15, %vm1428_vm14  ;;  %v1421_v2 = vadd.f32 1.0, %v2916_v0 }
 0xd1b   : > { %v1424_v57 = vsub.f32 1.0, %v1423_v53 }
 0xd1c   : > { %2917 = vrcp.f32 %v1421_v2  ;;  %v1448_v51 = vand.u32 2147483648, %v1421_v2  ;;  %vm1442_vm12 = vweird.f32 %v1421_v2  ;;  %v1446_v12 = vand.u32 2147483647, %v1421_v2 }
 0xd1d   : > { %v1425_v60 = vmul.f32 %v2914_v46, %v1424_v57 }
 0xd1e   : > { %v1449_v15 = vor.u32 1.1754944e-38, %v1448_v51  ;;  %vm1447_vm6 = vcmp.eq.f32.partialorder %v1446_v12, 8.507059e+37 }
 0xd1f   : > { %v1426_v58 = vadd.f32 %v2914_v46, %v1425_v60 }
 0xd21   : > { %v1430_v1 = vsel %vm1429_vm8, %v2914_v46, %v1426_v58 }
 0xd22   : > { %v1435_v3 = vsel %vm1432_vm1, %v1434_v43, %v1430_v1  ;;  %v2918_v7 = vpop.eup %2917 }
 0xd23   : > { %v1438_v8 = vmul.f32 %v2918_v7, %v1421_v2  ;;  %vm1443_vm11 = vweird.f32 %v2918_v7  ;;  %v1452_v22 = vmul.f32 %v1435_v3, %v1403_v35 }
 0xd24   : > { %vm1444_vm13 = vmor %vm1442_vm12, %vm1443_vm11 }
 0xd25   : > { %v1439_v34 = vsub.f32 1.0, %v1438_v8 }
 0xd27   : > { %v1440_v10 = vmul.f32 %v2918_v7, %v1439_v34 }
 0xd29   : > { %v1441_v11 = vadd.f32 %v2918_v7, %v1440_v10 }
 0xd2b   : > { %v1445_v13 = vsel %vm1444_vm13, %v2918_v7, %v1441_v11 }
 0xd2c   : > { %v1450_v30 = vsel %vm1447_vm6, %v1449_v15, %v1445_v13 }
 0xd2d   : > { %v1453_v49 = vmul.f32 %v1450_v30, %v1405_v45 }
 0xd61   : > { %v1459_v5 = vpop.permute.xlu2 %1458 }
 0xd62   : > { %v1464_v6 = vmul.f32 %v1459_v5, %v1435_v3 }
 0xd64   : > { %1468 = vrot.lane.b32.xlu1 %v1464_v6, %s3125_s7 }
 0xd81   : > { %v1461_v18 = vpop.permute.xlu0 %1460 }
 0xd82   : > { %v1465_v56 = vmul.f32 %v1461_v18, %v1450_v30 }
 0xd84   : > { %1470 = vrot.lane.b32.xlu2 %v1465_v56, %s3125_s7 }
 0xdd6   : > { %v1469_v26 = vpop.permute.xlu1 %1468 }
 0xdd7   : > { %v3604_v27 = vadd.f32 %v1469_v26, %v1452_v22 }
 0xdd9   : > { %2919 = vtanh.f32 %v3604_v27  ;;  %v1476_v28 = vmul.f32 %v3604_v27, %v3300_v16 }
 0xddb   : > { %1480 = vrot.lane.b32.xlu0 %v1476_v28, %s3126_s8 }
 0xdde   : > { %v1471_v32 = vpop.permute.xlu2 %1470 }
 0xddf   : > { %v2920_v31 = vpop.eup %2919  ;;  %v3610_v36 = vadd.f32 %v1471_v32, %v1453_v49 }
 0xde0   : > { %1530 = vrot.lane.b32.xlu2 %v2920_v31, %s3126_s8 }
 0xde1   : > { %2921 = vtanh.f32 %v3610_v36  ;;  %v1477_v35 = vmul.f32 %v3610_v36, %v3308_v21 }
 0xde3   : > { %1482 = vrot.lane.b32.xlu1 %v1477_v35, %s3126_s8 }
 0xde7   : > { %v2922_v38 = vpop.eup %2921 }
 0xde8   : > { %1532 = vrot.lane.b32.xlu0 %v2922_v38, %s3126_s8 }
 0xe3a   : > { %v1531_v2 = vpop.permute.xlu2 %1530 }
 0xe4d   : > { %v1481_v19 = vpop.permute.xlu0 %1480 }
 0xe4e   : > { %v1486_v39 = vadd.f32 %v1481_v19, %v3587_v29 }
 0xe50   : > { %v2674_v17 = vmul.f32 -1.442695, %v1486_v39 }
 0xe52   : > { %2923 = vpow2.f32 %v2674_v17  ;;  %v1569_v17 = vld [vmem:[#allocation2 + $0x8] sm:$0x1] }
 0xe55   : > { %v1483_v44 = vpop.permute.xlu1 %1482 }
 0xe56   : > { %v1487_v45 = vadd.f32 %v1483_v44, %v3591_v33 }
 0xe58   : > { %v2924_v46 = vpop.eup %2923  ;;  %v2675_v48 = vmul.f32 -1.442695, %v1487_v45 }
 0xe59   : > { %v1494_v37 = vadd.f32 1.0, %v2924_v46 }
 0xe5a   : > { %2925 = vpow2.f32 %v2675_v48  ;;  %v1533_v30 = vpop.permute.xlu0 %1532  ;;  %v1346_v48 = vld [vmem:[#allocation2] sm:$0xf] }
 0xe5b   : > { %2927 = vrcp.f32 %v1494_v37  ;;  %v1507_v58 = vand.u32 2147483648, %v1494_v37  ;;  %v1505_v29 = vand.u32 2147483647, %v1494_v37  ;;  %vm1501_vm15 = vweird.f32 %v1494_v37 }
 0xe5d   : > { %v1508_v1 = vor.u32 1.1754944e-38, %v1507_v58  ;;  %vm1506_vm1 = vcmp.eq.f32.partialorder %v1505_v29, 8.507059e+37 }
 0xe60   : > { %v2926_v53 = vpop.eup %2925 }
 0xe61   : > { %v2928_v23 = vpop.eup %2927  ;;  %v1495_v57 = vadd.f32 1.0, %v2926_v53 }
 0xe62   : > { %v1497_v59 = vmul.f32 %v2928_v23, %v1494_v37  ;;  %vm1502_vm14 = vweird.f32 %v2928_v23 }
 0xe63   : > { %2929 = vrcp.f32 %v1495_v57  ;;  %vm1503_vm8 = vmor %vm1501_vm15, %vm1502_vm14  ;;  %v1522_v7 = vand.u32 2147483648, %v1495_v57  ;;  %v1520_v34 = vand.u32 2147483647, %v1495_v57  ;;  %vm1516_vm12 = vweird.f32 %v1495_v57 }
 0xe64   : > { %v1498_v60 = vsub.f32 1.0, %v1497_v59  ;;  %vm3988_vm14 = vcmask 785408  }
 0xe65   : > { %v1523_v12 = vor.u32 1.1754944e-38, %v1522_v7  ;;  %vm1521_vm6 = vcmp.eq.f32.partialorder %v1520_v34, 8.507059e+37 }
 0xe66   : > { %v1499_v61 = vmul.f32 %v2928_v23, %v1498_v60 }
 0xe68   : > { %v1500_v63 = vadd.f32 %v2928_v23, %v1499_v61 }
 0xe69   : > { %v2930_v0 = vpop.eup %2929 }
 0xe6a   : > { %v1512_v33 = vmul.f32 %v2930_v0, %v1495_v57  ;;  %v1504_v43 = vsel %vm1503_vm8, %v2928_v23, %v1500_v63  ;;  %vm1517_vm11 = vweird.f32 %v2930_v0 }
 0xe6b   : > { %v1509_v3 = vsel %vm1506_vm1, %v1508_v1, %v1504_v43  ;;  %vm1518_vm13 = vmor %vm1516_vm12, %vm1517_vm11 }
 0xe6c   : > { %v1513_v5 = vsub.f32 1.0, %v1512_v33  ;;  %v1536_v6 = vmul.f32 %v1531_v2, %v1509_v3 }
 0xe6e   : > { %v1514_v8 = vmul.f32 %v2930_v0, %v1513_v5  ;;  %v3620_v10 = vpack.c.bf16 %v1536_v6, %v1536_v6 }
 0xe70   : > { %v1515_v11 = vadd.f32 %v2930_v0, %v1514_v8  ;;  %v1541_v51 = vshrl.u32 %v3620_v10, 16  ;;  %v1544_v18 = vshll.u32 %v3620_v10, 16 }
 0xe72   : > { %v1519_v13 = vsel %vm1518_vm13, %v2930_v0, %v1515_v11  ;;  %v1543_v15 = vrot.slane %v1541_v51, 7 }
 0xe73   : > { %v1524_v56 = vsel %vm1521_vm6, %v1523_v12, %v1519_v13 }
 0xe74   : > { %v1537_v22 = vmul.f32 %v1533_v30, %v1524_v56  ;;  %v1546_v26 = vor.u32 %v1544_v18, %v1543_v15  ;;  %v1547_v38 = vrot.slane %v1543_v15, 4 }
 0xe76   : > { %v3624_v28 = vpack.c.bf16 %v1537_v22, %v1537_v22  ;;  %1557 = vrot.lane.b32.xlu1 %v1546_v26, %s3125_s7 }
 0xe78   : > { %v1549_v49 = vshrl.u32 %v3624_v28, 16  ;;  %v1552_v32 = vshll.u32 %v3624_v28, 16 }
 0xe7a   : > { %v1551_v31 = vrot.slane %v1549_v49, 7 }
 0xe7c   : > { %v1556_v35 = vrot.slane %v1551_v31, 4  ;;  %v1554_v19 = vor.u32 %v1552_v32, %v1551_v31 }
 0xe7e   : > { %1561 = vrot.lane.b32.xlu2 %v1556_v35, %s3125_s7  ;;  %v1555_v39 = vsel %vm3330_vm7, %v1547_v38, %v1554_v19 }
 0xe7f   : > { %1559 = vrot.lane.b32.xlu0 %v1555_v39, %s3125_s7 }
 0xe87   : > { %1574 = vrot.lane.b32.xlu0 %v3604_v27, %s3128_s9 }
 0xed8   : > { %v1562_v44 = vpop.permute.xlu2 %1561 }
 0xed9   : > { %v1570_v45 = vsel %vm3349_vm10, %v1562_v44, %v1569_v17 }
 0xeda   : > { %1571 = vst [vmem:[#allocation2 + $0x8] sm:$0x1] %v1570_v45 }
 0xee1   : > { %v1597_v53 = vld [vmem:[#allocation2 + $0x8] sm:$0x1] }
 0xee2   : > { %v1604_v57 = vunpack.c.l.b16 %v1597_v53 }
 0xee4   : > { %v1605_v59 = vpack.c.b16 %v1604_v57, %v1604_v57 }
 0xee6   : > { %v1621_v61 = vrot.slane %v1605_v59, 1  ;;  %v1614_v63 = vshll.u32 %v1605_v59, 16 }
 0xee8   : > { %v1558_v46 = vpop.permute.xlu1 %1557  ;;  %v1616_v2 = vrot.slane %v1614_v63, 1 }
 0xee9   : > { %v1566_v37 = vsel %vm3341_vm9, %v1558_v46, %v1346_v48 }
 0xeea   : > { %1567 = vst [vmem:[#allocation2] sm:$0xf] %v1566_v37 }
 0xef1   : > { %v1560_v23 = vpop.permute.xlu0 %1559 }
 0xef2   : > { %1568 = vst.msk [vmem:[#allocation2 + $0x4] sm:$0xf] %vm267_vm0, %v1560_v23 }
 0xef9   : > { %v1575_v60 = vpop.permute.xlu0 %1574  ;;  %v2731_v27 = vld [vmem:[#allocation2] sm:$0xff] }
 0xefa   : > { %1580 = vst.msk [vmem:[#allocation3] sm:$0xff] %vm272_vm4, %v1575_v60  ;;  %v1620_v58 = vrot.slane %v2731_v27, 1  ;;  %v1609_v29 = vshll.u32 %v2731_v27, 16  ;;  %v1607_v1 = vshrl.u32 %v2731_v27, 16 }
 0xefc   : > { %v1622_v0 = vsel %vm319_vm3, %v1620_v58, %v1621_v61  ;;  %v1611_v33 = vrot.slane %v1609_v29, 1 }
 0xefd   : > { %1623 = vrot.lane.b32.xlu2 %v1622_v0, %s3126_s8 }
 0xefe   : > { %v1612_v43 = vor.u32 %v1611_v33, %v1607_v1 }
 0xf00   : > { %v1617_v3 = vsel %vm304_vm2, %v1612_v43, %v1616_v2 }
 0xf01   : > { %1618 = vrot.lane.b32.xlu1 %v1617_v3, %s3125_s7  ;;  %v1647_v5 = vld [vmem:[#allocation3] sm:$0xff] }
 0xf05   : > { %1651 = vrot.lane.b32.xlu2 %v1647_v5, %s3125_s7 }
 0xf09   : > { %1576 = vrot.lane.b32.xlu1 %v3610_v36, %s3128_s9 }
 0xf57   : > { %v1624_v7 = vpop.permute.xlu2 %1623 }
 0xf5f   : > { %v1652_v32 = vpop.permute.xlu2 %1651 }
 0xf73   : > { %v1619_v6 = vpop.permute.xlu1 %1618 }
 0xf74   : > { %v1626_v8 = vsel %vm272_vm4, %v2731_v27, %v1619_v6 }
 0xf75   : > { %v1628_v34 = vsel %vm328_vm5, %v1626_v8, %v1624_v7 }
 0xf76   : > { %2682 = vmatmul.msk.bf16.vlgmr.msrb.gmra.mxu1 %vm3988_vm14, %v1628_v34 }
 0xf7b   : > { %v1577_v11 = vpop.permute.xlu1 %1576 }
 0xf7c   : > { %1581 = vst.msk [vmem:[#allocation3 + $0x8] sm:$0xff] %vm272_vm4, %v1577_v11 }
 0xf83   : > { %v1648_v51 = vld [vmem:[#allocation3 + $0x8] sm:$0xff] }
 0xf84   : > { %1653 = vrot.lane.b32.xlu0 %v1648_v51, %s3125_s7 }
 0xff3   : > { %v1640_v12 = vpop.f32.mrf.mxu1 }
 0xff4   : > { %v3654_v13 = vadd.f32 %v1640_v12, %v3504_v42 }
 0xff6   : > { %2931 = vtanh.f32 %v3654_v13  ;;  %v1654_v56 = vpop.permute.xlu0 %1653 }
 0xff7   : > { %v1658_v22 = vsel %vm272_vm4, %v1648_v51, %v1654_v56 }
 0xff8   : > { %v1660_v42 = vmul.f32 %v3531_v47, %v1658_v22 }
 0xffb   : > { %v1642_v36 = vpop.f32.mrf.mxu1 }
 0xffc   : > { %v2932_v15 = vpop.eup %2931  ;;  %v3658_v18 = vadd.f32 %v1642_v36, %v3511_v54  ;;  %v1657_v54 = vsel %vm272_vm4, %v1647_v5, %v1652_v32 }
 0xffd   : > { %1707 = vrot.lane.b32.xlu1 %v2932_v15, %s3126_s8  ;;  %v1659_v35 = vmul.f32 %v3523_v55, %v1657_v54 }
 0xffe   : > { %2933 = vtanh.f32 %v3658_v18  ;;  %v1662_v26 = vadd.f32 %v1660_v42, %v3658_v18 }
 0xfff   : > { %v1661_v38 = vadd.f32 %v1659_v35, %v3654_v13 }
0x1000   : > { %v2684_v49 = vmul.f32 -1.442695, %v1662_v26 }
0x1001   : > { %v2683_v39 = vmul.f32 -1.442695, %v1661_v38 }
0x1002   : > { %2935 = vpow2.f32 %v2684_v49 }
0x1004   : > { %v2934_v30 = vpop.eup %2933 }
0x1005   : > { %1709 = vrot.lane.b32.xlu2 %v2934_v30, %s3126_s8 }
0x1008   : > { %v2936_v31 = vpop.eup %2935 }
0x1009   : > { %v1670_v19 = vadd.f32 1.0, %v2936_v31 }
0x100b   : > { %2937 = vrcp.f32 %v1670_v19  ;;  %v1697_v23 = vand.u32 2147483648, %v1670_v19  ;;  %vm1691_vm8 = vweird.f32 %v1670_v19  ;;  %v1695_v57 = vand.u32 2147483647, %v1670_v19 }
0x100c   : > { %2939 = vpow2.f32 %v2683_v39 }
0x100d   : > { %v1698_v60 = vor.u32 1.1754944e-38, %v1697_v23  ;;  %vm1696_vm11 = vcmp.eq.f32.partialorder %v1695_v57, 8.507059e+37 }
0x1011   : > { %v2938_v17 = vpop.eup %2937 }
0x1012   : > { %v2940_v44 = vpop.eup %2939  ;;  %v1687_v45 = vmul.f32 %v2938_v17, %v1670_v19  ;;  %vm1692_vm15 = vweird.f32 %v2938_v17 }
0x1013   : > { %v1669_v47 = vadd.f32 1.0, %v2940_v44  ;;  %vm1693_vm1 = vmor %vm1691_vm8, %vm1692_vm15 }
0x1014   : > { %v1688_v46 = vsub.f32 1.0, %v1687_v45 }
0x1015   : > { %2941 = vrcp.f32 %v1669_v47  ;;  %v1682_v1 = vand.u32 2147483648, %v1669_v47  ;;  %vm1676_vm13 = vweird.f32 %v1669_v47  ;;  %v1680_v33 = vand.u32 2147483647, %v1669_v47 }
0x1016   : > { %v1689_v48 = vmul.f32 %v2938_v17, %v1688_v46 }
0x1017   : > { %v1683_v2 = vor.u32 1.1754944e-38, %v1682_v1  ;;  %vm1681_vm14 = vcmp.eq.f32.partialorder %v1680_v33, 8.507059e+37 }
0x1018   : > { %v1690_v37 = vadd.f32 %v2938_v17, %v1689_v48 }
0x101a   : > { %v1694_v55 = vsel %vm1693_vm1, %v2938_v17, %v1690_v37 }
0x101b   : > { %v2942_v53 = vpop.eup %2941  ;;  %v1699_v58 = vsel %vm1696_vm11, %v1698_v60, %v1694_v55 }
0x101c   : > { %v1672_v59 = vmul.f32 %v2942_v53, %v1669_v47  ;;  %vm1677_vm12 = vweird.f32 %v2942_v53  ;;  %v1702_v7 = vmul.f32 %v1699_v58, %v1654_v56 }
0x101d   : > { %vm1678_vm6 = vmor %vm1676_vm13, %vm1677_vm12 }
0x101e   : > { %v1673_v29 = vsub.f32 1.0, %v1672_v59 }
0x1020   : > { %v1674_v63 = vmul.f32 %v2942_v53, %v1673_v29 }
0x1022   : > { %v1675_v0 = vadd.f32 %v2942_v53, %v1674_v63 }
0x1024   : > { %v1679_v43 = vsel %vm1678_vm6, %v2942_v53, %v1675_v0 }
0x1025   : > { %v1684_v3 = vsel %vm1681_vm14, %v1683_v2, %v1679_v43 }
0x1026   : > { %v1701_v51 = vmul.f32 %v1684_v3, %v1652_v32 }
0x105f   : > { %v1710_v27 = vpop.permute.xlu2 %1709 }
0x1060   : > { %v1714_v61 = vmul.f32 %v1710_v27, %v1699_v58 }
0x1062   : > { %1719 = vrot.lane.b32.xlu1 %v1714_v61, %s3125_s7 }
0x106f   : > { %v1708_v5 = vpop.permute.xlu1 %1707 }
0x1070   : > { %v1713_v6 = vmul.f32 %v1708_v5, %v1684_v3 }
0x1072   : > { %1717 = vrot.lane.b32.xlu0 %v1713_v6, %s3125_s7 }
0x10d4   : > { %v1720_v8 = vpop.permute.xlu1 %1719 }
0x10d5   : > { %v3671_v34 = vadd.f32 %v1720_v8, %v1702_v7 }
0x10d7   : > { %v1726_v11 = vmul.f32 %v3671_v34, %v3308_v21 }
0x10d9   : > { %1731 = vrot.lane.b32.xlu0 %v1726_v11, %s3126_s8 }
0x10e4   : > { %v1718_v12 = vpop.permute.xlu0 %1717 }
0x10e5   : > { %v3676_v36 = vadd.f32 %v1718_v12, %v1701_v51 }
0x10e7   : > { %2943 = vtanh.f32 %v3676_v36  ;;  %v1725_v15 = vmul.f32 %v3676_v36, %v3300_v16 }
0x10e8   : > { %2945 = vtanh.f32 %v3671_v34 }
0x10e9   : > { %1729 = vrot.lane.b32.xlu2 %v1725_v15, %s3126_s8 }
0x10ed   : > { %v2944_v30 = vpop.eup %2943 }
0x10ee   : > { %1779 = vrot.lane.b32.xlu1 %v2944_v30, %s3126_s8  ;;  %v2946_v56 = vpop.eup %2945 }
0x10f1   : > { %1781 = vrot.lane.b32.xlu2 %v2946_v56, %s3126_s8 }
0x1143   : > { %v1730_v22 = vpop.permute.xlu2 %1729 }
0x1144   : > { %v1735_v42 = vadd.f32 %v1730_v22, %v3654_v13 }
0x1146   : > { %v2685_v26 = vmul.f32 -1.442695, %v1735_v42 }
0x1148   : > { %2947 = vpow2.f32 %v2685_v26 }
0x114b   : > { %v1732_v49 = vpop.permute.xlu0 %1731  ;;  %v1782_v2 = vpop.permute.xlu2 %1781 }
0x114c   : > { %v1736_v32 = vadd.f32 %v1732_v49, %v3658_v18  ;;  %v1595_v49 = vld [vmem:[#allocation2] sm:$0xf] }
0x114e   : > { %v2948_v54 = vpop.eup %2947  ;;  %v2686_v31 = vmul.f32 -1.442695, %v1736_v32 }
0x114f   : > { %v1743_v35 = vadd.f32 1.0, %v2948_v54  ;;  %v1818_v54 = vld [vmem:[#allocation2 + $0x8] sm:$0x1] }
0x1150   : > { %2949 = vpow2.f32 %v2686_v31 }
0x1151   : > { %2951 = vrcp.f32 %v1743_v35  ;;  %v1756_v45 = vand.u32 2147483648, %v1743_v35  ;;  %v1754_v13 = vand.u32 2147483647, %v1743_v35  ;;  %vm1750_vm8 = vweird.f32 %v1743_v35 }
0x1153   : > { %v1757_v18 = vor.u32 1.1754944e-38, %v1756_v45  ;;  %vm1755_vm11 = vcmp.eq.f32.partialorder %v1754_v13, 8.507059e+37 }
0x1156   : > { %v2950_v38 = vpop.eup %2949 }
0x1157   : > { %v2952_v19 = vpop.eup %2951  ;;  %v1744_v39 = vadd.f32 1.0, %v2950_v38 }
0x1158   : > { %v1746_v17 = vmul.f32 %v2952_v19, %v1743_v35  ;;  %vm1751_vm15 = vweird.f32 %v2952_v19 }
0x1159   : > { %2953 = vrcp.f32 %v1744_v39  ;;  %vm1752_vm1 = vmor %vm1750_vm8, %vm1751_vm15  ;;  %v1771_v60 = vand.u32 2147483648, %v1744_v39  ;;  %v1769_v61 = vand.u32 2147483647, %v1744_v39  ;;  %vm1765_vm13 = vweird.f32 %v1744_v39 }
0x115a   : > { %v1747_v44 = vsub.f32 1.0, %v1746_v17  ;;  %vm3989_vm15 = vcmask 785408  }
0x115b   : > { %v1772_v0 = vor.u32 1.1754944e-38, %v1771_v60  ;;  %vm1770_vm14 = vcmp.eq.f32.partialorder %v1769_v61, 8.507059e+37 }
0x115c   : > { %v1748_v47 = vmul.f32 %v2952_v19, %v1747_v44 }
0x115e   : > { %v1749_v46 = vadd.f32 %v2952_v19, %v1748_v47 }
0x115f   : > { %v2954_v48 = vpop.eup %2953 }
0x1160   : > { %v1761_v37 = vmul.f32 %v2954_v48, %v1744_v39  ;;  %v1753_v53 = vsel %vm1752_vm1, %v2952_v19, %v1749_v46  ;;  %v1780_v23 = vpop.permute.xlu1 %1779  ;;  %vm1766_vm12 = vweird.f32 %v2954_v48 }
0x1161   : > { %v1758_v57 = vsel %vm1755_vm11, %v1757_v18, %v1753_v53  ;;  %vm1767_vm6 = vmor %vm1765_vm13, %vm1766_vm12 }
0x1162   : > { %v1762_v55 = vsub.f32 1.0, %v1761_v37  ;;  %v1785_v59 = vmul.f32 %v1780_v23, %v1758_v57 }
0x1164   : > { %v1763_v27 = vmul.f32 %v2954_v48, %v1762_v55  ;;  %v3687_v58 = vpack.c.bf16 %v1785_v59, %v1785_v59 }
0x1166   : > { %v1790_v29 = vshrl.u32 %v3687_v58, 16  ;;  %v1764_v63 = vadd.f32 %v2954_v48, %v1763_v27  ;;  %v1793_v1 = vshll.u32 %v3687_v58, 16 }
0x1168   : > { %v1792_v33 = vrot.slane %v1790_v29, 7  ;;  %v1768_v43 = vsel %vm1767_vm6, %v2954_v48, %v1764_v63  ;;  %v3721_v29 = vld [vmem:[%s3262_s17] sm:$0xff] }
0x1169   : > { %v1773_v3 = vsel %vm1770_vm14, %v1772_v0, %v1768_v43 }
0x116a   : > { %v1795_v5 = vor.u32 %v1793_v1, %v1792_v33  ;;  %v1786_v6 = vmul.f32 %v1782_v2, %v1773_v3  ;;  %v1796_v15 = vrot.slane %v1792_v33, 4 }
0x116c   : > { %1806 = vrot.lane.b32.xlu0 %v1795_v5, %s3125_s7  ;;  %v3692_v7 = vpack.c.bf16 %v1786_v6, %v1786_v6  ;;  %v3740_v6 = vld [vmem:[%s3974_s2] sm:$0xff] }
0x116e   : > { %v1798_v8 = vshrl.u32 %v3692_v7, 16  ;;  %v1801_v51 = vshll.u32 %v3692_v7, 16 }
0x1170   : > { %v1800_v11 = vrot.slane %v1798_v8, 7 }
0x1172   : > { %v1805_v12 = vrot.slane %v1800_v11, 4  ;;  %v1803_v30 = vor.u32 %v1801_v51, %v1800_v11 }
0x1174   : > { %1810 = vrot.lane.b32.xlu1 %v1805_v12, %s3125_s7  ;;  %v1804_v56 = vsel %vm3330_vm7, %v1796_v15, %v1803_v30  ;;  %v3748_v30 = vld [vmem:[%s3974_s2 + $0x8] sm:$0xff] }
0x1175   : > { %1808 = vrot.lane.b32.xlu2 %v1804_v56, %s3125_s7 }
0x117d   : > { %1823 = vrot.lane.b32.xlu2 %v3676_v36, %s3128_s9 }
0x11cf   : > { %v1809_v22 = vpop.permute.xlu2 %1808 }
0x11d0   : > { %1817 = vst.msk [vmem:[#allocation2 + $0x4] sm:$0xf] %vm267_vm0, %v1809_v22 }
0x11d7   : > { %v1824_v42 = vpop.permute.xlu2 %1823 }
0x11d8   : > { %1829 = vst.msk [vmem:[#allocation3] sm:$0xff] %vm272_vm4, %v1824_v42 }
0x11de   : > { %v1807_v26 = vpop.permute.xlu0 %1806 }
0x11df   : > { %v1815_v32 = vsel %vm3341_vm9, %v1807_v26, %v1595_v49  ;;  %v1896_v23 = vld [vmem:[#allocation3] sm:$0xff] }
0x11e0   : > { %1816 = vst [vmem:[#allocation2] sm:$0xf] %v1815_v32 }
0x11e6   : > { %v1811_v31 = vpop.permute.xlu1 %1810 }
0x11e7   : > { %v1819_v35 = vsel %vm3349_vm10, %v1811_v31, %v1818_v54  ;;  %v2732_v38 = vld [vmem:[#allocation2] sm:$0xff] }
0x11e8   : > { %1820 = vst [vmem:[#allocation2 + $0x8] sm:$0x1] %v1819_v35  ;;  %v1858_v36 = vshll.u32 %v2732_v38, 16  ;;  %v1869_v45 = vrot.slane %v2732_v38, 1  ;;  %v1856_v13 = vshrl.u32 %v2732_v38, 16 }
0x11ea   : > { %v1860_v44 = vrot.slane %v1858_v36, 1 }
0x11ec   : > { %v1861_v18 = vor.u32 %v1860_v44, %v1856_v13 }
0x11ef   : > { %v1846_v19 = vld [vmem:[#allocation2 + $0x8] sm:$0x1] }
0x11f0   : > { %v1853_v39 = vunpack.c.l.b16 %v1846_v19 }
0x11f2   : > { %v1854_v17 = vpack.c.b16 %v1853_v39, %v1853_v39 }
0x11f4   : > { %v1870_v47 = vrot.slane %v1854_v17, 1  ;;  %v1863_v46 = vshll.u32 %v1854_v17, 16 }
0x11f6   : > { %v1871_v48 = vsel %vm319_vm3, %v1869_v45, %v1870_v47  ;;  %v1865_v37 = vrot.slane %v1863_v46, 1 }
0x11f7   : > { %1872 = vrot.lane.b32.xlu1 %v1871_v48, %s3126_s8 }
0x11f8   : > { %v1866_v53 = vsel %vm304_vm2, %v1861_v18, %v1865_v37 }
0x11f9   : > { %1867 = vrot.lane.b32.xlu0 %v1866_v53, %s3125_s7 }
0x11ff   : > { %1900 = vrot.lane.b32.xlu1 %v1896_v23, %s3125_s7 }
0x1201   : > { %1825 = vrot.lane.b32.xlu0 %v3671_v34, %s3128_s9  ;;  %v3728_v34 = vld [vmem:[%s3262_s17 + $0x8] sm:$0xff] }
0x1269   : > { %v1873_v55 = vpop.permute.xlu1 %1872 }
0x126b   : > { %v1868_v57 = vpop.permute.xlu0 %1867 }
0x126c   : > { %v1875_v59 = vsel %vm272_vm4, %v2732_v38, %v1868_v57 }
0x126d   : > { %v1877_v60 = vsel %vm328_vm5, %v1875_v59, %v1873_v55 }
0x126e   : > { %2693 = vmatmul.msk.bf16.vlgmr.msrb.gmra.mxu2 %vm3989_vm15, %v1877_v60 }
0x1271   : > { %v1901_v3 = vpop.permute.xlu1 %1900 }
0x1272   : > { %v1906_v5 = vsel %vm272_vm4, %v1896_v23, %v1901_v3 }
0x1273   : > { %v1826_v27 = vpop.permute.xlu0 %1825  ;;  %v1908_v8 = vmul.f32 %v3740_v6, %v1906_v5 }
0x1274   : > { %1830 = vst.msk [vmem:[#allocation3 + $0x8] sm:$0xff] %vm272_vm4, %v1826_v27 }
0x127b   : > { %v1897_v61 = vld [vmem:[#allocation3 + $0x8] sm:$0xff] }
0x127c   : > { %1902 = vrot.lane.b32.xlu2 %v1897_v61, %s3125_s7 }
0x12d6   : > { %v1903_v11 = vpop.permute.xlu2 %1902 }
0x12d7   : > { %v1907_v12 = vsel %vm272_vm4, %v1897_v61, %v1903_v11 }
0x12d8   : > { %v1909_v56 = vmul.f32 %v3748_v30, %v1907_v12 }
0x12f1   : > { %v1889_v63 = vpop.f32.mrf.mxu2 }
0x12f2   : > { %v3724_v0 = vadd.f32 %v1889_v63, %v3721_v29 }
0x12f4   : > { %2955 = vtanh.f32 %v3724_v0  ;;  %v1910_v51 = vadd.f32 %v1908_v8, %v3724_v0 }
0x12f6   : > { %v2694_v15 = vmul.f32 -1.442695, %v1910_v51 }
0x12f9   : > { %v1891_v1 = vpop.f32.mrf.mxu2 }
0x12fa   : > { %v2956_v33 = vpop.eup %2955  ;;  %v3731_v43 = vadd.f32 %v1891_v1, %v3728_v34 }
0x12fb   : > { %1956 = vrot.lane.b32.xlu0 %v2956_v33, %s3126_s8 }
0x12fc   : > { %2957 = vtanh.f32 %v3731_v43  ;;  %v1911_v22 = vadd.f32 %v1909_v56, %v3731_v43 }
0x12fd   : > { %2959 = vpow2.f32 %v2694_v15 }
0x12fe   : > { %v2695_v42 = vmul.f32 -1.442695, %v1911_v22 }
0x1300   : > { %2961 = vpow2.f32 %v2695_v42 }
0x1302   : > { %v2958_v2 = vpop.eup %2957 }
0x1303   : > { %1958 = vrot.lane.b32.xlu1 %v2958_v2, %s3126_s8  ;;  %v2960_v26 = vpop.eup %2959 }
0x1304   : > { %v1918_v49 = vadd.f32 1.0, %v2960_v26 }
0x1306   : > { %2963 = vrcp.f32 %v1918_v49  ;;  %v2962_v32 = vpop.eup %2961  ;;  %v1931_v45 = vand.u32 2147483648, %v1918_v49  ;;  %vm1925_vm1 = vweird.f32 %v1918_v49  ;;  %v1929_v47 = vand.u32 2147483647, %v1918_v49 }
0x1307   : > { %v1919_v54 = vadd.f32 1.0, %v2962_v32 }
0x1308   : > { %v1932_v48 = vor.u32 1.1754944e-38, %v1931_v45  ;;  %vm1930_vm12 = vcmp.eq.f32.partialorder %v1929_v47, 8.507059e+37 }
0x1309   : > { %2965 = vrcp.f32 %v1919_v54  ;;  %v1946_v57 = vand.u32 2147483648, %v1919_v54  ;;  %vm1940_vm6 = vweird.f32 %v1919_v54  ;;  %v1944_v55 = vand.u32 2147483647, %v1919_v54 }
0x130b   : > { %v1947_v60 = vor.u32 1.1754944e-38, %v1946_v57  ;;  %vm1945_vm15 = vcmp.eq.f32.partialorder %v1944_v55, 8.507059e+37 }
0x130c   : > { %v2964_v31 = vpop.eup %2963 }
0x130d   : > { %v1921_v35 = vmul.f32 %v2964_v31, %v1918_v49  ;;  %vm1926_vm8 = vweird.f32 %v2964_v31 }
0x130e   : > { %vm1927_vm11 = vmor %vm1925_vm1, %vm1926_vm8 }
0x130f   : > { %v1922_v38 = vsub.f32 1.0, %v1921_v35  ;;  %v2966_v36 = vpop.eup %2965 }
0x1310   : > { %v1936_v39 = vmul.f32 %v2966_v36, %v1919_v54  ;;  %vm1941_vm13 = vweird.f32 %v2966_v36 }
0x1311   : > { %v1923_v19 = vmul.f32 %v2964_v31, %v1922_v38  ;;  %vm1942_vm14 = vmor %vm1940_vm6, %vm1941_vm13 }
0x1312   : > { %v1937_v44 = vsub.f32 1.0, %v1936_v39 }
0x1313   : > { %v1924_v17 = vadd.f32 %v2964_v31, %v1923_v19 }
0x1314   : > { %v1938_v46 = vmul.f32 %v2966_v36, %v1937_v44 }
0x1315   : > { %v1928_v13 = vsel %vm1927_vm11, %v2964_v31, %v1924_v17 }
0x1316   : > { %v1933_v18 = vsel %vm1930_vm12, %v1932_v48, %v1928_v13  ;;  %v1939_v23 = vadd.f32 %v2966_v36, %v1938_v46 }
0x1317   : > { %v1950_v1 = vmul.f32 %v1933_v18, %v1901_v3 }
0x1318   : > { %v1943_v59 = vsel %vm1942_vm14, %v2966_v36, %v1939_v23 }
0x1319   : > { %v1948_v61 = vsel %vm1945_vm15, %v1947_v60, %v1943_v59 }
0x131a   : > { %v1951_v51 = vmul.f32 %v1948_v61, %v1903_v11 }
0x136d   : > { %v1957_v37 = vpop.permute.xlu0 %1956 }
0x136e   : > { %v1962_v53 = vmul.f32 %v1957_v37, %v1933_v18 }
0x1370   : > { %1966 = vrot.lane.b32.xlu2 %v1962_v53, %s3125_s7 }
0x1375   : > { %v1959_v27 = vpop.permute.xlu1 %1958 }
0x1376   : > { %v1963_v63 = vmul.f32 %v1959_v27, %v1948_v61 }
0x1378   : > { %1968 = vrot.lane.b32.xlu0 %v1963_v63, %s3125_s7 }
0x13ca   : > { %v1967_v33 = vpop.permute.xlu2 %1966 }
0x13cb   : > { %v3754_v2 = vadd.f32 %v1967_v33, %v1950_v1 }
0x13cd   : > { %2967 = vtanh.f32 %v3754_v2  ;;  %v1974_v5 = vmul.f32 %v3754_v2, %v3300_v16 }
0x13cf   : > { %1978 = vrot.lane.b32.xlu1 %v1974_v5, %s3126_s8 }
0x13d3   : > { %v2968_v8 = vpop.eup %2967 }
0x13d4   : > { %2028 = vrot.lane.b32.xlu0 %v2968_v8, %s3126_s8 }
0x13ea   : > { %v1969_v12 = vpop.permute.xlu0 %1968 }
0x13eb   : > { %v3761_v15 = vadd.f32 %v1969_v12, %v1951_v51 }
0x13ed   : > { %2969 = vtanh.f32 %v3761_v15  ;;  %v1975_v3 = vmul.f32 %v3761_v15, %v3308_v21 }
0x13ef   : > { %1980 = vrot.lane.b32.xlu2 %v1975_v3, %s3126_s8 }
0x13f3   : > { %v2970_v56 = vpop.eup %2969 }
0x13f4   : > { %2030 = vrot.lane.b32.xlu1 %v2970_v56, %s3126_s8 }
0x1441   : > { %v1979_v22 = vpop.permute.xlu1 %1978 }
0x1442   : > { %v1984_v42 = vadd.f32 %v1979_v22, %v3724_v0 }
0x1444   : > { %v2696_v26 = vmul.f32 -1.442695, %v1984_v42 }
0x1446   : > { %2971 = vpow2.f32 %v2696_v26  ;;  %v2029_v18 = vpop.permute.xlu0 %2028 }
0x1449   : > { %v1981_v49 = vpop.permute.xlu2 %1980 }
0x144a   : > { %v1985_v11 = vadd.f32 %v1981_v49, %v3731_v43 }
0x144c   : > { %v2972_v32 = vpop.eup %2971  ;;  %v2697_v54 = vmul.f32 -1.442695, %v1985_v11 }
0x144d   : > { %v1992_v31 = vadd.f32 1.0, %v2972_v32 }
0x144e   : > { %2973 = vpow2.f32 %v2697_v54 }
0x144f   : > { %2975 = vrcp.f32 %v1992_v31  ;;  %v2005_v17 = vand.u32 2147483648, %v1992_v31  ;;  %v2003_v0 = vand.u32 2147483647, %v1992_v31  ;;  %vm1999_vm1 = vweird.f32 %v1992_v31 }
0x1451   : > { %v2006_v43 = vor.u32 1.1754944e-38, %v2005_v17  ;;  %vm2004_vm12 = vcmp.eq.f32.partialorder %v2003_v0, 8.507059e+37 }
0x1454   : > { %v2974_v35 = vpop.eup %2973 }
0x1455   : > { %v2976_v38 = vpop.eup %2975  ;;  %v1993_v36 = vadd.f32 1.0, %v2974_v35 }
0x1456   : > { %v1995_v19 = vmul.f32 %v2976_v38, %v1992_v31  ;;  %vm2000_vm8 = vweird.f32 %v2976_v38  ;;  %v1844_v31 = vld [vmem:[#allocation2] sm:$0xf] }
0x1457   : > { %2977 = vrcp.f32 %v1993_v36  ;;  %vm2001_vm11 = vmor %vm1999_vm1, %vm2000_vm8  ;;  %v2020_v23 = vand.u32 2147483648, %v1993_v36  ;;  %v2018_v59 = vand.u32 2147483647, %v1993_v36  ;;  %vm2014_vm6 = vweird.f32 %v1993_v36 }
0x1458   : > { %v1996_v39 = vsub.f32 1.0, %v1995_v19 }
0x1459   : > { %v2021_v61 = vor.u32 1.1754944e-38, %v2020_v23  ;;  %vm2019_vm15 = vcmp.eq.f32.partialorder %v2018_v59, 8.507059e+37 }
0x145a   : > { %v1997_v44 = vmul.f32 %v2976_v38, %v1996_v39 }
0x145c   : > { %v1998_v45 = vadd.f32 %v2976_v38, %v1997_v44 }
0x145d   : > { %v2978_v47 = vpop.eup %2977 }
0x145e   : > { %v2002_v13 = vsel %vm2001_vm11, %v2976_v38, %v1998_v45  ;;  %v2010_v46 = vmul.f32 %v2978_v47, %v1993_v36  ;;  %vm2015_vm13 = vweird.f32 %v2978_v47  ;;  %v2067_v38 = vld [vmem:[#allocation2 + $0x8] sm:$0x1] }
0x145f   : > { %v2007_v48 = vsel %vm2004_vm12, %v2006_v43, %v2002_v13  ;;  %vm2016_vm14 = vmor %vm2014_vm6, %vm2015_vm13 }
0x1460   : > { %v2034_v37 = vmul.f32 %v2029_v18, %v2007_v48  ;;  %v2011_v53 = vsub.f32 1.0, %v2010_v46 }
0x1462   : > { %v3770_v57 = vpack.c.bf16 %v2034_v37, %v2034_v37  ;;  %v2012_v55 = vmul.f32 %v2978_v47, %v2011_v53 }
0x1464   : > { %v2039_v60 = vshrl.u32 %v3770_v57, 16  ;;  %v2013_v27 = vadd.f32 %v2978_v47, %v2012_v55  ;;  %v2042_v63 = vshll.u32 %v3770_v57, 16 }
0x1466   : > { %v2031_v1 = vpop.permute.xlu1 %2030  ;;  %v2017_v33 = vsel %vm2016_vm14, %v2978_v47, %v2013_v27  ;;  %v2041_v5 = vrot.slane %v2039_v60, 7 }
0x1467   : > { %v2022_v8 = vsel %vm2019_vm15, %v2021_v61, %v2017_v33 }
0x1468   : > { %v2035_v51 = vmul.f32 %v2031_v1, %v2022_v8  ;;  %v2044_v12 = vor.u32 %v2042_v63, %v2041_v5  ;;  %v2045_v49 = vrot.slane %v2041_v5, 4 }
0x146a   : > { %v3774_v3 = vpack.c.bf16 %v2035_v51, %v2035_v51  ;;  %2055 = vrot.lane.b32.xlu2 %v2044_v12, %s3125_s7 }
0x146c   : > { %v2047_v56 = vshrl.u32 %v3774_v3, 16  ;;  %v2050_v22 = vshll.u32 %v3774_v3, 16 }
0x146e   : > { %v2049_v42 = vrot.slane %v2047_v56, 7 }
0x1470   : > { %v2054_v26 = vrot.slane %v2049_v42, 4  ;;  %v2052_v11 = vor.u32 %v2050_v22, %v2049_v42 }
0x1472   : > { %2059 = vrot.lane.b32.xlu0 %v2054_v26, %s3125_s7  ;;  %v2053_v32 = vsel %vm3330_vm7, %v2045_v49, %v2052_v11 }
0x1473   : > { %2057 = vrot.lane.b32.xlu1 %v2053_v32, %s3125_s7 }
0x147b   : > { %2072 = vrot.lane.b32.xlu1 %v3754_v2, %s3128_s9 }
0x14c4   : > { %v2056_v54 = vpop.permute.xlu2 %2055 }
0x14c5   : > { %v2064_v35 = vsel %vm3341_vm9, %v2056_v54, %v1844_v31 }
0x14c6   : > { %2065 = vst [vmem:[#allocation2] sm:$0xf] %v2064_v35 }
0x14e4   : > { %v2060_v36 = vpop.permute.xlu0 %2059 }
0x14e5   : > { %v2068_v19 = vsel %vm3349_vm10, %v2060_v36, %v2067_v38  ;;  %v2058_v39 = vpop.permute.xlu1 %2057 }
0x14e6   : > { %2069 = vst [vmem:[#allocation2 + $0x8] sm:$0x1] %v2068_v19 }
0x14e7   : > { %2066 = vst.msk [vmem:[#allocation2 + $0x4] sm:$0xf] %vm267_vm0, %v2058_v39 }
0x14ed   : > { %v2073_v17 = vpop.permute.xlu1 %2072  ;;  %v2095_v44 = vld [vmem:[#allocation2 + $0x8] sm:$0x1] }
0x14ee   : > { %2078 = vst.msk [vmem:[#allocation3] sm:$0xff] %vm272_vm4, %v2073_v17  ;;  %v2733_v2 = vld [vmem:[#allocation2] sm:$0xff]  ;;  %v2102_v0 = vunpack.c.l.b16 %v2095_v44 }
0x14ef   : > { %v2107_v47 = vshll.u32 %v2733_v2, 16  ;;  %v2118_v43 = vrot.slane %v2733_v2, 1  ;;  %v2105_v46 = vshrl.u32 %v2733_v2, 16 }
0x14f0   : > { %v2103_v45 = vpack.c.b16 %v2102_v0, %v2102_v0 }
0x14f1   : > { %v2109_v48 = vrot.slane %v2107_v47, 1 }
0x14f2   : > { %v2119_v13 = vrot.slane %v2103_v45, 1  ;;  %v2112_v18 = vshll.u32 %v2103_v45, 16 }
0x14f3   : > { %v2110_v53 = vor.u32 %v2109_v48, %v2105_v46 }
0x14f4   : > { %v2120_v37 = vsel %vm319_vm3, %v2118_v43, %v2119_v13  ;;  %v2114_v23 = vrot.slane %v2112_v18, 1 }
0x14f5   : > { %2121 = vrot.lane.b32.xlu0 %v2120_v37, %s3126_s8  ;;  %v2145_v59 = vld [vmem:[#allocation3] sm:$0xff] }
0x14f6   : > { %v2115_v55 = vsel %vm304_vm2, %v2110_v53, %v2114_v23  ;;  %vm3990_vm2 = vcmask 785408  }
0x14f7   : > { %2116 = vrot.lane.b32.xlu2 %v2115_v55, %s3125_s7 }
0x14fd   : > { %2149 = vrot.lane.b32.xlu0 %v2145_v59, %s3125_s7 }
0x14ff   : > { %2074 = vrot.lane.b32.xlu2 %v3761_v15, %s3128_s9 }
0x1551   : > { %v2117_v60 = vpop.permute.xlu2 %2116 }
0x1552   : > { %v2124_v63 = vsel %vm272_vm4, %v2733_v2, %v2117_v60 }
0x1559   : > { %v2075_v27 = vpop.permute.xlu2 %2074 }
0x155a   : > { %2079 = vst.msk [vmem:[#allocation3 + $0x8] sm:$0xff] %vm272_vm4, %v2075_v27 }
0x1561   : > { %v2146_v61 = vld [vmem:[#allocation3 + $0x8] sm:$0xff] }
0x1562   : > { %2151 = vrot.lane.b32.xlu1 %v2146_v61, %s3125_s7 }
0x1567   : > { %v2122_v1 = vpop.permute.xlu0 %2121 }
0x1568   : > { %v2126_v33 = vsel %vm328_vm5, %v2124_v63, %v2122_v1 }
0x1569   : > { %2704 = vmatmul.msk.bf16.vlgmr.msrb.gmra.mxu3 %vm3990_vm2, %v2126_v33 }
0x156f   : > { %v2150_v22 = vpop.permute.xlu0 %2149 }
0x1570   : > { %v2155_v42 = vsel %vm272_vm4, %v2145_v59, %v2150_v22 }
0x15ec   : > { %v2138_v5 = vpop.f32.mrf.mxu3 }
0x15ed   : > { %v3804_v8 = vadd.f32 %v2138_v5, %v3721_v29  ;;  %v2157_v29 = vmul.f32 %v3740_v6, %v2155_v42 }
0x15ef   : > { %2979 = vtanh.f32 %v3804_v8  ;;  %v2159_v26 = vadd.f32 %v2157_v29, %v3804_v8 }
0x15f1   : > { %v2705_v49 = vmul.f32 -1.442695, %v2159_v26 }
0x15f4   : > { %v2140_v15 = vpop.f32.mrf.mxu3 }
0x15f5   : > { %v2980_v51 = vpop.eup %2979  ;;  %v3808_v12 = vadd.f32 %v2140_v15, %v3728_v34  ;;  %v2152_v34 = vpop.permute.xlu1 %2151 }
0x15f6   : > { %2205 = vrot.lane.b32.xlu2 %v2980_v51, %s3126_s8  ;;  %v2156_v31 = vsel %vm272_vm4, %v2146_v61, %v2152_v34 }
0x15f7   : > { %2981 = vtanh.f32 %v3808_v12  ;;  %v2158_v35 = vmul.f32 %v3748_v30, %v2156_v31 }
0x15f8   : > { %2983 = vpow2.f32 %v2705_v49 }
0x15f9   : > { %v2160_v36 = vadd.f32 %v2158_v35, %v3808_v12 }
0x15fb   : > { %v2706_v39 = vmul.f32 -1.442695, %v2160_v36 }
0x15fd   : > { %v2982_v56 = vpop.eup %2981 }
0x15fe   : > { %2207 = vrot.lane.b32.xlu0 %v2982_v56, %s3126_s8  ;;  %v2984_v11 = vpop.eup %2983 }
0x15ff   : > { %v2167_v32 = vadd.f32 1.0, %v2984_v11 }
0x1601   : > { %2985 = vrcp.f32 %v2167_v32  ;;  %v2180_v44 = vand.u32 2147483648, %v2167_v32  ;;  %vm2174_vm5 = vweird.f32 %v2167_v32  ;;  %v2178_v2 = vand.u32 2147483647, %v2167_v32 }
0x1602   : > { %2987 = vpow2.f32 %v2706_v39 }
0x1603   : > { %v2181_v47 = vor.u32 1.1754944e-38, %v2180_v44  ;;  %vm2179_vm1 = vcmp.eq.f32.partialorder %v2178_v2, 8.507059e+37 }
0x1607   : > { %v2986_v54 = vpop.eup %2985 }
0x1608   : > { %v2170_v38 = vmul.f32 %v2986_v54, %v2167_v32  ;;  %vm2175_vm3 = vweird.f32 %v2986_v54  ;;  %v2988_v0 = vpop.eup %2987 }
0x1609   : > { %vm2176_vm8 = vmor %vm2174_vm5, %vm2175_vm3  ;;  %v2168_v43 = vadd.f32 1.0, %v2988_v0 }
0x160a   : > { %v2171_v19 = vsub.f32 1.0, %v2170_v38 }
0x160b   : > { %2989 = vrcp.f32 %v2168_v43  ;;  %v2195_v55 = vand.u32 2147483648, %v2168_v43  ;;  %vm2189_vm12 = vweird.f32 %v2168_v43  ;;  %v2193_v59 = vand.u32 2147483647, %v2168_v43 }
0x160c   : > { %v2172_v17 = vmul.f32 %v2986_v54, %v2171_v19 }
0x160d   : > { %v2196_v27 = vor.u32 1.1754944e-38, %v2195_v55  ;;  %vm2194_vm6 = vcmp.eq.f32.partialorder %v2193_v59, 8.507059e+37 }
0x160e   : > { %v2173_v6 = vadd.f32 %v2986_v54, %v2172_v17 }
0x1610   : > { %v2177_v45 = vsel %vm2176_vm8, %v2986_v54, %v2173_v6 }
0x1611   : > { %v2182_v13 = vsel %vm2179_vm1, %v2181_v47, %v2177_v45  ;;  %v2990_v48 = vpop.eup %2989 }
0x1612   : > { %v2185_v18 = vmul.f32 %v2990_v48, %v2168_v43  ;;  %vm2190_vm11 = vweird.f32 %v2990_v48  ;;  %v2199_v33 = vmul.f32 %v2182_v13, %v2150_v22 }
0x1613   : > { %vm2191_vm13 = vmor %vm2189_vm12, %vm2190_vm11 }
0x1614   : > { %v2186_v37 = vsub.f32 1.0, %v2185_v18 }
0x1616   : > { %v2187_v53 = vmul.f32 %v2990_v48, %v2186_v37 }
0x1618   : > { %v2188_v23 = vadd.f32 %v2990_v48, %v2187_v53 }
0x161a   : > { %v2192_v60 = vsel %vm2191_vm13, %v2990_v48, %v2188_v23 }
0x161b   : > { %v2197_v63 = vsel %vm2194_vm6, %v2196_v27, %v2192_v60 }
0x161c   : > { %v2200_v56 = vmul.f32 %v2197_v63, %v2152_v34 }
0x1650   : > { %v2206_v30 = vpop.permute.xlu2 %2205 }
0x1651   : > { %v2211_v46 = vmul.f32 %v2206_v30, %v2182_v13 }
0x1653   : > { %2215 = vrot.lane.b32.xlu1 %v2211_v46, %s3125_s7 }
0x1670   : > { %v2208_v61 = vpop.permute.xlu0 %2207 }
0x1671   : > { %v2212_v1 = vmul.f32 %v2208_v61, %v2197_v63 }
0x1673   : > { %2217 = vrot.lane.b32.xlu2 %v2212_v1, %s3125_s7 }
0x16c5   : > { %v2216_v5 = vpop.permute.xlu1 %2215 }
0x16c6   : > { %v2221_v15 = vadd.f32 %v2216_v5, %v2199_v33 }
0x16c8   : > { %2991 = vtanh.f32 %v2221_v15  ;;  %v2223_v51 = vmul.f32 %v2221_v15, %v3300_v16 }
0x16ca   : > { %2227 = vrot.lane.b32.xlu0 %v2223_v51, %s3126_s8 }
0x16cd   : > { %v2218_v42 = vpop.permute.xlu2 %2217 }
0x16ce   : > { %v2992_v29 = vpop.eup %2991  ;;  %v2222_v26 = vadd.f32 %v2218_v42, %v2200_v56 }
0x16cf   : > { %2277 = vrot.lane.b32.xlu2 %v2992_v29, %s3126_s8 }
0x16d0   : > { %2993 = vtanh.f32 %v2222_v26  ;;  %v2224_v49 = vmul.f32 %v2222_v26, %v3308_v21 }
0x16d2   : > { %2229 = vrot.lane.b32.xlu1 %v2224_v49, %s3126_s8 }
0x16d6   : > { %v2994_v11 = vpop.eup %2993 }
0x16d7   : > { %591 = vrot.lane.b32.xlu2 %v3320_v52, %s3125_s7  ;;  %2279 = vrot.lane.b32.xlu0 %v2994_v11, %s3126_s8  ;;  %s2597_s8 = sshll.u32 %s3822_s24, 6 }
0x16d8   : > { %s3861_s25 = scalar_lea.vmem [#allocation7], %s2597_s8 }
0x16da   : > { %589 = vrot.lane.b32.xlu1 %v3324_v4, %s3125_s7 }
0x16df   : > { %1086 = vrot.lane.b32.xlu2 %v3470_v50, %s3125_s7  ;;  %837 = vrot.lane.b32.xlu0 %v3403_v24, %s3125_s7 }
0x16e2   : > { %839 = vrot.lane.b32.xlu1 %v3407_v40, %s3125_s7 }
0x16e7   : > { %2323 = vrot.lane.b32.xlu2 %v2222_v26, %s3128_s9  ;;  %1088 = vrot.lane.b32.xlu0 %v3475_v62, %s3125_s7 }
0x16ea   : > { %2321 = vrot.lane.b32.xlu1 %v2221_v15, %s3128_s9  ;;  %s2734_s9 = sshll.u32 (%p3201_p4), %s3111_s21, 3 }
0x16eb   : > { %s2364_s12 = scalar_lea.vmem (%p3201_p4), %s3976_s4, %s2734_s9 }
0x16ef   : > { %1335 = vrot.lane.b32.xlu2 %v3553_v25, %s3125_s7  ;;  %1337 = vrot.lane.b32.xlu0 %v3557_v41, %s3125_s7 }
0x16f2   : > { %1584 = vrot.lane.b32.xlu1 %v3620_v10, %s3125_s7 }
0x16f7   : > { %1586 = vrot.lane.b32.xlu2 %v3624_v28, %s3125_s7  ;;  %1833 = vrot.lane.b32.xlu0 %v3687_v58, %s3125_s7 }
0x16fa   : > { %1835 = vrot.lane.b32.xlu1 %v3692_v7, %s3125_s7 }
0x16ff   : > { %2082 = vrot.lane.b32.xlu2 %v3770_v57, %s3125_s7  ;;  %2084 = vrot.lane.b32.xlu0 %v3774_v3, %s3125_s7 }
0x1729   : > { %v2278_v16 = vpop.permute.xlu2 %2277 }
0x1731   : > { %v592_v21 = vpop.permute.xlu2 %591 }
0x1732   : > { %596 = vst.msk [vmem:[%s3861_s25 + $0x4] sm:$0xf] %vm267_vm0, %v592_v21 }
0x1739   : > { %v1087_v52 = vpop.permute.xlu2 %1086 }
0x173a   : > { %2654 = vst.msk [vmem:[%s3861_s25 + $0x10] sm:$0xf] %vm267_vm0, %v1087_v52 }
0x173c   : > { %v2228_v4 = vpop.permute.xlu0 %2227 }
0x173d   : > { %v2233_v24 = vadd.f32 %v2228_v4, %v3804_v8 }
0x173f   : > { %v2707_v40 = vmul.f32 -1.442695, %v2233_v24 }
0x1741   : > { %2995 = vpow2.f32 %v2707_v40  ;;  %v2324_v50 = vpop.permute.xlu2 %2323 }
0x1742   : > { %2328 = vst.msk [vmem:[#allocation3 + $0x8] sm:$0xff] %vm272_vm4, %v2324_v50  ;;  %v2093_v50 = vld [vmem:[#allocation2] sm:$0xf] }
0x1744   : > { %v2230_v62 = vpop.permute.xlu1 %2229 }
0x1745   : > { %v2234_v25 = vadd.f32 %v2230_v62, %v3808_v12 }
0x1747   : > { %v2996_v41 = vpop.eup %2995  ;;  %v2708_v10 = vmul.f32 -1.442695, %v2234_v25  ;;  %v2316_v25 = vld [vmem:[#allocation2 + $0x8] sm:$0x1] }
0x1748   : > { %v2241_v28 = vadd.f32 1.0, %v2996_v41 }
0x1749   : > { %v2344_v58 = vld [vmem:[#allocation3 + $0x8] sm:$0xff]  ;;  %2997 = vpow2.f32 %v2708_v10  ;;  %v2280_v7 = vpop.permute.xlu0 %2279  ;;  %v1336_v57 = vpop.permute.xlu2 %1335 }
0x174a   : > { %2999 = vrcp.f32 %v2241_v28  ;;  %2346 = vst.msk [vmem:[%s3871_s29 + $0x8] sm:$0xff] %vm272_vm4, %v2344_v58  ;;  %v2254_v38 = vand.u32 2147483648, %v2241_v28  ;;  %v2252_v19 = vand.u32 2147483647, %v2241_v28  ;;  %vm2248_vm15 = vweird.f32 %v2241_v28 }
0x174b   : > { %2665 = vst.msk [vmem:[%s3861_s25 + $0x18] sm:$0xf] %vm267_vm0, %v1336_v57 }
0x174c   : > { %v590_v3 = vpop.permute.xlu1 %589  ;;  %v2255_v6 = vor.u32 1.1754944e-38, %v2254_v38  ;;  %vm2253_vm3 = vcmp.eq.f32.partialorder %v2252_v19, 8.507059e+37 }
0x174d   : > { %595 = vst.msk [vmem:[%s3861_s25] sm:$0xf] %vm267_vm0, %v590_v3 }
0x174f   : > { %v2998_v8 = vpop.eup %2997 }
0x1750   : > { %v3000_v12 = vpop.eup %2999  ;;  %v2242_v22 = vadd.f32 1.0, %v2998_v8 }
0x1751   : > { %v2244_v32 = vmul.f32 %v3000_v12, %v2241_v28  ;;  %v838_v34 = vpop.permute.xlu0 %837  ;;  %v1587_v54 = vpop.permute.xlu2 %1586  ;;  %vm2249_vm14 = vweird.f32 %v3000_v12 }
0x1752   : > { %3001 = vrcp.f32 %v2242_v22  ;;  %2643 = vst.msk [vmem:[%s3861_s25 + $0x8] sm:$0xf] %vm267_vm0, %v838_v34  ;;  %vm2250_vm2 = vmor %vm2248_vm15, %vm2249_vm14  ;;  %v2269_v30 = vand.u32 2147483648, %v2242_v22  ;;  %v2267_v18 = vand.u32 2147483647, %v2242_v22  ;;  %vm2263_vm8 = vweird.f32 %v2242_v22 }
0x1753   : > { %v2245_v31 = vsub.f32 1.0, %v2244_v32  ;;  %2677 = vst.msk [vmem:[%s3861_s25 + $0x24] sm:$0xf] %vm267_vm0, %v1587_v54 }
0x1754   : > { %v840_v35 = vpop.permute.xlu1 %839  ;;  %v2270_v55 = vor.u32 1.1754944e-38, %v2269_v30  ;;  %vm2268_vm11 = vcmp.eq.f32.partialorder %v2267_v18, 8.507059e+37  ;;  %v2381_v14 = vld [vmem:[%s3861_s25] sm:$0xff] (%p3201_p4)  }
0x1755   : > { %2644 = vst.msk [vmem:[%s3861_s25 + $0xc] sm:$0xf] %vm267_vm0, %v840_v35  ;;  %v2246_v36 = vmul.f32 %v3000_v12, %v2245_v31 }
0x1756   : > { %2382 = vst [vmem:[%s2364_s12] sm:$0xff] (%p3201_p4), %v2381_v14  }
0x1757   : > { %v2247_v39 = vadd.f32 %v3000_v12, %v2246_v36 }
0x1758   : > { %v3002_v17 = vpop.eup %3001 }
0x1759   : > { %v2259_v44 = vmul.f32 %v3002_v17, %v2242_v22  ;;  %v1089_v2 = vpop.permute.xlu0 %1088  ;;  %v2083_v0 = vpop.permute.xlu2 %2082  ;;  %v2251_v45 = vsel %vm2250_vm2, %v3000_v12, %v2247_v39  ;;  %vm2264_vm5 = vweird.f32 %v3002_v17 }
0x175a   : > { %2655 = vst.msk [vmem:[%s3861_s25 + $0x14] sm:$0xf] %vm267_vm0, %v1089_v2  ;;  %v2256_v47 = vsel %vm2253_vm3, %v2255_v6, %v2251_v45  ;;  %vm2265_vm1 = vmor %vm2263_vm8, %vm2264_vm5 }
0x175b   : > { %v2260_v43 = vsub.f32 1.0, %v2259_v44  ;;  %2698 = vst.msk [vmem:[%s3861_s25 + $0x30] sm:$0xf] %vm267_vm0, %v2083_v0  ;;  %v2283_v13 = vmul.f32 %v2278_v16, %v2256_v47 }
0x175c   : > { %v2322_v46 = vpop.permute.xlu1 %2321  ;;  %v2385_v20 = vld [vmem:[%s3861_s25 + $0x8] sm:$0xff] (%p3201_p4)  }
0x175d   : > { %v2261_v48 = vmul.f32 %v3002_v17, %v2260_v43  ;;  %2327 = vst.msk [vmem:[#allocation3] sm:$0xff] %vm272_vm4, %v2322_v46  ;;  %v2285_v37 = vpack.c.bf16 %v2283_v13, %v2283_v13 }
0x175e   : > { %2386 = vst [vmem:[%s2364_s12 + $0x10] sm:$0xff] (%p3201_p4), %v2385_v20  }
0x175f   : > { %v2262_v53 = vadd.f32 %v3002_v17, %v2261_v48  ;;  %2331 = vrot.lane.b32.xlu2 %v2285_v37, %s3125_s7  ;;  %v2288_v23 = vshrl.u32 %v2285_v37, 16  ;;  %v2291_v61 = vshll.u32 %v2285_v37, 16 }
0x1761   : > { %v2266_v59 = vsel %vm2265_vm1, %v3002_v17, %v2262_v53  ;;  %v1338_v60 = vpop.permute.xlu0 %1337  ;;  %v2290_v27 = vrot.slane %v2288_v23, 7  ;;  %v2389_v58 = vld [vmem:[%s3861_s25 + $0x10] sm:$0xff] (%p3201_p4)  }
0x1762   : > { %v2271_v63 = vsel %vm2268_vm11, %v2270_v55, %v2266_v59  ;;  %2666 = vst.msk [vmem:[%s3861_s25 + $0x1c] sm:$0xf] %vm267_vm0, %v1338_v60 }
0x1763   : > { %v2284_v1 = vmul.f32 %v2280_v7, %v2271_v63  ;;  %v2293_v33 = vor.u32 %v2291_v61, %v2290_v27  ;;  %v2294_v52 = vrot.slane %v2290_v27, 4  ;;  %2390 = vst [vmem:[%s2364_s12 + $0x20] sm:$0xff] (%p3201_p4), %v2389_v58  }
0x1764   : > { %v2343_v5 = vld [vmem:[#allocation3] sm:$0xff]  ;;  %v1585_v15 = vpop.permute.xlu1 %1584 }
0x1765   : > { %v2286_v51 = vpack.c.bf16 %v2284_v1, %v2284_v1  ;;  %2345 = vst.msk [vmem:[%s3871_s29] sm:$0xff] %vm272_vm4, %v2343_v5  ;;  %2304 = vrot.lane.b32.xlu0 %v2293_v33, %s3125_s7 }
0x1766   : > { %2676 = vst.msk [vmem:[%s3861_s25 + $0x20] sm:$0xf] %vm267_vm0, %v1585_v15 }
0x1767   : > { %v2296_v56 = vshrl.u32 %v2286_v51, 16  ;;  %v2299_v11 = vshll.u32 %v2286_v51, 16 }
0x1769   : > { %v2298_v42 = vrot.slane %v2296_v56, 7  ;;  %v1834_v29 = vpop.permute.xlu0 %1833  ;;  %v2393_v7 = vld [vmem:[%s3861_s25 + $0x18] sm:$0xff] (%p3201_p4)  }
0x176a   : > { %2687 = vst.msk [vmem:[%s3861_s25 + $0x28] sm:$0xf] %vm267_vm0, %v1834_v29 }
0x176b   : > { %v2303_v26 = vrot.slane %v2298_v42, 4  ;;  %v2301_v16 = vor.u32 %v2299_v11, %v2298_v42  ;;  %2394 = vst [vmem:[%s2364_s12 + $0x30] sm:$0xff] (%p3201_p4), %v2393_v7  }
0x176c   : > { %v1836_v49 = vpop.permute.xlu1 %1835 }
0x176d   : > { %2688 = vst.msk [vmem:[%s3861_s25 + $0x2c] sm:$0xf] %vm267_vm0, %v1836_v49  ;;  %2308 = vrot.lane.b32.xlu1 %v2303_v26, %s3125_s7  ;;  %2333 = vrot.lane.b32.xlu0 %v2286_v51, %s3125_s7  ;;  %v2302_v4 = vsel %vm3330_vm7, %v2294_v52, %v2301_v16  ;;  %v2397_v57 = vld [vmem:[%s3861_s25 + $0x20] sm:$0xff] (%p3201_p4)  }
0x176e   : > { %2398 = vst [vmem:[%s2364_s12 + $0x40] sm:$0xff] (%p3201_p4), %v2397_v57  }
0x1771   : > { %v2085_v21 = vpop.permute.xlu0 %2084 }
0x1772   : > { %2699 = vst.msk [vmem:[%s3861_s25 + $0x34] sm:$0xf] %vm267_vm0, %v2085_v21 }
0x1774   : > { %v2401_v3 = vld [vmem:[%s3861_s25 + $0x28] sm:$0xff] (%p3201_p4)  }
0x1775   : > { %2306 = vrot.lane.b32.xlu1 %v2302_v4, %s3125_s7  ;;  %s2352_s7 = scalar_lea.sflag [#allocation6], %s3822_s24  ;;  %2402 = vst [vmem:[%s2364_s12 + $0x50] sm:$0xff] (%p3201_p4), %v2401_v3  }
0x1779   : > { %v2405_v8 = vld [vmem:[%s3861_s25 + $0x30] sm:$0xff] (%p3201_p4)  }
0x177a   : > { %2406 = vst [vmem:[%s2364_s12 + $0x60] sm:$0xff] (%p3201_p4), %v2405_v8  }
0x17b9   : > { %v2332_v24 = vpop.permute.xlu2 %2331 }
0x17ba   : > { %2709 = vst.msk [vmem:[%s3861_s25 + $0x38] sm:$0xf] %vm267_vm0, %v2332_v24 }
0x17d7   : > { %v2305_v40 = vpop.permute.xlu0 %2304 }
0x17d8   : > { %v2313_v62 = vsel %vm3341_vm9, %v2305_v40, %v2093_v50 }
0x17d9   : > { %2314 = vst [vmem:[#allocation2] sm:$0xf] %v2313_v62 }
0x17df   : > { %v2309_v41 = vpop.permute.xlu1 %2308  ;;  %v2334_v10 = vpop.permute.xlu0 %2333 }
0x17e0   : > { %v2317_v28 = vsel %vm3349_vm10, %v2309_v41, %v2316_v25  ;;  %2710 = vst.msk [vmem:[%s3861_s25 + $0x3c] sm:$0xf] %vm267_vm0, %v2334_v10 }
0x17e1   : > { %2318 = vst [vmem:[#allocation2 + $0x8] sm:$0x1] %v2317_v28 }
0x17e4   : > { %2358 = sbr.rel (!%p3201_p4) target bundleno = 6122 (0x17ea), region = 52 }
0x17e7   : > { %v2307_v9 = vpop.permute.xlu1 %2306  ;;  %v2409_v12 = vld [vmem:[%s3861_s25 + $0x38] sm:$0xff] (%p3201_p4)  }
0x17e8   : > { %2315 = vst.msk [vmem:[#allocation2 + $0x4] sm:$0xf] %vm267_vm0, %v2307_v9 }
0x17e9   : > { %2410 = vst [vmem:[%s2364_s12 + $0x70] sm:$0xff] %v2409_v12  }
0x17ea PF: > { %s2735_s13 = sshll.u32 %s3111_s21, 4  ;;  %s2474_s14 = sshll.u32 %s3871_s29, 4  ;;  %s2475_s14 = int_to_ptr.vmem [resolvable:$true] %s2474_s14 }
0x17eb   : > { %s2473_s17 = scalar_lea.hbm %s3977_s5, %s2735_s13  ;;  %s3057_s11 = scalar_lea.hbm %s3977_s5, 32 }
0x17ec   : > { %s2476_s8 = sshll.u32 %s2473_s17, 4  ;;  %s2477_s8 = int_to_ptr.hbm [resolvable:$true] %s2476_s8 }
0x17ed   : > { %s3051_s27 = sshra.s32 %s2477_s8, 4  ;;  %s3052_s27 = int_to_ptr.hbm [resolvable:$true] %s3051_s27 }
0x17ee   : > { %s3053_s9 = scalar_lea.hbm %s3052_s27, 16  ;;  %p3058_p5 = scmp.lt.s32.totalorder %s3052_s27, %s3977_s5 }
0x17ef   : > { %p3054_p1 = scmp.ne.s32.totalorder %s3052_s27, %s3053_s9  ;;  %p3059_p6 = scmp.lt.s32.totalorder %s3057_s11, %s3053_s9 }
0x17f1   : > { %p3055_p2 = pnand %p3054_p1, %p3201_p4  ;;  %p3060_p7 = por %p3059_p6, %p3058_p5 }
0x17f3   : > { %p3056_p3 = pneg %p3055_p2 }
0x17f5   : > { %p3061_p9 = pnand %p3060_p7, %p3056_p3 }
0x17f7   : > { %3064 = shalt.err (!%p3061_p9)
}
0x17f8   : > { %s3129_s12 = smov 128   ;;  %s3130_s13 = smov 8  }
0x17f9   : > { %2740 = dma.vmem_to_hbm [thread:$0]  (%p3201_p4), %s2475_s14, 256, %s2477_s8, %s2352_s7, %s3129_s12, %s3129_s12, %s3130_s13  }
0x17fa PF: > { %p2752_p10 = scmp.ge.s32.totalorder %s3119_s23, 2  ;;  %s2498_s15 = sand.u32 1, %s3099_s18  }
0x17fb   : > { %s2499_s16 = scalar_lea.sflag [#allocation6], %s2498_s15 }
0x17fc   : > { %p2747_p11 = pnand %p2752_p10, %p3208_p8 }
0x17fe   : > { %p2748_p12 = pneg %p2747_p11 }
0x1800   : > { %3094 = dma.done.wait (%p2748_p12), %s2499_s16, 256  }
0x1801   : > { %3096 = vsyncadd (%p2748_p12), %s2499_s16, 4294967040  ;;  %s20_s23 = sadd.s32 1, %s3119_s23   ;;  %s3991_s18 = smov %s3103_s19 }
0x1802   : > { %p17_p13 = scmp.ge.s32.totalorder %s20_s23, 4   ;;  %s3992_s19 = smov %s3107_s20 }
0x1803   : > { %s3993_s20 = smov %s3214_s6  ;;  %s3994_s21 = smov %s3115_s22 }
0x1804   : > { %s3995_s22 = smov %s3997_s26  ;;  %19 = sbr.rel (!%p17_p13) target bundleno = 5 (0x5), region = 144 }
0x1809   :  { %2505 = vsyncpa [#allocation5], 1 }
0x180a   :  { %2507 = vsyncpa [#allocation5 + $0x1], 1 }
0x180b   :  { %2508 = vsyncpa [#allocation6], 1 }
0x180c   :  { %2510 = vsyncpa [#allocation6 + $0x1], 1 }

// kernel: convlstm_forward.7
= control target key start
LH: loop header
LB: loop body
LE: loop exit
PB: predicated region body
PF: predicated region fallthrough
CT: control target
= control target key end

     0   :  { %11 = vsyncpa [#allocation7], 0  ;;  %s4034_s0 = inlined_call_operand.vmem [shape: f32[8,2,16,128], index: 0, kind: input, shape index: {}]   ;;  %s4035_s1 = inlined_call_operand.vmem [shape: bf16[96,128], index: 1, kind: input, shape index: {}]   ;;  %s4036_s2 = inlined_call_operand.vmem [shape: f32[16,64], index: 2, kind: input, shape index: {}]   ;;  %s4037_s3 = inlined_call_operand.vmem [shape: f32[16,32], index: 3, kind: input, shape index: {}]   ;;  %s4038_s4 = inlined_call_operand.vmem [shape: bf16[8,2,16,32], index: 4, kind: output, shape index: {0}]   ;;  %s4039_s5 = inlined_call_operand.hbm [shape: f32[2,16,32], index: 5, kind: output, shape index: {1}]  }
   0x1   :  { %13 = vsyncpa [#allocation7 + $0x1], 0  ;;  %s3214_s18 = smov 0   ;;  %s3216_s19 = smov 0  }
   0x2   :  { %s3218_s20 = smov 0   ;;  %s3220_s21 = smov 0  }
   0x3   :  { %s3222_s22 = smov 0   ;;  %s3224_s23 = smov 0  }
   0x4 LB: > { %s2679_s24 = sadd.s32 4294967295, %s3175_s23   ;;  %s2680_s25 = sadd.s32 4294967294, %s3175_s23   ;;  %s3175_s23 = sphi %s3224_s23, %s19_s23   ;;  %s3171_s22 = sphi %s3222_s22, %s4057_s22   ;;  %s3167_s21 = sphi %s3220_s21, %s4056_s21   ;;  %s3163_s20 = sphi %s3218_s20, %s4055_s20   ;;  %s3159_s19 = sphi %s3216_s19, %s4054_s19   ;;  %s3155_s18 = sphi %s3214_s18, %s4053_s18  }
   0x5   : > { %s31_s26 = sadd.s32 1, %s3171_s22  ;;  %s40_s27 = sadd.s32 1, %s3163_s20 }
   0x6   : > { %p33_p0 = scmp.ge.s32.totalorder %s31_s26, 2  ;;  %p47_p1 = scmp.ne.s32.totalorder %s3163_s20, %s3159_s19 }
   0x7   : > { %p48_p2 = scmp.eq.s32.totalorder %s3175_s23, 0  ;;  %p142_p3 = scmp.eq.s32.totalorder %s2679_s24, 1 }
   0x8   : > { %s4059_s26 = smov (%p33_p0, %s31_s26), 0  ;;  %p173_p6 = scmp.ne.s32.totalorder %s3159_s19, %s3155_s18 }
   0x9   : > { %p49_p4 = por %p48_p2, %p47_p1  ;;  %p3253_p5 = por %p142_p3, %p47_p1 }
   0xa   : > { %s36_s29 = ssub.s32 %s3171_s22, %s4059_s26  ;;  %p174_p8 = scmp.eq.s32.totalorder %s2680_s25, 1 }
   0xb   : > { %p38_p7 = scmp.eq.s32.totalorder %s36_s29, 0  ;;  %p2682_p10 = scmp.ge.s32.totalorder %s3175_s23, 2 }
   0xc   : > { %p3264_p9 = por %p174_p8, %p173_p6 }
   0xd   : > { %s3262_s30 = scalar_select %p38_p7, %s3163_s20, %s40_s27  }
   0xe   : > { %199 = sbr.rel (%p2682_p10) target bundleno = 39 (0x27), region = 28 }
  0x13   : > { %202 = sbr.rel (!%p49_p4) target bundleno = 39 (0x27), region = 32  ;;  %s204_s7 = sand.u32 (%p49_p4), 1, %s3163_s20  }
  0x14   : > { %s2822_s8 = sshll.u32 (%p49_p4), %s3171_s22, 4  ;;  %s2683_s9 = sshll.u32 (%p49_p4), %s204_s7, 7 }
  0x15   : > { %s3276_s12 = scalar_lea.vmem (%p49_p4), %s4034_s0, %s2822_s8  ;;  %s206_s13 = scalar_lea.vmem (%p49_p4), [#allocation4], %s2683_s9 }
  0x16   : > { %v271_v0 = vld [vmem:[%s3276_s12] sm:$0xff] (%p49_p4)  ;;  %v273_v1 = vld [vmem:[%s3276_s12 + $0x8] sm:$0xff] (%p49_p4) }
  0x17   : > { %v275_v2 = vld [vmem:[%s3276_s12 + $0x20] sm:$0xff] (%p49_p4)  ;;  %272 = vst [vmem:[%s206_s13] sm:$0xff] (%p49_p4), %v271_v0  ;;  %v277_v3 = vld [vmem:[%s3276_s12 + $0x28] sm:$0xff] (%p49_p4) }
  0x18   : > { %274 = vst [vmem:[%s206_s13 + $0x8] sm:$0xff] %v273_v1  ;;  %v279_v4 = vld [vmem:[%s3276_s12 + $0x40] sm:$0xff]  ;;  %v281_v5 = vld [vmem:[%s3276_s12 + $0x48] sm:$0xff] }
  0x19   : > { %276 = vst [vmem:[%s206_s13 + $0x10] sm:$0xff] %v275_v2  ;;  %v283_v6 = vld [vmem:[%s3276_s12 + $0x60] sm:$0xff]  ;;  %v285_v7 = vld [vmem:[%s3276_s12 + $0x68] sm:$0xff] }
  0x1a   : > { %278 = vst [vmem:[%s206_s13 + $0x18] sm:$0xff] %v277_v3  ;;  %v287_v8 = vld [vmem:[%s3276_s12 + $0x80] sm:$0xff]  ;;  %v289_v9 = vld [vmem:[%s3276_s12 + $0x88] sm:$0xff] }
  0x1b   : > { %280 = vst [vmem:[%s206_s13 + $0x20] sm:$0xff] %v279_v4  ;;  %v291_v10 = vld [vmem:[%s3276_s12 + $0xa0] sm:$0xff]  ;;  %v293_v11 = vld [vmem:[%s3276_s12 + $0xa8] sm:$0xff] }
  0x1c   : > { %282 = vst [vmem:[%s206_s13 + $0x28] sm:$0xff] %v281_v5  ;;  %v295_v12 = vld [vmem:[%s3276_s12 + $0xc0] sm:$0xff]  ;;  %v297_v13 = vld [vmem:[%s3276_s12 + $0xc8] sm:$0xff] }
  0x1d   : > { %284 = vst [vmem:[%s206_s13 + $0x30] sm:$0xff] %v283_v6  ;;  %v299_v14 = vld [vmem:[%s3276_s12 + $0xe0] sm:$0xff]  ;;  %v301_v15 = vld [vmem:[%s3276_s12 + $0xe8] sm:$0xff] }
  0x1e   : > { %286 = vst [vmem:[%s206_s13 + $0x38] sm:$0xff] %v285_v7 }
  0x1f   : > { %288 = vst [vmem:[%s206_s13 + $0x40] sm:$0xff] %v287_v8 }
  0x20   : > { %290 = vst [vmem:[%s206_s13 + $0x48] sm:$0xff] %v289_v9 }
  0x21   : > { %292 = vst [vmem:[%s206_s13 + $0x50] sm:$0xff] %v291_v10 }
  0x22   : > { %294 = vst [vmem:[%s206_s13 + $0x58] sm:$0xff] %v293_v11 }
  0x23   : > { %296 = vst [vmem:[%s206_s13 + $0x60] sm:$0xff] %v295_v12 }
  0x24   : > { %298 = vst [vmem:[%s206_s13 + $0x68] sm:$0xff] %v297_v13 }
  0x25   : > { %300 = vst [vmem:[%s206_s13 + $0x70] sm:$0xff] %v299_v14 }
  0x26   : > { %302 = vst [vmem:[%s206_s13 + $0x78] sm:$0xff] %v301_v15 }
  0x27 PF: > { %p2686_p11 = scmp.ge.s32.totalorder %s3175_s23, 1  ;;  %p307_p12 = scmp.lt.s32.totalorder %s3175_s23, 3 }
  0x29   : > { %p308_p13 = pnand %p2686_p11, %p307_p12 }
  0x2a   : > { %s3178_s7 = smov (!%p308_p13), 32   ;;  %s3179_s8 = smov (!%p308_p13), 64  }
  0x2b   : > { %311 = sbr.rel (%p308_p13) target bundleno = 6162 (0x1812), region = 70  ;;  %s3335_s13 = sand.u32 (!%p308_p13), 1, %s3159_s19  }
  0x2c   : > { %s2687_s14 = sshll.u32 (!%p308_p13), %s3335_s13, 7  ;;  %s3181_s11 = smov (!%p308_p13), 96  }
  0x2d   : > { %s3338_s15 = scalar_lea.vmem (!%p308_p13), [#allocation4], %s2687_s14  ;;  %s2689_s9 = sshll.u32 (!%p308_p13), %s3335_s13, 4 }
  0x2e   : > { %s3932_s10 = scalar_lea.vmem (!%p308_p13), [#allocation6], %s2689_s9 }
  0x30   : > { %vm352_vm0 = vcmask 257024   ;;  %vm355_vm1 = vcmask 253952   ;;  %v3177_v16 = vmov 0   ;;  %v2828_v17 = vld [vmem:[%s4035_s1 + $0x28] sm:$0xff]  ;;  %v2827_v18 = vld [vmem:[%s4035_s1 + $0x20] sm:$0xff]  ;;  %v2826_v19 = vld [vmem:[%s4035_s1 + $0x18] sm:$0xff] }
  0x31   : > { %353 = vst.msk [vmem:[#allocation2] sm:$0xf] %vm352_vm0, %v3177_v16  ;;  %457 = vmatpush.bf16.msra.mxu0 %v2828_v17  ;;  %723 = vmatpush.bf16.msra.mxu1 %v2828_v17  ;;  %v2825_v25 = vld [vmem:[%s4035_s1 + $0x10] sm:$0xff]  ;;  %vm389_vm2 = vsmask.f32 7424  ;;  %vm404_vm3 = vcmask 1046528  }
  0x32   : > { %354 = vst.msk [vmem:[#allocation2 + $0x4] sm:$0xf] %vm352_vm0, %v3177_v16  ;;  %973 = vmatpush.bf16.msra.mxu2 %v2828_v17  ;;  %1223 = vmatpush.bf16.msra.mxu3 %v2828_v17  ;;  %v2824_v35 = vld [vmem:[%s4035_s1 + $0x8] sm:$0xff]  ;;  %v2823_v36 = vld [vmem:[%s4035_s1] sm:$0xff]  ;;  %vm357_vm4 = vcmask 261120   ;;  %v3180_v37 = vmov 0.0  }
  0x33   : > { %356 = vst.msk [vmem:[#allocation2 + $0x8] sm:$0x1] %vm355_vm1, %v3177_v16  ;;  %vm413_vm5 = vcmask 523264   ;;  %vm4040_vm6 = vcmask 785408   ;;  %v376_v44 = vld [vmem:[%s3338_s15] sm:$0xff]  ;;  %v377_v47 = vld [vmem:[%s3338_s15 + $0x8] sm:$0xff] }
  0x34   : > { %358 = vst.msk [vmem:[#allocation3] sm:$0xff] %vm357_vm4, %v3180_v37  ;;  %v3353_v53 = vld [vmem:[%s4036_s2] sm:$0xff]  ;;  %v3361_v58 = vld [vmem:[%s4036_s2 + $0x8] sm:$0xff] }
  0x35   : > { %458 = vmatpush.bf16.msra.mxu0 %v2827_v18  ;;  %724 = vmatpush.bf16.msra.mxu1 %v2827_v18  ;;  %359 = vst.msk [vmem:[#allocation3 + $0x8] sm:$0xff] %vm357_vm4, %v3180_v37  ;;  %v374_v5 = vld [vmem:[%s4037_s3] sm:$0xff] }
  0x36   : > { %974 = vmatpush.bf16.msra.mxu2 %v2827_v18  ;;  %1224 = vmatpush.bf16.msra.mxu3 %v2827_v18 }
  0x39   : > { %v3308_v20 = vld [vmem:[#allocation2] sm:$0xff]  ;;  %459 = vmatpush.bf16.msra.mxu0 %v2826_v19  ;;  %725 = vmatpush.bf16.msra.mxu1 %v2826_v19 }
  0x3a   : > { %v380_v21 = vld [vmem:[#allocation2 + $0x8] sm:$0x1]  ;;  %v391_v23 = vshrl.u32 %v3308_v20, 16  ;;  %v393_v24 = vshll.u32 %v3308_v20, 16  ;;  %975 = vmatpush.bf16.msra.mxu2 %v2826_v19  ;;  %1225 = vmatpush.bf16.msra.mxu3 %v2826_v19  ;;  %v405_v32 = vrot.slane %v3308_v20, 1 }
  0x3b   : > { %v387_v22 = vunpack.c.l.b16 %v380_v21  ;;  %v471_v38 = vld [vmem:[#allocation3] sm:$0xff] }
  0x3c   : > { %v395_v27 = vrot.slane %v393_v24, 1  ;;  %475 = vrot.lane.b32.xlu1 %v471_v38, %s3178_s7  ;;  %v472_v39 = vld [vmem:[#allocation3 + $0x8] sm:$0xff] }
  0x3d   : > { %v388_v26 = vpack.c.b16 %v387_v22, %v387_v22  ;;  %460 = vmatpush.bf16.msra.mxu0 %v2825_v25  ;;  %726 = vmatpush.bf16.msra.mxu1 %v2825_v25 }
  0x3e   : > { %v396_v28 = vor.u32 %v395_v27, %v391_v23  ;;  %976 = vmatpush.bf16.msra.mxu2 %v2825_v25  ;;  %1226 = vmatpush.bf16.msra.mxu3 %v2825_v25 }
  0x3f   : > { %v398_v29 = vshll.u32 %v388_v26, 16  ;;  %v406_v33 = vrot.slane %v388_v26, 1 }
  0x41   : > { %v400_v30 = vrot.slane %v398_v29, 1  ;;  %v407_v34 = vsel %vm404_vm3, %v405_v32, %v406_v33  ;;  %461 = vmatpush.bf16.msra.mxu0 %v2824_v35  ;;  %727 = vmatpush.bf16.msra.mxu1 %v2824_v35 }
  0x42   : > { %977 = vmatpush.bf16.msra.mxu2 %v2824_v35  ;;  %1227 = vmatpush.bf16.msra.mxu3 %v2824_v35 }
  0x43   : > { %v401_v31 = vsel %vm389_vm2, %v396_v28, %v400_v30  ;;  %v375_v28 = vld [vmem:[%s4037_s3 + $0x8] sm:$0xff] }
  0x44   : > { %402 = vrot.lane.b32.xlu0 %v401_v31, %s3178_s7  ;;  %477 = vrot.lane.b32.xlu1 %v472_v39, %s3178_s7 }
  0x45   : > { %462 = vmatpush.bf16.msra.mxu0 %v2823_v36  ;;  %728 = vmatpush.bf16.msra.mxu1 %v2823_v36 }
  0x46   : > { %978 = vmatpush.bf16.msra.mxu2 %v2823_v36  ;;  %1228 = vmatpush.bf16.msra.mxu3 %v2823_v36 }
  0x49   : > { %1473 = vmatpush.bf16.msrb.mxu0 %v2828_v17  ;;  %1723 = vmatpush.bf16.msrb.mxu1 %v2828_v17 }
  0x4a   : > { %1973 = vmatpush.bf16.msrb.mxu2 %v2828_v17  ;;  %2223 = vmatpush.bf16.msrb.mxu3 %v2828_v17 }
  0x4c   : > { %408 = vrot.lane.b32.xlu0 %v407_v34, %s3179_s8 }
  0x4d   : > { %1474 = vmatpush.bf16.msrb.mxu0 %v2827_v18  ;;  %1724 = vmatpush.bf16.msrb.mxu1 %v2827_v18 }
  0x4e   : > { %1974 = vmatpush.bf16.msrb.mxu2 %v2827_v18  ;;  %2224 = vmatpush.bf16.msrb.mxu3 %v2827_v18 }
  0x51   : > { %1475 = vmatpush.bf16.msrb.mxu0 %v2826_v19  ;;  %1725 = vmatpush.bf16.msrb.mxu1 %v2826_v19 }
  0x52   : > { %1975 = vmatpush.bf16.msrb.mxu2 %v2826_v19  ;;  %2225 = vmatpush.bf16.msrb.mxu3 %v2826_v19 }
  0x55   : > { %1476 = vmatpush.bf16.msrb.mxu0 %v2825_v25  ;;  %1726 = vmatpush.bf16.msrb.mxu1 %v2825_v25 }
  0x56   : > { %1976 = vmatpush.bf16.msrb.mxu2 %v2825_v25  ;;  %2226 = vmatpush.bf16.msrb.mxu3 %v2825_v25 }
  0x59   : > { %1477 = vmatpush.bf16.msrb.mxu0 %v2824_v35  ;;  %1727 = vmatpush.bf16.msrb.mxu1 %v2824_v35 }
  0x5a   : > { %1977 = vmatpush.bf16.msrb.mxu2 %v2824_v35  ;;  %2227 = vmatpush.bf16.msrb.mxu3 %v2824_v35 }
  0x5d   : > { %1478 = vmatpush.bf16.msrb.mxu0 %v2823_v36  ;;  %1728 = vmatpush.bf16.msrb.mxu1 %v2823_v36 }
  0x5e   : > { %1978 = vmatpush.bf16.msrb.mxu2 %v2823_v36  ;;  %2228 = vmatpush.bf16.msrb.mxu3 %v2823_v36 }
  0xae   : > { %v476_v52 = vpop.permute.xlu1 %475 }
  0xaf   : > { %v481_v54 = vsel %vm357_vm4, %v471_v38, %v476_v52 }
  0xb0   : > { %v483_v55 = vmul.f32 %v481_v54, %v3353_v53 }
  0xb6   : > { %v403_v40 = vpop.permute.xlu0 %402  ;;  %v478_v56 = vpop.permute.xlu1 %477 }
  0xb7   : > { %v412_v41 = vsel %vm357_vm4, %v3308_v20, %v403_v40  ;;  %v482_v59 = vsel %vm357_vm4, %v472_v39, %v478_v56 }
  0xb8   : > { %v484_v61 = vmul.f32 %v482_v59, %v3361_v58 }
  0xbe   : > { %v409_v42 = vpop.permute.xlu0 %408 }
  0xbf   : > { %v415_v43 = vsel %vm413_vm5, %v412_v41, %v409_v42 }
  0xc0   : > { %2718 = vmatmul.msk.bf16.vlgmr.msra.gmra.mxu0 %vm4040_vm6, %v415_v43 }
 0x13d   : > { %v464_v45 = vpop.f32.mrf.mxu0 }
 0x13e   : > { %v3341_v46 = vadd.f32 %v464_v45, %v376_v44 }
 0x140   : > { %2901 = vtanh.f32 %v3341_v46  ;;  %v485_v57 = vadd.f32 %v483_v55, %v3341_v46 }
 0x142   : > { %v2719_v60 = vmul.f32 -1.442695, %v485_v57 }
 0x145   : > { %v466_v48 = vpop.f32.mrf.mxu0 }
 0x146   : > { %v2902_v49 = vpop.eup %2901  ;;  %v3345_v50 = vadd.f32 %v466_v48, %v377_v47 }
 0x147   : > { %531 = vrot.lane.b32.xlu2 %v2902_v49, %s3179_s8 }
 0x148   : > { %2903 = vtanh.f32 %v3345_v50  ;;  %v486_v62 = vadd.f32 %v484_v61, %v3345_v50 }
 0x149   : > { %2905 = vpow2.f32 %v2719_v60 }
 0x14a   : > { %v2720_v63 = vmul.f32 -1.442695, %v486_v62 }
 0x14c   : > { %2907 = vpow2.f32 %v2720_v63 }
 0x14e   : > { %v2904_v51 = vpop.eup %2903 }
 0x14f   : > { %533 = vrot.lane.b32.xlu2 %v2904_v51, %s3179_s8  ;;  %v2906_v0 = vpop.eup %2905 }
 0x150   : > { %v493_v1 = vadd.f32 1.0, %v2906_v0 }
 0x152   : > { %2909 = vrcp.f32 %v493_v1  ;;  %v2908_v2 = vpop.eup %2907  ;;  %v506_v13 = vand.u32 2147483648, %v493_v1  ;;  %vm500_vm8 = vweird.f32 %v493_v1  ;;  %v504_v14 = vand.u32 2147483647, %v493_v1 }
 0x153   : > { %v494_v3 = vadd.f32 1.0, %v2908_v2 }
 0x154   : > { %v507_v17 = vor.u32 1.1754944e-38, %v506_v13  ;;  %vm505_vm10 = vcmp.eq.f32.partialorder %v504_v14, 8.507059e+37 }
 0x155   : > { %2911 = vrcp.f32 %v494_v3  ;;  %v521_v22 = vand.u32 2147483648, %v494_v3  ;;  %vm515_vm12 = vweird.f32 %v494_v3  ;;  %v519_v23 = vand.u32 2147483647, %v494_v3 }
 0x157   : > { %551 = vrot.lane.b32.xlu2 %v374_v5, %s3178_s7  ;;  %v522_v25 = vor.u32 1.1754944e-38, %v521_v22  ;;  %vm520_vm14 = vcmp.eq.f32.partialorder %v519_v23, 8.507059e+37 }
 0x158   : > { %v2910_v4 = vpop.eup %2909 }
 0x159   : > { %v496_v6 = vmul.f32 %v2910_v4, %v493_v1  ;;  %vm501_vm7 = vweird.f32 %v2910_v4 }
 0x15a   : > { %vm502_vm9 = vmor %vm500_vm8, %vm501_vm7 }
 0x15b   : > { %v497_v7 = vsub.f32 1.0, %v496_v6  ;;  %v2912_v8 = vpop.eup %2911 }
 0x15c   : > { %v511_v10 = vmul.f32 %v2912_v8, %v494_v3  ;;  %vm516_vm11 = vweird.f32 %v2912_v8 }
 0x15d   : > { %v498_v9 = vmul.f32 %v2910_v4, %v497_v7  ;;  %vm517_vm13 = vmor %vm515_vm12, %vm516_vm11 }
 0x15e   : > { %v512_v12 = vsub.f32 1.0, %v511_v10 }
 0x15f   : > { %v499_v11 = vadd.f32 %v2910_v4, %v498_v9 }
 0x160   : > { %v513_v16 = vmul.f32 %v2912_v8, %v512_v12 }
 0x161   : > { %v503_v15 = vsel %vm502_vm9, %v2910_v4, %v499_v11 }
 0x162   : > { %v508_v19 = vsel %vm505_vm10, %v507_v17, %v503_v15  ;;  %v514_v21 = vadd.f32 %v2912_v8, %v513_v16 }
 0x163   : > { %v525_v30 = vmul.f32 %v508_v19, %v476_v52 }
 0x164   : > { %v518_v24 = vsel %vm517_vm13, %v2912_v8, %v514_v21 }
 0x165   : > { %v523_v26 = vsel %vm520_vm14, %v522_v25, %v518_v24  ;;  %vm621_vm14 = vsmask.f32 256 }
 0x166   : > { %v526_v35 = vmul.f32 %v523_v26, %v478_v56 }
 0x1a1   : > { %v532_v18 = vpop.permute.xlu2 %531 }
 0x1a2   : > { %v537_v20 = vmul.f32 %v532_v18, %v508_v19 }
 0x1a4   : > { %541 = vrot.lane.b32.xlu0 %v537_v20, %s3178_s7 }
 0x1a9   : > { %v534_v27 = vpop.permute.xlu2 %533 }
 0x1aa   : > { %v538_v29 = vmul.f32 %v534_v27, %v523_v26 }
 0x1ac   : > { %543 = vrot.lane.b32.xlu1 %v538_v29, %s3178_s7  ;;  %553 = vrot.lane.b32.xlu0 %v375_v28, %s3178_s7  ;;  %v378_v28 = vld [vmem:[#allocation2] sm:$0xf] }
 0x1b1   : > { %v3376_v32 = vpop.permute.xlu2 %551 }
 0x216   : > { %v542_v31 = vpop.permute.xlu0 %541 }
 0x217   : > { %v3378_v33 = vadd.f32 %v542_v31, %v525_v30 }
 0x219   : > { %2913 = vtanh.f32 %v3378_v33  ;;  %v557_v34 = vmul.f32 %v3376_v32, %v3378_v33 }
 0x21b   : > { %561 = vrot.lane.b32.xlu1 %v557_v34, %s3179_s8 }
 0x21e   : > { %v544_v36 = vpop.permute.xlu1 %543  ;;  %v3384_v37 = vpop.permute.xlu0 %553 }
 0x21f   : > { %v2914_v38 = vpop.eup %2913  ;;  %v3386_v39 = vadd.f32 %v544_v36, %v526_v35  ;;  %v659_v35 = vld [vmem:[#allocation2 + $0x8] sm:$0x1] }
 0x220   : > { %611 = vrot.lane.b32.xlu0 %v2914_v38, %s3179_s8 }
 0x221   : > { %2915 = vtanh.f32 %v3386_v39  ;;  %v558_v40 = vmul.f32 %v3384_v37, %v3386_v39 }
 0x223   : > { %563 = vrot.lane.b32.xlu2 %v558_v40, %s3179_s8 }
 0x227   : > { %v2916_v41 = vpop.eup %2915 }
 0x228   : > { %613 = vrot.lane.b32.xlu1 %v2916_v41, %s3179_s8 }
 0x27d   : > { %v564_v42 = vpop.permute.xlu2 %563 }
 0x27e   : > { %v568_v43 = vadd.f32 %v564_v42, %v3345_v50 }
 0x280   : > { %v2722_v44 = vmul.f32 -1.442695, %v568_v43 }
 0x282   : > { %2917 = vpow2.f32 %v2722_v44 }
 0x288   : > { %v2918_v45 = vpop.eup %2917 }
 0x289   : > { %v576_v47 = vadd.f32 1.0, %v2918_v45 }
 0x28b   : > { %2919 = vrcp.f32 %v576_v47  ;;  %v603_v57 = vand.u32 2147483648, %v576_v47  ;;  %v601_v59 = vand.u32 2147483647, %v576_v47  ;;  %vm597_vm7 = vweird.f32 %v576_v47 }
 0x28d   : > { %v562_v48 = vpop.permute.xlu1 %561  ;;  %v604_v63 = vor.u32 1.1754944e-38, %v603_v57  ;;  %vm602_vm9 = vcmp.eq.f32.partialorder %v601_v59, 8.507059e+37 }
 0x28e   : > { %v567_v49 = vadd.f32 %v562_v48, %v3341_v46 }
 0x290   : > { %v2721_v51 = vmul.f32 -1.442695, %v567_v49 }
 0x291   : > { %v2920_v52 = vpop.eup %2919 }
 0x292   : > { %2921 = vpow2.f32 %v2721_v51  ;;  %v593_v54 = vmul.f32 %v2920_v52, %v576_v47  ;;  %vm598_vm15 = vweird.f32 %v2920_v52  ;;  %v612_v15 = vpop.permute.xlu0 %611 }
 0x293   : > { %vm599_vm8 = vmor %vm597_vm7, %vm598_vm15  ;;  %vm622_vm15 = vsmask.f32 4368 }
 0x294   : > { %v594_v55 = vsub.f32 1.0, %v593_v54  ;;  %vm3406_vm7 = vmor %vm621_vm14, %vm622_vm15 }
 0x296   : > { %v595_v56 = vmul.f32 %v2920_v52, %v594_v55 }
 0x298   : > { %v2922_v60 = vpop.eup %2921  ;;  %v596_v61 = vadd.f32 %v2920_v52, %v595_v56 }
 0x299   : > { %v575_v50 = vadd.f32 1.0, %v2922_v60 }
 0x29a   : > { %v600_v62 = vsel %vm599_vm8, %v2920_v52, %v596_v61  ;;  %v614_v0 = vpop.permute.xlu1 %613  ;;  %vm651_vm8 = vsmask.f32 7938 }
 0x29b   : > { %2923 = vrcp.f32 %v575_v50  ;;  %v605_v46 = vsel %vm602_vm9, %v604_v63, %v600_v62  ;;  %v588_v8 = vand.u32 2147483648, %v575_v50  ;;  %v586_v11 = vand.u32 2147483647, %v575_v50  ;;  %vm3417_vm9 = vmand %vm352_vm0, %vm651_vm8 }
 0x29c   : > { %v618_v1 = vmul.f32 %v614_v0, %v605_v46  ;;  %vm582_vm11 = vweird.f32 %v575_v50  ;;  %v2723_v46 = vld [vmem:[%s3338_s15 + $0x10] sm:$0xff] }
 0x29d   : > { %v589_v13 = vor.u32 1.1754944e-38, %v588_v8  ;;  %vm587_vm13 = vcmp.eq.f32.partialorder %v586_v11, 8.507059e+37 }
 0x29e   : > { %v3396_v2 = vpack.c.bf16 %v618_v1, %v618_v1 }
 0x2a0   : > { %v633_v4 = vshrl.u32 %v3396_v2, 16  ;;  %v636_v21 = vshll.u32 %v3396_v2, 16 }
 0x2a1   : > { %v2924_v3 = vpop.eup %2923 }
 0x2a2   : > { %v578_v5 = vmul.f32 %v2924_v3, %v575_v50  ;;  %v635_v6 = vrot.slane %v633_v4, 7  ;;  %vm583_vm10 = vweird.f32 %v2924_v3 }
 0x2a3   : > { %vm584_vm12 = vmor %vm582_vm11, %vm583_vm10 }
 0x2a4   : > { %v579_v7 = vsub.f32 1.0, %v578_v5  ;;  %v640_v9 = vrot.slane %v635_v6, 4  ;;  %v638_v26 = vor.u32 %v636_v21, %v635_v6  ;;  %vm3425_vm10 = vmand %vm355_vm1, %vm621_vm14 }
 0x2a6   : > { %v580_v10 = vmul.f32 %v2924_v3, %v579_v7  ;;  %645 = vrot.lane.b32.xlu0 %v640_v9, %s3178_s7 }
 0x2a8   : > { %v581_v12 = vadd.f32 %v2924_v3, %v580_v10 }
 0x2aa   : > { %v585_v14 = vsel %vm584_vm12, %v2924_v3, %v581_v12 }
 0x2ab   : > { %v590_v16 = vsel %vm587_vm13, %v589_v13, %v585_v14 }
 0x2ac   : > { %v617_v17 = vmul.f32 %v612_v15, %v590_v16 }
 0x2ae   : > { %v3400_v18 = vpack.c.bf16 %v617_v17, %v617_v17 }
 0x2b0   : > { %v625_v19 = vshrl.u32 %v3400_v18, 16  ;;  %v628_v20 = vshll.u32 %v3400_v18, 16 }
 0x2b2   : > { %v627_v22 = vrot.slane %v625_v19, 7 }
 0x2b4   : > { %v630_v24 = vor.u32 %v628_v20, %v627_v22  ;;  %v631_v25 = vrot.slane %v627_v22, 4 }
 0x2b6   : > { %641 = vrot.lane.b32.xlu2 %v630_v24, %s3178_s7  ;;  %v639_v27 = vsel %vm3406_vm7, %v631_v25, %v638_v26 }
 0x2b7   : > { %643 = vrot.lane.b32.xlu1 %v639_v27, %s3178_s7 }
 0x2bf   : > { %664 = vrot.lane.b32.xlu1 %v3378_v33, %s3181_s11 }
 0x310   : > { %v642_v30 = vpop.permute.xlu2 %641 }
 0x311   : > { %v653_v31 = vsel %vm3417_vm9, %v642_v30, %v378_v28 }
 0x312   : > { %654 = vst [vmem:[#allocation2] sm:$0xf] %v653_v31 }
 0x318   : > { %v646_v33 = vpop.permute.xlu0 %645 }
 0x319   : > { %v660_v36 = vsel %vm3425_vm10, %v646_v33, %v659_v35 }
 0x31a   : > { %661 = vst [vmem:[#allocation2 + $0x8] sm:$0x1] %v660_v36 }
 0x321   : > { %v687_v38 = vld [vmem:[#allocation2 + $0x8] sm:$0x1] }
 0x322   : > { %v694_v41 = vunpack.c.l.b16 %v687_v38 }
 0x324   : > { %v695_v42 = vpack.c.b16 %v694_v41, %v694_v41 }
 0x326   : > { %v711_v47 = vrot.slane %v695_v42, 1  ;;  %v704_v49 = vshll.u32 %v695_v42, 16 }
 0x328   : > { %v706_v56 = vrot.slane %v704_v49, 1 }
 0x329   : > { %v644_v40 = vpop.permute.xlu1 %643 }
 0x32a   : > { %656 = vst.msk [vmem:[#allocation2 + $0x4] sm:$0xf] %vm352_vm0, %v644_v40 }
 0x331   : > { %v665_v43 = vpop.permute.xlu1 %664  ;;  %v2830_v44 = vld [vmem:[#allocation2] sm:$0xff] }
 0x332   : > { %670 = vst.msk [vmem:[#allocation3] sm:$0xff] %vm357_vm4, %v665_v43  ;;  %v710_v45 = vrot.slane %v2830_v44, 1  ;;  %v699_v48 = vshll.u32 %v2830_v44, 16  ;;  %v697_v52 = vshrl.u32 %v2830_v44, 16 }
 0x334   : > { %v712_v51 = vsel %vm404_vm3, %v710_v45, %v711_v47  ;;  %v701_v54 = vrot.slane %v699_v48, 1 }
 0x335   : > { %713 = vrot.lane.b32.xlu0 %v712_v51, %s3179_s8 }
 0x336   : > { %v702_v55 = vor.u32 %v701_v54, %v697_v52 }
 0x338   : > { %v707_v57 = vsel %vm389_vm2, %v702_v55, %v706_v56 }
 0x339   : > { %708 = vrot.lane.b32.xlu2 %v707_v57, %s3178_s7  ;;  %v737_v59 = vld [vmem:[#allocation3] sm:$0xff] }
 0x33d   : > { %741 = vrot.lane.b32.xlu0 %v737_v59, %s3178_s7 }
 0x341   : > { %666 = vrot.lane.b32.xlu2 %v3386_v39, %s3181_s11  ;;  %v2724_v39 = vld [vmem:[%s3338_s15 + $0x18] sm:$0xff] }
 0x393   : > { %v709_v60 = vpop.permute.xlu2 %708 }
 0x394   : > { %v716_v62 = vsel %vm357_vm4, %v2830_v44, %v709_v60 }
 0x39b   : > { %v667_v61 = vpop.permute.xlu2 %666 }
 0x39c   : > { %671 = vst.msk [vmem:[#allocation3 + $0x8] sm:$0xff] %vm357_vm4, %v667_v61 }
 0x3a3   : > { %v738_v50 = vld [vmem:[#allocation3 + $0x8] sm:$0xff] }
 0x3a4   : > { %743 = vrot.lane.b32.xlu1 %v738_v50, %s3178_s7 }
 0x3a7   : > { %v714_v63 = vpop.permute.xlu0 %713 }
 0x3a8   : > { %v718_v0 = vsel %vm413_vm5, %v716_v62, %v714_v63 }
 0x3a9   : > { %2729 = vmatmul.msk.bf16.vlgmr.msra.gmra.mxu1 %vm4040_vm6, %v718_v0 }
 0x3af   : > { %v742_v8 = vpop.permute.xlu0 %741 }
 0x3b0   : > { %v747_v9 = vsel %vm357_vm4, %v737_v59, %v742_v8 }
 0x3b1   : > { %v749_v10 = vmul.f32 %v747_v9, %v3353_v53 }
 0x416   : > { %v744_v15 = vpop.permute.xlu1 %743 }
 0x417   : > { %v748_v17 = vsel %vm357_vm4, %v738_v50, %v744_v15 }
 0x418   : > { %v750_v19 = vmul.f32 %v748_v17, %v3361_v58 }
 0x426   : > { %v730_v1 = vpop.f32.mrf.mxu1 }
 0x427   : > { %v3446_v3 = vadd.f32 %v2723_v46, %v730_v1 }
 0x429   : > { %2925 = vtanh.f32 %v3446_v3  ;;  %v751_v11 = vadd.f32 %v749_v10, %v3446_v3 }
 0x42b   : > { %v2730_v12 = vmul.f32 -1.442695, %v751_v11 }
 0x42e   : > { %v732_v4 = vpop.f32.mrf.mxu1 }
 0x42f   : > { %v2926_v5 = vpop.eup %2925  ;;  %v3450_v6 = vadd.f32 %v2724_v39, %v732_v4 }
 0x430   : > { %797 = vrot.lane.b32.xlu2 %v2926_v5, %s3179_s8 }
 0x431   : > { %2927 = vtanh.f32 %v3450_v6  ;;  %v752_v21 = vadd.f32 %v750_v19, %v3450_v6 }
 0x432   : > { %2929 = vpow2.f32 %v2730_v12 }
 0x433   : > { %v2731_v24 = vmul.f32 -1.442695, %v752_v21 }
 0x437   : > { %v2928_v7 = vpop.eup %2927 }
 0x438   : > { %799 = vrot.lane.b32.xlu0 %v2928_v7, %s3179_s8  ;;  %v2930_v13 = vpop.eup %2929 }
 0x439   : > { %v759_v14 = vadd.f32 1.0, %v2930_v13 }
 0x43b   : > { %2931 = vrcp.f32 %v759_v14  ;;  %v772_v27 = vand.u32 2147483648, %v759_v14  ;;  %vm766_vm11 = vweird.f32 %v759_v14  ;;  %v770_v28 = vand.u32 2147483647, %v759_v14 }
 0x43c   : > { %2933 = vpow2.f32 %v2731_v24 }
 0x43d   : > { %v773_v35 = vor.u32 1.1754944e-38, %v772_v27  ;;  %vm771_vm13 = vcmp.eq.f32.partialorder %v770_v28, 8.507059e+37 }
 0x441   : > { %v2932_v16 = vpop.eup %2931 }
 0x442   : > { %v762_v20 = vmul.f32 %v2932_v16, %v759_v14  ;;  %vm767_vm1 = vweird.f32 %v2932_v16  ;;  %v2934_v30 = vpop.eup %2933 }
 0x443   : > { %vm768_vm12 = vmor %vm766_vm11, %vm767_vm1  ;;  %v760_v33 = vadd.f32 1.0, %v2934_v30 }
 0x444   : > { %v763_v22 = vsub.f32 1.0, %v762_v20 }
 0x445   : > { %2935 = vrcp.f32 %v760_v33  ;;  %v787_v47 = vand.u32 2147483648, %v760_v33  ;;  %vm781_vm15 = vweird.f32 %v760_v33  ;;  %v785_v48 = vand.u32 2147483647, %v760_v33 }
 0x446   : > { %v764_v25 = vmul.f32 %v2932_v16, %v763_v22 }
 0x447   : > { %v788_v51 = vor.u32 1.1754944e-38, %v787_v47  ;;  %vm786_vm1 = vcmp.eq.f32.partialorder %v785_v48, 8.507059e+37 }
 0x448   : > { %v765_v26 = vadd.f32 %v2932_v16, %v764_v25 }
 0x44a   : > { %v769_v31 = vsel %vm768_vm12, %v2932_v16, %v765_v26 }
 0x44b   : > { %v774_v38 = vsel %vm771_vm13, %v773_v35, %v769_v31  ;;  %v2936_v41 = vpop.eup %2935 }
 0x44c   : > { %v777_v42 = vmul.f32 %v2936_v41, %v760_v33  ;;  %vm782_vm14 = vweird.f32 %v2936_v41  ;;  %v791_v56 = vmul.f32 %v774_v38, %v742_v8 }
 0x44d   : > { %vm783_vm8 = vmor %vm781_vm15, %vm782_vm14 }
 0x44e   : > { %v778_v43 = vsub.f32 1.0, %v777_v42 }
 0x450   : > { %v779_v44 = vmul.f32 %v2936_v41, %v778_v43 }
 0x452   : > { %v780_v45 = vadd.f32 %v2936_v41, %v779_v44 }
 0x454   : > { %v784_v49 = vsel %vm783_vm8, %v2936_v41, %v780_v45 }
 0x455   : > { %v789_v54 = vsel %vm786_vm1, %v788_v51, %v784_v49 }
 0x456   : > { %v792_v61 = vmul.f32 %v789_v54, %v744_v15 }
 0x48a   : > { %v798_v36 = vpop.permute.xlu2 %797 }
 0x48b   : > { %v803_v40 = vmul.f32 %v798_v36, %v774_v38 }
 0x48d   : > { %807 = vrot.lane.b32.xlu1 %v803_v40, %s3178_s7 }
 0x4aa   : > { %v800_v52 = vpop.permute.xlu0 %799 }
 0x4ab   : > { %v804_v55 = vmul.f32 %v800_v52, %v789_v54 }
 0x4ad   : > { %809 = vrot.lane.b32.xlu2 %v804_v55, %s3178_s7 }
 0x4ff   : > { %v808_v57 = vpop.permute.xlu1 %807 }
 0x500   : > { %v3463_v59 = vadd.f32 %v808_v57, %v791_v56 }
 0x502   : > { %2937 = vtanh.f32 %v3463_v59  ;;  %v815_v60 = vmul.f32 %v3463_v59, %v3376_v32 }
 0x504   : > { %819 = vrot.lane.b32.xlu0 %v815_v60, %s3179_s8  ;;  %v908_v60 = vld [vmem:[#allocation2 + $0x8] sm:$0x1] }
 0x507   : > { %v810_v50 = vpop.permute.xlu2 %809 }
 0x508   : > { %v2938_v62 = vpop.eup %2937  ;;  %v3469_v63 = vadd.f32 %v810_v50, %v792_v61 }
 0x509   : > { %869 = vrot.lane.b32.xlu2 %v2938_v62, %s3179_s8  ;;  %v685_v62 = vld [vmem:[#allocation2] sm:$0xf] }
 0x50a   : > { %2939 = vtanh.f32 %v3469_v63  ;;  %v816_v0 = vmul.f32 %v3469_v63, %v3384_v37 }
 0x50c   : > { %821 = vrot.lane.b32.xlu1 %v816_v0, %s3179_s8 }
 0x510   : > { %v2940_v46 = vpop.eup %2939 }
 0x511   : > { %871 = vrot.lane.b32.xlu0 %v2940_v46, %s3179_s8 }
 0x563   : > { %v870_v24 = vpop.permute.xlu2 %869 }
 0x576   : > { %v820_v1 = vpop.permute.xlu0 %819 }
 0x577   : > { %v825_v39 = vadd.f32 %v820_v1, %v3446_v3 }
 0x579   : > { %v2732_v4 = vmul.f32 -1.442695, %v825_v39 }
 0x57b   : > { %2941 = vpow2.f32 %v2732_v4 }
 0x57e   : > { %v822_v5 = vpop.permute.xlu1 %821 }
 0x57f   : > { %v826_v7 = vadd.f32 %v822_v5, %v3450_v6 }
 0x581   : > { %v2942_v8 = vpop.eup %2941  ;;  %v2733_v9 = vmul.f32 -1.442695, %v826_v7 }
 0x582   : > { %v833_v10 = vadd.f32 1.0, %v2942_v8 }
 0x583   : > { %2943 = vpow2.f32 %v2733_v9  ;;  %v872_v43 = vpop.permute.xlu0 %871 }
 0x584   : > { %2945 = vrcp.f32 %v833_v10  ;;  %v846_v16 = vand.u32 2147483648, %v833_v10  ;;  %v844_v3 = vand.u32 2147483647, %v833_v10  ;;  %vm840_vm12 = vweird.f32 %v833_v10 }
 0x586   : > { %v847_v21 = vor.u32 1.1754944e-38, %v846_v16  ;;  %vm845_vm14 = vcmp.eq.f32.partialorder %v844_v3, 8.507059e+37 }
 0x589   : > { %v2944_v11 = vpop.eup %2943 }
 0x58a   : > { %v2946_v12 = vpop.eup %2945  ;;  %v834_v13 = vadd.f32 1.0, %v2944_v11 }
 0x58b   : > { %v836_v14 = vmul.f32 %v2946_v12, %v833_v10  ;;  %vm841_vm11 = vweird.f32 %v2946_v12 }
 0x58c   : > { %2947 = vrcp.f32 %v834_v13  ;;  %vm842_vm13 = vmor %vm840_vm12, %vm841_vm11  ;;  %v861_v28 = vand.u32 2147483648, %v834_v13  ;;  %v859_v31 = vand.u32 2147483647, %v834_v13  ;;  %vm855_vm8 = vweird.f32 %v834_v13 }
 0x58d   : > { %v837_v15 = vsub.f32 1.0, %v836_v14 }
 0x58e   : > { %v862_v38 = vor.u32 1.1754944e-38, %v861_v28  ;;  %vm860_vm11 = vcmp.eq.f32.partialorder %v859_v31, 8.507059e+37 }
 0x58f   : > { %v838_v17 = vmul.f32 %v2946_v12, %v837_v15 }
 0x591   : > { %v839_v19 = vadd.f32 %v2946_v12, %v838_v17 }
 0x592   : > { %v2948_v20 = vpop.eup %2947 }
 0x593   : > { %v851_v6 = vmul.f32 %v2948_v20, %v834_v13  ;;  %v843_v22 = vsel %vm842_vm13, %v2946_v12, %v839_v19  ;;  %vm856_vm15 = vweird.f32 %v2948_v20 }
 0x594   : > { %v848_v25 = vsel %vm845_vm14, %v847_v21, %v843_v22  ;;  %vm857_vm1 = vmor %vm855_vm8, %vm856_vm15 }
 0x595   : > { %v852_v26 = vsub.f32 1.0, %v851_v6  ;;  %v875_v27 = vmul.f32 %v870_v24, %v848_v25  ;;  %v2736_v25 = vld [vmem:[%s3338_s15 + $0x20] sm:$0xff] }
 0x597   : > { %v853_v30 = vmul.f32 %v2948_v20, %v852_v26  ;;  %v3479_v35 = vpack.c.bf16 %v875_v27, %v875_v27 }
 0x599   : > { %v854_v33 = vadd.f32 %v2948_v20, %v853_v30  ;;  %v880_v36 = vshrl.u32 %v3479_v35, 16  ;;  %v883_v42 = vshll.u32 %v3479_v35, 16 }
 0x59b   : > { %v858_v40 = vsel %vm857_vm1, %v2948_v20, %v854_v33  ;;  %v882_v41 = vrot.slane %v880_v36, 7 }
 0x59c   : > { %v863_v44 = vsel %vm860_vm11, %v862_v38, %v858_v40 }
 0x59d   : > { %v876_v45 = vmul.f32 %v872_v43, %v863_v44  ;;  %v885_v47 = vor.u32 %v883_v42, %v882_v41  ;;  %v886_v55 = vrot.slane %v882_v41, 4 }
 0x59f   : > { %v3483_v48 = vpack.c.bf16 %v876_v45, %v876_v45  ;;  %896 = vrot.lane.b32.xlu1 %v885_v47, %s3178_s7 }
 0x5a1   : > { %v888_v49 = vshrl.u32 %v3483_v48, 16  ;;  %v891_v51 = vshll.u32 %v3483_v48, 16 }
 0x5a3   : > { %v890_v52 = vrot.slane %v888_v49, 7 }
 0x5a5   : > { %v895_v54 = vrot.slane %v890_v52, 4  ;;  %v893_v56 = vor.u32 %v891_v51, %v890_v52 }
 0x5a7   : > { %900 = vrot.lane.b32.xlu2 %v895_v54, %s3178_s7  ;;  %v894_v57 = vsel %vm3406_vm7, %v886_v55, %v893_v56 }
 0x5a8   : > { %898 = vrot.lane.b32.xlu0 %v894_v57, %s3178_s7 }
 0x5b0   : > { %913 = vrot.lane.b32.xlu0 %v3463_v59, %s3181_s11 }
 0x601   : > { %v901_v61 = vpop.permute.xlu2 %900 }
 0x602   : > { %v909_v50 = vsel %vm3425_vm10, %v901_v61, %v908_v60 }
 0x603   : > { %910 = vst [vmem:[#allocation2 + $0x8] sm:$0x1] %v909_v50 }
 0x60a   : > { %v937_v1 = vld [vmem:[#allocation2 + $0x8] sm:$0x1] }
 0x60b   : > { %v944_v4 = vunpack.c.l.b16 %v937_v1 }
 0x60d   : > { %v945_v5 = vpack.c.b16 %v944_v4, %v944_v4 }
 0x60f   : > { %v961_v9 = vrot.slane %v945_v5, 1  ;;  %v954_v11 = vshll.u32 %v945_v5, 16 }
 0x611   : > { %v897_v0 = vpop.permute.xlu1 %896  ;;  %v956_v16 = vrot.slane %v954_v11, 1 }
 0x612   : > { %v905_v46 = vsel %vm3417_vm9, %v897_v0, %v685_v62 }
 0x613   : > { %906 = vst [vmem:[#allocation2] sm:$0xf] %v905_v46 }
 0x61a   : > { %v899_v39 = vpop.permute.xlu0 %898 }
 0x61b   : > { %907 = vst.msk [vmem:[#allocation2 + $0x4] sm:$0xf] %vm352_vm0, %v899_v39 }
 0x622   : > { %v914_v7 = vpop.permute.xlu0 %913  ;;  %v2831_v59 = vld [vmem:[#allocation2] sm:$0xff] }
 0x623   : > { %919 = vst.msk [vmem:[#allocation3] sm:$0xff] %vm357_vm4, %v914_v7  ;;  %v960_v8 = vrot.slane %v2831_v59, 1  ;;  %v949_v10 = vshll.u32 %v2831_v59, 16  ;;  %v947_v13 = vshrl.u32 %v2831_v59, 16 }
 0x625   : > { %v962_v12 = vsel %vm404_vm3, %v960_v8, %v961_v9  ;;  %v951_v14 = vrot.slane %v949_v10, 1 }
 0x626   : > { %963 = vrot.lane.b32.xlu2 %v962_v12, %s3179_s8 }
 0x627   : > { %v952_v15 = vor.u32 %v951_v14, %v947_v13 }
 0x629   : > { %v957_v17 = vsel %vm389_vm2, %v952_v15, %v956_v16 }
 0x62a   : > { %958 = vrot.lane.b32.xlu1 %v957_v17, %s3178_s7  ;;  %v987_v3 = vld [vmem:[#allocation3] sm:$0xff] }
 0x62e   : > { %991 = vrot.lane.b32.xlu2 %v987_v3, %s3178_s7 }
 0x632   : > { %915 = vrot.lane.b32.xlu1 %v3469_v63, %s3181_s11  ;;  %v2737_v63 = vld [vmem:[%s3338_s15 + $0x28] sm:$0xff] }
 0x680   : > { %v964_v20 = vpop.permute.xlu2 %963 }
 0x688   : > { %v992_v43 = vpop.permute.xlu2 %991 }
 0x689   : > { %v997_v44 = vsel %vm357_vm4, %v987_v3, %v992_v43 }
 0x68a   : > { %v999_v47 = vmul.f32 %v997_v44, %v3353_v53 }
 0x69c   : > { %v959_v19 = vpop.permute.xlu1 %958 }
 0x69d   : > { %v966_v21 = vsel %vm357_vm4, %v2831_v59, %v959_v19 }
 0x69e   : > { %v968_v6 = vsel %vm413_vm5, %v966_v21, %v964_v20 }
 0x69f   : > { %2742 = vmatmul.msk.bf16.vlgmr.msra.gmra.mxu2 %vm4040_vm6, %v968_v6 }
 0x6a4   : > { %v916_v22 = vpop.permute.xlu1 %915 }
 0x6a5   : > { %920 = vst.msk [vmem:[#allocation3 + $0x8] sm:$0xff] %vm357_vm4, %v916_v22 }
 0x6ac   : > { %v988_v24 = vld [vmem:[#allocation3 + $0x8] sm:$0xff] }
 0x6ad   : > { %993 = vrot.lane.b32.xlu0 %v988_v24, %s3178_s7 }
 0x71f   : > { %v994_v36 = vpop.permute.xlu0 %993 }
 0x720   : > { %v998_v38 = vsel %vm357_vm4, %v988_v24, %v994_v36 }
 0x721   : > { %v1000_v40 = vmul.f32 %v998_v38, %v3361_v58 }
 0x722   : > { %v980_v26 = vpop.f32.mrf.mxu2 }
 0x723   : > { %v3513_v27 = vadd.f32 %v2736_v25, %v980_v26 }
 0x725   : > { %2949 = vtanh.f32 %v3513_v27  ;;  %v1001_v49 = vadd.f32 %v999_v47, %v3513_v27 }
 0x727   : > { %v2743_v52 = vmul.f32 -1.442695, %v1001_v49 }
 0x72a   : > { %v982_v28 = vpop.f32.mrf.mxu2 }
 0x72b   : > { %v2950_v30 = vpop.eup %2949  ;;  %v3517_v31 = vadd.f32 %v2737_v63, %v982_v28 }
 0x72c   : > { %1047 = vrot.lane.b32.xlu1 %v2950_v30, %s3179_s8 }
 0x72d   : > { %2951 = vtanh.f32 %v3517_v31  ;;  %v1002_v41 = vadd.f32 %v1000_v40, %v3517_v31 }
 0x72f   : > { %v2744_v42 = vmul.f32 -1.442695, %v1002_v41 }
 0x731   : > { %2953 = vpow2.f32 %v2744_v42 }
 0x733   : > { %v2952_v33 = vpop.eup %2951 }
 0x734   : > { %1049 = vrot.lane.b32.xlu2 %v2952_v33, %s3179_s8 }
 0x737   : > { %v2954_v45 = vpop.eup %2953 }
 0x738   : > { %v1010_v51 = vadd.f32 1.0, %v2954_v45 }
 0x73a   : > { %2955 = vrcp.f32 %v1010_v51  ;;  %v1037_v62 = vand.u32 2147483648, %v1010_v51  ;;  %vm1031_vm13 = vweird.f32 %v1010_v51  ;;  %v1035_v0 = vand.u32 2147483647, %v1010_v51 }
 0x73b   : > { %2957 = vpow2.f32 %v2743_v52 }
 0x73c   : > { %v1038_v1 = vor.u32 1.1754944e-38, %v1037_v62  ;;  %vm1036_vm15 = vcmp.eq.f32.partialorder %v1035_v0, 8.507059e+37 }
 0x740   : > { %v2956_v54 = vpop.eup %2955 }
 0x741   : > { %v2958_v55 = vpop.eup %2957  ;;  %v1027_v56 = vmul.f32 %v2956_v54, %v1010_v51  ;;  %vm1032_vm12 = vweird.f32 %v2956_v54 }
 0x742   : > { %v1009_v58 = vadd.f32 1.0, %v2958_v55  ;;  %vm1033_vm14 = vmor %vm1031_vm13, %vm1032_vm12 }
 0x743   : > { %v1028_v57 = vsub.f32 1.0, %v1027_v56 }
 0x744   : > { %2959 = vrcp.f32 %v1009_v58  ;;  %v1022_v9 = vand.u32 2147483648, %v1009_v58  ;;  %vm1016_vm1 = vweird.f32 %v1009_v58  ;;  %v1020_v10 = vand.u32 2147483647, %v1009_v58 }
 0x745   : > { %v1029_v60 = vmul.f32 %v2956_v54, %v1028_v57 }
 0x746   : > { %v1023_v12 = vor.u32 1.1754944e-38, %v1022_v9  ;;  %vm1021_vm12 = vcmp.eq.f32.partialorder %v1020_v10, 8.507059e+37 }
 0x747   : > { %v1030_v61 = vadd.f32 %v2956_v54, %v1029_v60 }
 0x749   : > { %v1034_v53 = vsel %vm1033_vm14, %v2956_v54, %v1030_v61 }
 0x74a   : > { %v2960_v50 = vpop.eup %2959  ;;  %v1039_v4 = vsel %vm1036_vm15, %v1038_v1, %v1034_v53 }
 0x74b   : > { %v1012_v46 = vmul.f32 %v2960_v50, %v1009_v58  ;;  %vm1017_vm8 = vweird.f32 %v2960_v50  ;;  %v1042_v16 = vmul.f32 %v1039_v4, %v994_v36 }
 0x74c   : > { %vm1018_vm11 = vmor %vm1016_vm1, %vm1017_vm8 }
 0x74d   : > { %v1013_v7 = vsub.f32 1.0, %v1012_v46 }
 0x74f   : > { %v1014_v59 = vmul.f32 %v2960_v50, %v1013_v7 }
 0x751   : > { %v1015_v8 = vadd.f32 %v2960_v50, %v1014_v59 }
 0x753   : > { %v1019_v11 = vsel %vm1018_vm11, %v2960_v50, %v1015_v8 }
 0x754   : > { %v1024_v13 = vsel %vm1021_vm12, %v1023_v12, %v1019_v11 }
 0x755   : > { %v1041_v20 = vmul.f32 %v1024_v13, %v992_v43 }
 0x78e   : > { %v1050_v39 = vpop.permute.xlu2 %1049 }
 0x78f   : > { %v1054_v5 = vmul.f32 %v1050_v39, %v1039_v4 }
 0x791   : > { %1059 = vrot.lane.b32.xlu1 %v1054_v5, %s3178_s7 }
 0x79e   : > { %v1048_v14 = vpop.permute.xlu1 %1047 }
 0x79f   : > { %v1053_v15 = vmul.f32 %v1048_v14, %v1024_v13 }
 0x7a1   : > { %1057 = vrot.lane.b32.xlu0 %v1053_v15, %s3178_s7 }
 0x803   : > { %v1060_v17 = vpop.permute.xlu1 %1059 }
 0x804   : > { %v3530_v3 = vadd.f32 %v1060_v17, %v1042_v16 }
 0x806   : > { %v1066_v19 = vmul.f32 %v3530_v3, %v3384_v37 }
 0x808   : > { %1071 = vrot.lane.b32.xlu0 %v1066_v19, %s3179_s8 }
 0x813   : > { %v1058_v21 = vpop.permute.xlu0 %1057 }
 0x814   : > { %v3535_v6 = vadd.f32 %v1058_v21, %v1041_v20 }
 0x816   : > { %2961 = vtanh.f32 %v3535_v6  ;;  %v1065_v22 = vmul.f32 %v3535_v6, %v3376_v32 }
 0x817   : > { %2963 = vtanh.f32 %v3530_v3 }
 0x818   : > { %1069 = vrot.lane.b32.xlu2 %v1065_v22, %s3179_s8  ;;  %v935_v22 = vld [vmem:[#allocation2] sm:$0xf] }
 0x81c   : > { %v2962_v24 = vpop.eup %2961 }
 0x81d   : > { %1119 = vrot.lane.b32.xlu1 %v2962_v24, %s3179_s8  ;;  %v2964_v25 = vpop.eup %2963 }
 0x820   : > { %1121 = vrot.lane.b32.xlu2 %v2964_v25, %s3179_s8  ;;  %v1158_v25 = vld [vmem:[#allocation2 + $0x8] sm:$0x1] }
 0x872   : > { %v1070_v26 = vpop.permute.xlu2 %1069 }
 0x873   : > { %v1075_v63 = vadd.f32 %v1070_v26, %v3513_v27 }
 0x875   : > { %v2745_v28 = vmul.f32 -1.442695, %v1075_v63 }
 0x877   : > { %2965 = vpow2.f32 %v2745_v28 }
 0x87a   : > { %v1072_v30 = vpop.permute.xlu0 %1071  ;;  %v1122_v7 = vpop.permute.xlu2 %1121 }
 0x87b   : > { %v1076_v33 = vadd.f32 %v1072_v30, %v3517_v31 }
 0x87d   : > { %v2966_v36 = vpop.eup %2965  ;;  %v2746_v38 = vmul.f32 -1.442695, %v1076_v33 }
 0x87e   : > { %v1083_v40 = vadd.f32 1.0, %v2966_v36 }
 0x87f   : > { %2967 = vpow2.f32 %v2746_v38 }
 0x880   : > { %2969 = vrcp.f32 %v1083_v40  ;;  %v1096_v47 = vand.u32 2147483648, %v1083_v40  ;;  %v1094_v27 = vand.u32 2147483647, %v1083_v40  ;;  %vm1090_vm14 = vweird.f32 %v1083_v40 }
 0x882   : > { %v1097_v31 = vor.u32 1.1754944e-38, %v1096_v47  ;;  %vm1095_vm8 = vcmp.eq.f32.partialorder %v1094_v27, 8.507059e+37 }
 0x885   : > { %v2968_v41 = vpop.eup %2967 }
 0x886   : > { %v2970_v42 = vpop.eup %2969  ;;  %v1084_v43 = vadd.f32 1.0, %v2968_v41 }
 0x887   : > { %v1086_v44 = vmul.f32 %v2970_v42, %v1083_v40  ;;  %vm1091_vm13 = vweird.f32 %v2970_v42 }
 0x888   : > { %2971 = vrcp.f32 %v1084_v43  ;;  %vm1092_vm15 = vmor %vm1090_vm14, %vm1091_vm13  ;;  %v1111_v61 = vand.u32 2147483648, %v1084_v43  ;;  %v1109_v0 = vand.u32 2147483647, %v1084_v43  ;;  %vm1105_vm11 = vweird.f32 %v1084_v43 }
 0x889   : > { %v1087_v45 = vsub.f32 1.0, %v1086_v44 }
 0x88a   : > { %v1112_v1 = vor.u32 1.1754944e-38, %v1111_v61  ;;  %vm1110_vm13 = vcmp.eq.f32.partialorder %v1109_v0, 8.507059e+37 }
 0x88b   : > { %v1088_v49 = vmul.f32 %v2970_v42, %v1087_v45 }
 0x88d   : > { %v1089_v51 = vadd.f32 %v2970_v42, %v1088_v49 }
 0x88e   : > { %v2972_v52 = vpop.eup %2971 }
 0x88f   : > { %v1101_v54 = vmul.f32 %v2972_v52, %v1084_v43  ;;  %v1093_v55 = vsel %vm1092_vm15, %v2970_v42, %v1089_v51  ;;  %v1120_v56 = vpop.permute.xlu1 %1119  ;;  %vm1106_vm1 = vweird.f32 %v2972_v52 }
 0x890   : > { %v1098_v58 = vsel %vm1095_vm8, %v1097_v31, %v1093_v55  ;;  %vm1107_vm12 = vmor %vm1105_vm11, %vm1106_vm1 }
 0x891   : > { %v1102_v57 = vsub.f32 1.0, %v1101_v54  ;;  %v1125_v60 = vmul.f32 %v1120_v56, %v1098_v58  ;;  %v2749_v58 = vld [vmem:[%s3338_s15 + $0x30] sm:$0xff] }
 0x893   : > { %v1103_v50 = vmul.f32 %v2972_v52, %v1102_v57  ;;  %v3546_v62 = vpack.c.bf16 %v1125_v60, %v1125_v60 }
 0x895   : > { %v1130_v53 = vshrl.u32 %v3546_v62, 16  ;;  %v1104_v46 = vadd.f32 %v2972_v52, %v1103_v50  ;;  %v1133_v39 = vshll.u32 %v3546_v62, 16 }
 0x897   : > { %v1132_v4 = vrot.slane %v1130_v53, 7  ;;  %v1108_v5 = vsel %vm1107_vm12, %v2972_v52, %v1104_v46 }
 0x898   : > { %v1113_v59 = vsel %vm1110_vm13, %v1112_v1, %v1108_v5 }
 0x899   : > { %v1135_v8 = vor.u32 %v1133_v39, %v1132_v4  ;;  %v1126_v9 = vmul.f32 %v1122_v7, %v1113_v59  ;;  %v1136_v15 = vrot.slane %v1132_v4, 4  ;;  %v3593_v39 = vld [vmem:[%s4036_s2] sm:$0xff] }
 0x89b   : > { %1146 = vrot.lane.b32.xlu0 %v1135_v8, %s3178_s7  ;;  %v3551_v10 = vpack.c.bf16 %v1126_v9, %v1126_v9  ;;  %v3601_v9 = vld [vmem:[%s4036_s2 + $0x8] sm:$0xff] }
 0x89d   : > { %v1138_v11 = vshrl.u32 %v3551_v10, 16  ;;  %v1141_v13 = vshll.u32 %v3551_v10, 16 }
 0x89f   : > { %v1140_v12 = vrot.slane %v1138_v11, 7 }
 0x8a1   : > { %v1145_v14 = vrot.slane %v1140_v12, 4  ;;  %v1143_v16 = vor.u32 %v1141_v13, %v1140_v12 }
 0x8a3   : > { %1150 = vrot.lane.b32.xlu1 %v1145_v14, %s3178_s7  ;;  %v1144_v17 = vsel %vm3406_vm7, %v1136_v15, %v1143_v16 }
 0x8a4   : > { %1148 = vrot.lane.b32.xlu2 %v1144_v17, %s3178_s7 }
 0x8ac   : > { %1163 = vrot.lane.b32.xlu2 %v3535_v6, %s3181_s11 }
 0x8fe   : > { %v1149_v19 = vpop.permute.xlu2 %1148 }
 0x8ff   : > { %1157 = vst.msk [vmem:[#allocation2 + $0x4] sm:$0xf] %vm352_vm0, %v1149_v19 }
 0x906   : > { %v1164_v20 = vpop.permute.xlu2 %1163 }
 0x907   : > { %1169 = vst.msk [vmem:[#allocation3] sm:$0xff] %vm357_vm4, %v1164_v20 }
 0x90d   : > { %v1147_v21 = vpop.permute.xlu0 %1146 }
 0x90e   : > { %v1155_v24 = vsel %vm3417_vm9, %v1147_v21, %v935_v22  ;;  %v1237_v27 = vld [vmem:[#allocation3] sm:$0xff] }
 0x90f   : > { %1156 = vst [vmem:[#allocation2] sm:$0xf] %v1155_v24 }
 0x915   : > { %v1151_v26 = vpop.permute.xlu1 %1150 }
 0x916   : > { %v1159_v63 = vsel %vm3425_vm10, %v1151_v26, %v1158_v25  ;;  %v2832_v28 = vld [vmem:[#allocation2] sm:$0xff] }
 0x917   : > { %1160 = vst [vmem:[#allocation2 + $0x8] sm:$0x1] %v1159_v63  ;;  %v1199_v6 = vshll.u32 %v2832_v28, 16  ;;  %v1210_v40 = vrot.slane %v2832_v28, 1  ;;  %v1197_v42 = vshrl.u32 %v2832_v28, 16 }
 0x919   : > { %v1201_v38 = vrot.slane %v1199_v6, 1 }
 0x91b   : > { %v1202_v45 = vor.u32 %v1201_v38, %v1197_v42 }
 0x91e   : > { %v1187_v30 = vld [vmem:[#allocation2 + $0x8] sm:$0x1] }
 0x91f   : > { %v1194_v33 = vunpack.c.l.b16 %v1187_v30 }
 0x921   : > { %v1195_v36 = vpack.c.b16 %v1194_v33, %v1194_v33 }
 0x923   : > { %v1211_v41 = vrot.slane %v1195_v36, 1  ;;  %v1204_v43 = vshll.u32 %v1195_v36, 16 }
 0x925   : > { %v1212_v44 = vsel %vm404_vm3, %v1210_v40, %v1211_v41  ;;  %v1206_v47 = vrot.slane %v1204_v43, 1 }
 0x926   : > { %1213 = vrot.lane.b32.xlu1 %v1212_v44, %s3179_s8 }
 0x927   : > { %v1207_v49 = vsel %vm389_vm2, %v1202_v45, %v1206_v47 }
 0x928   : > { %1208 = vrot.lane.b32.xlu0 %v1207_v49, %s3178_s7 }
 0x92e   : > { %1241 = vrot.lane.b32.xlu1 %v1237_v27, %s3178_s7 }
 0x930   : > { %1165 = vrot.lane.b32.xlu0 %v3530_v3, %s3181_s11  ;;  %v2750_v3 = vld [vmem:[%s3338_s15 + $0x38] sm:$0xff] }
 0x998   : > { %v1214_v52 = vpop.permute.xlu1 %1213 }
 0x99a   : > { %v1209_v51 = vpop.permute.xlu0 %1208 }
 0x99b   : > { %v1216_v31 = vsel %vm357_vm4, %v2832_v28, %v1209_v51 }
 0x99c   : > { %v1218_v54 = vsel %vm413_vm5, %v1216_v31, %v1214_v52 }
 0x99d   : > { %2755 = vmatmul.msk.bf16.vlgmr.msra.gmra.mxu3 %vm4040_vm6, %v1218_v54 }
 0x9a0   : > { %v1242_v46 = vpop.permute.xlu1 %1241 }
 0x9a1   : > { %v1247_v1 = vsel %vm357_vm4, %v1237_v27, %v1242_v46 }
 0x9a2   : > { %v1166_v55 = vpop.permute.xlu0 %1165  ;;  %v1249_v4 = vmul.f32 %v3593_v39, %v1247_v1 }
 0x9a3   : > { %1170 = vst.msk [vmem:[#allocation3 + $0x8] sm:$0xff] %vm357_vm4, %v1166_v55 }
 0x9aa   : > { %v1238_v56 = vld [vmem:[#allocation3 + $0x8] sm:$0xff] }
 0x9ab   : > { %1243 = vrot.lane.b32.xlu2 %v1238_v56, %s3178_s7 }
 0xa05   : > { %v1244_v5 = vpop.permute.xlu2 %1243 }
 0xa06   : > { %v1248_v59 = vsel %vm357_vm4, %v1238_v56, %v1244_v5 }
 0xa07   : > { %v1250_v11 = vmul.f32 %v3601_v9, %v1248_v59 }
 0xa20   : > { %v1230_v57 = vpop.f32.mrf.mxu3 }
 0xa21   : > { %v3580_v60 = vadd.f32 %v2749_v58, %v1230_v57 }
 0xa23   : > { %2973 = vtanh.f32 %v3580_v60  ;;  %v1251_v7 = vadd.f32 %v1249_v4, %v3580_v60 }
 0xa25   : > { %v2756_v8 = vmul.f32 -1.442695, %v1251_v7 }
 0xa28   : > { %v1232_v61 = vpop.f32.mrf.mxu3 }
 0xa29   : > { %v2974_v50 = vpop.eup %2973  ;;  %v3584_v0 = vadd.f32 %v2750_v3, %v1232_v61 }
 0xa2a   : > { %1297 = vrot.lane.b32.xlu0 %v2974_v50, %s3179_s8 }
 0xa2b   : > { %2975 = vtanh.f32 %v3584_v0  ;;  %v1252_v12 = vadd.f32 %v1250_v11, %v3584_v0 }
 0xa2c   : > { %2977 = vpow2.f32 %v2756_v8 }
 0xa2d   : > { %v2757_v13 = vmul.f32 -1.442695, %v1252_v12 }
 0xa2f   : > { %2979 = vpow2.f32 %v2757_v13 }
 0xa31   : > { %v2976_v53 = vpop.eup %2975 }
 0xa32   : > { %1299 = vrot.lane.b32.xlu1 %v2976_v53, %s3179_s8  ;;  %v2978_v14 = vpop.eup %2977 }
 0xa33   : > { %v1259_v15 = vadd.f32 1.0, %v2978_v14 }
 0xa35   : > { %2981 = vrcp.f32 %v1259_v15  ;;  %v2980_v16 = vpop.eup %2979  ;;  %v1272_v28 = vand.u32 2147483648, %v1259_v15  ;;  %vm1266_vm15 = vweird.f32 %v1259_v15  ;;  %v1270_v6 = vand.u32 2147483647, %v1259_v15 }
 0xa36   : > { %v1260_v17 = vadd.f32 1.0, %v2980_v16 }
 0xa37   : > { %v1273_v36 = vor.u32 1.1754944e-38, %v1272_v28  ;;  %vm1271_vm1 = vcmp.eq.f32.partialorder %v1270_v6, 8.507059e+37 }
 0xa38   : > { %2983 = vrcp.f32 %v1260_v17  ;;  %v1287_v43 = vand.u32 2147483648, %v1260_v17  ;;  %vm1281_vm12 = vweird.f32 %v1260_v17  ;;  %v1285_v44 = vand.u32 2147483647, %v1260_v17 }
 0xa3a   : > { %v1288_v47 = vor.u32 1.1754944e-38, %v1287_v43  ;;  %vm1286_vm6 = vcmp.eq.f32.partialorder %v1285_v44, 8.507059e+37 }
 0xa3b   : > { %v2982_v19 = vpop.eup %2981 }
 0xa3c   : > { %v1262_v20 = vmul.f32 %v2982_v19, %v1259_v15  ;;  %vm1267_vm14 = vweird.f32 %v2982_v19 }
 0xa3d   : > { %vm1268_vm8 = vmor %vm1266_vm15, %vm1267_vm14 }
 0xa3e   : > { %v1263_v21 = vsub.f32 1.0, %v1262_v20  ;;  %v2984_v22 = vpop.eup %2983 }
 0xa3f   : > { %v1277_v25 = vmul.f32 %v2984_v22, %v1260_v17  ;;  %vm1282_vm11 = vweird.f32 %v2984_v22 }
 0xa40   : > { %v1264_v24 = vmul.f32 %v2982_v19, %v1263_v21  ;;  %vm1283_vm13 = vmor %vm1281_vm12, %vm1282_vm11 }
 0xa41   : > { %v1278_v63 = vsub.f32 1.0, %v1277_v25 }
 0xa42   : > { %v1265_v26 = vadd.f32 %v2982_v19, %v1264_v24 }
 0xa43   : > { %v1279_v33 = vmul.f32 %v2984_v22, %v1278_v63 }
 0xa44   : > { %v1269_v30 = vsel %vm1268_vm8, %v2982_v19, %v1265_v26 }
 0xa45   : > { %v1274_v38 = vsel %vm1271_vm1, %v1273_v36, %v1269_v30  ;;  %v1280_v42 = vadd.f32 %v2984_v22, %v1279_v33 }
 0xa46   : > { %v1291_v52 = vmul.f32 %v1274_v38, %v1242_v46 }
 0xa47   : > { %v1284_v45 = vsel %vm1283_vm13, %v2984_v22, %v1280_v42 }
 0xa48   : > { %v1289_v27 = vsel %vm1286_vm6, %v1288_v47, %v1284_v45 }
 0xa49   : > { %v1292_v58 = vmul.f32 %v1289_v27, %v1244_v5 }
 0xa9c   : > { %v1298_v40 = vpop.permute.xlu0 %1297 }
 0xa9d   : > { %v1303_v41 = vmul.f32 %v1298_v40, %v1274_v38 }
 0xa9f   : > { %1307 = vrot.lane.b32.xlu2 %v1303_v41, %s3178_s7 }
 0xaa4   : > { %v1300_v49 = vpop.permute.xlu1 %1299 }
 0xaa5   : > { %v1304_v51 = vmul.f32 %v1300_v49, %v1289_v27 }
 0xaa7   : > { %1309 = vrot.lane.b32.xlu0 %v1304_v51, %s3178_s7 }
 0xaf9   : > { %v1308_v31 = vpop.permute.xlu2 %1307 }
 0xafa   : > { %v3607_v54 = vadd.f32 %v1308_v31, %v1291_v52 }
 0xafc   : > { %2985 = vtanh.f32 %v3607_v54  ;;  %v1315_v55 = vmul.f32 %v3607_v54, %v3376_v32 }
 0xafe   : > { %1319 = vrot.lane.b32.xlu1 %v1315_v55, %s3179_s8 }
 0xb02   : > { %v2986_v56 = vpop.eup %2985 }
 0xb03   : > { %1369 = vrot.lane.b32.xlu0 %v2986_v56, %s3179_s8 }
 0xb19   : > { %v1310_v57 = vpop.permute.xlu0 %1309 }
 0xb1a   : > { %v3614_v3 = vadd.f32 %v1310_v57, %v1292_v58 }
 0xb1c   : > { %2987 = vtanh.f32 %v3614_v3  ;;  %v1316_v61 = vmul.f32 %v3614_v3, %v3384_v37 }
 0xb1e   : > { %1321 = vrot.lane.b32.xlu2 %v1316_v61, %s3179_s8 }
 0xb22   : > { %v2988_v50 = vpop.eup %2987 }
 0xb23   : > { %1371 = vrot.lane.b32.xlu1 %v2988_v50, %s3179_s8  ;;  %v1185_v50 = vld [vmem:[#allocation2] sm:$0xf] }
 0xb70   : > { %v1320_v53 = vpop.permute.xlu1 %1319 }
 0xb71   : > { %v1325_v46 = vadd.f32 %v1320_v53, %v3580_v60 }
 0xb73   : > { %v2758_v1 = vmul.f32 -1.442695, %v1325_v46  ;;  %v1408_v46 = vld [vmem:[#allocation2 + $0x8] sm:$0x1] }
 0xb75   : > { %2989 = vpow2.f32 %v2758_v1  ;;  %v1370_v25 = vpop.permute.xlu0 %1369 }
 0xb78   : > { %v1322_v4 = vpop.permute.xlu2 %1321 }
 0xb79   : > { %v1326_v5 = vadd.f32 %v1322_v4, %v3584_v0 }
 0xb7b   : > { %v2990_v7 = vpop.eup %2989  ;;  %v2759_v59 = vmul.f32 -1.442695, %v1326_v5 }
 0xb7c   : > { %v1333_v8 = vadd.f32 1.0, %v2990_v7 }
 0xb7d   : > { %2991 = vpow2.f32 %v2759_v59 }
 0xb7e   : > { %2993 = vrcp.f32 %v1333_v8  ;;  %v1346_v16 = vand.u32 2147483648, %v1333_v8  ;;  %v1344_v60 = vand.u32 2147483647, %v1333_v8  ;;  %vm1340_vm14 = vweird.f32 %v1333_v8 }
 0xb80   : > { %v1347_v0 = vor.u32 1.1754944e-38, %v1346_v16  ;;  %vm1345_vm8 = vcmp.eq.f32.partialorder %v1344_v60, 8.507059e+37 }
 0xb83   : > { %v2992_v11 = vpop.eup %2991 }
 0xb84   : > { %v2994_v12 = vpop.eup %2993  ;;  %v1334_v13 = vadd.f32 1.0, %v2992_v11 }
 0xb85   : > { %v1336_v14 = vmul.f32 %v2994_v12, %v1333_v8  ;;  %vm1341_vm6 = vweird.f32 %v2994_v12 }
 0xb86   : > { %2995 = vrcp.f32 %v1334_v13  ;;  %vm1342_vm15 = vmor %vm1340_vm14, %vm1341_vm6  ;;  %v1361_v28 = vand.u32 2147483648, %v1334_v13  ;;  %v1359_v33 = vand.u32 2147483647, %v1334_v13  ;;  %vm1355_vm11 = vweird.f32 %v1334_v13 }
 0xb87   : > { %v1337_v15 = vsub.f32 1.0, %v1336_v14  ;;  %vm4049_vm6 = vcmask 785408  }
 0xb88   : > { %v1362_v40 = vor.u32 1.1754944e-38, %v1361_v28  ;;  %vm1360_vm13 = vcmp.eq.f32.partialorder %v1359_v33, 8.507059e+37 }
 0xb89   : > { %v1338_v17 = vmul.f32 %v2994_v12, %v1337_v15 }
 0xb8b   : > { %v1339_v19 = vadd.f32 %v2994_v12, %v1338_v17 }
 0xb8c   : > { %v2996_v20 = vpop.eup %2995 }
 0xb8d   : > { %v1343_v21 = vsel %vm1342_vm15, %v2994_v12, %v1339_v19  ;;  %v1351_v22 = vmul.f32 %v2996_v20, %v1334_v13  ;;  %vm1356_vm1 = vweird.f32 %v2996_v20 }
 0xb8e   : > { %v1348_v24 = vsel %vm1345_vm8, %v1347_v0, %v1343_v21  ;;  %vm1357_vm12 = vmor %vm1355_vm11, %vm1356_vm1 }
 0xb8f   : > { %v1375_v26 = vmul.f32 %v1370_v25, %v1348_v24  ;;  %v1352_v63 = vsub.f32 1.0, %v1351_v22 }
 0xb91   : > { %v3623_v6 = vpack.c.bf16 %v1375_v26, %v1375_v26  ;;  %v1353_v30 = vmul.f32 %v2996_v20, %v1352_v63 }
 0xb93   : > { %v1380_v36 = vshrl.u32 %v3623_v6, 16  ;;  %v1354_v38 = vadd.f32 %v2996_v20, %v1353_v30  ;;  %v1383_v41 = vshll.u32 %v3623_v6, 16  ;;  %v2762_v30 = vld [vmem:[%s3338_s15 + $0x40] sm:$0xff] }
 0xb95   : > { %v1372_v42 = vpop.permute.xlu1 %1371  ;;  %v1358_v43 = vsel %vm1357_vm12, %v2996_v20, %v1354_v38  ;;  %v1382_v44 = vrot.slane %v1380_v36, 7 }
 0xb96   : > { %v1363_v45 = vsel %vm1360_vm13, %v1362_v40, %v1358_v43 }
 0xb97   : > { %v1376_v47 = vmul.f32 %v1372_v42, %v1363_v45  ;;  %v1385_v49 = vor.u32 %v1383_v41, %v1382_v44  ;;  %v1386_v56 = vrot.slane %v1382_v44, 4 }
 0xb99   : > { %v3627_v27 = vpack.c.bf16 %v1376_v47, %v1376_v47  ;;  %1396 = vrot.lane.b32.xlu2 %v1385_v49, %s3178_s7 }
 0xb9b   : > { %v1388_v51 = vshrl.u32 %v3627_v27, 16  ;;  %v1391_v52 = vshll.u32 %v3627_v27, 16 }
 0xb9d   : > { %v1390_v31 = vrot.slane %v1388_v51, 7 }
 0xb9f   : > { %v1395_v55 = vrot.slane %v1390_v31, 4  ;;  %v1393_v58 = vor.u32 %v1391_v52, %v1390_v31 }
 0xba1   : > { %1400 = vrot.lane.b32.xlu0 %v1395_v55, %s3178_s7  ;;  %v1394_v57 = vsel %vm3406_vm7, %v1386_v56, %v1393_v58 }
 0xba2   : > { %1398 = vrot.lane.b32.xlu1 %v1394_v57, %s3178_s7 }
 0xbaa   : > { %1413 = vrot.lane.b32.xlu1 %v3607_v54, %s3181_s11 }
 0xbf3   : > { %v1397_v61 = vpop.permute.xlu2 %1396 }
 0xbf4   : > { %v1405_v53 = vsel %vm3417_vm9, %v1397_v61, %v1185_v50 }
 0xbf5   : > { %1406 = vst [vmem:[#allocation2] sm:$0xf] %v1405_v53 }
 0xc13   : > { %v1401_v1 = vpop.permute.xlu0 %1400 }
 0xc14   : > { %v1409_v4 = vsel %vm3425_vm10, %v1401_v1, %v1408_v46  ;;  %v1399_v5 = vpop.permute.xlu1 %1398 }
 0xc15   : > { %1410 = vst [vmem:[#allocation2 + $0x8] sm:$0x1] %v1409_v4 }
 0xc16   : > { %1407 = vst.msk [vmem:[#allocation2 + $0x4] sm:$0xf] %vm352_vm0, %v1399_v5 }
 0xc1c   : > { %v1414_v7 = vpop.permute.xlu1 %1413  ;;  %v1437_v59 = vld [vmem:[#allocation2 + $0x8] sm:$0x1] }
 0xc1d   : > { %1419 = vst.msk [vmem:[#allocation3] sm:$0xff] %vm357_vm4, %v1414_v7  ;;  %v2833_v54 = vld [vmem:[#allocation2] sm:$0xff]  ;;  %v1444_v8 = vunpack.c.l.b16 %v1437_v59 }
 0xc1e   : > { %v1449_v12 = vshll.u32 %v2833_v54, 16  ;;  %v1460_v13 = vrot.slane %v2833_v54, 1  ;;  %v1447_v15 = vshrl.u32 %v2833_v54, 16 }
 0xc1f   : > { %v1445_v11 = vpack.c.b16 %v1444_v8, %v1444_v8 }
 0xc20   : > { %v1451_v16 = vrot.slane %v1449_v12, 1 }
 0xc21   : > { %v1461_v14 = vrot.slane %v1445_v11, 1  ;;  %v1454_v17 = vshll.u32 %v1445_v11, 16 }
 0xc22   : > { %v1452_v19 = vor.u32 %v1451_v16, %v1447_v15 }
 0xc23   : > { %v1462_v60 = vsel %vm404_vm3, %v1460_v13, %v1461_v14  ;;  %v1456_v20 = vrot.slane %v1454_v17, 1 }
 0xc24   : > { %1463 = vrot.lane.b32.xlu0 %v1462_v60, %s3179_s8  ;;  %v1487_v21 = vld [vmem:[#allocation3] sm:$0xff] }
 0xc25   : > { %v1457_v0 = vsel %vm389_vm2, %v1452_v19, %v1456_v20 }
 0xc26   : > { %1458 = vrot.lane.b32.xlu2 %v1457_v0, %s3178_s7 }
 0xc2c   : > { %1491 = vrot.lane.b32.xlu0 %v1487_v21, %s3178_s7 }
 0xc2e   : > { %1415 = vrot.lane.b32.xlu2 %v3614_v3, %s3181_s11  ;;  %v2763_v3 = vld [vmem:[%s3338_s15 + $0x48] sm:$0xff] }
 0xc80   : > { %v1459_v22 = vpop.permute.xlu2 %1458 }
 0xc81   : > { %v1466_v26 = vsel %vm357_vm4, %v2833_v54, %v1459_v22 }
 0xc88   : > { %v1416_v24 = vpop.permute.xlu2 %1415 }
 0xc89   : > { %1420 = vst.msk [vmem:[#allocation3 + $0x8] sm:$0xff] %vm357_vm4, %v1416_v24 }
 0xc90   : > { %v1488_v25 = vld [vmem:[#allocation3 + $0x8] sm:$0xff] }
 0xc91   : > { %1493 = vrot.lane.b32.xlu1 %v1488_v25, %s3178_s7 }
 0xc96   : > { %v1464_v63 = vpop.permute.xlu0 %1463 }
 0xc97   : > { %v1468_v28 = vsel %vm413_vm5, %v1466_v26, %v1464_v63 }
 0xc98   : > { %2768 = vmatmul.msk.bf16.vlgmr.msrb.gmra.mxu0 %vm4049_vm6, %v1468_v28 }
 0xc9e   : > { %v1492_v43 = vpop.permute.xlu0 %1491 }
 0xc9f   : > { %v1497_v44 = vsel %vm357_vm4, %v1487_v21, %v1492_v43 }
 0xca0   : > { %v1499_v45 = vmul.f32 %v3593_v39, %v1497_v44 }
 0xd03   : > { %v1494_v31 = vpop.permute.xlu1 %1493 }
 0xd04   : > { %v1498_v56 = vsel %vm357_vm4, %v1488_v25, %v1494_v31 }
 0xd05   : > { %v1500_v58 = vmul.f32 %v3601_v9, %v1498_v56 }
 0xd15   : > { %v1480_v33 = vpop.f32.mrf.mxu0 }
 0xd16   : > { %v3657_v36 = vadd.f32 %v2762_v30, %v1480_v33 }
 0xd18   : > { %2997 = vtanh.f32 %v3657_v36  ;;  %v1501_v47 = vadd.f32 %v1499_v45, %v3657_v36 }
 0xd1a   : > { %v2769_v49 = vmul.f32 -1.442695, %v1501_v47 }
 0xd1d   : > { %v1482_v38 = vpop.f32.mrf.mxu0 }
 0xd1e   : > { %v2998_v40 = vpop.eup %2997  ;;  %v3661_v41 = vadd.f32 %v2763_v3, %v1482_v38 }
 0xd1f   : > { %1547 = vrot.lane.b32.xlu2 %v2998_v40, %s3179_s8 }
 0xd20   : > { %2999 = vtanh.f32 %v3661_v41  ;;  %v1502_v61 = vadd.f32 %v1500_v58, %v3661_v41 }
 0xd21   : > { %3001 = vpow2.f32 %v2769_v49 }
 0xd22   : > { %v2770_v53 = vmul.f32 -1.442695, %v1502_v61 }
 0xd26   : > { %v3000_v42 = vpop.eup %2999 }
 0xd27   : > { %1549 = vrot.lane.b32.xlu0 %v3000_v42, %s3179_s8  ;;  %v3002_v51 = vpop.eup %3001 }
 0xd28   : > { %v1509_v52 = vadd.f32 1.0, %v3002_v51 }
 0xd2a   : > { %3003 = vrcp.f32 %v1509_v52  ;;  %v1522_v4 = vand.u32 2147483648, %v1509_v52  ;;  %vm1516_vm15 = vweird.f32 %v1509_v52  ;;  %v1520_v5 = vand.u32 2147483647, %v1509_v52 }
 0xd2b   : > { %3005 = vpow2.f32 %v2770_v53 }
 0xd2c   : > { %v1523_v54 = vor.u32 1.1754944e-38, %v1522_v4  ;;  %vm1521_vm1 = vcmp.eq.f32.partialorder %v1520_v5, 8.507059e+37 }
 0xd30   : > { %v3004_v55 = vpop.eup %3003 }
 0xd31   : > { %v1512_v57 = vmul.f32 %v3004_v55, %v1509_v52  ;;  %vm1517_vm14 = vweird.f32 %v3004_v55  ;;  %v3006_v7 = vpop.eup %3005 }
 0xd32   : > { %vm1518_vm8 = vmor %vm1516_vm15, %vm1517_vm14  ;;  %v1510_v8 = vadd.f32 1.0, %v3006_v7 }
 0xd33   : > { %v1513_v50 = vsub.f32 1.0, %v1512_v57 }
 0xd34   : > { %3007 = vrcp.f32 %v1510_v8  ;;  %v1537_v19 = vand.u32 2147483648, %v1510_v8  ;;  %vm1531_vm12 = vweird.f32 %v1510_v8  ;;  %v1535_v20 = vand.u32 2147483647, %v1510_v8 }
 0xd35   : > { %v1514_v46 = vmul.f32 %v3004_v55, %v1513_v50 }
 0xd36   : > { %v1538_v21 = vor.u32 1.1754944e-38, %v1537_v19  ;;  %vm1536_vm6 = vcmp.eq.f32.partialorder %v1535_v20, 8.507059e+37 }
 0xd37   : > { %v1515_v1 = vadd.f32 %v3004_v55, %v1514_v46 }
 0xd39   : > { %v1519_v59 = vsel %vm1518_vm8, %v3004_v55, %v1515_v1 }
 0xd3a   : > { %v1524_v11 = vsel %vm1521_vm1, %v1523_v54, %v1519_v59  ;;  %v3008_v14 = vpop.eup %3007 }
 0xd3b   : > { %v1527_v15 = vmul.f32 %v3008_v14, %v1510_v8  ;;  %vm1532_vm11 = vweird.f32 %v3008_v14  ;;  %v1541_v26 = vmul.f32 %v1524_v11, %v1492_v43 }
 0xd3c   : > { %vm1533_vm13 = vmor %vm1531_vm12, %vm1532_vm11 }
 0xd3d   : > { %v1528_v16 = vsub.f32 1.0, %v1527_v15 }
 0xd3f   : > { %v1529_v17 = vmul.f32 %v3008_v14, %v1528_v16 }
 0xd41   : > { %v1530_v60 = vadd.f32 %v3008_v14, %v1529_v17 }
 0xd43   : > { %v1534_v0 = vsel %vm1533_vm13, %v3008_v14, %v1530_v60 }
 0xd44   : > { %v1539_v24 = vsel %vm1536_vm6, %v1538_v21, %v1534_v0 }
 0xd45   : > { %v1542_v33 = vmul.f32 %v1539_v24, %v1494_v31 }
 0xd79   : > { %v1548_v12 = vpop.permute.xlu2 %1547 }
 0xd7a   : > { %v1553_v13 = vmul.f32 %v1548_v12, %v1524_v11 }
 0xd7c   : > { %1557 = vrot.lane.b32.xlu1 %v1553_v13, %s3178_s7 }
 0xd99   : > { %v1550_v22 = vpop.permute.xlu0 %1549 }
 0xd9a   : > { %v1554_v25 = vmul.f32 %v1550_v22, %v1539_v24 }
 0xd9c   : > { %1559 = vrot.lane.b32.xlu2 %v1554_v25, %s3178_s7 }
 0xdee   : > { %v1558_v63 = vpop.permute.xlu1 %1557 }
 0xdef   : > { %v3674_v28 = vadd.f32 %v1558_v63, %v1541_v26 }
 0xdf1   : > { %3009 = vtanh.f32 %v3674_v28  ;;  %v1565_v30 = vmul.f32 %v3674_v28, %v3376_v32 }
 0xdf3   : > { %1569 = vrot.lane.b32.xlu0 %v1565_v30, %s3179_s8 }
 0xdf6   : > { %v1560_v3 = vpop.permute.xlu2 %1559 }
 0xdf7   : > { %v3010_v38 = vpop.eup %3009  ;;  %v3680_v40 = vadd.f32 %v1560_v3, %v1542_v33 }
 0xdf8   : > { %1619 = vrot.lane.b32.xlu2 %v3010_v38, %s3179_s8 }
 0xdf9   : > { %3011 = vtanh.f32 %v3680_v40  ;;  %v1566_v42 = vmul.f32 %v3680_v40, %v3384_v37 }
 0xdfb   : > { %1571 = vrot.lane.b32.xlu1 %v1566_v42, %s3179_s8 }
 0xdff   : > { %v3012_v43 = vpop.eup %3011 }
 0xe00   : > { %1621 = vrot.lane.b32.xlu0 %v3012_v43, %s3179_s8 }
 0xe52   : > { %v1620_v59 = vpop.permute.xlu2 %1619 }
 0xe65   : > { %v1570_v44 = vpop.permute.xlu0 %1569 }
 0xe66   : > { %v1575_v45 = vadd.f32 %v1570_v44, %v3657_v36  ;;  %v1658_v44 = vld [vmem:[#allocation2 + $0x8] sm:$0x1] }
 0xe68   : > { %v2771_v47 = vmul.f32 -1.442695, %v1575_v45 }
 0xe6a   : > { %3013 = vpow2.f32 %v2771_v47 }
 0xe6d   : > { %v1572_v49 = vpop.permute.xlu1 %1571 }
 0xe6e   : > { %v1576_v51 = vadd.f32 %v1572_v49, %v3661_v41 }
 0xe70   : > { %v3014_v52 = vpop.eup %3013  ;;  %v2772_v31 = vmul.f32 -1.442695, %v1576_v51  ;;  %v1435_v51 = vld [vmem:[#allocation2] sm:$0xf] }
 0xe71   : > { %v1583_v55 = vadd.f32 1.0, %v3014_v52 }
 0xe72   : > { %3015 = vpow2.f32 %v2772_v31  ;;  %v1622_v21 = vpop.permute.xlu0 %1621 }
 0xe73   : > { %3017 = vrcp.f32 %v1583_v55  ;;  %v1596_v53 = vand.u32 2147483648, %v1583_v55  ;;  %v1594_v36 = vand.u32 2147483647, %v1583_v55  ;;  %vm1590_vm15 = vweird.f32 %v1583_v55 }
 0xe75   : > { %v1597_v5 = vor.u32 1.1754944e-38, %v1596_v53  ;;  %vm1595_vm1 = vcmp.eq.f32.partialorder %v1594_v36, 8.507059e+37 }
 0xe78   : > { %v3016_v56 = vpop.eup %3015 }
 0xe79   : > { %v3018_v58 = vpop.eup %3017  ;;  %v1584_v57 = vadd.f32 1.0, %v3016_v56 }
 0xe7a   : > { %v1586_v61 = vmul.f32 %v3018_v58, %v1583_v55  ;;  %vm1591_vm14 = vweird.f32 %v3018_v58 }
 0xe7b   : > { %3019 = vrcp.f32 %v1584_v57  ;;  %vm1592_vm8 = vmor %vm1590_vm15, %vm1591_vm14  ;;  %v1611_v12 = vand.u32 2147483648, %v1584_v57  ;;  %v1609_v14 = vand.u32 2147483647, %v1584_v57  ;;  %vm1605_vm12 = vweird.f32 %v1584_v57 }
 0xe7c   : > { %v1587_v50 = vsub.f32 1.0, %v1586_v61  ;;  %vm4050_vm14 = vcmask 785408  }
 0xe7d   : > { %v1612_v60 = vor.u32 1.1754944e-38, %v1611_v12  ;;  %vm1610_vm6 = vcmp.eq.f32.partialorder %v1609_v14, 8.507059e+37 }
 0xe7e   : > { %v1588_v46 = vmul.f32 %v3018_v58, %v1587_v50 }
 0xe80   : > { %v1589_v1 = vadd.f32 %v3018_v58, %v1588_v46 }
 0xe81   : > { %v3020_v4 = vpop.eup %3019 }
 0xe82   : > { %v1601_v41 = vmul.f32 %v3020_v4, %v1584_v57  ;;  %v1593_v7 = vsel %vm1592_vm8, %v3018_v58, %v1589_v1  ;;  %vm1606_vm11 = vweird.f32 %v3020_v4 }
 0xe83   : > { %v1598_v54 = vsel %vm1595_vm1, %v1597_v5, %v1593_v7  ;;  %vm1607_vm13 = vmor %vm1605_vm12, %vm1606_vm11 }
 0xe84   : > { %v1602_v8 = vsub.f32 1.0, %v1601_v41  ;;  %v1625_v11 = vmul.f32 %v1620_v59, %v1598_v54 }
 0xe86   : > { %v1603_v13 = vmul.f32 %v3020_v4, %v1602_v8  ;;  %v3690_v15 = vpack.c.bf16 %v1625_v11, %v1625_v11 }
 0xe88   : > { %v1604_v16 = vadd.f32 %v3020_v4, %v1603_v13  ;;  %v1630_v17 = vshrl.u32 %v3690_v15, 16  ;;  %v1633_v0 = vshll.u32 %v3690_v15, 16 }
 0xe8a   : > { %v1608_v19 = vsel %vm1607_vm13, %v3020_v4, %v1604_v16  ;;  %v1632_v20 = vrot.slane %v1630_v17, 7  ;;  %v2775_v16 = vld [vmem:[%s3338_s15 + $0x50] sm:$0xff] }
 0xe8b   : > { %v1613_v22 = vsel %vm1610_vm6, %v1612_v60, %v1608_v19 }
 0xe8c   : > { %v1626_v24 = vmul.f32 %v1622_v21, %v1613_v22  ;;  %v1635_v25 = vor.u32 %v1633_v0, %v1632_v20  ;;  %v1636_v38 = vrot.slane %v1632_v20, 4 }
 0xe8e   : > { %v3694_v26 = vpack.c.bf16 %v1626_v24, %v1626_v24  ;;  %1646 = vrot.lane.b32.xlu1 %v1635_v25, %s3178_s7 }
 0xe90   : > { %v1638_v63 = vshrl.u32 %v3694_v26, 16  ;;  %v1641_v30 = vshll.u32 %v3694_v26, 16 }
 0xe92   : > { %v1640_v33 = vrot.slane %v1638_v63, 7 }
 0xe94   : > { %v1645_v3 = vrot.slane %v1640_v33, 4  ;;  %v1643_v42 = vor.u32 %v1641_v30, %v1640_v33 }
 0xe96   : > { %1650 = vrot.lane.b32.xlu2 %v1645_v3, %s3178_s7  ;;  %v1644_v43 = vsel %vm3406_vm7, %v1636_v38, %v1643_v42 }
 0xe97   : > { %1648 = vrot.lane.b32.xlu0 %v1644_v43, %s3178_s7 }
 0xe9f   : > { %1663 = vrot.lane.b32.xlu0 %v3674_v28, %s3181_s11 }
 0xef0   : > { %v1651_v45 = vpop.permute.xlu2 %1650 }
 0xef1   : > { %v1659_v47 = vsel %vm3425_vm10, %v1651_v45, %v1658_v44 }
 0xef2   : > { %1660 = vst [vmem:[#allocation2 + $0x8] sm:$0x1] %v1659_v47 }
 0xef9   : > { %v1687_v31 = vld [vmem:[#allocation2 + $0x8] sm:$0x1] }
 0xefa   : > { %v1694_v56 = vunpack.c.l.b16 %v1687_v31 }
 0xefc   : > { %v1695_v58 = vpack.c.b16 %v1694_v56, %v1694_v56 }
 0xefe   : > { %v1711_v50 = vrot.slane %v1695_v58, 1  ;;  %v1704_v46 = vshll.u32 %v1695_v58, 16 }
 0xf00   : > { %v1647_v49 = vpop.permute.xlu1 %1646  ;;  %v1706_v41 = vrot.slane %v1704_v46, 1 }
 0xf01   : > { %v1655_v52 = vsel %vm3417_vm9, %v1647_v49, %v1435_v51 }
 0xf02   : > { %1656 = vst [vmem:[#allocation2] sm:$0xf] %v1655_v52 }
 0xf09   : > { %v1649_v55 = vpop.permute.xlu0 %1648 }
 0xf0a   : > { %1657 = vst.msk [vmem:[#allocation2 + $0x4] sm:$0xf] %vm352_vm0, %v1649_v55 }
 0xf11   : > { %v1664_v57 = vpop.permute.xlu0 %1663  ;;  %v2834_v28 = vld [vmem:[#allocation2] sm:$0xff] }
 0xf12   : > { %1669 = vst.msk [vmem:[#allocation3] sm:$0xff] %vm357_vm4, %v1664_v57  ;;  %v1710_v61 = vrot.slane %v2834_v28, 1  ;;  %v1699_v53 = vshll.u32 %v2834_v28, 16  ;;  %v1697_v1 = vshrl.u32 %v2834_v28, 16 }
 0xf14   : > { %v1712_v36 = vsel %vm404_vm3, %v1710_v61, %v1711_v50  ;;  %v1701_v4 = vrot.slane %v1699_v53, 1 }
 0xf15   : > { %1713 = vrot.lane.b32.xlu2 %v1712_v36, %s3179_s8 }
 0xf16   : > { %v1702_v5 = vor.u32 %v1701_v4, %v1697_v1 }
 0xf18   : > { %v1707_v7 = vsel %vm389_vm2, %v1702_v5, %v1706_v41 }
 0xf19   : > { %1708 = vrot.lane.b32.xlu1 %v1707_v7, %s3178_s7  ;;  %v1737_v59 = vld [vmem:[#allocation3] sm:$0xff] }
 0xf1d   : > { %1741 = vrot.lane.b32.xlu2 %v1737_v59, %s3178_s7 }
 0xf21   : > { %1665 = vrot.lane.b32.xlu1 %v3680_v40, %s3181_s11  ;;  %v2776_v40 = vld [vmem:[%s3338_s15 + $0x58] sm:$0xff] }
 0xf6f   : > { %v1714_v8 = vpop.permute.xlu2 %1713 }
 0xf77   : > { %v1742_v33 = vpop.permute.xlu2 %1741 }
 0xf78   : > { %v1747_v3 = vsel %vm357_vm4, %v1737_v59, %v1742_v33 }
 0xf79   : > { %v1749_v42 = vmul.f32 %v3593_v39, %v1747_v3 }
 0xf8b   : > { %v1709_v54 = vpop.permute.xlu1 %1708 }
 0xf8c   : > { %v1716_v11 = vsel %vm357_vm4, %v2834_v28, %v1709_v54 }
 0xf8d   : > { %v1718_v12 = vsel %vm413_vm5, %v1716_v11, %v1714_v8 }
 0xf8e   : > { %2781 = vmatmul.msk.bf16.vlgmr.msrb.gmra.mxu1 %vm4050_vm14, %v1718_v12 }
 0xf93   : > { %v1666_v13 = vpop.permute.xlu1 %1665 }
 0xf94   : > { %1670 = vst.msk [vmem:[#allocation3 + $0x8] sm:$0xff] %vm357_vm4, %v1666_v13 }
 0xf9b   : > { %v1738_v14 = vld [vmem:[#allocation3 + $0x8] sm:$0xff] }
 0xf9c   : > { %1743 = vrot.lane.b32.xlu0 %v1738_v14, %s3178_s7 }
0x100b   : > { %v1730_v17 = vpop.f32.mrf.mxu1 }
0x100c   : > { %v3724_v60 = vadd.f32 %v2775_v16, %v1730_v17 }
0x100e   : > { %3021 = vtanh.f32 %v3724_v60  ;;  %v1744_v22 = vpop.permute.xlu0 %1743  ;;  %v1751_v43 = vadd.f32 %v1749_v42, %v3724_v60 }
0x100f   : > { %v1748_v24 = vsel %vm357_vm4, %v1738_v14, %v1744_v22 }
0x1010   : > { %v1750_v25 = vmul.f32 %v3601_v9, %v1748_v24  ;;  %v2782_v45 = vmul.f32 -1.442695, %v1751_v43 }
0x1013   : > { %v1732_v19 = vpop.f32.mrf.mxu1 }
0x1014   : > { %v3022_v20 = vpop.eup %3021  ;;  %v3728_v0 = vadd.f32 %v2776_v40, %v1732_v19 }
0x1015   : > { %1797 = vrot.lane.b32.xlu1 %v3022_v20, %s3179_s8 }
0x1016   : > { %3023 = vtanh.f32 %v3728_v0  ;;  %v1752_v63 = vadd.f32 %v1750_v25, %v3728_v0 }
0x1018   : > { %v2783_v30 = vmul.f32 -1.442695, %v1752_v63 }
0x101a   : > { %3025 = vpow2.f32 %v2783_v30 }
0x101c   : > { %v3024_v21 = vpop.eup %3023 }
0x101d   : > { %1799 = vrot.lane.b32.xlu2 %v3024_v21, %s3179_s8 }
0x1020   : > { %v3026_v38 = vpop.eup %3025 }
0x1021   : > { %v1760_v44 = vadd.f32 1.0, %v3026_v38 }
0x1023   : > { %3027 = vrcp.f32 %v1760_v44  ;;  %v1787_v58 = vand.u32 2147483648, %v1760_v44  ;;  %vm1781_vm8 = vweird.f32 %v1760_v44  ;;  %v1785_v57 = vand.u32 2147483647, %v1760_v44 }
0x1024   : > { %3029 = vpow2.f32 %v2782_v45 }
0x1025   : > { %v1788_v61 = vor.u32 1.1754944e-38, %v1787_v58  ;;  %vm1786_vm11 = vcmp.eq.f32.partialorder %v1785_v57, 8.507059e+37 }
0x1029   : > { %v3028_v47 = vpop.eup %3027 }
0x102a   : > { %v3030_v49 = vpop.eup %3029  ;;  %v1777_v51 = vmul.f32 %v3028_v47, %v1760_v44  ;;  %vm1782_vm15 = vweird.f32 %v3028_v47 }
0x102b   : > { %v1759_v9 = vadd.f32 1.0, %v3030_v49  ;;  %vm1783_vm1 = vmor %vm1781_vm8, %vm1782_vm15 }
0x102c   : > { %v1778_v52 = vsub.f32 1.0, %v1777_v51 }
0x102d   : > { %3031 = vrcp.f32 %v1759_v9  ;;  %v1772_v5 = vand.u32 2147483648, %v1759_v9  ;;  %vm1766_vm13 = vweird.f32 %v1759_v9  ;;  %v1770_v41 = vand.u32 2147483647, %v1759_v9 }
0x102e   : > { %v1779_v31 = vmul.f32 %v3028_v47, %v1778_v52 }
0x102f   : > { %v1773_v59 = vor.u32 1.1754944e-38, %v1772_v5  ;;  %vm1771_vm14 = vcmp.eq.f32.partialorder %v1770_v41, 8.507059e+37 }
0x1030   : > { %v1780_v55 = vadd.f32 %v3028_v47, %v1779_v31 }
0x1032   : > { %v1784_v39 = vsel %vm1783_vm1, %v3028_v47, %v1780_v55 }
0x1033   : > { %v3032_v56 = vpop.eup %3031  ;;  %v1789_v53 = vsel %vm1786_vm11, %v1788_v61, %v1784_v39 }
0x1034   : > { %v1762_v28 = vmul.f32 %v3032_v56, %v1759_v9  ;;  %vm1767_vm12 = vweird.f32 %v3032_v56  ;;  %v1792_v12 = vmul.f32 %v1789_v53, %v1744_v22 }
0x1035   : > { %vm1768_vm6 = vmor %vm1766_vm13, %vm1767_vm12 }
0x1036   : > { %v1763_v36 = vsub.f32 1.0, %v1762_v28 }
0x1038   : > { %v1764_v1 = vmul.f32 %v3032_v56, %v1763_v36 }
0x103a   : > { %v1765_v4 = vadd.f32 %v3032_v56, %v1764_v1 }
0x103c   : > { %v1769_v7 = vsel %vm1768_vm6, %v3032_v56, %v1765_v4 }
0x103d   : > { %v1774_v54 = vsel %vm1771_vm14, %v1773_v59, %v1769_v7 }
0x103e   : > { %v1791_v17 = vmul.f32 %v1774_v54, %v1742_v33 }
0x1077   : > { %v1800_v50 = vpop.permute.xlu2 %1799 }
0x1078   : > { %v1804_v46 = vmul.f32 %v1800_v50, %v1789_v53 }
0x107a   : > { %1809 = vrot.lane.b32.xlu1 %v1804_v46, %s3178_s7 }
0x1087   : > { %v1798_v8 = vpop.permute.xlu1 %1797 }
0x1088   : > { %v1803_v11 = vmul.f32 %v1798_v8, %v1774_v54 }
0x108a   : > { %1807 = vrot.lane.b32.xlu0 %v1803_v11, %s3178_s7 }
0x10ec   : > { %v1810_v13 = vpop.permute.xlu1 %1809 }
0x10ed   : > { %v3741_v14 = vadd.f32 %v1810_v13, %v1792_v12 }
0x10ef   : > { %v1816_v16 = vmul.f32 %v3741_v14, %v3384_v37 }
0x10f1   : > { %1821 = vrot.lane.b32.xlu0 %v1816_v16, %s3179_s8 }
0x10fc   : > { %v1808_v40 = vpop.permute.xlu0 %1807 }
0x10fd   : > { %v3746_v19 = vadd.f32 %v1808_v40, %v1791_v17 }
0x10ff   : > { %3033 = vtanh.f32 %v3746_v19  ;;  %v1815_v20 = vmul.f32 %v3746_v19, %v3376_v32 }
0x1100   : > { %3035 = vtanh.f32 %v3741_v14 }
0x1101   : > { %1819 = vrot.lane.b32.xlu2 %v1815_v20, %s3179_s8 }
0x1105   : > { %v3034_v21 = vpop.eup %3033 }
0x1106   : > { %1869 = vrot.lane.b32.xlu1 %v3034_v21, %s3179_s8  ;;  %v3036_v22 = vpop.eup %3035 }
0x1109   : > { %1871 = vrot.lane.b32.xlu2 %v3036_v22, %s3179_s8 }
0x115b   : > { %v1820_v24 = vpop.permute.xlu2 %1819 }
0x115c   : > { %v1825_v25 = vadd.f32 %v1820_v24, %v3724_v60 }
0x115e   : > { %v2784_v63 = vmul.f32 -1.442695, %v1825_v25 }
0x1160   : > { %3037 = vpow2.f32 %v2784_v63 }
0x1163   : > { %v1822_v30 = vpop.permute.xlu0 %1821  ;;  %v1872_v59 = vpop.permute.xlu2 %1871 }
0x1164   : > { %v1826_v33 = vadd.f32 %v1822_v30, %v3728_v0  ;;  %v1685_v30 = vld [vmem:[#allocation2] sm:$0xf] }
0x1166   : > { %v3038_v3 = vpop.eup %3037  ;;  %v2785_v38 = vmul.f32 -1.442695, %v1826_v33 }
0x1167   : > { %v1833_v42 = vadd.f32 1.0, %v3038_v3  ;;  %v1908_v3 = vld [vmem:[#allocation2 + $0x8] sm:$0x1] }
0x1168   : > { %3039 = vpow2.f32 %v2785_v38 }
0x1169   : > { %3041 = vrcp.f32 %v1833_v42  ;;  %v1846_v51 = vand.u32 2147483648, %v1833_v42  ;;  %v1844_v60 = vand.u32 2147483647, %v1833_v42  ;;  %vm1840_vm8 = vweird.f32 %v1833_v42 }
0x116b   : > { %v1847_v0 = vor.u32 1.1754944e-38, %v1846_v51  ;;  %vm1845_vm11 = vcmp.eq.f32.partialorder %v1844_v60, 8.507059e+37 }
0x116e   : > { %v3040_v43 = vpop.eup %3039 }
0x116f   : > { %v3042_v44 = vpop.eup %3041  ;;  %v1834_v45 = vadd.f32 1.0, %v3040_v43 }
0x1170   : > { %v1836_v47 = vmul.f32 %v3042_v44, %v1833_v42  ;;  %vm1841_vm15 = vweird.f32 %v3042_v44 }
0x1171   : > { %3043 = vrcp.f32 %v1834_v45  ;;  %vm1842_vm1 = vmor %vm1840_vm8, %vm1841_vm15  ;;  %v1861_v61 = vand.u32 2147483648, %v1834_v45  ;;  %v1859_v46 = vand.u32 2147483647, %v1834_v45  ;;  %vm1855_vm13 = vweird.f32 %v1834_v45 }
0x1172   : > { %v1837_v49 = vsub.f32 1.0, %v1836_v47  ;;  %vm4051_vm15 = vcmask 785408  }
0x1173   : > { %v1862_v4 = vor.u32 1.1754944e-38, %v1861_v61  ;;  %vm1860_vm14 = vcmp.eq.f32.partialorder %v1859_v46, 8.507059e+37 }
0x1174   : > { %v1838_v9 = vmul.f32 %v3042_v44, %v1837_v49 }
0x1176   : > { %v1839_v52 = vadd.f32 %v3042_v44, %v1838_v9 }
0x1177   : > { %v3044_v31 = vpop.eup %3043 }
0x1178   : > { %v1851_v55 = vmul.f32 %v3044_v31, %v1834_v45  ;;  %v1843_v56 = vsel %vm1842_vm1, %v3042_v44, %v1839_v52  ;;  %v1870_v58 = vpop.permute.xlu1 %1869  ;;  %vm1856_vm12 = vweird.f32 %v3044_v31 }
0x1179   : > { %v1848_v57 = vsel %vm1845_vm11, %v1847_v0, %v1843_v56  ;;  %vm1857_vm6 = vmor %vm1855_vm13, %vm1856_vm12 }
0x117a   : > { %v1852_v39 = vsub.f32 1.0, %v1851_v55  ;;  %v1875_v28 = vmul.f32 %v1870_v58, %v1848_v57 }
0x117c   : > { %v1853_v50 = vmul.f32 %v3044_v31, %v1852_v39  ;;  %v3757_v53 = vpack.c.bf16 %v1875_v28, %v1875_v28 }
0x117e   : > { %v1880_v36 = vshrl.u32 %v3757_v53, 16  ;;  %v1854_v1 = vadd.f32 %v3044_v31, %v1853_v50  ;;  %v1883_v5 = vshll.u32 %v3757_v53, 16 }
0x1180   : > { %v1882_v41 = vrot.slane %v1880_v36, 7  ;;  %v1858_v7 = vsel %vm1857_vm6, %v3044_v31, %v1854_v1  ;;  %v2788_v36 = vld [vmem:[%s3338_s15 + $0x60] sm:$0xff] }
0x1181   : > { %v1863_v54 = vsel %vm1860_vm14, %v1862_v4, %v1858_v7 }
0x1182   : > { %v1885_v8 = vor.u32 %v1883_v5, %v1882_v41  ;;  %v1876_v11 = vmul.f32 %v1872_v59, %v1863_v54  ;;  %v1886_v20 = vrot.slane %v1882_v41, 4 }
0x1184   : > { %1896 = vrot.lane.b32.xlu0 %v1885_v8, %s3178_s7  ;;  %v3762_v12 = vpack.c.bf16 %v1876_v11, %v1876_v11  ;;  %v3804_v11 = vld [vmem:[%s4036_s2] sm:$0xff] }
0x1186   : > { %v1888_v13 = vshrl.u32 %v3762_v12, 16  ;;  %v1891_v17 = vshll.u32 %v3762_v12, 16 }
0x1188   : > { %v1890_v16 = vrot.slane %v1888_v13, 7 }
0x118a   : > { %v1895_v40 = vrot.slane %v1890_v16, 4  ;;  %v1893_v21 = vor.u32 %v1891_v17, %v1890_v16 }
0x118c   : > { %1900 = vrot.lane.b32.xlu1 %v1895_v40, %s3178_s7  ;;  %v1894_v22 = vsel %vm3406_vm7, %v1886_v20, %v1893_v21  ;;  %v3812_v21 = vld [vmem:[%s4036_s2 + $0x8] sm:$0xff] }
0x118d   : > { %1898 = vrot.lane.b32.xlu2 %v1894_v22, %s3178_s7 }
0x1195   : > { %1913 = vrot.lane.b32.xlu2 %v3746_v19, %s3181_s11 }
0x11e7   : > { %v1899_v24 = vpop.permute.xlu2 %1898 }
0x11e8   : > { %1907 = vst.msk [vmem:[#allocation2 + $0x4] sm:$0xf] %vm352_vm0, %v1899_v24 }
0x11ef   : > { %v1914_v25 = vpop.permute.xlu2 %1913 }
0x11f0   : > { %1919 = vst.msk [vmem:[#allocation3] sm:$0xff] %vm357_vm4, %v1914_v25 }
0x11f6   : > { %v1897_v63 = vpop.permute.xlu0 %1896 }
0x11f7   : > { %v1905_v33 = vsel %vm3417_vm9, %v1897_v63, %v1685_v30  ;;  %v1987_v58 = vld [vmem:[#allocation3] sm:$0xff] }
0x11f8   : > { %1906 = vst [vmem:[#allocation2] sm:$0xf] %v1905_v33 }
0x11fe   : > { %v1901_v38 = vpop.permute.xlu1 %1900 }
0x11ff   : > { %v1909_v42 = vsel %vm3425_vm10, %v1901_v38, %v1908_v3  ;;  %v2835_v43 = vld [vmem:[#allocation2] sm:$0xff] }
0x1200   : > { %1910 = vst [vmem:[#allocation2 + $0x8] sm:$0x1] %v1909_v42  ;;  %v1949_v19 = vshll.u32 %v2835_v43, 16  ;;  %v1960_v51 = vrot.slane %v2835_v43, 1  ;;  %v1947_v60 = vshrl.u32 %v2835_v43, 16 }
0x1202   : > { %v1951_v49 = vrot.slane %v1949_v19, 1 }
0x1204   : > { %v1952_v0 = vor.u32 %v1951_v49, %v1947_v60 }
0x1207   : > { %v1937_v44 = vld [vmem:[#allocation2 + $0x8] sm:$0x1] }
0x1208   : > { %v1944_v45 = vunpack.c.l.b16 %v1937_v44 }
0x120a   : > { %v1945_v47 = vpack.c.b16 %v1944_v45, %v1944_v45 }
0x120c   : > { %v1961_v9 = vrot.slane %v1945_v47, 1  ;;  %v1954_v52 = vshll.u32 %v1945_v47, 16 }
0x120e   : > { %v1962_v31 = vsel %vm404_vm3, %v1960_v51, %v1961_v9  ;;  %v1956_v55 = vrot.slane %v1954_v52, 1 }
0x120f   : > { %1963 = vrot.lane.b32.xlu1 %v1962_v31, %s3179_s8 }
0x1210   : > { %v1957_v56 = vsel %vm389_vm2, %v1952_v0, %v1956_v55 }
0x1211   : > { %1958 = vrot.lane.b32.xlu0 %v1957_v56, %s3178_s7 }
0x1217   : > { %1991 = vrot.lane.b32.xlu1 %v1987_v58, %s3178_s7 }
0x1219   : > { %1915 = vrot.lane.b32.xlu0 %v3741_v14, %s3181_s11  ;;  %v2789_v14 = vld [vmem:[%s3338_s15 + $0x68] sm:$0xff] }
0x1281   : > { %v1964_v39 = vpop.permute.xlu1 %1963 }
0x1283   : > { %v1959_v57 = vpop.permute.xlu0 %1958 }
0x1284   : > { %v1966_v28 = vsel %vm357_vm4, %v2835_v43, %v1959_v57 }
0x1285   : > { %v1968_v61 = vsel %vm413_vm5, %v1966_v28, %v1964_v39 }
0x1286   : > { %2794 = vmatmul.msk.bf16.vlgmr.msrb.gmra.mxu2 %vm4051_vm15, %v1968_v61 }
0x1289   : > { %v1992_v54 = vpop.permute.xlu1 %1991 }
0x128a   : > { %v1997_v8 = vsel %vm357_vm4, %v1987_v58, %v1992_v54 }
0x128b   : > { %v1916_v50 = vpop.permute.xlu0 %1915  ;;  %v1999_v13 = vmul.f32 %v3804_v11, %v1997_v8 }
0x128c   : > { %1920 = vst.msk [vmem:[#allocation3 + $0x8] sm:$0xff] %vm357_vm4, %v1916_v50 }
0x1293   : > { %v1988_v46 = vld [vmem:[#allocation3 + $0x8] sm:$0xff] }
0x1294   : > { %1993 = vrot.lane.b32.xlu2 %v1988_v46, %s3178_s7 }
0x12ee   : > { %v1994_v16 = vpop.permute.xlu2 %1993 }
0x12ef   : > { %v1998_v40 = vsel %vm357_vm4, %v1988_v46, %v1994_v16 }
0x12f0   : > { %v2000_v22 = vmul.f32 %v3812_v21, %v1998_v40 }
0x1309   : > { %v1980_v1 = vpop.f32.mrf.mxu2 }
0x130a   : > { %v3791_v4 = vadd.f32 %v2788_v36, %v1980_v1 }
0x130c   : > { %3045 = vtanh.f32 %v3791_v4  ;;  %v2001_v17 = vadd.f32 %v1999_v13, %v3791_v4 }
0x130e   : > { %v2795_v20 = vmul.f32 -1.442695, %v2001_v17 }
0x1311   : > { %v1982_v5 = vpop.f32.mrf.mxu2 }
0x1312   : > { %v3046_v41 = vpop.eup %3045  ;;  %v3795_v7 = vadd.f32 %v2789_v14, %v1982_v5 }
0x1313   : > { %2047 = vrot.lane.b32.xlu0 %v3046_v41, %s3179_s8 }
0x1314   : > { %3047 = vtanh.f32 %v3795_v7  ;;  %v2002_v24 = vadd.f32 %v2000_v22, %v3795_v7 }
0x1315   : > { %3049 = vpow2.f32 %v2795_v20 }
0x1316   : > { %v2796_v25 = vmul.f32 -1.442695, %v2002_v24 }
0x1318   : > { %3051 = vpow2.f32 %v2796_v25 }
0x131a   : > { %v3048_v59 = vpop.eup %3047 }
0x131b   : > { %2049 = vrot.lane.b32.xlu1 %v3048_v59, %s3179_s8  ;;  %v3050_v63 = vpop.eup %3049 }
0x131c   : > { %v2009_v30 = vadd.f32 1.0, %v3050_v63 }
0x131e   : > { %3053 = vrcp.f32 %v2009_v30  ;;  %v3052_v33 = vpop.eup %3051  ;;  %v2022_v51 = vand.u32 2147483648, %v2009_v30  ;;  %vm2016_vm1 = vweird.f32 %v2009_v30  ;;  %v2020_v9 = vand.u32 2147483647, %v2009_v30 }
0x131f   : > { %v2010_v3 = vadd.f32 1.0, %v3052_v33 }
0x1320   : > { %v2023_v31 = vor.u32 1.1754944e-38, %v2022_v51  ;;  %vm2021_vm12 = vcmp.eq.f32.partialorder %v2020_v9, 8.507059e+37 }
0x1321   : > { %3055 = vrcp.f32 %v2010_v3  ;;  %v2037_v57 = vand.u32 2147483648, %v2010_v3  ;;  %vm2031_vm6 = vweird.f32 %v2010_v3  ;;  %v2035_v39 = vand.u32 2147483647, %v2010_v3 }
0x1323   : > { %v2038_v61 = vor.u32 1.1754944e-38, %v2037_v57  ;;  %vm2036_vm15 = vcmp.eq.f32.partialorder %v2035_v39, 8.507059e+37 }
0x1324   : > { %v3054_v38 = vpop.eup %3053 }
0x1325   : > { %v2012_v42 = vmul.f32 %v3054_v38, %v2009_v30  ;;  %vm2017_vm8 = vweird.f32 %v3054_v38 }
0x1326   : > { %vm2018_vm11 = vmor %vm2016_vm1, %vm2017_vm8 }
0x1327   : > { %v2013_v43 = vsub.f32 1.0, %v2012_v42  ;;  %v3056_v19 = vpop.eup %3055 }
0x1328   : > { %v2027_v45 = vmul.f32 %v3056_v19, %v2010_v3  ;;  %vm2032_vm13 = vweird.f32 %v3056_v19 }
0x1329   : > { %v2014_v44 = vmul.f32 %v3054_v38, %v2013_v43  ;;  %vm2033_vm14 = vmor %vm2031_vm6, %vm2032_vm13 }
0x132a   : > { %v2028_v49 = vsub.f32 1.0, %v2027_v45 }
0x132b   : > { %v2015_v47 = vadd.f32 %v3054_v38, %v2014_v44 }
0x132c   : > { %v2029_v52 = vmul.f32 %v3056_v19, %v2028_v49 }
0x132d   : > { %v2019_v60 = vsel %vm2018_vm11, %v3054_v38, %v2015_v47 }
0x132e   : > { %v2024_v0 = vsel %vm2021_vm12, %v2023_v31, %v2019_v60  ;;  %v2030_v58 = vadd.f32 %v3056_v19, %v2029_v52 }
0x132f   : > { %v2041_v1 = vmul.f32 %v2024_v0, %v1992_v54 }
0x1330   : > { %v2034_v28 = vsel %vm2033_vm14, %v3056_v19, %v2030_v58 }
0x1331   : > { %v2039_v46 = vsel %vm2036_vm15, %v2038_v61, %v2034_v28 }
0x1332   : > { %v2042_v8 = vmul.f32 %v2039_v46, %v1994_v16 }
0x1385   : > { %v2048_v55 = vpop.permute.xlu0 %2047 }
0x1386   : > { %v2053_v56 = vmul.f32 %v2048_v55, %v2024_v0 }
0x1388   : > { %2057 = vrot.lane.b32.xlu2 %v2053_v56, %s3178_s7 }
0x138d   : > { %v2050_v50 = vpop.permute.xlu1 %2049 }
0x138e   : > { %v2054_v36 = vmul.f32 %v2050_v50, %v2039_v46 }
0x1390   : > { %2059 = vrot.lane.b32.xlu0 %v2054_v36, %s3178_s7 }
0x13e2   : > { %v2058_v14 = vpop.permute.xlu2 %2057 }
0x13e3   : > { %v3818_v5 = vadd.f32 %v2058_v14, %v2041_v1 }
0x13e5   : > { %3057 = vtanh.f32 %v3818_v5  ;;  %v2065_v41 = vmul.f32 %v3818_v5, %v3376_v32 }
0x13e7   : > { %2069 = vrot.lane.b32.xlu1 %v2065_v41, %s3179_s8 }
0x13eb   : > { %v3058_v59 = vpop.eup %3057 }
0x13ec   : > { %2119 = vrot.lane.b32.xlu0 %v3058_v59, %s3179_s8 }
0x1402   : > { %v2060_v13 = vpop.permute.xlu0 %2059 }
0x1403   : > { %v3825_v17 = vadd.f32 %v2060_v13, %v2042_v8 }
0x1405   : > { %3059 = vtanh.f32 %v3825_v17  ;;  %v2066_v54 = vmul.f32 %v3825_v17, %v3384_v37 }
0x1407   : > { %2071 = vrot.lane.b32.xlu2 %v2066_v54, %s3179_s8 }
0x140b   : > { %v3060_v40 = vpop.eup %3059 }
0x140c   : > { %2121 = vrot.lane.b32.xlu1 %v3060_v40, %s3179_s8 }
0x1459   : > { %v2070_v20 = vpop.permute.xlu1 %2069 }
0x145a   : > { %v2075_v22 = vadd.f32 %v2070_v20, %v3791_v4 }
0x145c   : > { %v2797_v24 = vmul.f32 -1.442695, %v2075_v22 }
0x145e   : > { %3061 = vpow2.f32 %v2797_v24  ;;  %v2120_v52 = vpop.permute.xlu0 %2119 }
0x1461   : > { %v2072_v25 = vpop.permute.xlu2 %2071 }
0x1462   : > { %v2076_v16 = vadd.f32 %v2072_v25, %v3795_v7 }
0x1464   : > { %v3062_v63 = vpop.eup %3061  ;;  %v2798_v30 = vmul.f32 -1.442695, %v2076_v16 }
0x1465   : > { %v2083_v33 = vadd.f32 1.0, %v3062_v63  ;;  %v1935_v63 = vld [vmem:[#allocation2] sm:$0xf] }
0x1466   : > { %3063 = vpow2.f32 %v2798_v30 }
0x1467   : > { %3065 = vrcp.f32 %v2083_v33  ;;  %v2096_v44 = vand.u32 2147483648, %v2083_v33  ;;  %v2094_v4 = vand.u32 2147483647, %v2083_v33  ;;  %vm2090_vm1 = vweird.f32 %v2083_v33 }
0x1469   : > { %v2097_v7 = vor.u32 1.1754944e-38, %v2096_v44  ;;  %vm2095_vm12 = vcmp.eq.f32.partialorder %v2094_v4, 8.507059e+37 }
0x146c   : > { %v3064_v3 = vpop.eup %3063 }
0x146d   : > { %v3066_v38 = vpop.eup %3065  ;;  %v2084_v42 = vadd.f32 1.0, %v3064_v3 }
0x146e   : > { %v2086_v43 = vmul.f32 %v3066_v38, %v2083_v33  ;;  %vm2091_vm8 = vweird.f32 %v3066_v38  ;;  %v2158_v33 = vld [vmem:[#allocation2 + $0x8] sm:$0x1] }
0x146f   : > { %3067 = vrcp.f32 %v2084_v42  ;;  %vm2092_vm11 = vmor %vm2090_vm1, %vm2091_vm8  ;;  %v2111_v55 = vand.u32 2147483648, %v2084_v42  ;;  %v2109_v57 = vand.u32 2147483647, %v2084_v42  ;;  %vm2105_vm6 = vweird.f32 %v2084_v42 }
0x1470   : > { %v2087_v19 = vsub.f32 1.0, %v2086_v43 }
0x1471   : > { %v2112_v61 = vor.u32 1.1754944e-38, %v2111_v55  ;;  %vm2110_vm15 = vcmp.eq.f32.partialorder %v2109_v57, 8.507059e+37 }
0x1472   : > { %v2088_v45 = vmul.f32 %v3066_v38, %v2087_v19 }
0x1474   : > { %v2089_v47 = vadd.f32 %v3066_v38, %v2088_v45 }
0x1475   : > { %v3068_v49 = vpop.eup %3067 }
0x1476   : > { %v2093_v51 = vsel %vm2092_vm11, %v3066_v38, %v2089_v47  ;;  %v2101_v9 = vmul.f32 %v3068_v49, %v2084_v42  ;;  %vm2106_vm13 = vweird.f32 %v3068_v49 }
0x1477   : > { %v2098_v60 = vsel %vm2095_vm12, %v2097_v7, %v2093_v51  ;;  %vm2107_vm14 = vmor %vm2105_vm6, %vm2106_vm13 }
0x1478   : > { %v2125_v31 = vmul.f32 %v2120_v52, %v2098_v60  ;;  %v2102_v0 = vsub.f32 1.0, %v2101_v9 }
0x147a   : > { %v3834_v56 = vpack.c.bf16 %v2125_v31, %v2125_v31  ;;  %v2103_v58 = vmul.f32 %v3068_v49, %v2102_v0 }
0x147c   : > { %v2130_v39 = vshrl.u32 %v3834_v56, 16  ;;  %v2104_v28 = vadd.f32 %v3068_v49, %v2103_v58  ;;  %v2133_v50 = vshll.u32 %v3834_v56, 16 }
0x147e   : > { %v2122_v46 = vpop.permute.xlu1 %2121  ;;  %v2108_v36 = vsel %vm2107_vm14, %v3068_v49, %v2104_v28  ;;  %v2132_v1 = vrot.slane %v2130_v39, 7 }
0x147f   : > { %v2113_v14 = vsel %vm2110_vm15, %v2112_v61, %v2108_v36 }
0x1480   : > { %v2126_v41 = vmul.f32 %v2122_v46, %v2113_v14  ;;  %v2135_v59 = vor.u32 %v2133_v50, %v2132_v1  ;;  %v2136_v22 = vrot.slane %v2132_v1, 4  ;;  %v2801_v46 = vld [vmem:[%s3338_s15 + $0x70] sm:$0xff] }
0x1482   : > { %v3838_v8 = vpack.c.bf16 %v2126_v41, %v2126_v41  ;;  %2146 = vrot.lane.b32.xlu2 %v2135_v59, %s3178_s7 }
0x1484   : > { %v2138_v13 = vshrl.u32 %v3838_v8, 16  ;;  %v2141_v54 = vshll.u32 %v3838_v8, 16 }
0x1486   : > { %v2140_v40 = vrot.slane %v2138_v13, 7 }
0x1488   : > { %v2145_v20 = vrot.slane %v2140_v40, 4  ;;  %v2143_v24 = vor.u32 %v2141_v54, %v2140_v40 }
0x148a   : > { %2150 = vrot.lane.b32.xlu0 %v2145_v20, %s3178_s7  ;;  %v2144_v25 = vsel %vm3406_vm7, %v2136_v22, %v2143_v24 }
0x148b   : > { %2148 = vrot.lane.b32.xlu1 %v2144_v25, %s3178_s7 }
0x1493   : > { %2163 = vrot.lane.b32.xlu1 %v3818_v5, %s3181_s11 }
0x14dc   : > { %v2147_v16 = vpop.permute.xlu2 %2146 }
0x14dd   : > { %v2155_v30 = vsel %vm3417_vm9, %v2147_v16, %v1935_v63 }
0x14de   : > { %2156 = vst [vmem:[#allocation2] sm:$0xf] %v2155_v30 }
0x14fc   : > { %v2151_v3 = vpop.permute.xlu0 %2150 }
0x14fd   : > { %v2159_v38 = vsel %vm3425_vm10, %v2151_v3, %v2158_v33  ;;  %v2149_v42 = vpop.permute.xlu1 %2148 }
0x14fe   : > { %2160 = vst [vmem:[#allocation2 + $0x8] sm:$0x1] %v2159_v38 }
0x14ff   : > { %2157 = vst.msk [vmem:[#allocation2 + $0x4] sm:$0xf] %vm352_vm0, %v2149_v42 }
0x1505   : > { %v2164_v43 = vpop.permute.xlu1 %2163  ;;  %v2187_v19 = vld [vmem:[#allocation2 + $0x8] sm:$0x1] }
0x1506   : > { %2169 = vst.msk [vmem:[#allocation3] sm:$0xff] %vm357_vm4, %v2164_v43  ;;  %v2836_v5 = vld [vmem:[#allocation2] sm:$0xff]  ;;  %v2194_v44 = vunpack.c.l.b16 %v2187_v19 }
0x1507   : > { %v2199_v4 = vshll.u32 %v2836_v5, 16  ;;  %v2210_v47 = vrot.slane %v2836_v5, 1  ;;  %v2197_v7 = vshrl.u32 %v2836_v5, 16 }
0x1508   : > { %v2195_v45 = vpack.c.b16 %v2194_v44, %v2194_v44 }
0x1509   : > { %v2201_v51 = vrot.slane %v2199_v4, 1 }
0x150a   : > { %v2211_v49 = vrot.slane %v2195_v45, 1  ;;  %v2204_v9 = vshll.u32 %v2195_v45, 16 }
0x150b   : > { %v2202_v52 = vor.u32 %v2201_v51, %v2197_v7 }
0x150c   : > { %v2212_v60 = vsel %vm404_vm3, %v2210_v47, %v2211_v49  ;;  %v2206_v31 = vrot.slane %v2204_v9, 1 }
0x150d   : > { %2213 = vrot.lane.b32.xlu0 %v2212_v60, %s3179_s8  ;;  %v2237_v55 = vld [vmem:[#allocation3] sm:$0xff] }
0x150e   : > { %v2207_v0 = vsel %vm389_vm2, %v2202_v52, %v2206_v31  ;;  %vm4052_vm2 = vcmask 785408  }
0x150f   : > { %2208 = vrot.lane.b32.xlu2 %v2207_v0, %s3178_s7 }
0x1515   : > { %2241 = vrot.lane.b32.xlu0 %v2237_v55, %s3178_s7 }
0x1517   : > { %2165 = vrot.lane.b32.xlu2 %v3825_v17, %s3181_s11  ;;  %v2802_v17 = vld [vmem:[%s3338_s15 + $0x78] sm:$0xff] }
0x1569   : > { %v2209_v58 = vpop.permute.xlu2 %2208 }
0x156a   : > { %v2216_v28 = vsel %vm357_vm4, %v2836_v5, %v2209_v58 }
0x1571   : > { %v2166_v57 = vpop.permute.xlu2 %2165 }
0x1572   : > { %2170 = vst.msk [vmem:[#allocation3 + $0x8] sm:$0xff] %vm357_vm4, %v2166_v57 }
0x1579   : > { %v2238_v39 = vld [vmem:[#allocation3 + $0x8] sm:$0xff] }
0x157a   : > { %2243 = vrot.lane.b32.xlu1 %v2238_v39, %s3178_s7 }
0x157f   : > { %v2214_v61 = vpop.permute.xlu0 %2213 }
0x1580   : > { %v2218_v50 = vsel %vm413_vm5, %v2216_v28, %v2214_v61 }
0x1581   : > { %2807 = vmatmul.msk.bf16.vlgmr.msrb.gmra.mxu3 %vm4052_vm2, %v2218_v50 }
0x1587   : > { %v2242_v54 = vpop.permute.xlu0 %2241 }
0x1588   : > { %v2247_v40 = vsel %vm357_vm4, %v2237_v55, %v2242_v54 }
0x1589   : > { %v2249_v20 = vmul.f32 %v3804_v11, %v2247_v40 }
0x15ec   : > { %v2244_v63 = vpop.permute.xlu1 %2243 }
0x15ed   : > { %v2248_v33 = vsel %vm357_vm4, %v2238_v39, %v2244_v63 }
0x15ee   : > { %v2250_v3 = vmul.f32 %v3812_v21, %v2248_v33 }
0x1604   : > { %v2230_v36 = vpop.f32.mrf.mxu3 }
0x1605   : > { %v3868_v1 = vadd.f32 %v2801_v46, %v2230_v36 }
0x1607   : > { %3069 = vtanh.f32 %v3868_v1  ;;  %v2251_v22 = vadd.f32 %v2249_v20, %v3868_v1 }
0x1609   : > { %v2808_v24 = vmul.f32 -1.442695, %v2251_v22 }
0x160c   : > { %v2232_v14 = vpop.f32.mrf.mxu3 }
0x160d   : > { %v3070_v41 = vpop.eup %3069  ;;  %v3872_v59 = vadd.f32 %v2802_v17, %v2232_v14 }
0x160e   : > { %2297 = vrot.lane.b32.xlu2 %v3070_v41, %s3179_s8 }
0x160f   : > { %3071 = vtanh.f32 %v3872_v59  ;;  %v2252_v42 = vadd.f32 %v2250_v3, %v3872_v59 }
0x1610   : > { %3073 = vpow2.f32 %v2808_v24 }
0x1611   : > { %v2809_v19 = vmul.f32 -1.442695, %v2252_v42 }
0x1615   : > { %v3072_v13 = vpop.eup %3071 }
0x1616   : > { %2299 = vrot.lane.b32.xlu0 %v3072_v13, %s3179_s8  ;;  %v3074_v25 = vpop.eup %3073 }
0x1617   : > { %v2259_v16 = vadd.f32 1.0, %v3074_v25 }
0x1619   : > { %3075 = vrcp.f32 %v2259_v16  ;;  %v2272_v44 = vand.u32 2147483648, %v2259_v16  ;;  %vm2266_vm5 = vweird.f32 %v2259_v16  ;;  %v2270_v45 = vand.u32 2147483647, %v2259_v16 }
0x161a   : > { %3077 = vpow2.f32 %v2809_v19 }
0x161b   : > { %v2273_v49 = vor.u32 1.1754944e-38, %v2272_v44  ;;  %vm2271_vm1 = vcmp.eq.f32.partialorder %v2270_v45, 8.507059e+37 }
0x161f   : > { %v3076_v30 = vpop.eup %3075 }
0x1620   : > { %v2262_v38 = vmul.f32 %v3076_v30, %v2259_v16  ;;  %vm2267_vm3 = vweird.f32 %v3076_v30  ;;  %v3078_v4 = vpop.eup %3077 }
0x1621   : > { %vm2268_vm8 = vmor %vm2266_vm5, %vm2267_vm3  ;;  %v2260_v7 = vadd.f32 1.0, %v3078_v4 }
0x1622   : > { %v2263_v43 = vsub.f32 1.0, %v2262_v38 }
0x1623   : > { %3079 = vrcp.f32 %v2260_v7  ;;  %v2287_v58 = vand.u32 2147483648, %v2260_v7  ;;  %vm2281_vm12 = vweird.f32 %v2260_v7  ;;  %v2285_v57 = vand.u32 2147483647, %v2260_v7 }
0x1624   : > { %v2264_v5 = vmul.f32 %v3076_v30, %v2263_v43 }
0x1625   : > { %v2288_v28 = vor.u32 1.1754944e-38, %v2287_v58  ;;  %vm2286_vm6 = vcmp.eq.f32.partialorder %v2285_v57, 8.507059e+37 }
0x1626   : > { %v2265_v11 = vadd.f32 %v3076_v30, %v2264_v5 }
0x1628   : > { %v2269_v47 = vsel %vm2268_vm8, %v3076_v30, %v2265_v11 }
0x1629   : > { %v2274_v51 = vsel %vm2271_vm1, %v2273_v49, %v2269_v47  ;;  %v3080_v60 = vpop.eup %3079 }
0x162a   : > { %v2277_v52 = vmul.f32 %v3080_v60, %v2260_v7  ;;  %vm2282_vm11 = vweird.f32 %v3080_v60  ;;  %v2291_v36 = vmul.f32 %v2274_v51, %v2242_v54 }
0x162b   : > { %vm2283_vm13 = vmor %vm2281_vm12, %vm2282_vm11 }
0x162c   : > { %v2278_v31 = vsub.f32 1.0, %v2277_v52 }
0x162e   : > { %v2279_v0 = vmul.f32 %v3080_v60, %v2278_v31 }
0x1630   : > { %v2280_v55 = vadd.f32 %v3080_v60, %v2279_v0 }
0x1632   : > { %v2284_v39 = vsel %vm2283_vm13, %v3080_v60, %v2280_v55 }
0x1633   : > { %v2289_v50 = vsel %vm2286_vm6, %v2288_v28, %v2284_v39 }
0x1634   : > { %v2292_v13 = vmul.f32 %v2289_v50, %v2244_v63 }
0x1668   : > { %v2298_v21 = vpop.permute.xlu2 %2297 }
0x1669   : > { %v2303_v9 = vmul.f32 %v2298_v21, %v2274_v51 }
0x166b   : > { %2307 = vrot.lane.b32.xlu1 %v2303_v9, %s3178_s7 }
0x1688   : > { %v2300_v61 = vpop.permute.xlu0 %2299 }
0x1689   : > { %v2304_v46 = vmul.f32 %v2300_v61, %v2289_v50 }
0x168b   : > { %2309 = vrot.lane.b32.xlu2 %v2304_v46, %s3178_s7 }
0x16dd   : > { %v2308_v17 = vpop.permute.xlu1 %2307 }
0x16de   : > { %v2313_v14 = vadd.f32 %v2308_v17, %v2291_v36 }
0x16e0   : > { %3081 = vtanh.f32 %v2313_v14  ;;  %v2315_v41 = vmul.f32 %v2313_v14, %v3376_v32 }
0x16e2   : > { %2319 = vrot.lane.b32.xlu0 %v2315_v41, %s3179_s8 }
0x16e5   : > { %v2310_v40 = vpop.permute.xlu2 %2309 }
0x16e6   : > { %v3082_v20 = vpop.eup %3081  ;;  %v2314_v22 = vadd.f32 %v2310_v40, %v2292_v13 }
0x16e7   : > { %2369 = vrot.lane.b32.xlu2 %v3082_v20, %s3179_s8 }
0x16e8   : > { %3083 = vtanh.f32 %v2314_v22  ;;  %v2316_v24 = vmul.f32 %v2314_v22, %v3384_v37 }
0x16ea   : > { %2321 = vrot.lane.b32.xlu1 %v2316_v24, %s3179_s8 }
0x16ee   : > { %v3084_v25 = vpop.eup %3083 }
0x16ef   : > { %676 = vrot.lane.b32.xlu2 %v3396_v2, %s3178_s7  ;;  %2371 = vrot.lane.b32.xlu0 %v3084_v25, %s3179_s8  ;;  %s2688_s8 = sshll.u32 %s3335_s13, 6 }
0x16f0   : > { %s3922_s15 = scalar_lea.vmem [#allocation5], %s2688_s8 }
0x16f2   : > { %674 = vrot.lane.b32.xlu1 %v3400_v18, %s3178_s7 }
0x16f7   : > { %1173 = vrot.lane.b32.xlu2 %v3546_v62, %s3178_s7  ;;  %923 = vrot.lane.b32.xlu0 %v3479_v35, %s3178_s7 }
0x16fa   : > { %925 = vrot.lane.b32.xlu1 %v3483_v48, %s3178_s7 }
0x16ff   : > { %2415 = vrot.lane.b32.xlu2 %v2314_v22, %s3181_s11  ;;  %1175 = vrot.lane.b32.xlu0 %v3551_v10, %s3178_s7 }
0x1702   : > { %2413 = vrot.lane.b32.xlu1 %v2313_v14, %s3181_s11  ;;  %s2837_s11 = sshll.u32 (%p3253_p5), %s3167_s21, 3 }
0x1703   : > { %s2456_s16 = scalar_lea.vmem (%p3253_p5), %s4038_s4, %s2837_s11 }
0x1707   : > { %1423 = vrot.lane.b32.xlu2 %v3623_v6, %s3178_s7  ;;  %1425 = vrot.lane.b32.xlu0 %v3627_v27, %s3178_s7 }
0x170a   : > { %1673 = vrot.lane.b32.xlu1 %v3690_v15, %s3178_s7 }
0x170f   : > { %1675 = vrot.lane.b32.xlu2 %v3694_v26, %s3178_s7  ;;  %1923 = vrot.lane.b32.xlu0 %v3757_v53, %s3178_s7 }
0x1712   : > { %1925 = vrot.lane.b32.xlu1 %v3762_v12, %s3178_s7 }
0x1717   : > { %2173 = vrot.lane.b32.xlu2 %v3834_v56, %s3178_s7  ;;  %2175 = vrot.lane.b32.xlu0 %v3838_v8, %s3178_s7 }
0x1741   : > { %v2370_v32 = vpop.permute.xlu2 %2369 }
0x1749   : > { %v677_v37 = vpop.permute.xlu2 %676 }
0x174a   : > { %681 = vst.msk [vmem:[%s3922_s15 + $0x4] sm:$0xf] %vm352_vm0, %v677_v37 }
0x1751   : > { %v1174_v2 = vpop.permute.xlu2 %1173 }
0x1752   : > { %2747 = vst.msk [vmem:[%s3922_s15 + $0x10] sm:$0xf] %vm352_vm0, %v1174_v2 }
0x1754   : > { %v2320_v18 = vpop.permute.xlu0 %2319 }
0x1755   : > { %v2325_v35 = vadd.f32 %v2320_v18, %v3868_v1 }
0x1757   : > { %v2810_v48 = vmul.f32 -1.442695, %v2325_v35 }
0x1759   : > { %3085 = vpow2.f32 %v2810_v48  ;;  %v2416_v62 = vpop.permute.xlu2 %2415 }
0x175a   : > { %2420 = vst.msk [vmem:[#allocation3 + $0x8] sm:$0xff] %vm357_vm4, %v2416_v62  ;;  %v2185_v62 = vld [vmem:[#allocation2] sm:$0xf] }
0x175c   : > { %v2322_v10 = vpop.permute.xlu1 %2321 }
0x175d   : > { %v2326_v6 = vadd.f32 %v2322_v10, %v3872_v59 }
0x175f   : > { %v3086_v27 = vpop.eup %3085  ;;  %v2811_v15 = vmul.f32 -1.442695, %v2326_v6  ;;  %v2408_v6 = vld [vmem:[#allocation2 + $0x8] sm:$0x1] }
0x1760   : > { %v2333_v26 = vadd.f32 1.0, %v3086_v27 }
0x1761   : > { %v2436_v53 = vld [vmem:[#allocation3 + $0x8] sm:$0xff]  ;;  %3087 = vpow2.f32 %v2811_v15  ;;  %v2372_v12 = vpop.permute.xlu0 %2371  ;;  %v1424_v56 = vpop.permute.xlu2 %1423 }
0x1762   : > { %3089 = vrcp.f32 %v2333_v26  ;;  %2438 = vst.msk [vmem:[%s3932_s10 + $0x8] sm:$0xff] %vm357_vm4, %v2436_v53  ;;  %v2346_v38 = vand.u32 2147483648, %v2333_v26  ;;  %v2344_v43 = vand.u32 2147483647, %v2333_v26  ;;  %vm2340_vm15 = vweird.f32 %v2333_v26 }
0x1763   : > { %2760 = vst.msk [vmem:[%s3922_s15 + $0x18] sm:$0xf] %vm352_vm0, %v1424_v56 }
0x1764   : > { %v675_v8 = vpop.permute.xlu1 %674  ;;  %v2347_v11 = vor.u32 1.1754944e-38, %v2346_v38  ;;  %vm2345_vm3 = vcmp.eq.f32.partialorder %v2344_v43, 8.507059e+37 }
0x1765   : > { %680 = vst.msk [vmem:[%s3922_s15] sm:$0xf] %vm352_vm0, %v675_v8 }
0x1767   : > { %v3088_v1 = vpop.eup %3087 }
0x1768   : > { %v3090_v59 = vpop.eup %3089  ;;  %v2334_v54 = vadd.f32 1.0, %v3088_v1 }
0x1769   : > { %v2336_v16 = vmul.f32 %v3090_v59, %v2333_v26  ;;  %v924_v63 = vpop.permute.xlu0 %923  ;;  %v1676_v30 = vpop.permute.xlu2 %1675  ;;  %vm2341_vm14 = vweird.f32 %v3090_v59 }
0x176a   : > { %3091 = vrcp.f32 %v2334_v54  ;;  %2734 = vst.msk [vmem:[%s3922_s15 + $0x8] sm:$0xf] %vm352_vm0, %v924_v63  ;;  %vm2342_vm2 = vmor %vm2340_vm15, %vm2341_vm14  ;;  %v2361_v21 = vand.u32 2147483648, %v2334_v54  ;;  %v2359_v52 = vand.u32 2147483647, %v2334_v54  ;;  %vm2355_vm8 = vweird.f32 %v2334_v54 }
0x176b   : > { %v2337_v33 = vsub.f32 1.0, %v2336_v16  ;;  %2774 = vst.msk [vmem:[%s3922_s15 + $0x24] sm:$0xf] %vm352_vm0, %v1676_v30 }
0x176c   : > { %v926_v3 = vpop.permute.xlu1 %925  ;;  %v2362_v58 = vor.u32 1.1754944e-38, %v2361_v21  ;;  %vm2360_vm11 = vcmp.eq.f32.partialorder %v2359_v52, 8.507059e+37  ;;  %v2473_v29 = vld [vmem:[%s3922_s15] sm:$0xff] (%p3253_p5)  }
0x176d   : > { %2735 = vst.msk [vmem:[%s3922_s15 + $0xc] sm:$0xf] %vm352_vm0, %v926_v3  ;;  %v2338_v42 = vmul.f32 %v3090_v59, %v2337_v33 }
0x176e   : > { %2474 = vst [vmem:[%s2456_s16] sm:$0xff] (%p3253_p5), %v2473_v29  }
0x176f   : > { %v2339_v19 = vadd.f32 %v3090_v59, %v2338_v42 }
0x1770   : > { %v3092_v5 = vpop.eup %3091 }
0x1771   : > { %v2351_v44 = vmul.f32 %v3092_v5, %v2334_v54  ;;  %v1176_v45 = vpop.permute.xlu0 %1175  ;;  %v2174_v4 = vpop.permute.xlu2 %2173  ;;  %v2343_v47 = vsel %vm2342_vm2, %v3090_v59, %v2339_v19  ;;  %vm2356_vm5 = vweird.f32 %v3092_v5 }
0x1772   : > { %2748 = vst.msk [vmem:[%s3922_s15 + $0x14] sm:$0xf] %vm352_vm0, %v1176_v45  ;;  %v2348_v49 = vsel %vm2345_vm3, %v2347_v11, %v2343_v47  ;;  %vm2357_vm1 = vmor %vm2355_vm8, %vm2356_vm5 }
0x1773   : > { %v2352_v7 = vsub.f32 1.0, %v2351_v44  ;;  %2799 = vst.msk [vmem:[%s3922_s15 + $0x30] sm:$0xf] %vm352_vm0, %v2174_v4  ;;  %v2375_v51 = vmul.f32 %v2370_v32, %v2348_v49 }
0x1774   : > { %v2414_v9 = vpop.permute.xlu1 %2413  ;;  %v2477_v34 = vld [vmem:[%s3922_s15 + $0x8] sm:$0xff] (%p3253_p5)  }
0x1775   : > { %v2353_v60 = vmul.f32 %v3092_v5, %v2352_v7  ;;  %2419 = vst.msk [vmem:[#allocation3] sm:$0xff] %vm357_vm4, %v2414_v9  ;;  %v2377_v31 = vpack.c.bf16 %v2375_v51, %v2375_v51 }
0x1776   : > { %2478 = vst [vmem:[%s2456_s16 + $0x10] sm:$0xff] (%p3253_p5), %v2477_v34  }
0x1777   : > { %v2354_v0 = vadd.f32 %v3092_v5, %v2353_v60  ;;  %2423 = vrot.lane.b32.xlu2 %v2377_v31, %s3178_s7  ;;  %v2380_v55 = vshrl.u32 %v2377_v31, 16  ;;  %v2383_v61 = vshll.u32 %v2377_v31, 16 }
0x1779   : > { %v2358_v57 = vsel %vm2357_vm1, %v3092_v5, %v2354_v0  ;;  %v1426_v39 = vpop.permute.xlu0 %1425  ;;  %v2382_v28 = vrot.slane %v2380_v55, 7  ;;  %v2481_v53 = vld [vmem:[%s3922_s15 + $0x10] sm:$0xff] (%p3253_p5)  }
0x177a   : > { %v2363_v50 = vsel %vm2360_vm11, %v2362_v58, %v2358_v57  ;;  %2761 = vst.msk [vmem:[%s3922_s15 + $0x1c] sm:$0xf] %vm352_vm0, %v1426_v39 }
0x177b   : > { %v2376_v46 = vmul.f32 %v2372_v12, %v2363_v50  ;;  %v2385_v36 = vor.u32 %v2383_v61, %v2382_v28  ;;  %v2386_v2 = vrot.slane %v2382_v28, 4  ;;  %2482 = vst [vmem:[%s2456_s16 + $0x20] sm:$0xff] (%p3253_p5), %v2481_v53  }
0x177c   : > { %v2435_v17 = vld [vmem:[#allocation3] sm:$0xff]  ;;  %v1674_v14 = vpop.permute.xlu1 %1673 }
0x177d   : > { %v2378_v41 = vpack.c.bf16 %v2376_v46, %v2376_v46  ;;  %2437 = vst.msk [vmem:[%s3932_s10] sm:$0xff] %vm357_vm4, %v2435_v17  ;;  %2396 = vrot.lane.b32.xlu0 %v2385_v36, %s3178_s7 }
0x177e   : > { %2773 = vst.msk [vmem:[%s3922_s15 + $0x20] sm:$0xf] %vm352_vm0, %v1674_v14 }
0x177f   : > { %v2388_v13 = vshrl.u32 %v2378_v41, 16  ;;  %v2391_v25 = vshll.u32 %v2378_v41, 16 }
0x1781   : > { %v2390_v40 = vrot.slane %v2388_v13, 7  ;;  %v1924_v20 = vpop.permute.xlu0 %1923  ;;  %v2485_v12 = vld [vmem:[%s3922_s15 + $0x18] sm:$0xff] (%p3253_p5)  }
0x1782   : > { %2786 = vst.msk [vmem:[%s3922_s15 + $0x28] sm:$0xf] %vm352_vm0, %v1924_v20 }
0x1783   : > { %v2395_v22 = vrot.slane %v2390_v40, 4  ;;  %v2393_v32 = vor.u32 %v2391_v25, %v2390_v40  ;;  %2486 = vst [vmem:[%s2456_s16 + $0x30] sm:$0xff] (%p3253_p5), %v2485_v12  }
0x1784   : > { %v1926_v24 = vpop.permute.xlu1 %1925 }
0x1785   : > { %2787 = vst.msk [vmem:[%s3922_s15 + $0x2c] sm:$0xf] %vm352_vm0, %v1926_v24  ;;  %2400 = vrot.lane.b32.xlu1 %v2395_v22, %s3178_s7  ;;  %2425 = vrot.lane.b32.xlu0 %v2378_v41, %s3178_s7  ;;  %v2394_v18 = vsel %vm3406_vm7, %v2386_v2, %v2393_v32  ;;  %v2489_v56 = vld [vmem:[%s3922_s15 + $0x20] sm:$0xff] (%p3253_p5)  }
0x1786   : > { %2490 = vst [vmem:[%s2456_s16 + $0x40] sm:$0xff] (%p3253_p5), %v2489_v56  }
0x1789   : > { %v2176_v37 = vpop.permute.xlu0 %2175 }
0x178a   : > { %2800 = vst.msk [vmem:[%s3922_s15 + $0x34] sm:$0xf] %vm352_vm0, %v2176_v37 }
0x178c   : > { %v2493_v8 = vld [vmem:[%s3922_s15 + $0x28] sm:$0xff] (%p3253_p5)  }
0x178d   : > { %2398 = vrot.lane.b32.xlu1 %v2394_v18, %s3178_s7  ;;  %s2444_s7 = scalar_lea.sflag [#allocation7], %s3335_s13  ;;  %2494 = vst [vmem:[%s2456_s16 + $0x50] sm:$0xff] (%p3253_p5), %v2493_v8  }
0x1791   : > { %v2497_v1 = vld [vmem:[%s3922_s15 + $0x30] sm:$0xff] (%p3253_p5)  }
0x1792   : > { %2498 = vst [vmem:[%s2456_s16 + $0x60] sm:$0xff] (%p3253_p5), %v2497_v1  }
0x17d1   : > { %v2424_v35 = vpop.permute.xlu2 %2423 }
0x17d2   : > { %2812 = vst.msk [vmem:[%s3922_s15 + $0x38] sm:$0xf] %vm352_vm0, %v2424_v35 }
0x17ef   : > { %v2397_v48 = vpop.permute.xlu0 %2396 }
0x17f0   : > { %v2405_v10 = vsel %vm3417_vm9, %v2397_v48, %v2185_v62 }
0x17f1   : > { %2406 = vst [vmem:[#allocation2] sm:$0xf] %v2405_v10 }
0x17f7   : > { %v2401_v27 = vpop.permute.xlu1 %2400  ;;  %v2426_v15 = vpop.permute.xlu0 %2425 }
0x17f8   : > { %v2409_v26 = vsel %vm3425_vm10, %v2401_v27, %v2408_v6  ;;  %2813 = vst.msk [vmem:[%s3922_s15 + $0x3c] sm:$0xf] %vm352_vm0, %v2426_v15 }
0x17f9   : > { %2410 = vst [vmem:[#allocation2 + $0x8] sm:$0x1] %v2409_v26 }
0x17fc   : > { %2450 = sbr.rel (!%p3253_p5) target bundleno = 6146 (0x1802), region = 86 }
0x17ff   : > { %v2399_v23 = vpop.permute.xlu1 %2398  ;;  %v2501_v59 = vld [vmem:[%s3922_s15 + $0x38] sm:$0xff] (%p3253_p5)  }
0x1800   : > { %2407 = vst.msk [vmem:[#allocation2 + $0x4] sm:$0xf] %vm352_vm0, %v2399_v23 }
0x1801   : > { %2502 = vst [vmem:[%s2456_s16 + $0x70] sm:$0xff] %v2501_v59  }
0x1802 PF: > { %s2838_s17 = sshll.u32 %s3167_s21, 4  ;;  %s2566_s24 = sshll.u32 %s3932_s10, 4  ;;  %s2567_s24 = int_to_ptr.vmem [resolvable:$true] %s2566_s24 }
0x1803   : > { %s2565_s29 = scalar_lea.hbm %s4039_s5, %s2838_s17  ;;  %s3117_s14 = scalar_lea.hbm %s4039_s5, 32 }
0x1804   : > { %s2568_s8 = sshll.u32 %s2565_s29, 4  ;;  %s2569_s8 = int_to_ptr.hbm [resolvable:$true] %s2568_s8 }
0x1805   : > { %s3111_s9 = sshra.s32 %s2569_s8, 4  ;;  %s3112_s9 = int_to_ptr.hbm [resolvable:$true] %s3111_s9 }
0x1806   : > { %s3113_s11 = scalar_lea.hbm %s3112_s9, 16  ;;  %p3118_p3 = scmp.lt.s32.totalorder %s3112_s9, %s4039_s5 }
0x1807   : > { %p3114_p0 = scmp.ne.s32.totalorder %s3112_s9, %s3113_s11  ;;  %p3119_p4 = scmp.lt.s32.totalorder %s3117_s14, %s3113_s11 }
0x1809   : > { %p3115_p1 = pnand %p3114_p0, %p3253_p5  ;;  %p3120_p6 = por %p3119_p4, %p3118_p3 }
0x180b   : > { %p3116_p2 = pneg %p3115_p1 }
0x180d   : > { %p3121_p7 = pnand %p3120_p6, %p3116_p2 }
0x180f   : > { %3124 = shalt.err (!%p3121_p7)
}
0x1810   : > { %s3182_s16 = smov 128   ;;  %s3183_s17 = smov 8  }
0x1811   : > { %2839 = dma.vmem_to_hbm [thread:$0]  (%p3253_p5), %s2567_s24, 256, %s2569_s8, %s2444_s7, %s3182_s16, %s3182_s16, %s3183_s17  }
0x1812 PF: > { %s2590_s25 = sand.u32 1, %s3155_s18   ;;  %p2842_p8 = pnand %p2682_p10, %p3264_p9 }
0x1813   : > { %s2591_s27 = scalar_lea.sflag [#allocation7], %s2590_s25 }
0x1814   : > { %p2843_p11 = pneg %p2842_p8 }
0x1816   : > { %3150 = dma.done.wait (%p2843_p11), %s2591_s27, 256  }
0x1817   : > { %3152 = vsyncadd (%p2843_p11), %s2591_s27, 4294967040  ;;  %s19_s23 = sadd.s32 1, %s3175_s23   ;;  %s4053_s18 = smov %s3159_s19 }
0x1818   : > { %p16_p12 = scmp.ge.s32.totalorder %s19_s23, 4   ;;  %s4054_s19 = smov %s3163_s20 }
0x1819   : > { %s4055_s20 = smov %s3262_s30  ;;  %s4056_s21 = smov %s3171_s22 }
0x181a   : > { %s4057_s22 = smov %s4059_s26  ;;  %18 = sbr.rel (!%p16_p12) target bundleno = 4 (0x4), region = 189 }
0x181f   :  { %2597 = vsyncpa [#allocation7], 1 }
0x1820   :  { %2599 = vsyncpa [#allocation7 + $0x1], 1 }

</bundles_post_ra>
